<compile_context>
chip_gen: v6e
topology: v6e:2x2x1
jax: 0.10.0
libtpu: 0.0.40
codegen_flags: <defaults>
</compile_context>

<pallas_src>
import jax
import jax.numpy as jnp
from jax.experimental import pallas as pl
from jax.experimental.pallas import tpu as pltpu


# ----------------------------- fused conv kernel ------------------------------

def _conv3x3_bn_relu_kernel(x0_ref, x1_ref, x2_ref, w_ref, b_ref, o_ref):
    """Fused 3x3 conv (as 9 accumulated dots) + folded-BN bias + ReLU.

    x{0,1,2}_ref : (1, TILE_H, W+2, Cin)  bf16   row-shifted padded input views
    w_ref        : (9, Cin, Cout)         bf16   BN-folded weights, tap-major
    b_ref        : (1, Cout)              f32    BN-folded bias
    o_ref        : (1, TILE_H, W, Cout)   f32
    """
    th = o_ref.shape[1]
    W = o_ref.shape[2]
    cout = o_ref.shape[3]

    acc = jnp.zeros((th * W, cout), jnp.float32)
    rows = (x0_ref, x1_ref, x2_ref)
    for dh in range(3):
        xr = rows[dh][0]                                  # (TILE_H, W+2, Cin)
        for dw in range(3):
            xs = xr[:, dw:dw + W, :]                      # (TILE_H, W, Cin)
            xs = xs.reshape(th * W, xs.shape[-1])         # (TILE_H*W, Cin)
            acc = acc + jnp.dot(xs, w_ref[dh * 3 + dw],
                                preferred_element_type=jnp.float32)

    y = jnp.maximum(acc + b_ref[...], 0.0)                # bias + ReLU epilogue (f32)
    o_ref[...] = y.reshape(1, th, W, cout).astype(o_ref.dtype)


def _pick_tile_h(H, W, Cin, Cout, vmem_budget_bytes=8 * 1024 * 1024,
                 max_rows=2048):
    """Largest divisor of H whose per-step working set (double buffered) fits budget."""
    best = 1
    for th in range(1, H + 1):
        if H % th:
            continue
        if th * W > max_rows:
            continue
        in_bytes = 3 * th * (W + 2) * Cin * 2             # three bf16 input views
        out_bytes = th * W * Cout * 4                     # f32 output tile
        if 2 * (in_bytes + out_bytes) <= vmem_budget_bytes:
            best = th
    return best


def conv3x3_bn_relu(x, w, b, bn, eps=1e-5):
    """x: (N,H,W,Cin) f32, w: (Cout,Cin,3,3), b: (Cout,), bn: {gamma,beta,mean,var}."""
    N, H, W, Cin = x.shape
    Cout = w.shape[0]

    # Fold inference-mode BatchNorm + conv bias into the weights / bias.
    scale = bn['gamma'] / jnp.sqrt(bn['var'] + eps)                 # (Cout,)
    shift = (b - bn['mean']) * scale + bn['beta']                   # (Cout,)
    wf = w * scale[:, None, None, None]                             # (Cout,Cin,3,3)
    wm = jnp.transpose(wf, (2, 3, 1, 0)).reshape(9, Cin, Cout).astype(jnp.bfloat16)
    bias = shift.reshape(1, Cout).astype(jnp.float32)

    # Pad spatially, cast to bf16, build the three row-shifted views (no 9x im2col).
    xp = jnp.pad(x, ((0, 0), (1, 1), (1, 1), (0, 0))).astype(jnp.bfloat16)
    Wp = W + 2
    x0 = xp[:, 0:H]
    x1 = xp[:, 1:H + 1]
    x2 = xp[:, 2:H + 2]                                             # each (N,H,Wp,Cin)

    th = _pick_tile_h(H, W, Cin, Cout)
    grid = (N, H // th)

    xin_spec = pl.BlockSpec((1, th, Wp, Cin), lambda n, h: (n, h, 0, 0))
    return pl.pallas_call(
        _conv3x3_bn_relu_kernel,
        out_shape=jax.ShapeDtypeStruct((N, H, W, Cout), jnp.float32),
        grid=grid,
        in_specs=[xin_spec, xin_spec, xin_spec,
                  pl.BlockSpec((9, Cin, Cout), lambda n, h: (0, 0, 0)),
                  pl.BlockSpec((1, Cout), lambda n, h: (0, 0))],
        out_specs=pl.BlockSpec((1, th, W, Cout), lambda n, h: (n, h, 0, 0)),
        compiler_params=pltpu.CompilerParams(
            dimension_semantics=("parallel", "parallel")),
    )(x0, x1, x2, wm, bias)


# ------------------------------ module forward --------------------------------

def first_double_conv(params, x_nchw):
    """First_DoubleConv forward.  Input/output in PyTorch NCHW layout."""
    x = jnp.transpose(x_nchw, (0, 2, 3, 1)).astype(jnp.float32)     # NHWC inside
    x = conv3x3_bn_relu(x, params['c1_w'], params['c1_b'], params['bn1'])
    x = conv3x3_bn_relu(x, params['c2_w'], params['c2_b'], params['bn2'])
    return jnp.transpose(x, (0, 3, 1, 2))                           # back to NCHW


def first_double_conv_ref(params, x_nchw, eps=1e-5):
    """Pure-JAX reference (same bf16 matmul inputs / f32 accumulation) for checking."""
    def conv_bn_relu(x, w, b, bn):
        scale = bn['gamma'] / jnp.sqrt(bn['var'] + eps)
        shift = (b - bn['mean']) * scale + bn['beta']
        wf = (w * scale[:, None, None, None])
        whwio = jnp.transpose(wf, (2, 3, 1, 0)).astype(jnp.bfloat16)  # HWIO
        y = jax.lax.conv_general_dilated(
            x.astype(jnp.bfloat16), whwio, (1, 1), 'SAME',
            dimension_numbers=('NHWC', 'HWIO', 'NHWC'),
            preferred_element_type=jnp.float32)
        return jnp.maximum(y + shift.astype(jnp.float32), 0.0)

    x = jnp.transpose(x_nchw, (0, 2, 3, 1)).astype(jnp.float32)
    x = conv_bn_relu(x, params['c1_w'], params['c1_b'], params['bn1'])
    x = conv_bn_relu(x, params['c2_w'], params['c2_b'], params['bn2'])
    return jnp.transpose(x, (0, 3, 1, 2))


# --------------------------- parameter initialization --------------------------

class KeyGen:
    def __init__(self, key):
        self._key = key
        self._i = 0

    def __call__(self):
        self._i += 1
        return jax.random.fold_in(self._key, self._i)


def init_bn(kg, c):
    return {'gamma': 1.0 + 0.1 * jax.random.normal(kg(), (c,), jnp.float32),
            'beta': 0.1 * jax.random.normal(kg(), (c,), jnp.float32),
            'mean': 0.1 * jax.random.normal(kg(), (c,), jnp.float32),
            'var': 1.0 + 0.1 * jax.random.uniform(kg(), (c,), jnp.float32)}


def init_params(key, in_ch, out_ch):
    kg = KeyGen(key)
    return {
        'c1_w': 0.1 * jax.random.normal(kg(), (out_ch, in_ch, 3, 3), jnp.float32),
        'c1_b': 0.1 * jax.random.normal(kg(), (out_ch,), jnp.float32),
        'bn1': init_bn(kg, out_ch),
        'c2_w': 0.1 * jax.random.normal(kg(), (out_ch, out_ch, 3, 3), jnp.float32),
        'c2_b': 0.1 * jax.random.normal(kg(), (out_ch,), jnp.float32),
        'bn2': init_bn(kg, out_ch),
    }


# ------------------------------------ main -------------------------------------

if __name__ == "__main__":
    in_ch, out_ch = 3, 32          # USSFCNet stem: First_DoubleConv(3, 64*0.5)
    N, H, W = 2, 16, 16

    params = init_params(jax.random.PRNGKey(0), in_ch, out_ch)
    kx = jax.random.fold_in(jax.random.PRNGKey(0), 1234)
    x = jax.random.normal(kx, (N, in_ch, H, W), jnp.float32)

    fwd = jax.jit(first_double_conv)
    out = jax.block_until_ready(fwd(params, x))

    assert out.shape == (N, out_ch, H, W), out.shape
    assert bool(jnp.all(jnp.isfinite(out)))
    assert bool(jnp.all(out >= 0.0))  # ReLU epilogue

    ref = first_double_conv_ref(params, x)
    max_err = float(jnp.max(jnp.abs(out - ref)))
    assert max_err < 2e-2, f"max abs error vs reference: {max_err}"

    print("KERNEL_OK")
</pallas_src>

<mosaic_0001>
module attributes {stable_mosaic.version = 11 : i64} {
  func.func @_conv3x3_bn_relu_kernel(%arg0: i32, %arg1: i32, %arg2: memref<1x16x18x3xbf16, #tpu.memory_space<vmem>>, %arg3: memref<1x16x18x3xbf16, #tpu.memory_space<vmem>>, %arg4: memref<1x16x18x3xbf16, #tpu.memory_space<vmem>>, %arg5: memref<9x3x32xbf16, #tpu.memory_space<vmem>>, %arg6: memref<1x32xf32, #tpu.memory_space<vmem>>, %arg7: memref<1x16x16x32xf32, #tpu.memory_space<vmem>>) attributes {dimension_semantics = [#tpu.dimension_semantics<parallel>, #tpu.dimension_semantics<parallel>], iteration_bounds = array<i64: 2, 1>, scalar_prefetch = 0 : i64, scratch_operands = 0 : i64, tpu.core_type = #tpu.core_type<tc>, window_params = [{transform_indices = @transform_0, window_bounds = array<i64: 1, 16, 18, 3>}, {transform_indices = @transform_1, window_bounds = array<i64: 1, 16, 18, 3>}, {transform_indices = @transform_2, window_bounds = array<i64: 1, 16, 18, 3>}, {pipeline_mode = #tpu.pipeline_mode<synchronous>, transform_indices = @transform_3, window_bounds = array<i64: 9, 3, 32>}, {pipeline_mode = #tpu.pipeline_mode<synchronous>, transform_indices = @transform_4, window_bounds = array<i64: 1, 32>}, {transform_indices = @transform_5, window_bounds = array<i64: 1, 16, 16, 32>}]} {
    %cst = arith.constant 0.000000e+00 : f32
    %0 = vector.broadcast %cst : f32 to vector<256x32xf32>
    %c0 = arith.constant 0 : index
    %c0_0 = arith.constant 0 : index
    %c0_1 = arith.constant 0 : index
    %c0_2 = arith.constant 0 : index
    %1 = vector.load %arg2[%c0, %c0_0, %c0_1, %c0_2] : memref<1x16x18x3xbf16, #tpu.memory_space<vmem>>, vector<1x16x18x3xbf16>
    %2 = vector.shape_cast %1 : vector<1x16x18x3xbf16> to vector<16x18x3xbf16>
    %3 = vector.extract_strided_slice %2 {offsets = [0, 0, 0], sizes = [16, 16, 3], strides = [1, 1, 1]} : vector<16x18x3xbf16> to vector<16x16x3xbf16>
    %4 = vector.shape_cast %3 : vector<16x16x3xbf16> to vector<256x3xbf16>
    %c0_3 = arith.constant 0 : index
    %c0_4 = arith.constant 0 : index
    %c0_5 = arith.constant 0 : index
    %5 = vector.load %arg5[%c0_3, %c0_4, %c0_5] : memref<9x3x32xbf16, #tpu.memory_space<vmem>>, vector<1x3x32xbf16>
    %6 = vector.shape_cast %5 : vector<1x3x32xbf16> to vector<3x32xbf16>
    %cst_6 = arith.constant dense<0.000000e+00> : vector<256x32xf32>
    %7 = tpu.matmul %4, %6, %cst_6 {dimension_numbers = #tpu.dot_dimension_numbers<[1], [0], [0], [1], [0, 0, 1, 1], [], []>} : vector<256x3xbf16>, vector<3x32xbf16>, vector<256x32xf32> -> vector<256x32xf32>
    %8 = arith.addf %0, %7 : vector<256x32xf32>
    %9 = vector.extract_strided_slice %2 {offsets = [0, 1, 0], sizes = [16, 16, 3], strides = [1, 1, 1]} : vector<16x18x3xbf16> to vector<16x16x3xbf16>
    %10 = vector.shape_cast %9 : vector<16x16x3xbf16> to vector<256x3xbf16>
    %c1 = arith.constant 1 : index
    %c0_7 = arith.constant 0 : index
    %c0_8 = arith.constant 0 : index
    %11 = vector.load %arg5[%c1, %c0_7, %c0_8] : memref<9x3x32xbf16, #tpu.memory_space<vmem>>, vector<1x3x32xbf16>
    %12 = vector.shape_cast %11 : vector<1x3x32xbf16> to vector<3x32xbf16>
    %cst_9 = arith.constant dense<0.000000e+00> : vector<256x32xf32>
    %13 = tpu.matmul %10, %12, %cst_9 {dimension_numbers = #tpu.dot_dimension_numbers<[1], [0], [0], [1], [0, 0, 1, 1], [], []>} : vector<256x3xbf16>, vector<3x32xbf16>, vector<256x32xf32> -> vector<256x32xf32>
    %14 = arith.addf %8, %13 : vector<256x32xf32>
    %15 = vector.extract_strided_slice %2 {offsets = [0, 2, 0], sizes = [16, 16, 3], strides = [1, 1, 1]} : vector<16x18x3xbf16> to vector<16x16x3xbf16>
    %16 = vector.shape_cast %15 : vector<16x16x3xbf16> to vector<256x3xbf16>
    %c2 = arith.constant 2 : index
    %c0_10 = arith.constant 0 : index
    %c0_11 = arith.constant 0 : index
    %17 = vector.load %arg5[%c2, %c0_10, %c0_11] : memref<9x3x32xbf16, #tpu.memory_space<vmem>>, vector<1x3x32xbf16>
    %18 = vector.shape_cast %17 : vector<1x3x32xbf16> to vector<3x32xbf16>
    %cst_12 = arith.constant dense<0.000000e+00> : vector<256x32xf32>
    %19 = tpu.matmul %16, %18, %cst_12 {dimension_numbers = #tpu.dot_dimension_numbers<[1], [0], [0], [1], [0, 0, 1, 1], [], []>} : vector<256x3xbf16>, vector<3x32xbf16>, vector<256x32xf32> -> vector<256x32xf32>
    %20 = arith.addf %14, %19 : vector<256x32xf32>
    %c0_13 = arith.constant 0 : index
    %c0_14 = arith.constant 0 : index
    %c0_15 = arith.constant 0 : index
    %c0_16 = arith.constant 0 : index
    %21 = vector.load %arg3[%c0_13, %c0_14, %c0_15, %c0_16] : memref<1x16x18x3xbf16, #tpu.memory_space<vmem>>, vector<1x16x18x3xbf16>
    %22 = vector.shape_cast %21 : vector<1x16x18x3xbf16> to vector<16x18x3xbf16>
    %23 = vector.extract_strided_slice %22 {offsets = [0, 0, 0], sizes = [16, 16, 3], strides = [1, 1, 1]} : vector<16x18x3xbf16> to vector<16x16x3xbf16>
    %24 = vector.shape_cast %23 : vector<16x16x3xbf16> to vector<256x3xbf16>
    %c3 = arith.constant 3 : index
    %c0_17 = arith.constant 0 : index
    %c0_18 = arith.constant 0 : index
    %25 = vector.load %arg5[%c3, %c0_17, %c0_18] : memref<9x3x32xbf16, #tpu.memory_space<vmem>>, vector<1x3x32xbf16>
    %26 = vector.shape_cast %25 : vector<1x3x32xbf16> to vector<3x32xbf16>
    %cst_19 = arith.constant dense<0.000000e+00> : vector<256x32xf32>
    %27 = tpu.matmul %24, %26, %cst_19 {dimension_numbers = #tpu.dot_dimension_numbers<[1], [0], [0], [1], [0, 0, 1, 1], [], []>} : vector<256x3xbf16>, vector<3x32xbf16>, vector<256x32xf32> -> vector<256x32xf32>
    %28 = arith.addf %20, %27 : vector<256x32xf32>
    %29 = vector.extract_strided_slice %22 {offsets = [0, 1, 0], sizes = [16, 16, 3], strides = [1, 1, 1]} : vector<16x18x3xbf16> to vector<16x16x3xbf16>
    %30 = vector.shape_cast %29 : vector<16x16x3xbf16> to vector<256x3xbf16>
    %c4 = arith.constant 4 : index
    %c0_20 = arith.constant 0 : index
    %c0_21 = arith.constant 0 : index
    %31 = vector.load %arg5[%c4, %c0_20, %c0_21] : memref<9x3x32xbf16, #tpu.memory_space<vmem>>, vector<1x3x32xbf16>
    %32 = vector.shape_cast %31 : vector<1x3x32xbf16> to vector<3x32xbf16>
    %cst_22 = arith.constant dense<0.000000e+00> : vector<256x32xf32>
    %33 = tpu.matmul %30, %32, %cst_22 {dimension_numbers = #tpu.dot_dimension_numbers<[1], [0], [0], [1], [0, 0, 1, 1], [], []>} : vector<256x3xbf16>, vector<3x32xbf16>, vector<256x32xf32> -> vector<256x32xf32>
    %34 = arith.addf %28, %33 : vector<256x32xf32>
    %35 = vector.extract_strided_slice %22 {offsets = [0, 2, 0], sizes = [16, 16, 3], strides = [1, 1, 1]} : vector<16x18x3xbf16> to vector<16x16x3xbf16>
    %36 = vector.shape_cast %35 : vector<16x16x3xbf16> to vector<256x3xbf16>
    %c5 = arith.constant 5 : index
    %c0_23 = arith.constant 0 : index
    %c0_24 = arith.constant 0 : index
    %37 = vector.load %arg5[%c5, %c0_23, %c0_24] : memref<9x3x32xbf16, #tpu.memory_space<vmem>>, vector<1x3x32xbf16>
    %38 = vector.shape_cast %37 : vector<1x3x32xbf16> to vector<3x32xbf16>
    %cst_25 = arith.constant dense<0.000000e+00> : vector<256x32xf32>
    %39 = tpu.matmul %36, %38, %cst_25 {dimension_numbers = #tpu.dot_dimension_numbers<[1], [0], [0], [1], [0, 0, 1, 1], [], []>} : vector<256x3xbf16>, vector<3x32xbf16>, vector<256x32xf32> -> vector<256x32xf32>
    %40 = arith.addf %34, %39 : vector<256x32xf32>
    %c0_26 = arith.constant 0 : index
    %c0_27 = arith.constant 0 : index
    %c0_28 = arith.constant 0 : index
    %c0_29 = arith.constant 0 : index
    %41 = vector.load %arg4[%c0_26, %c0_27, %c0_28, %c0_29] : memref<1x16x18x3xbf16, #tpu.memory_space<vmem>>, vector<1x16x18x3xbf16>
    %42 = vector.shape_cast %41 : vector<1x16x18x3xbf16> to vector<16x18x3xbf16>
    %43 = vector.extract_strided_slice %42 {offsets = [0, 0, 0], sizes = [16, 16, 3], strides = [1, 1, 1]} : vector<16x18x3xbf16> to vector<16x16x3xbf16>
    %44 = vector.shape_cast %43 : vector<16x16x3xbf16> to vector<256x3xbf16>
    %c6 = arith.constant 6 : index
    %c0_30 = arith.constant 0 : index
    %c0_31 = arith.constant 0 : index
    %45 = vector.load %arg5[%c6, %c0_30, %c0_31] : memref<9x3x32xbf16, #tpu.memory_space<vmem>>, vector<1x3x32xbf16>
    %46 = vector.shape_cast %45 : vector<1x3x32xbf16> to vector<3x32xbf16>
    %cst_32 = arith.constant dense<0.000000e+00> : vector<256x32xf32>
    %47 = tpu.matmul %44, %46, %cst_32 {dimension_numbers = #tpu.dot_dimension_numbers<[1], [0], [0], [1], [0, 0, 1, 1], [], []>} : vector<256x3xbf16>, vector<3x32xbf16>, vector<256x32xf32> -> vector<256x32xf32>
    %48 = arith.addf %40, %47 : vector<256x32xf32>
    %49 = vector.extract_strided_slice %42 {offsets = [0, 1, 0], sizes = [16, 16, 3], strides = [1, 1, 1]} : vector<16x18x3xbf16> to vector<16x16x3xbf16>
    %50 = vector.shape_cast %49 : vector<16x16x3xbf16> to vector<256x3xbf16>
    %c7 = arith.constant 7 : index
    %c0_33 = arith.constant 0 : index
    %c0_34 = arith.constant 0 : index
    %51 = vector.load %arg5[%c7, %c0_33, %c0_34] : memref<9x3x32xbf16, #tpu.memory_space<vmem>>, vector<1x3x32xbf16>
    %52 = vector.shape_cast %51 : vector<1x3x32xbf16> to vector<3x32xbf16>
    %cst_35 = arith.constant dense<0.000000e+00> : vector<256x32xf32>
    %53 = tpu.matmul %50, %52, %cst_35 {dimension_numbers = #tpu.dot_dimension_numbers<[1], [0], [0], [1], [0, 0, 1, 1], [], []>} : vector<256x3xbf16>, vector<3x32xbf16>, vector<256x32xf32> -> vector<256x32xf32>
    %54 = arith.addf %48, %53 : vector<256x32xf32>
    %55 = vector.extract_strided_slice %42 {offsets = [0, 2, 0], sizes = [16, 16, 3], strides = [1, 1, 1]} : vector<16x18x3xbf16> to vector<16x16x3xbf16>
    %56 = vector.shape_cast %55 : vector<16x16x3xbf16> to vector<256x3xbf16>
    %c8 = arith.constant 8 : index
    %c0_36 = arith.constant 0 : index
    %c0_37 = arith.constant 0 : index
    %57 = vector.load %arg5[%c8, %c0_36, %c0_37] : memref<9x3x32xbf16, #tpu.memory_space<vmem>>, vector<1x3x32xbf16>
    %58 = vector.shape_cast %57 : vector<1x3x32xbf16> to vector<3x32xbf16>
    %cst_38 = arith.constant dense<0.000000e+00> : vector<256x32xf32>
    %59 = tpu.matmul %56, %58, %cst_38 {dimension_numbers = #tpu.dot_dimension_numbers<[1], [0], [0], [1], [0, 0, 1, 1], [], []>} : vector<256x3xbf16>, vector<3x32xbf16>, vector<256x32xf32> -> vector<256x32xf32>
    %60 = arith.addf %54, %59 : vector<256x32xf32>
    %c0_39 = arith.constant 0 : index
    %c0_40 = arith.constant 0 : index
    %61 = vector.load %arg6[%c0_39, %c0_40] : memref<1x32xf32, #tpu.memory_space<vmem>>, vector<1x32xf32>
    %62 = vector.broadcast %61 : vector<1x32xf32> to vector<256x32xf32>
    %63 = arith.addf %60, %62 : vector<256x32xf32>
    %cst_41 = arith.constant 0.000000e+00 : f32
    %64 = vector.broadcast %cst_41 : f32 to vector<256x32xf32>
    %65 = arith.maximumf %63, %64 : vector<256x32xf32>
    %66 = vector.shape_cast %65 : vector<256x32xf32> to vector<1x16x16x32xf32>
    %c0_42 = arith.constant 0 : index
    %c0_43 = arith.constant 0 : index
    %c0_44 = arith.constant 0 : index
    %c0_45 = arith.constant 0 : index
    %67 = vector.load %arg7[%c0_42, %c0_43, %c0_44, %c0_45] : memref<1x16x16x32xf32, #tpu.memory_space<vmem>>, vector<1x16x16x32xf32>
    tpu.vector_store %arg7[%c0_42, %c0_43, %c0_44, %c0_45], %66 {strides = array<i32>} : memref<1x16x16x32xf32, #tpu.memory_space<vmem>>, vector<1x16x16x32xf32>,
    return
  }
  func.func @transform_0(%arg0: i32, %arg1: i32) -> (i32, i32, i32, i32) {
    %c0_i32 = arith.constant 0 : i32
    %c0_i32_0 = arith.constant 0 : i32
    %c0_i32_1 = arith.constant 0 : i32
    return %arg0, %arg1, %c0_i32, %c0_i32_0 : i32, i32, i32, i32
  }
  func.func @transform_1(%arg0: i32, %arg1: i32) -> (i32, i32, i32, i32) {
    %c0_i32 = arith.constant 0 : i32
    %c0_i32_0 = arith.constant 0 : i32
    %c0_i32_1 = arith.constant 0 : i32
    return %arg0, %arg1, %c0_i32, %c0_i32_0 : i32, i32, i32, i32
  }
  func.func @transform_2(%arg0: i32, %arg1: i32) -> (i32, i32, i32, i32) {
    %c0_i32 = arith.constant 0 : i32
    %c0_i32_0 = arith.constant 0 : i32
    %c0_i32_1 = arith.constant 0 : i32
    return %arg0, %arg1, %c0_i32, %c0_i32_0 : i32, i32, i32, i32
  }
  func.func @transform_3(%arg0: i32, %arg1: i32) -> (i32, i32, i32) {
    %c0_i32 = arith.constant 0 : i32
    %c0_i32_0 = arith.constant 0 : i32
    %c0_i32_1 = arith.constant 0 : i32
    %c0_i32_2 = arith.constant 0 : i32
    return %c0_i32, %c0_i32_0, %c0_i32_1 : i32, i32, i32
  }
  func.func @transform_4(%arg0: i32, %arg1: i32) -> (i32, i32) {
    %c0_i32 = arith.constant 0 : i32
    %c0_i32_0 = arith.constant 0 : i32
    %c0_i32_1 = arith.constant 0 : i32
    return %c0_i32, %c0_i32_0 : i32, i32
  }
  func.func @transform_5(%arg0: i32, %arg1: i32) -> (i32, i32, i32, i32) {
    %c0_i32 = arith.constant 0 : i32
    %c0_i32_0 = arith.constant 0 : i32
    %c0_i32_1 = arith.constant 0 : i32
    return %arg0, %arg1, %c0_i32, %c0_i32_0 : i32, i32, i32, i32
  }
}

module attributes {stable_mosaic.version = 11 : i64} {
  func.func @_conv3x3_bn_relu_kernel(%arg0: i32, %arg1: i32, %arg2: memref<1x16x18x32xbf16, #tpu.memory_space<vmem>>, %arg3: memref<1x16x18x32xbf16, #tpu.memory_space<vmem>>, %arg4: memref<1x16x18x32xbf16, #tpu.memory_space<vmem>>, %arg5: memref<9x32x32xbf16, #tpu.memory_space<vmem>>, %arg6: memref<1x32xf32, #tpu.memory_space<vmem>>, %arg7: memref<1x16x16x32xf32, #tpu.memory_space<vmem>>) attributes {dimension_semantics = [#tpu.dimension_semantics<parallel>, #tpu.dimension_semantics<parallel>], iteration_bounds = array<i64: 2, 1>, scalar_prefetch = 0 : i64, scratch_operands = 0 : i64, tpu.core_type = #tpu.core_type<tc>, window_params = [{transform_indices = @transform_0, window_bounds = array<i64: 1, 16, 18, 32>}, {transform_indices = @transform_1, window_bounds = array<i64: 1, 16, 18, 32>}, {transform_indices = @transform_2, window_bounds = array<i64: 1, 16, 18, 32>}, {pipeline_mode = #tpu.pipeline_mode<synchronous>, transform_indices = @transform_3, window_bounds = array<i64: 9, 32, 32>}, {pipeline_mode = #tpu.pipeline_mode<synchronous>, transform_indices = @transform_4, window_bounds = array<i64: 1, 32>}, {transform_indices = @transform_5, window_bounds = array<i64: 1, 16, 16, 32>}]} {
    %cst = arith.constant 0.000000e+00 : f32
    %0 = vector.broadcast %cst : f32 to vector<256x32xf32>
    %c0 = arith.constant 0 : index
    %c0_0 = arith.constant 0 : index
    %c0_1 = arith.constant 0 : index
    %c0_2 = arith.constant 0 : index
    %1 = vector.load %arg2[%c0, %c0_0, %c0_1, %c0_2] : memref<1x16x18x32xbf16, #tpu.memory_space<vmem>>, vector<1x16x18x32xbf16>
    %2 = vector.shape_cast %1 : vector<1x16x18x32xbf16> to vector<16x18x32xbf16>
    %3 = vector.extract_strided_slice %2 {offsets = [0, 0, 0], sizes = [16, 16, 32], strides = [1, 1, 1]} : vector<16x18x32xbf16> to vector<16x16x32xbf16>
    %4 = vector.shape_cast %3 : vector<16x16x32xbf16> to vector<256x32xbf16>
    %c0_3 = arith.constant 0 : index
    %c0_4 = arith.constant 0 : index
    %c0_5 = arith.constant 0 : index
    %5 = vector.load %arg5[%c0_3, %c0_4, %c0_5] : memref<9x32x32xbf16, #tpu.memory_space<vmem>>, vector<1x32x32xbf16>
    %6 = vector.shape_cast %5 : vector<1x32x32xbf16> to vector<32x32xbf16>
    %cst_6 = arith.constant dense<0.000000e+00> : vector<256x32xf32>
    %7 = tpu.matmul %4, %6, %cst_6 {dimension_numbers = #tpu.dot_dimension_numbers<[1], [0], [0], [1], [0, 0, 1, 1], [], []>} : vector<256x32xbf16>, vector<32x32xbf16>, vector<256x32xf32> -> vector<256x32xf32>
    %8 = arith.addf %0, %7 : vector<256x32xf32>
    %9 = vector.extract_strided_slice %2 {offsets = [0, 1, 0], sizes = [16, 16, 32], strides = [1, 1, 1]} : vector<16x18x32xbf16> to vector<16x16x32xbf16>
    %10 = vector.shape_cast %9 : vector<16x16x32xbf16> to vector<256x32xbf16>
    %c1 = arith.constant 1 : index
    %c0_7 = arith.constant 0 : index
    %c0_8 = arith.constant 0 : index
    %11 = vector.load %arg5[%c1, %c0_7, %c0_8] : memref<9x32x32xbf16, #tpu.memory_space<vmem>>, vector<1x32x32xbf16>
    %12 = vector.shape_cast %11 : vector<1x32x32xbf16> to vector<32x32xbf16>
    %cst_9 = arith.constant dense<0.000000e+00> : vector<256x32xf32>
    %13 = tpu.matmul %10, %12, %cst_9 {dimension_numbers = #tpu.dot_dimension_numbers<[1], [0], [0], [1], [0, 0, 1, 1], [], []>} : vector<256x32xbf16>, vector<32x32xbf16>, vector<256x32xf32> -> vector<256x32xf32>
    %14 = arith.addf %8, %13 : vector<256x32xf32>
    %15 = vector.extract_strided_slice %2 {offsets = [0, 2, 0], sizes = [16, 16, 32], strides = [1, 1, 1]} : vector<16x18x32xbf16> to vector<16x16x32xbf16>
    %16 = vector.shape_cast %15 : vector<16x16x32xbf16> to vector<256x32xbf16>
    %c2 = arith.constant 2 : index
    %c0_10 = arith.constant 0 : index
    %c0_11 = arith.constant 0 : index
    %17 = vector.load %arg5[%c2, %c0_10, %c0_11] : memref<9x32x32xbf16, #tpu.memory_space<vmem>>, vector<1x32x32xbf16>
    %18 = vector.shape_cast %17 : vector<1x32x32xbf16> to vector<32x32xbf16>
    %cst_12 = arith.constant dense<0.000000e+00> : vector<256x32xf32>
    %19 = tpu.matmul %16, %18, %cst_12 {dimension_numbers = #tpu.dot_dimension_numbers<[1], [0], [0], [1], [0, 0, 1, 1], [], []>} : vector<256x32xbf16>, vector<32x32xbf16>, vector<256x32xf32> -> vector<256x32xf32>
    %20 = arith.addf %14, %19 : vector<256x32xf32>
    %c0_13 = arith.constant 0 : index
    %c0_14 = arith.constant 0 : index
    %c0_15 = arith.constant 0 : index
    %c0_16 = arith.constant 0 : index
    %21 = vector.load %arg3[%c0_13, %c0_14, %c0_15, %c0_16] : memref<1x16x18x32xbf16, #tpu.memory_space<vmem>>, vector<1x16x18x32xbf16>
    %22 = vector.shape_cast %21 : vector<1x16x18x32xbf16> to vector<16x18x32xbf16>
    %23 = vector.extract_strided_slice %22 {offsets = [0, 0, 0], sizes = [16, 16, 32], strides = [1, 1, 1]} : vector<16x18x32xbf16> to vector<16x16x32xbf16>
    %24 = vector.shape_cast %23 : vector<16x16x32xbf16> to vector<256x32xbf16>
    %c3 = arith.constant 3 : index
    %c0_17 = arith.constant 0 : index
    %c0_18 = arith.constant 0 : index
    %25 = vector.load %arg5[%c3, %c0_17, %c0_18] : memref<9x32x32xbf16, #tpu.memory_space<vmem>>, vector<1x32x32xbf16>
    %26 = vector.shape_cast %25 : vector<1x32x32xbf16> to vector<32x32xbf16>
    %cst_19 = arith.constant dense<0.000000e+00> : vector<256x32xf32>
    %27 = tpu.matmul %24, %26, %cst_19 {dimension_numbers = #tpu.dot_dimension_numbers<[1], [0], [0], [1], [0, 0, 1, 1], [], []>} : vector<256x32xbf16>, vector<32x32xbf16>, vector<256x32xf32> -> vector<256x32xf32>
    %28 = arith.addf %20, %27 : vector<256x32xf32>
    %29 = vector.extract_strided_slice %22 {offsets = [0, 1, 0], sizes = [16, 16, 32], strides = [1, 1, 1]} : vector<16x18x32xbf16> to vector<16x16x32xbf16>
    %30 = vector.shape_cast %29 : vector<16x16x32xbf16> to vector<256x32xbf16>
    %c4 = arith.constant 4 : index
    %c0_20 = arith.constant 0 : index
    %c0_21 = arith.constant 0 : index
    %31 = vector.load %arg5[%c4, %c0_20, %c0_21] : memref<9x32x32xbf16, #tpu.memory_space<vmem>>, vector<1x32x32xbf16>
    %32 = vector.shape_cast %31 : vector<1x32x32xbf16> to vector<32x32xbf16>
    %cst_22 = arith.constant dense<0.000000e+00> : vector<256x32xf32>
    %33 = tpu.matmul %30, %32, %cst_22 {dimension_numbers = #tpu.dot_dimension_numbers<[1], [0], [0], [1], [0, 0, 1, 1], [], []>} : vector<256x32xbf16>, vector<32x32xbf16>, vector<256x32xf32> -> vector<256x32xf32>
    %34 = arith.addf %28, %33 : vector<256x32xf32>
    %35 = vector.extract_strided_slice %22 {offsets = [0, 2, 0], sizes = [16, 16, 32], strides = [1, 1, 1]} : vector<16x18x32xbf16> to vector<16x16x32xbf16>
    %36 = vector.shape_cast %35 : vector<16x16x32xbf16> to vector<256x32xbf16>
    %c5 = arith.constant 5 : index
    %c0_23 = arith.constant 0 : index
    %c0_24 = arith.constant 0 : index
    %37 = vector.load %arg5[%c5, %c0_23, %c0_24] : memref<9x32x32xbf16, #tpu.memory_space<vmem>>, vector<1x32x32xbf16>
    %38 = vector.shape_cast %37 : vector<1x32x32xbf16> to vector<32x32xbf16>
    %cst_25 = arith.constant dense<0.000000e+00> : vector<256x32xf32>
    %39 = tpu.matmul %36, %38, %cst_25 {dimension_numbers = #tpu.dot_dimension_numbers<[1], [0], [0], [1], [0, 0, 1, 1], [], []>} : vector<256x32xbf16>, vector<32x32xbf16>, vector<256x32xf32> -> vector<256x32xf32>
    %40 = arith.addf %34, %39 : vector<256x32xf32>
    %c0_26 = arith.constant 0 : index
    %c0_27 = arith.constant 0 : index
    %c0_28 = arith.constant 0 : index
    %c0_29 = arith.constant 0 : index
    %41 = vector.load %arg4[%c0_26, %c0_27, %c0_28, %c0_29] : memref<1x16x18x32xbf16, #tpu.memory_space<vmem>>, vector<1x16x18x32xbf16>
    %42 = vector.shape_cast %41 : vector<1x16x18x32xbf16> to vector<16x18x32xbf16>
    %43 = vector.extract_strided_slice %42 {offsets = [0, 0, 0], sizes = [16, 16, 32], strides = [1, 1, 1]} : vector<16x18x32xbf16> to vector<16x16x32xbf16>
    %44 = vector.shape_cast %43 : vector<16x16x32xbf16> to vector<256x32xbf16>
    %c6 = arith.constant 6 : index
    %c0_30 = arith.constant 0 : index
    %c0_31 = arith.constant 0 : index
    %45 = vector.load %arg5[%c6, %c0_30, %c0_31] : memref<9x32x32xbf16, #tpu.memory_space<vmem>>, vector<1x32x32xbf16>
    %46 = vector.shape_cast %45 : vector<1x32x32xbf16> to vector<32x32xbf16>
    %cst_32 = arith.constant dense<0.000000e+00> : vector<256x32xf32>
    %47 = tpu.matmul %44, %46, %cst_32 {dimension_numbers = #tpu.dot_dimension_numbers<[1], [0], [0], [1], [0, 0, 1, 1], [], []>} : vector<256x32xbf16>, vector<32x32xbf16>, vector<256x32xf32> -> vector<256x32xf32>
    %48 = arith.addf %40, %47 : vector<256x32xf32>
    %49 = vector.extract_strided_slice %42 {offsets = [0, 1, 0], sizes = [16, 16, 32], strides = [1, 1, 1]} : vector<16x18x32xbf16> to vector<16x16x32xbf16>
    %50 = vector.shape_cast %49 : vector<16x16x32xbf16> to vector<256x32xbf16>
    %c7 = arith.constant 7 : index
    %c0_33 = arith.constant 0 : index
    %c0_34 = arith.constant 0 : index
    %51 = vector.load %arg5[%c7, %c0_33, %c0_34] : memref<9x32x32xbf16, #tpu.memory_space<vmem>>, vector<1x32x32xbf16>
    %52 = vector.shape_cast %51 : vector<1x32x32xbf16> to vector<32x32xbf16>
    %cst_35 = arith.constant dense<0.000000e+00> : vector<256x32xf32>
    %53 = tpu.matmul %50, %52, %cst_35 {dimension_numbers = #tpu.dot_dimension_numbers<[1], [0], [0], [1], [0, 0, 1, 1], [], []>} : vector<256x32xbf16>, vector<32x32xbf16>, vector<256x32xf32> -> vector<256x32xf32>
    %54 = arith.addf %48, %53 : vector<256x32xf32>
    %55 = vector.extract_strided_slice %42 {offsets = [0, 2, 0], sizes = [16, 16, 32], strides = [1, 1, 1]} : vector<16x18x32xbf16> to vector<16x16x32xbf16>
    %56 = vector.shape_cast %55 : vector<16x16x32xbf16> to vector<256x32xbf16>
    %c8 = arith.constant 8 : index
    %c0_36 = arith.constant 0 : index
    %c0_37 = arith.constant 0 : index
    %57 = vector.load %arg5[%c8, %c0_36, %c0_37] : memref<9x32x32xbf16, #tpu.memory_space<vmem>>, vector<1x32x32xbf16>
    %58 = vector.shape_cast %57 : vector<1x32x32xbf16> to vector<32x32xbf16>
    %cst_38 = arith.constant dense<0.000000e+00> : vector<256x32xf32>
    %59 = tpu.matmul %56, %58, %cst_38 {dimension_numbers = #tpu.dot_dimension_numbers<[1], [0], [0], [1], [0, 0, 1, 1], [], []>} : vector<256x32xbf16>, vector<32x32xbf16>, vector<256x32xf32> -> vector<256x32xf32>
    %60 = arith.addf %54, %59 : vector<256x32xf32>
    %c0_39 = arith.constant 0 : index
    %c0_40 = arith.constant 0 : index
    %61 = vector.load %arg6[%c0_39, %c0_40] : memref<1x32xf32, #tpu.memory_space<vmem>>, vector<1x32xf32>
    %62 = vector.broadcast %61 : vector<1x32xf32> to vector<256x32xf32>
    %63 = arith.addf %60, %62 : vector<256x32xf32>
    %cst_41 = arith.constant 0.000000e+00 : f32
    %64 = vector.broadcast %cst_41 : f32 to vector<256x32xf32>
    %65 = arith.maximumf %63, %64 : vector<256x32xf32>
    %66 = vector.shape_cast %65 : vector<256x32xf32> to vector<1x16x16x32xf32>
    %c0_42 = arith.constant 0 : index
    %c0_43 = arith.constant 0 : index
    %c0_44 = arith.constant 0 : index
    %c0_45 = arith.constant 0 : index
    %67 = vector.load %arg7[%c0_42, %c0_43, %c0_44, %c0_45] : memref<1x16x16x32xf32, #tpu.memory_space<vmem>>, vector<1x16x16x32xf32>
    tpu.vector_store %arg7[%c0_42, %c0_43, %c0_44, %c0_45], %66 {strides = array<i32>} : memref<1x16x16x32xf32, #tpu.memory_space<vmem>>, vector<1x16x16x32xf32>,
    return
  }
  func.func @transform_0(%arg0: i32, %arg1: i32) -> (i32, i32, i32, i32) {
    %c0_i32 = arith.constant 0 : i32
    %c0_i32_0 = arith.constant 0 : i32
    %c0_i32_1 = arith.constant 0 : i32
    return %arg0, %arg1, %c0_i32, %c0_i32_0 : i32, i32, i32, i32
  }
  func.func @transform_1(%arg0: i32, %arg1: i32) -> (i32, i32, i32, i32) {
    %c0_i32 = arith.constant 0 : i32
    %c0_i32_0 = arith.constant 0 : i32
    %c0_i32_1 = arith.constant 0 : i32
    return %arg0, %arg1, %c0_i32, %c0_i32_0 : i32, i32, i32, i32
  }
  func.func @transform_2(%arg0: i32, %arg1: i32) -> (i32, i32, i32, i32) {
    %c0_i32 = arith.constant 0 : i32
    %c0_i32_0 = arith.constant 0 : i32
    %c0_i32_1 = arith.constant 0 : i32
    return %arg0, %arg1, %c0_i32, %c0_i32_0 : i32, i32, i32, i32
  }
  func.func @transform_3(%arg0: i32, %arg1: i32) -> (i32, i32, i32) {
    %c0_i32 = arith.constant 0 : i32
    %c0_i32_0 = arith.constant 0 : i32
    %c0_i32_1 = arith.constant 0 : i32
    %c0_i32_2 = arith.constant 0 : i32
    return %c0_i32, %c0_i32_0, %c0_i32_1 : i32, i32, i32
  }
  func.func @transform_4(%arg0: i32, %arg1: i32) -> (i32, i32) {
    %c0_i32 = arith.constant 0 : i32
    %c0_i32_0 = arith.constant 0 : i32
    %c0_i32_1 = arith.constant 0 : i32
    return %c0_i32, %c0_i32_0 : i32, i32
  }
  func.func @transform_5(%arg0: i32, %arg1: i32) -> (i32, i32, i32, i32) {
    %c0_i32 = arith.constant 0 : i32
    %c0_i32_0 = arith.constant 0 : i32
    %c0_i32_1 = arith.constant 0 : i32
    return %arg0, %arg1, %c0_i32, %c0_i32_0 : i32, i32, i32, i32
  }
}

</mosaic_0001>

<bundles_post_ra>
// kernel: first_double_conv.2
= control target key start
LH: loop header
LB: loop body
LE: loop exit
PB: predicated region body
PF: predicated region fallthrough
CT: control target
= control target key end

     0   :  { %s5906_s18 = smov 0   ;;  %s5908_s19 = smov 0   ;;  %s8804_s0 = inlined_call_operand.vmem [shape: bf16[2,16,18,3], index: 0, kind: input, shape index: {}]   ;;  %s8805_s1 = inlined_call_operand.vmem [shape: bf16[2,16,18,3], index: 1, kind: input, shape index: {}]   ;;  %s8806_s2 = inlined_call_operand.vmem [shape: bf16[2,16,18,3], index: 2, kind: input, shape index: {}]   ;;  %s8807_s3 = inlined_call_operand.vmem [shape: bf16[9,3,32], index: 3, kind: input, shape index: {}]   ;;  %s8808_s4 = inlined_call_operand.vmem [shape: f32[1,32], index: 4, kind: input, shape index: {}]   ;;  %s8809_s5 = inlined_call_operand.vmem [shape: f32[2,16,16,32], index: 5, kind: output, shape index: {}]  }
   0x1   :  { %s5910_s20 = smov 0  }
   0x2 LB: > { %s27_s21 = sadd.s32 1, %s5869_s19  ;;  %p4962_p0 = scmp.ge.s32.totalorder %s5873_s20, 1  ;;  %s5873_s20 = sphi %s5910_s20, %s15_s20   ;;  %s5869_s19 = sphi %s5908_s19, %s9286_s19   ;;  %s5865_s18 = sphi %s5906_s18, %s9285_s18  }
   0x3   : > { %p29_p1 = scmp.ge.s32.totalorder %s27_s21, 2  ;;  %p245_p2 = scmp.lt.s32.totalorder %s5873_s20, 3 }
   0x5   : > { %s9288_s21 = smov (%p29_p1, %s27_s21), 0  ;;  %p246_p3 = pnand %p4962_p0, %p245_p2 }
   0x7   : > { %249 = sbr.rel (%p246_p3) target bundleno = 564 (0x234), region = 40 }
   0xc   : > { %v4968_v0 = vld [vmem:[%s8807_s3 + $0x2] sm:$0x3]  ;;  %vm883_vm0 = vcmask 1040384   ;;  %vm884_vm1 = vcmask 1041408   ;;  %p304_p4 = scmp.lt.s32.totalorder %s5865_s18, 1  ;;  %v5875_v1 = vmov 65535  }
   0xd   : > { %v885_v2 = vsel %vm883_vm0, 4294967295, %v5875_v1  ;;  %v396_v4 = vld [vmem:[%s8807_s3] sm:$0x3]  ;;  %v5049_v5 = vld [vmem:[%s8807_s3 + $0x4] sm:$0x3]  ;;  %vm834_vm4 = vcmask 23552  }
   0xe   : > { %v5927_v3 = vsel %vm884_vm1, %v885_v2, 0  ;;  %s9290_s18 = smov (!%p304_p4, %s5865_s18), 1  ;;  %vm397_vm2 = vsmask.f32 3328  ;;  %vm398_vm3 = vsmask.f32 7440 }
   0xf   : > { %8879 = vst [vmem:[#allocation2_spill] sm:$0xff] %v5927_v3  ;;  %v888_v6 = vand.u32 %v4968_v0, %v5927_v3  ;;  %v5939_v7 = vand.u32 %v5927_v3, %v396_v4  ;;  %v5942_v8 = vand.u32 %v5049_v5, %v5927_v3  ;;  %s5945_s28 = smul.u32 192, %s9290_s18  ;;  %v5082_v9 = vld [vmem:[%s8807_s3 + $0x6] sm:$0x3]  ;;  %v5115_v10 = vld [vmem:[%s8807_s3 + $0x8] sm:$0x3]  ;;  %vm6004_vm5 = vmor %vm397_vm2, %vm398_vm3 }
  0x10   : > { %v5986_v23 = vand.u32 %v5082_v9, %v5927_v3  ;;  %v5989_v24 = vand.u32 %v5115_v10, %v5927_v3  ;;  %v8880_v39 = vmov 0  ;;  %vm1359_vm6 = vcmask 1042432  }
  0x11   : > { %5775 = vmatprep.subr.bf16.mxu1 %v888_v6  ;;  %5469 = vmatprep.subr.bf16.mxu0 %v888_v6  ;;  %s5951_s6 = scalar_lea.vmem %s8804_s0, %s5945_s28  ;;  %v8881_v39 = vsel %vm6004_vm5, 4294967295, %v8880_v39  ;;  %vm1360_vm7 = vcmask 1046532   ;;  %s6488_s15 = scalar_lea.vmem %s8805_s1, %s5945_s28  ;;  %vm4787_vm9 = vcmask 261120  }
  0x12   : > { %5776 = vmatpush3.bf16.msra.mxu1 %v888_v6  ;;  %5470 = vmatpush3.bf16.msra.mxu0 %v888_v6  ;;  %v5960_v11 = vld [vmem:[%s5951_s6] sm:$0xf]  ;;  %v5963_v12 = vld [vmem:[%s5951_s6 + $0x4] sm:$0xf]  ;;  %v5966_v13 = vld [vmem:[%s5951_s6 + $0x8] sm:$0x1]  ;;  %s7015_s26 = scalar_lea.vmem %s8806_s2, %s5945_s28 }
  0x13   : > { %5503 = vmatprep.subr.bf16.mxu1 %v5939_v7  ;;  %5537 = vmatprep.subr.bf16.mxu0 %v5942_v8  ;;  %v401_v14 = vshrl.u32 %v5960_v11, 16  ;;  %v404_v15 = vshll.u32 %v5960_v11, 16  ;;  %v410_v16 = vshll.u32 %v5963_v12, 16  ;;  %v414_v17 = vshrl.u32 %v5963_v12, 16  ;;  %v5975_v18 = vld [vmem:[%s5951_s6 + $0x60] sm:$0xf]  ;;  %vm6277_vm8 = vmor %vm1359_vm6, %vm1360_vm7 }
  0x14   : > { %v420_v19 = vshll.u32 %v5966_v13, 16  ;;  %v5980_v21 = vld [vmem:[%s5951_s6 + $0x64] sm:$0xf]  ;;  %v5983_v22 = vld [vmem:[%s5951_s6 + $0x68] sm:$0x1]  ;;  %v593_v30 = vshrl.u32 %v5975_v18, 16 }
  0x15   : > { %v403_v25 = vrot.slane %v401_v14, 4  ;;  %v406_v26 = vrot.slane %v404_v15, 5  ;;  %v412_v27 = vrot.slane %v410_v16, 5  ;;  %v416_v28 = vrot.slane %v414_v17, 4  ;;  %v5997_v37 = vld [vmem:[%s5951_s6 + $0xc] sm:$0xf] }
  0x16   : > { %v422_v29 = vrot.slane %v420_v19, 5  ;;  %v596_v31 = vshll.u32 %v5975_v18, 16  ;;  %v602_v32 = vshll.u32 %v5980_v21, 16  ;;  %v606_v35 = vshrl.u32 %v5980_v21, 16  ;;  %v6000_v38 = vld [vmem:[%s5951_s6 + $0x10] sm:$0xf] }
  0x17   : > { %v407_v33 = vor.u32 %v406_v26, %v403_v25  ;;  %v417_v34 = vor.u32 %v416_v28, %v412_v27  ;;  %v612_v36 = vshll.u32 %v5983_v22, 16  ;;  %8882 = vst [vmem:[#allocation3_spill] sm:$0xff] %v8881_v39  ;;  %v595_v40 = vrot.slane %v593_v30, 4  ;;  %v6011_v49 = vld [vmem:[%s5951_s6 + $0x14] sm:$0x1] }
  0x18   : > { %v598_v41 = vrot.slane %v596_v31, 5  ;;  %v604_v42 = vrot.slane %v602_v32, 5  ;;  %v608_v46 = vrot.slane %v606_v35, 4  ;;  %v425_v50 = vshrl.u32 %v5997_v37, 16  ;;  %v6022_v61 = vld [vmem:[%s5951_s6 + $0x6c] sm:$0xf] }
  0x19   : > { %v408_v44 = vrot.slane %v407_v33, 4  ;;  %v418_v45 = vrot.slane %v417_v34, 4  ;;  %v614_v47 = vrot.slane %v612_v36, 5  ;;  %v428_v51 = vshll.u32 %v5997_v37, 16  ;;  %v6026_v2 = vld [vmem:[%s5951_s6 + $0x70] sm:$0xf] }
  0x1a   : > { %v599_v48 = vor.u32 %v598_v41, %v595_v40  ;;  %v434_v52 = vshll.u32 %v6000_v38, 16  ;;  %v609_v55 = vor.u32 %v608_v46, %v604_v42  ;;  %v438_v56 = vshrl.u32 %v6000_v38, 16  ;;  %v6034_v10 = vld [vmem:[%s5951_s6 + $0x74] sm:$0x1]  ;;  %v6040_v19 = vld [vmem:[%s5951_s6 + $0x18] sm:$0xf] }
  0x1b   : > { %v413_v53 = vsel %vm6004_vm5, %v408_v44, %v412_v27  ;;  %v423_v54 = vsel %vm6004_vm5, %v418_v45, %v422_v29  ;;  %v427_v59 = vrot.slane %v425_v50, 4  ;;  %v430_v60 = vrot.slane %v428_v51, 5  ;;  %8883 = vst [vmem:[#allocation4_spill] sm:$0xff] %v6034_v10  ;;  %v6047_v33 = vld [vmem:[%s5951_s6 + $0x1c] sm:$0xf] }
  0x1c   : > { %v4969_v57 = vcombine.low %v413_v53, %v423_v54  ;;  %v600_v58 = vrot.slane %v599_v48, 4  ;;  %v610_v62 = vrot.slane %v609_v55, 4  ;;  %v436_v63 = vrot.slane %v434_v52, 5  ;;  %v6053_v40 = vld [vmem:[%s5951_s6 + $0x20] sm:$0x1] }
  0x1d   : > { %v440_v0 = vrot.slane %v438_v56, 4  ;;  %v444_v1 = vshll.u32 %v6011_v49, 16  ;;  %v431_v5 = vor.u32 %v430_v60, %v427_v59  ;;  %v617_v17 = vshrl.u32 %v6022_v61, 16 }
  0x1e   : > { %5471 = vmatprep.mubr.msk.bf16.mxu0 %vm834_vm4, %v4969_v57  ;;  %v605_v4 = vsel %vm6004_vm5, %v600_v58, %v604_v42  ;;  %v615_v14 = vsel %vm6004_vm5, %v610_v62, %v614_v47  ;;  %v620_v27 = vshll.u32 %v6022_v61, 16  ;;  %v626_v28 = vshll.u32 %v6026_v2, 16  ;;  %v6060_v47 = vld [vmem:[%s5951_s6 + $0x78] sm:$0xf]  ;;  %v6066_v57 = vld [vmem:[%s5951_s6 + $0x7c] sm:$0xf] }
  0x1f   : > { %v441_v15 = vor.u32 %v440_v0, %v436_v63  ;;  %v446_v16 = vrot.slane %v444_v1, 5  ;;  %v4977_v25 = vcombine.low %v605_v4, %v615_v14  ;;  %v432_v26 = vrot.slane %v431_v5, 4  ;;  %8884 = vst [vmem:[#allocation5_spill] sm:$0xff] %v6060_v47  ;;  %8885 = vst [vmem:[#allocation6_spill] sm:$0xff] %v6066_v57  ;;  %v6073_v5 = vld [vmem:[%s5951_s6 + $0x80] sm:$0x1] }
  0x20   : > { %v619_v30 = vrot.slane %v617_v17, 4  ;;  %v630_v31 = vshrl.u32 %v6026_v2, 16  ;;  %v636_v32 = vshll.u32 %v6034_v10, 16  ;;  %v622_v35 = vrot.slane %v620_v27, 5  ;;  %8886 = vst [vmem:[#allocation7_spill] sm:$0xff] %v6073_v5 }
  0x21   : > { %v442_v29 = vrot.slane %v441_v15, 4  ;;  %5487 = vmatprep.mubr.msk.bf16.mxu1 %vm834_vm4, %v4977_v25  ;;  %v437_v34 = vsel %vm6004_vm5, %v432_v26, %v436_v63  ;;  %v628_v36 = vrot.slane %v626_v28, 5  ;;  %v449_v41 = vshrl.u32 %v6040_v19, 16  ;;  %v6079_v25 = vld [vmem:[%s5951_s6 + $0x24] sm:$0xf] }
  0x22   : > { %v632_v44 = vrot.slane %v630_v31, 4  ;;  %v638_v45 = vrot.slane %v636_v32, 5  ;;  %v452_v46 = vshll.u32 %v6040_v19, 16  ;;  %v623_v50 = vor.u32 %v622_v35, %v619_v30 }
  0x23   : > { %v447_v42 = vsel %vm6004_vm5, %v442_v29, %v446_v16  ;;  %v451_v51 = vrot.slane %v449_v41, 4  ;;  %v458_v52 = vshll.u32 %v6047_v33, 16  ;;  %v462_v55 = vshrl.u32 %v6047_v33, 16  ;;  %v6086_v29 = vld [vmem:[%s5951_s6 + $0x28] sm:$0xf] }
  0x24   : > { %v4970_v48 = vcombine.low %v437_v34, %v447_v42  ;;  %v633_v53 = vor.u32 %v632_v44, %v628_v36  ;;  %v454_v54 = vrot.slane %v452_v46, 5  ;;  %v468_v56 = vshll.u32 %v6053_v40, 16  ;;  %v6092_v42 = vld [vmem:[%s5951_s6 + $0x2c] sm:$0x1] }
  0x25   : > { %v624_v58 = vrot.slane %v623_v50, 4  ;;  %v460_v59 = vrot.slane %v458_v52, 5  ;;  %v641_v60 = vshrl.u32 %v6060_v47, 16  ;;  %v644_v62 = vshll.u32 %v6060_v47, 16 }
  0x26   : > { %5472 = vmatmul.mubr.msk.bf16.vlgmr.msra.gmra.mxu0 %vm834_vm4, %v4970_v48  ;;  %v634_v63 = vrot.slane %v633_v53, 4  ;;  %v455_v0 = vor.u32 %v454_v54, %v451_v51  ;;  %v464_v1 = vrot.slane %v462_v55, 4  ;;  %v470_v4 = vrot.slane %v468_v56, 5  ;;  %v6099_v51 = vld [vmem:[%s5951_s6 + $0x84] sm:$0xf] }
  0x27   : > { %5538 = vmatpush3.bf16.msra.mxu0 %v5942_v8  ;;  %v629_v14 = vsel %vm6004_vm5, %v624_v58, %v628_v36  ;;  %v643_v15 = vrot.slane %v641_v60, 4  ;;  %v646_v16 = vrot.slane %v644_v62, 5  ;;  %v650_v17 = vshll.u32 %v6066_v57, 16  ;;  %v6106_v56 = vld [vmem:[%s5951_s6 + $0x88] sm:$0xf] }
  0x28   : > { %5605 = vmatprep.subr.bf16.mxu0 %v5989_v24  ;;  %v639_v8 = vsel %vm6004_vm5, %v634_v63, %v638_v45  ;;  %v456_v26 = vrot.slane %v455_v0, 4  ;;  %v465_v27 = vor.u32 %v464_v1, %v460_v59  ;;  %v654_v28 = vshrl.u32 %v6066_v57, 16  ;;  %v6113_v1 = vld [vmem:[%s5951_s6 + $0x8c] sm:$0x1] }
  0x29   : > { %v4978_v30 = vcombine.low %v629_v14, %v639_v8  ;;  %v647_v31 = vor.u32 %v646_v16, %v643_v15  ;;  %v652_v32 = vrot.slane %v650_v17, 5  ;;  %v660_v34 = vshll.u32 %v6073_v5, 16  ;;  %v6121_v8 = vld [vmem:[%s5951_s6 + $0x30] sm:$0xf] }
  0x2a   : > { %v461_v35 = vsel %vm6004_vm5, %v456_v26, %v460_v59  ;;  %v466_v36 = vrot.slane %v465_v27, 4  ;;  %v656_v41 = vrot.slane %v654_v28, 4  ;;  %v473_v44 = vshrl.u32 %v6079_v25, 16 }
  0x2b   : > { %5488 = vmatmul.mubr.msk.bf16.vlgmr.msra.gmra.mxu1 %vm834_vm4, %v4978_v30  ;;  %v648_v45 = vrot.slane %v647_v31, 4  ;;  %v662_v46 = vrot.slane %v660_v34, 5  ;;  %v476_v48 = vshll.u32 %v6079_v25, 16  ;;  %v482_v50 = vshll.u32 %v6086_v29, 16  ;;  %v6126_v31 = vld [vmem:[%s5951_s6 + $0x34] sm:$0xf] }
  0x2c   : > { %5504 = vmatpush3.bf16.msra.mxu1 %v5939_v7  ;;  %v471_v52 = vsel %vm6004_vm5, %v466_v36, %v470_v4  ;;  %v657_v53 = vor.u32 %v656_v41, %v652_v32  ;;  %v475_v54 = vrot.slane %v473_v44, 4  ;;  %v486_v55 = vshrl.u32 %v6086_v29, 16 }
  0x2d   : > { %v4971_v58 = vcombine.low %v461_v35, %v471_v52  ;;  %v653_v59 = vsel %vm6004_vm5, %v648_v45, %v652_v32  ;;  %v478_v60 = vrot.slane %v476_v48, 5  ;;  %v484_v62 = vrot.slane %v482_v50, 5  ;;  %5571 = vmatprep.subr.bf16.mxu1 %v5986_v23  ;;  %v6134_v52 = vld [vmem:[%s5951_s6 + $0x38] sm:$0x1] }
  0x2e   : > { %v658_v7 = vrot.slane %v657_v53, 4  ;;  %v488_v63 = vrot.slane %v486_v55, 4  ;;  %v492_v0 = vshll.u32 %v6092_v42, 16  ;;  %v665_v4 = vshrl.u32 %v6099_v51, 16  ;;  %v6139_v55 = vld [vmem:[%s5951_s6 + $0x90] sm:$0xf] }
  0x2f   : > { %5475 = vmatprep.mubr.msk.bf16.mxu0 %vm834_vm4, %v4971_v58  ;;  %v479_v14 = vor.u32 %v478_v60, %v475_v54  ;;  %v668_v15 = vshll.u32 %v6099_v51, 16  ;;  %v674_v16 = vshll.u32 %v6106_v56, 16  ;;  %v678_v17 = vshrl.u32 %v6106_v56, 16 }
  0x30   : > { %v663_v26 = vsel %vm6004_vm5, %v658_v7, %v662_v46  ;;  %v489_v27 = vor.u32 %v488_v63, %v484_v62  ;;  %v494_v28 = vrot.slane %v492_v0, 5  ;;  %v667_v30 = vrot.slane %v665_v4, 4  ;;  %v6144_v63 = vld [vmem:[%s5951_s6 + $0x94] sm:$0xf] }
  0x31   : > { %v4979_v32 = vcombine.low %v653_v59, %v663_v26  ;;  %v480_v34 = vrot.slane %v479_v14, 4  ;;  %v670_v35 = vrot.slane %v668_v15, 5  ;;  %v676_v36 = vrot.slane %v674_v16, 5 }
  0x32   : > { %v490_v41 = vrot.slane %v489_v27, 4  ;;  %v680_v44 = vrot.slane %v678_v17, 4  ;;  %v684_v45 = vshll.u32 %v6113_v1, 16  ;;  %v497_v48 = vshrl.u32 %v6121_v8, 16 }
  0x33   : > { %5491 = vmatprep.mubr.msk.bf16.mxu1 %vm834_vm4, %v4979_v32  ;;  %v485_v46 = vsel %vm6004_vm5, %v480_v34, %v484_v62  ;;  %v671_v50 = vor.u32 %v670_v35, %v667_v30  ;;  %v500_v53 = vshll.u32 %v6121_v8, 16  ;;  %v506_v54 = vshll.u32 %v6126_v31, 16  ;;  %v6153_v30 = vld [vmem:[%s5951_s6 + $0x98] sm:$0x1]  ;;  %v6158_v35 = vld [vmem:[%s5951_s6 + $0x3c] sm:$0xf] }
  0x34   : > { %v495_v58 = vsel %vm6004_vm5, %v490_v41, %v494_v28  ;;  %v681_v59 = vor.u32 %v680_v44, %v676_v36  ;;  %v686_v60 = vrot.slane %v684_v45, 5  ;;  %v499_v7 = vrot.slane %v497_v48, 4 }
  0x35   : > { %v4972_v62 = vcombine.low %v485_v46, %v495_v58  ;;  %v672_v0 = vrot.slane %v671_v50, 4  ;;  %v502_v4 = vrot.slane %v500_v53, 5  ;;  %v508_v14 = vrot.slane %v506_v54, 5  ;;  %v6163_v46 = vld [vmem:[%s5951_s6 + $0x40] sm:$0xf] }
  0x36   : > { %v682_v15 = vrot.slane %v681_v59, 4  ;;  %v510_v16 = vshrl.u32 %v6126_v31, 16  ;;  %v516_v17 = vshll.u32 %v6134_v52, 16  ;;  %v689_v26 = vshrl.u32 %v6139_v55, 16 }
  0x37   : > { %5476 = vmatmul.mubr.msk.bf16.gmra.mxu0 %vm834_vm4, %v4972_v62  ;;  %v677_v27 = vsel %vm6004_vm5, %v672_v0, %v676_v36  ;;  %v503_v28 = vor.u32 %v502_v4, %v499_v7  ;;  %v692_v32 = vshll.u32 %v6139_v55, 16  ;;  %v698_v34 = vshll.u32 %v6144_v63, 16  ;;  %v6172_v4 = vld [vmem:[%s5951_s6 + $0x44] sm:$0x1] }
  0x38   : > { %v687_v41 = vsel %vm6004_vm5, %v682_v15, %v686_v60  ;;  %v512_v44 = vrot.slane %v510_v16, 4  ;;  %v518_v45 = vrot.slane %v516_v17, 5  ;;  %v691_v48 = vrot.slane %v689_v26, 4  ;;  %v6177_v17 = vld [vmem:[%s5951_s6 + $0x9c] sm:$0xf] }
  0x39   : > { %v4980_v36 = vcombine.low %v677_v27, %v687_v41  ;;  %v504_v50 = vrot.slane %v503_v28, 4  ;;  %v694_v53 = vrot.slane %v692_v32, 5  ;;  %v700_v54 = vrot.slane %v698_v34, 5  ;;  %8887 = vst [vmem:[#allocation8_spill] sm:$0xff] %v6177_v17 }
  0x3a   : > { %v513_v58 = vor.u32 %v512_v44, %v508_v14  ;;  %v702_v59 = vshrl.u32 %v6144_v63, 16  ;;  %v708_v7 = vshll.u32 %v6153_v30, 16  ;;  %v521_v62 = vshrl.u32 %v6158_v35, 16 }
  0x3b   : > { %5492 = vmatmul.mubr.msk.bf16.gmra.mxu1 %vm834_vm4, %v4980_v36  ;;  %v509_v60 = vsel %vm6004_vm5, %v504_v50, %v508_v14  ;;  %v695_v0 = vor.u32 %v694_v53, %v691_v48  ;;  %v524_v15 = vshll.u32 %v6158_v35, 16  ;;  %v530_v16 = vshll.u32 %v6163_v46, 16  ;;  %v6184_v53 = vld [vmem:[%s5951_s6 + $0xa0] sm:$0xf] }
  0x3c   : > { %v514_v26 = vrot.slane %v513_v58, 4  ;;  %v704_v27 = vrot.slane %v702_v59, 4  ;;  %v710_v28 = vrot.slane %v708_v7, 5  ;;  %v523_v32 = vrot.slane %v521_v62, 4  ;;  %8888 = vst [vmem:[#allocation9_spill] sm:$0xff] %v6184_v53 }
  0x3d   : > { %v696_v34 = vrot.slane %v695_v0, 4  ;;  %v526_v41 = vrot.slane %v524_v15, 5  ;;  %v532_v44 = vrot.slane %v530_v16, 5  ;;  %v534_v14 = vshrl.u32 %v6163_v46, 16  ;;  %v6190_v15 = vld [vmem:[%s5951_s6 + $0xa4] sm:$0x1] }
  0x3e   : > { %v519_v48 = vsel %vm6004_vm5, %v514_v26, %v518_v45  ;;  %v705_v36 = vor.u32 %v704_v27, %v700_v54  ;;  %v540_v50 = vshll.u32 %v6172_v4, 16  ;;  %v713_v58 = vshrl.u32 %v6177_v17, 16  ;;  %8889 = vst [vmem:[#allocation10_spill] sm:$0xff] %v6190_v15  ;;  %v6193_v16 = vld [vmem:[%s5951_s6 + $0x48] sm:$0xf] }
  0x3f   : > { %v4973_v59 = vcombine.low %v509_v60, %v519_v48  ;;  %v701_v7 = vsel %vm6004_vm5, %v696_v34, %v700_v54  ;;  %v527_v62 = vor.u32 %v526_v41, %v523_v32  ;;  %v536_v0 = vrot.slane %v534_v14, 4  ;;  %v6203_v14 = vld [vmem:[%s5951_s6 + $0x4c] sm:$0xf] }
  0x40   : > { %v706_v43 = vrot.slane %v705_v36, 4  ;;  %v542_v45 = vrot.slane %v540_v50, 5  ;;  %v715_v26 = vrot.slane %v713_v58, 4  ;;  %v716_v27 = vshll.u32 %v6177_v17, 16 }
  0x41   : > { %5479 = vmatprep.mubr.msk.bf16.mxu0 %vm834_vm4, %v4973_v59  ;;  %v528_v9 = vrot.slane %v527_v62, 4  ;;  %v537_v60 = vor.u32 %v536_v0, %v532_v44  ;;  %v722_v48 = vshll.u32 %v6184_v53, 16  ;;  %v726_v54 = vshrl.u32 %v6184_v53, 16  ;;  %v6209_v0 = vld [vmem:[%s5951_s6 + $0x50] sm:$0x1] }
  0x42   : > { %v711_v32 = vsel %vm6004_vm5, %v706_v43, %v710_v28  ;;  %v718_v34 = vrot.slane %v716_v27, 5  ;;  %v732_v41 = vshll.u32 %v6190_v15, 16  ;;  %v545_v36 = vshrl.u32 %v6193_v16, 16  ;;  %v6212_v28 = vld [vmem:[%s5951_s6 + $0xa8] sm:$0xf] }
  0x43   : > { %v4981_v50 = vcombine.low %v701_v7, %v711_v32  ;;  %v533_v58 = vsel %vm6004_vm5, %v528_v9, %v532_v44  ;;  %v538_v59 = vrot.slane %v537_v60, 4  ;;  %v724_v62 = vrot.slane %v722_v48, 5  ;;  %8890 = vst [vmem:[#allocation11_spill] sm:$0xff] %v6212_v28  ;;  %v6222_v32 = vld [vmem:[%s5951_s6 + $0xac] sm:$0xf] }
  0x44   : > { %v719_v20 = vor.u32 %v718_v34, %v715_v26  ;;  %v728_v6 = vrot.slane %v726_v54, 4  ;;  %v734_v5 = vrot.slane %v732_v41, 5  ;;  %v547_v43 = vrot.slane %v545_v36, 4  ;;  %8891 = vst [vmem:[#allocation12_spill] sm:$0xff] %v6222_v32 }
  0x45   : > { %5495 = vmatprep.mubr.msk.bf16.mxu1 %vm834_vm4, %v4981_v50  ;;  %v543_v7 = vsel %vm6004_vm5, %v538_v59, %v542_v45  ;;  %v548_v27 = vshll.u32 %v6193_v16, 16  ;;  %v554_v9 = vshll.u32 %v6203_v14, 16  ;;  %v558_v44 = vshrl.u32 %v6203_v14, 16  ;;  %v6225_v50 = vld [vmem:[%s5951_s6 + $0xb0] sm:$0x1] }
  0x46   : > { %v4974_v60 = vcombine.low %v533_v58, %v543_v7  ;;  %v720_v48 = vrot.slane %v719_v20, 4  ;;  %v729_v26 = vor.u32 %v728_v6, %v724_v62  ;;  %v564_v54 = vshll.u32 %v6209_v0, 16  ;;  %8892 = vst [vmem:[#allocation13_spill] sm:$0xff] %v6225_v50 }
  0x47   : > { %v550_v34 = vrot.slane %v548_v27, 5  ;;  %v556_v41 = vrot.slane %v554_v9, 5  ;;  %v560_v36 = vrot.slane %v558_v44, 4  ;;  %v737_v45 = vshrl.u32 %v6212_v28, 16  ;;  %v6234_v9 = vld [vmem:[%s5951_s6 + $0x54] sm:$0xf] }
  0x48   : > { %5480 = vmatmul.mubr.msk.bf16.gmra.mxu0 %vm834_vm4, %v4974_v60  ;;  %v725_v58 = vsel %vm6004_vm5, %v720_v48, %v724_v62  ;;  %v730_v20 = vrot.slane %v729_v26, 4  ;;  %v566_v6 = vrot.slane %v564_v54, 5  ;;  %v740_v59 = vshll.u32 %v6212_v28, 16  ;;  %v6241_v26 = vld [vmem:[%s5951_s6 + $0x58] sm:$0xf] }
  0x49   : > { %v551_v7 = vor.u32 %v550_v34, %v547_v43  ;;  %v561_v47 = vor.u32 %v560_v36, %v556_v41  ;;  %v739_v3 = vrot.slane %v737_v45, 4  ;;  %v746_v27 = vshll.u32 %v6222_v32, 16  ;;  %v6244_v28 = vld [vmem:[%s5951_s6 + $0x5c] sm:$0x1] }
  0x4a   : > { %v735_v44 = vsel %vm6004_vm5, %v730_v20, %v734_v5  ;;  %v742_v60 = vrot.slane %v740_v59, 5  ;;  %v750_v62 = vshrl.u32 %v6222_v32, 16  ;;  %v756_v48 = vshll.u32 %v6225_v50, 16  ;;  %v6268_v50 = vld [vmem:[%s5951_s6 + $0xbc] sm:$0x1] }
  0x4b   : > { %v4982_v43 = vcombine.low %v725_v58, %v735_v44  ;;  %v552_v54 = vrot.slane %v551_v7, 4  ;;  %v562_v34 = vrot.slane %v561_v47, 4  ;;  %v748_v36 = vrot.slane %v746_v27, 5  ;;  %v6255_v7 = vld [vmem:[%s5951_s6 + $0xb4] sm:$0xf] }
  0x4c   : > { %v743_v45 = vor.u32 %v742_v60, %v739_v3  ;;  %v752_v10 = vrot.slane %v750_v62, 4  ;;  %v758_v57 = vrot.slane %v756_v48, 5  ;;  %v569_v5 = vshrl.u32 %v6234_v9, 16  ;;  %8893 = vst [vmem:[#allocation14_spill] sm:$0xff] %v6255_v7  ;;  %v6258_v62 = vld [vmem:[%s5951_s6 + $0xb8] sm:$0xf] }
  0x4d   : > { %5496 = vmatmul.mubr.msk.bf16.gmra.mxu1 %vm834_vm4, %v4982_v43  ;;  %v557_v20 = vsel %vm6004_vm5, %v552_v54, %v556_v41  ;;  %v567_v59 = vsel %vm6004_vm5, %v562_v34, %v566_v6  ;;  %v572_v58 = vshll.u32 %v6234_v9, 16  ;;  %v578_v47 = vshll.u32 %v6241_v26, 16  ;;  %s5315_s6 = sshll.u32 %s9290_s18, 8 }
  0x4e   : > { %v4975_v3 = vcombine.low %v557_v20, %v567_v59  ;;  %v744_v27 = vrot.slane %v743_v45, 4  ;;  %v753_v44 = vor.u32 %v752_v10, %v748_v36  ;;  %v571_v60 = vrot.slane %v569_v5, 4  ;;  %s8621_s8 = scalar_lea.vmem %s8809_s5, %s5315_s6 }
  0x4f   : > { %v574_v48 = vrot.slane %v572_v58, 5  ;;  %v580_v43 = vrot.slane %v578_v47, 5  ;;  %v582_v41 = vshrl.u32 %v6241_v26, 16  ;;  %v588_v54 = vshll.u32 %v6244_v28, 16 }
  0x50   : > { %5483 = vmatprep.mubr.msk.bf16.mxu0 %vm834_vm4, %v4975_v3  ;;  %v749_v6 = vsel %vm6004_vm5, %v744_v27, %v748_v36  ;;  %v754_v34 = vrot.slane %v753_v44, 4  ;;  %v761_v20 = vshrl.u32 %v6255_v7, 16  ;;  %v764_v45 = vshll.u32 %v6255_v7, 16 }
  0x51   : > { %v575_v10 = vor.u32 %v574_v48, %v571_v60  ;;  %v584_v5 = vrot.slane %v582_v41, 4  ;;  %v590_v59 = vrot.slane %v588_v54, 5  ;;  %v770_v58 = vshll.u32 %v6258_v62, 16 }
  0x52   : > { %v759_v47 = vsel %vm6004_vm5, %v754_v34, %v758_v57  ;;  %v763_v32 = vrot.slane %v761_v20, 4  ;;  %v766_v3 = vrot.slane %v764_v45, 5  ;;  %v774_v15 = vshrl.u32 %v6258_v62, 16 }
  0x53   : > { %v4983_v36 = vcombine.low %v749_v6, %v759_v47  ;;  %v576_v27 = vrot.slane %v575_v10, 4  ;;  %v585_v44 = vor.u32 %v584_v5, %v580_v43  ;;  %v772_v17 = vrot.slane %v770_v58, 5 }
  0x54   : > { %v767_v53 = vor.u32 %v766_v3, %v763_v32  ;;  %v776_v7 = vrot.slane %v774_v15, 4  ;;  %v780_v60 = vshll.u32 %v6268_v50, 16  ;;  %v8894_v48 = vmov 0 }
  0x55   : > { %v8895_v48 = vsel %vm6277_vm8, 4294967295, %v8894_v48  ;;  %v5033_v57 = vrot.slane %v5960_v11, 9  ;;  %5499 = vmatprep.mubr.msk.bf16.mxu1 %vm834_vm4, %v4983_v36  ;;  %v581_v41 = vsel %vm6004_vm5, %v576_v27, %v580_v43  ;;  %v586_v54 = vrot.slane %v585_v44, 4 }
  0x56   : > { %8896 = vst [vmem:[#allocation15_spill] sm:$0xff] %v8895_v48  ;;  %v1364_v6 = vrot.slane %v5963_v12, 5  ;;  %v5002_v15 = vcombine.low %v5997_v37, %v6000_v38  ;;  %v768_v32 = vrot.slane %v767_v53, 4  ;;  %v777_v34 = vor.u32 %v776_v7, %v772_v17 }
  0x57   : > { %v782_v20 = vrot.slane %v780_v60, 5  ;;  %v5034_v45 = vrot.slane %v5997_v37, 9  ;;  %v591_v10 = vsel %vm6004_vm5, %v586_v54, %v590_v59  ;;  %v8897_v43 = vrot.slane %v6000_v38, 5 }
  0x58   : > { %v1365_v5 = vsel %vm6277_vm8, %v5033_v57, %v1364_v6  ;;  %v1366_v58 = vrot.slane %v1364_v6, 4  ;;  %v4976_v3 = vcombine.low %v581_v41, %v591_v10  ;;  %v773_v36 = vsel %vm6004_vm5, %v768_v32, %v772_v17 }
  0x59   : > { %v1373_v47 = vrot.slane %v8897_v43, 4  ;;  %v778_v27 = vrot.slane %v777_v34, 4  ;;  %v8898_v53 = vmov %v8897_v43  ;;  %v8899_v7 = vrot.slane %v5966_v13, 5 }
  0x5a   : > { %v1372_v37 = vsel %vm6277_vm8, %v5034_v45, %v8898_v53  ;;  %v8900_v44 = vrot.slane %v6011_v49, 5  ;;  %v5003_v57 = vcombine.low %v6040_v19, %v6047_v33  ;;  %v5035_v17 = vrot.slane %v6040_v19, 9  ;;  %5484 = vmatmul.mubr.msk.bf16.gmra.mxu0 %vm834_vm4, %v4976_v3 }
  0x5b   : > { %v1368_v59 = vsel %vm6277_vm8, %v1366_v58, %v8899_v7  ;;  %v783_v38 = vsel %vm6004_vm5, %v778_v27, %v782_v20  ;;  %v1378_v54 = vrot.slane %v6047_v33, 5  ;;  %v1381_v49 = vrot.slane %v6053_v40, 5 }
  0x5c   : > { %v1375_v60 = vsel %vm6277_vm8, %v1373_v47, %v8900_v44  ;;  %v5050_v41 = vcombine.low %v1365_v5, %v1368_v59  ;;  %v4984_v6 = vcombine.low %v773_v36, %v783_v38  ;;  %v1385_v19 = vrot.slane %v6086_v29, 5 }
  0x5d   : > { %v5051_v13 = vcombine.low %v1372_v37, %v1375_v60  ;;  %v1379_v32 = vsel %vm6277_vm8, %v5035_v17, %v1378_v54  ;;  %v1380_v34 = vrot.slane %v1378_v54, 4  ;;  %v5036_v45 = vrot.slane %v6079_v25, 9 }
  0x5e   : > { %5539 = vmatprep.mubr.msk.bf16.mxu0 %vm834_vm4, %v5050_v41  ;;  %5500 = vmatmul.mubr.msk.bf16.gmra.mxu1 %vm834_vm4, %v4984_v6  ;;  %v5037_v20 = vrot.slane %v6121_v8, 9  ;;  %v1392_v10 = vrot.slane %v6126_v31, 5  ;;  %v8901_v33 = vcombine.low %v5960_v11, %v5963_v12  ;;  %v1387_v5 = vrot.slane %v1385_v19, 4 }
  0x5f   : > { %v1382_v40 = vsel %vm6277_vm8, %v1380_v34, %v1381_v49  ;;  %v1388_v58 = vrot.slane %v6092_v42, 5  ;;  %v1395_v43 = vrot.slane %v6134_v52, 5  ;;  %v1399_v36 = vrot.slane %v6163_v46, 5 }
  0x60   : > { %5505 = vmatprep.mubr.msk.bf16.mxu1 %vm834_vm4, %v8901_v33  ;;  %v5052_v47 = vcombine.low %v1379_v32, %v1382_v40  ;;  %v1394_v3 = vrot.slane %v1392_v10, 4  ;;  %v1386_v27 = vsel %vm6277_vm8, %v5036_v45, %v1385_v19  ;;  %v1393_v11 = vsel %vm6277_vm8, %v5037_v20, %v1392_v10 }
  0x61   : > { %v1406_v12 = vrot.slane %v6203_v14, 5  ;;  %v1389_v53 = vsel %vm6277_vm8, %v1387_v5, %v1388_v58  ;;  %v5038_v52 = vrot.slane %v6158_v35, 9  ;;  %v1402_v37 = vrot.slane %v6172_v4, 5 }
  0x62   : > { %5540 = vmatmul.mubr.msk.bf16.vlgmr.msra.gmra.mxu0 %vm834_vm4, %v5051_v13  ;;  %v1396_v42 = vsel %vm6277_vm8, %v1394_v3, %v1395_v43  ;;  %v1401_v7 = vrot.slane %v1399_v36, 4  ;;  %v5039_v59 = vrot.slane %v6193_v16, 9  ;;  %v1409_v60 = vrot.slane %v6209_v0, 5  ;;  %v8902_v43 = vld [vmem:[#allocation9_spill] sm:$0xff] }
  0x63   : > { %5606 = vmatpush3.bf16.msra.mxu0 %v5989_v24  ;;  %5543 = vmatprep.mubr.msk.bf16.mxu0 %vm834_vm4, %v5052_v47  ;;  %v1408_v44 = vrot.slane %v1406_v12, 4  ;;  %v5053_v17 = vcombine.low %v1386_v27, %v1389_v53  ;;  %v5054_v38 = vcombine.low %v1393_v11, %v1396_v42  ;;  %v1400_v4 = vsel %vm6277_vm8, %v5038_v52, %v1399_v36  ;;  %v8903_v47 = vld [vmem:[#allocation8_spill] sm:$0xff]  ;;  %v8904_v52 = vld [vmem:[#allocation10_spill] sm:$0xff] }
  0x64   : > { %v5040_v24 = vrot.slane %v6234_v9, 9  ;;  %v1403_v41 = vsel %vm6277_vm8, %v1401_v7, %v1402_v37  ;;  %v1407_v13 = vsel %vm6277_vm8, %v5039_v59, %v1406_v12  ;;  %v5041_v54 = vrot.slane %v5975_v18, 9  ;;  %v8905_v7 = vld [vmem:[#allocation12_spill] sm:$0xff]  ;;  %v8906_v59 = vld [vmem:[#allocation11_spill] sm:$0xff] }
  0x65   : > { %v1410_v0 = vsel %vm6277_vm8, %v1408_v44, %v1409_v60  ;;  %v1420_v6 = vrot.slane %v5980_v21, 5  ;;  %v5005_v49 = vcombine.low %v6121_v8, %v6126_v31  ;;  %v5006_v32 = vcombine.low %v6158_v35, %v6163_v46 }
  0x66   : > { %5506 = vmatmul.mubr.msk.bf16.vlgmr.msra.gmra.mxu1 %vm834_vm4, %v5002_v15  ;;  %v1423_v15 = vrot.slane %v5983_v22, 5  ;;  %v5007_v34 = vcombine.low %v6193_v16, %v6203_v14  ;;  %v1416_v19 = vrot.slane %v6244_v28, 5  ;;  %v5055_v22 = vcombine.low %v1400_v4, %v1403_v41  ;;  %v8907_v4 = vld [vmem:[#allocation13_spill] sm:$0xff] }
  0x67   : > { %5572 = vmatpush3.bf16.msra.mxu1 %v5986_v23  ;;  %5509 = vmatprep.mubr.msk.bf16.mxu1 %vm834_vm4, %v5003_v57  ;;  %v1413_v23 = vrot.slane %v6241_v26, 5  ;;  %v5004_v57 = vcombine.low %v6079_v25, %v6086_v29  ;;  %v5056_v45 = vcombine.low %v1407_v13, %v1410_v0  ;;  %v5044_v31 = vrot.slane %v6099_v51, 9 }
  0x68   : > { %v1441_v35 = vrot.slane %v6106_v56, 5  ;;  %v1444_v46 = vrot.slane %v6113_v1, 5  ;;  %v6388_v16 = vsel %vm6277_vm8, %v5041_v54, %v1420_v6  ;;  %v1422_v14 = vrot.slane %v1420_v6, 4 }
  0x69   : > { %v6378_v25 = vsel %vm6277_vm8, %v5040_v24, %v1413_v23  ;;  %v1415_v8 = vrot.slane %v1413_v23, 4  ;;  %v5042_v28 = vrot.slane %v6022_v61, 9  ;;  %v5045_v40 = vrot.slane %v6139_v55, 9  ;;  %v8908_v23 = vld [vmem:[#allocation14_spill] sm:$0xff] }
  0x6a   : > { %5544 = vmatmul.mubr.msk.bf16.gmra.mxu0 %vm834_vm4, %v5053_v17  ;;  %v6396_v10 = vsel %vm6277_vm8, %v5044_v31, %v1441_v35  ;;  %v1443_v33 = vrot.slane %v1441_v35, 4  ;;  %v1448_v1 = vrot.slane %v6144_v63, 5  ;;  %v1427_v5 = vrot.slane %v6026_v2, 5 }
  0x6b   : > { %5547 = vmatprep.mubr.msk.bf16.mxu0 %vm834_vm4, %v5054_v38  ;;  %v1451_v58 = vrot.slane %v6153_v30, 5  ;;  %v5046_v36 = vrot.slane %v8903_v47, 9  ;;  %v1417_v27 = vsel %vm6277_vm8, %v1415_v8, %v1416_v19  ;;  %v1455_v42 = vrot.slane %v8902_v43, 5  ;;  %v8909_v8 = vld [vmem:[#allocation6_spill] sm:$0xff]  ;;  %v6583_v30 = vld [vmem:[%s6488_s15 + $0x30] sm:$0xf] }
  0x6c   : > { %v6410_v11 = vsel %vm6277_vm8, %v1443_v33, %v1444_v46  ;;  %v6414_v12 = vsel %vm6277_vm8, %v5045_v40, %v1448_v1  ;;  %v1450_v53 = vrot.slane %v1448_v1, 4  ;;  %v1458_v37 = vrot.slane %v8904_v52, 5  ;;  %v5164_v46 = vld [vmem:[%s8807_s3 + $0xa] sm:$0x3]  ;;  %v8911_v52 = vld [vmem:[#allocation2_spill] sm:$0xff]  ;;  %8916 = vst [vmem:[#allocation10_spill] sm:$0xff] %v6583_v30 }
  0x6d   : > { %v5047_v17 = vrot.slane %v8906_v59, 9  ;;  %v1462_v38 = vrot.slane %v8905_v7, 5  ;;  %v1465_v24 = vrot.slane %v8907_v4, 5  ;;  %v6434_v13 = vsel %vm6277_vm8, %v5046_v36, %v1455_v42  ;;  %v8913_v4 = vld [vmem:[#allocation7_spill] sm:$0xff] }
  0x6e   : > { %5510 = vmatmul.mubr.msk.bf16.gmra.mxu1 %vm834_vm4, %v5004_v57  ;;  %v6424_v60 = vsel %vm6277_vm8, %v1450_v53, %v1451_v58  ;;  %v1457_v0 = vrot.slane %v1455_v42, 4  ;;  %v1469_v19 = vrot.slane %v6258_v62, 5  ;;  %v1434_v31 = vrot.slane %v8909_v8, 5  ;;  %v8910_v58 = vld [vmem:[#allocation4_spill] sm:$0xff] }
  0x6f   : > { %5513 = vmatprep.mubr.msk.bf16.mxu1 %vm834_vm4, %v5005_v49  ;;  %v6441_v54 = vsel %vm6277_vm8, %v5047_v17, %v1462_v38  ;;  %v1464_v6 = vrot.slane %v1462_v38, 4  ;;  %v5048_v49 = vrot.slane %v8908_v23, 9  ;;  %v1429_v1 = vrot.slane %v1427_v5, 4  ;;  %v8912_v17 = vld [vmem:[#allocation5_spill] sm:$0xff] }
  0x70   : > { %v6450_v35 = vsel %vm6277_vm8, %v1457_v0, %v1458_v37  ;;  %v1471_v40 = vrot.slane %v1469_v19, 4  ;;  %v6478_v37 = vand.u32 %v5164_v46, %v8911_v52  ;;  %v5043_v38 = vrot.slane %v8912_v17, 9 }
  0x71   : > { %v5009_v0 = vcombine.low %v5975_v18, %v5980_v21 }
  0x72   : > { %5548 = vmatmul.mubr.msk.bf16.gmra.mxu0 %vm834_vm4, %v5055_v22  ;;  %v1424_v22 = vsel %vm6277_vm8, %v1422_v14, %v1423_v15  ;;  %v6461_v15 = vsel %vm6277_vm8, %v1464_v6, %v1465_v24  ;;  %v6465_v14 = vsel %vm6277_vm8, %v5048_v49, %v1469_v19  ;;  %v5008_v24 = vcombine.low %v6234_v9, %v6241_v26  ;;  %v6507_v19 = vld [vmem:[%s6488_s15] sm:$0xf]  ;;  %v6510_v9 = vld [vmem:[%s6488_s15 + $0x4] sm:$0xf] }
  0x73   : > { %5551 = vmatprep.mubr.msk.bf16.mxu0 %vm834_vm4, %v5056_v45  ;;  %v1472_v45 = vrot.slane %v6268_v50, 5  ;;  %v5057_v50 = vcombine.low %v6378_v25, %v1417_v27  ;;  %v5058_v53 = vcombine.low %v6388_v16, %v1424_v22  ;;  %v1437_v25 = vrot.slane %v8913_v4, 5  ;;  %v5197_v16 = vld [vmem:[%s8807_s3 + $0xc] sm:$0x3]  ;;  %5639 = vmatprep.subr.bf16.mxu1 %v6478_v37  ;;  %v6524_v22 = vld [vmem:[%s6488_s15 + $0x10] sm:$0xf] }
  0x74   : > { %v1428_v6 = vsel %vm6277_vm8, %v5042_v28, %v1427_v5  ;;  %v6513_v26 = vand.u32 %v5197_v16, %v8911_v52  ;;  %v1435_v18 = vsel %vm6277_vm8, %v5043_v38, %v1434_v31  ;;  %v6520_v28 = vld [vmem:[%s6488_s15 + $0xc] sm:$0xf]  ;;  %v2146_v46 = vshll.u32 %v6507_v19, 16  ;;  %v6542_v38 = vld [vmem:[%s6488_s15 + $0x24] sm:$0xf] }
  0x75   : > { %v6475_v42 = vsel %vm6277_vm8, %v1471_v40, %v1472_v45  ;;  %v6528_v45 = vld [vmem:[%s6488_s15 + $0x18] sm:$0xf]  ;;  %v2156_v40 = vshrl.u32 %v6510_v9, 16  ;;  %v2170_v4 = vshll.u32 %v6520_v28, 16  ;;  %v2176_v16 = vshll.u32 %v6524_v22, 16 }
  0x76   : > { %5514 = vmatmul.mubr.msk.bf16.gmra.mxu1 %vm834_vm4, %v5006_v32  ;;  %v1430_v32 = vrot.slane %v8910_v58, 5  ;;  %5673 = vmatprep.subr.bf16.mxu0 %v6513_v26  ;;  %v5010_v58 = vcombine.low %v6022_v61, %v6026_v2  ;;  %v2194_v61 = vshll.u32 %v6528_v45, 16  ;;  %v2215_v27 = vshrl.u32 %v6542_v38, 16 }
  0x77   : > { %5517 = vmatprep.mubr.msk.bf16.mxu1 %vm834_vm4, %v5007_v34  ;;  %v1436_v34 = vrot.slane %v1434_v31, 4  ;;  %v2143_v31 = vshrl.u32 %v6507_v19, 16  ;;  %v2218_v44 = vshll.u32 %v6542_v38, 16  ;;  %v2172_v36 = vrot.slane %v2170_v4, 5 }
  0x78   : > { %v1431_v49 = vsel %vm6277_vm8, %v1429_v1, %v1430_v32  ;;  %v6536_v1 = vld [vmem:[%s6488_s15 + $0x1c] sm:$0xf] }
  0x79   : > { %v1438_v21 = vsel %vm6277_vm8, %v1436_v34, %v1437_v25  ;;  %v5059_v5 = vcombine.low %v1428_v6, %v1431_v49  ;;  %v5011_v34 = vcombine.low %v8912_v17, %v8909_v8  ;;  %v2180_v25 = vshrl.u32 %v6524_v22, 16 }
  0x7a   : > { %5552 = vmatmul.mubr.msk.bf16.gmra.mxu0 %vm834_vm4, %v5057_v50  ;;  %v2152_v50 = vshll.u32 %v6510_v9, 16  ;;  %v5060_v32 = vcombine.low %v1435_v18, %v1438_v21  ;;  %v2204_v2 = vshrl.u32 %v6536_v1, 16  ;;  %v2200_v6 = vshll.u32 %v6536_v1, 16  ;;  %v6561_v21 = vld [vmem:[%s6488_s15 + $0x8] sm:$0x1] }
  0x7b   : > { %5555 = vmatprep.mubr.msk.bf16.mxu0 %vm834_vm4, %v5058_v53  ;;  %v2167_v53 = vshrl.u32 %v6520_v28, 16  ;;  %v2145_v8 = vrot.slane %v2143_v31, 4  ;;  %v2148_v17 = vrot.slane %v2146_v46, 5  ;;  %v2158_v18 = vrot.slane %v2156_v40, 4  ;;  %v6571_v40 = vld [vmem:[%s6488_s15 + $0x14] sm:$0x1] }
  0x7c   : > { %v6557_v49 = vrot.slane %v2152_v50, 5  ;;  %v2182_v31 = vrot.slane %v2180_v25, 4  ;;  %8914 = vst [vmem:[#allocation9_spill] sm:$0xff] %v6571_v40  ;;  %v2206_v33 = vrot.slane %v2204_v2, 4  ;;  %v2162_v4 = vshll.u32 %v6561_v21, 16 }
  0x7d   : > { %v2169_v57 = vrot.slane %v2167_v53, 4  ;;  %v6573_v53 = vrot.slane %v2200_v6, 5  ;;  %v2149_v20 = vor.u32 %v2148_v17, %v2145_v8  ;;  %v2217_v25 = vrot.slane %v2215_v27, 4  ;;  %v6589_v2 = vld [vmem:[%s6488_s15 + $0x2c] sm:$0x1] }
  0x7e   : > { %5518 = vmatmul.mubr.msk.bf16.gmra.mxu1 %vm834_vm4, %v5008_v24  ;;  %v6550_v24 = vld [vmem:[%s6488_s15 + $0x28] sm:$0xf]  ;;  %v2220_v29 = vrot.slane %v2218_v44, 5  ;;  %8917 = vst [vmem:[#allocation12_spill] sm:$0xff] %v6589_v2  ;;  %v2239_v27 = vshrl.u32 %v6583_v30, 16 }
  0x7f   : > { %5521 = vmatprep.mubr.msk.bf16.mxu1 %vm834_vm4, %v5009_v0  ;;  %v2191_v0 = vshrl.u32 %v6528_v45, 16  ;;  %v2228_v3 = vshrl.u32 %v6550_v24, 16  ;;  %v2224_v46 = vshll.u32 %v6550_v24, 16  ;;  %v2207_v17 = vor.u32 %v2206_v33, %v6573_v53 }
  0x80   : > { %v2150_v33 = vrot.slane %v2149_v20, 4 }
  0x81   : > { %v2193_v50 = vrot.slane %v2191_v0, 4  ;;  %v6580_v41 = vrot.slane %v2224_v46, 5  ;;  %v2159_v0 = vor.u32 %v2158_v18, %v6557_v49  ;;  %v2242_v18 = vshll.u32 %v6583_v30, 16 }
  0x82   : > { %5556 = vmatmul.mubr.msk.bf16.gmra.mxu0 %vm834_vm4, %v5059_v5  ;;  %v6566_v5 = vrot.slane %v2176_v16, 5  ;;  %v6578_v16 = vld [vmem:[%s6488_s15 + $0x20] sm:$0x1]  ;;  %v2221_v46 = vor.u32 %v2220_v29, %v2217_v25  ;;  %v6617_v25 = vld [vmem:[%s6488_s15 + $0x38] sm:$0x1] }
  0x83   : > { %5559 = vmatprep.mubr.msk.bf16.mxu0 %vm834_vm4, %v5060_v32  ;;  %v2196_v32 = vrot.slane %v2194_v61, 5  ;;  %8915 = vst [vmem:[#allocation8_spill] sm:$0xff] %v6578_v16  ;;  %v2173_v61 = vor.u32 %v2172_v36, %v2169_v57  ;;  %v2210_v44 = vshll.u32 %v6578_v16, 16  ;;  %v2164_v36 = vrot.slane %v2162_v4, 5  ;;  %8921 = vst [vmem:[#allocation11_spill] sm:$0xff] %v6617_v25 }
  0x84   : > { %v2183_v6 = vor.u32 %v2182_v31, %v6566_v5  ;;  %v8919_v31 = vcombine.low %v6414_v12, %v6424_v60  ;;  %v8920_v16 = vcombine.low %v6099_v51, %v6106_v56  ;;  %v2208_v12 = vrot.slane %v2207_v17, 4 }
  0x85   : > { %v2197_v8 = vor.u32 %v2196_v32, %v2193_v50  ;;  %v6608_v50 = vld [vmem:[%s6488_s15 + $0x34] sm:$0xf]  ;;  %v2160_v32 = vrot.slane %v2159_v0, 4  ;;  %v2174_v4 = vrot.slane %v2173_v61, 4  ;;  %v2212_v60 = vrot.slane %v2210_v44, 5 }
  0x86   : > { %5522 = vmatmul.mubr.msk.bf16.gmra.mxu1 %vm834_vm4, %v5010_v58  ;;  %v2230_v58 = vrot.slane %v2228_v3, 4  ;;  %v8918_v3 = vcombine.low %v6396_v10, %v6410_v11  ;;  %v2234_v11 = vshll.u32 %v6589_v2, 16  ;;  %v2252_v0 = vshrl.u32 %v6608_v50, 16 }
  0x87   : > { %5525 = vmatprep.mubr.msk.bf16.mxu1 %vm834_vm4, %v5011_v34  ;;  %v2186_v34 = vshll.u32 %v6571_v40, 16  ;;  %v2198_v29 = vrot.slane %v2197_v8, 4  ;;  %v2241_v61 = vrot.slane %v2239_v27, 4  ;;  %v2244_v51 = vrot.slane %v2242_v18, 5  ;;  %v6641_v18 = vld [vmem:[%s6488_s15 + $0x40] sm:$0xf] }
  0x88   : > { %v2231_v10 = vor.u32 %v2230_v58, %v6580_v41  ;;  %v8922_v58 = vcombine.low %v6139_v55, %v6144_v63  ;;  %v2248_v56 = vshll.u32 %v6608_v50, 16  ;;  %v2236_v17 = vrot.slane %v2234_v11, 5  ;;  %8924 = vst [vmem:[#allocation14_spill] sm:$0xff] %v6641_v18 }
  0x89   : > { %v2188_v57 = vrot.slane %v2186_v34, 5  ;;  %v2222_v34 = vrot.slane %v2221_v46, 4  ;;  %v2155_v55 = vsel %vm6004_vm5, %v2150_v33, %v6557_v49  ;;  %v2165_v63 = vsel %vm6004_vm5, %v2160_v32, %v2164_v36 }
  0x8a   : > { %5560 = vmatmul.mubr.msk.bf16.gmra.mxu0 %vm834_vm4, %v8918_v3  ;;  %v2184_v3 = vrot.slane %v2183_v6, 4  ;;  %v2232_v8 = vrot.slane %v2231_v10, 4  ;;  %v2179_v44 = vsel %vm6004_vm5, %v2174_v4, %v6566_v5  ;;  %v2213_v46 = vsel %vm6004_vm5, %v2208_v12, %v2212_v60  ;;  %v6678_v12 = vld [vmem:[%s6488_s15 + $0x48] sm:$0xf]  ;;  %v6753_v6 = vld [vmem:[%s6488_s15 + $0x70] sm:$0xf] }
  0x8b   : > { %5563 = vmatprep.mubr.msk.bf16.mxu0 %vm834_vm4, %v8919_v31  ;;  %v2203_v31 = vsel %vm6004_vm5, %v2198_v29, %v6573_v53  ;;  %v2258_v49 = vshll.u32 %v6617_v25, 16  ;;  %v8925_v5 = vcombine.low %v6434_v13, %v6450_v35  ;;  %v6654_v33 = vrot.slane %v2248_v56, 5  ;;  %8928 = vst [vmem:[#allocation4_spill] sm:$0xff] %v6678_v12  ;;  %v6693_v56 = vld [vmem:[%s6488_s15 + $0x4c] sm:$0xf] }
  0x8c   : > { %v2189_v27 = vsel %vm6004_vm5, %v2184_v3, %v2188_v57  ;;  %v2245_v57 = vor.u32 %v2244_v51, %v2241_v61  ;;  %v2254_v10 = vrot.slane %v2252_v0, 4  ;;  %v8926_v11 = vcombine.low %v6441_v54, %v6461_v15  ;;  %8930 = vst [vmem:[#allocation2_spill] sm:$0xff] %v6693_v56  ;;  %v6748_v61 = vld [vmem:[%s6488_s15 + $0x6c] sm:$0xf] }
  0x8d   : > { %v2227_v32 = vsel %vm6004_vm5, %v2222_v34, %v6580_v41  ;;  %v2237_v13 = vsel %vm6004_vm5, %v2232_v8, %v2236_v17  ;;  %v2276_v35 = vshrl.u32 %v6641_v18, 16  ;;  %v2272_v4 = vshll.u32 %v6641_v18, 16  ;;  %v6675_v41 = vld [vmem:[%s6488_s15 + $0x44] sm:$0x1]  ;;  %v6696_v34 = vld [vmem:[%s6488_s15 + $0x54] sm:$0xf] }
  0x8e   : > { %5526 = vmatmul.mubr.msk.bf16.gmra.mxu1 %vm834_vm4, %v8920_v16  ;;  %v6626_v16 = vld [vmem:[%s6488_s15 + $0x3c] sm:$0xf]  ;;  %v5116_v3 = vcombine.low %v2155_v55, %v2165_v63  ;;  %v6668_v29 = vcombine.low %v2179_v44, %v2189_v27  ;;  %8927 = vst [vmem:[#allocation6_spill] sm:$0xff] %v6675_v41  ;;  %v8929_v60 = vcombine.low %v8903_v47, %v8902_v43  ;;  %v6686_v0 = vrot.slane %v2258_v49, 5  ;;  %v6708_v63 = vld [vmem:[%s6488_s15 + $0x58] sm:$0xf] }
  0x8f   : > { %5529 = vmatprep.mubr.msk.bf16.mxu1 %vm834_vm4, %v8922_v58  ;;  %8923 = vst [vmem:[#allocation13_spill] sm:$0xff] %v6626_v16  ;;  %v2263_v36 = vshrl.u32 %v6626_v16, 16  ;;  %v2266_v53 = vshll.u32 %v6626_v16, 16  ;;  %v6684_v58 = vcombine.low %v2203_v31, %v2213_v46  ;;  %8931 = vst [vmem:[#allocation5_spill] sm:$0xff] %v6696_v34  ;;  %v8932_v8 = vcombine.low %v8906_v59, %v8905_v7  ;;  %v6711_v44 = vld [vmem:[%s6488_s15 + $0x60] sm:$0xf] }
  0x90   : > { %v6702_v43 = vcombine.low %v2227_v32, %v2237_v13  ;;  %v6704_v47 = vrot.slane %v2245_v57, 4  ;;  %v2255_v17 = vor.u32 %v2254_v10, %v6654_v33  ;;  %8933 = vst [vmem:[#allocation7_spill] sm:$0xff] %v6711_v44  ;;  %v6713_v27 = vrot.slane %v2272_v4, 5  ;;  %v6721_v59 = vld [vmem:[%s6488_s15 + $0x64] sm:$0xf] }
  0x91   : > { %v6690_v51 = vrot.slane %v2263_v36, 4  ;;  %v2268_v55 = vrot.slane %v2266_v53, 5  ;;  %v6715_v31 = vrot.slane %v2276_v35, 4  ;;  %v2282_v46 = vshll.u32 %v6675_v41, 16 }
  0x92   : > { %5564 = vmatmul.mubr.msk.bf16.gmra.mxu0 %vm834_vm4, %v8925_v5  ;;  %v2287_v49 = vshrl.u32 %v6678_v12, 16  ;;  %v2290_v36 = vshll.u32 %v6678_v12, 16  ;;  %v2300_v5 = vshrl.u32 %v6693_v56, 16  ;;  %v2296_v57 = vshll.u32 %v6693_v56, 16 }
  0x93   : > { %5567 = vmatprep.mubr.msk.bf16.mxu0 %vm834_vm4, %v8926_v11  ;;  %v2311_v10 = vshrl.u32 %v6696_v34, 16  ;;  %v2314_v53 = vshll.u32 %v6696_v34, 16  ;;  %v2324_v11 = vshrl.u32 %v6708_v63, 16  ;;  %v2320_v32 = vshll.u32 %v6708_v63, 16 }
  0x94   : > { %v8934_v13 = vcombine.low %v6465_v14, %v6475_v42  ;;  %v2251_v35 = vsel %vm6004_vm5, %v6704_v47, %v6654_v33  ;;  %v2335_v4 = vshrl.u32 %v6711_v44, 16  ;;  %v2256_v7 = vrot.slane %v2255_v17, 4 }
  0x95   : > { %v2269_v14 = vor.u32 %v2268_v55, %v6690_v51  ;;  %v2279_v42 = vor.u32 %v6715_v31, %v6713_v27  ;;  %v2289_v33 = vrot.slane %v2287_v49, 4  ;;  %v2292_v47 = vrot.slane %v2290_v36, 5  ;;  %v6760_v51 = vld [vmem:[%s6488_s15 + $0x50] sm:$0x1]  ;;  %v6769_v36 = vld [vmem:[%s6488_s15 + $0x5c] sm:$0x1] }
  0x96   : > { %5530 = vmatmul.mubr.msk.bf16.gmra.mxu1 %vm834_vm4, %v8929_v60  ;;  %v2338_v60 = vshll.u32 %v6711_v44, 16  ;;  %v6750_v15 = vrot.slane %v2296_v57, 5  ;;  %v2302_v54 = vrot.slane %v2300_v5, 4  ;;  %8936 = vst [vmem:[#allocation16_spill] sm:$0xff] %v6760_v51  ;;  %v2313_v17 = vrot.slane %v2311_v10, 4  ;;  %8938 = vst [vmem:[#allocation17_spill] sm:$0xff] %v6769_v36 }
  0x97   : > { %5533 = vmatprep.mubr.msk.bf16.mxu1 %vm834_vm4, %v8932_v8  ;;  %v2348_v8 = vshrl.u32 %v6721_v59, 16  ;;  %v2316_v55 = vrot.slane %v2314_v53, 5  ;;  %v6762_v31 = vrot.slane %v2320_v32, 5  ;;  %v2326_v20 = vrot.slane %v2324_v11, 4 }
  0x98   : > { %v8937_v49 = vcombine.low %v6507_v19, %v6510_v9  ;;  %v2337_v5 = vrot.slane %v2335_v4, 4  ;;  %v2340_v57 = vrot.slane %v2338_v60, 5  ;;  %v2359_v10 = vshrl.u32 %v6748_v61, 16 }
  0x99   : > { %v2362_v53 = vshll.u32 %v6748_v61, 16  ;;  %v2372_v11 = vshrl.u32 %v6753_v6, 16  ;;  %v2368_v32 = vshll.u32 %v6753_v6, 16  ;;  %v6783_v4 = vrot.slane %v2282_v46, 5 }
  0x9a   : > { %5568 = vmatmul.mubr.msk.bf16.gmra.mxu0 %vm834_vm4, %v8934_v13  ;;  %v2344_v13 = vshll.u32 %v6721_v59, 16  ;;  %v2293_v60 = vor.u32 %v2292_v47, %v2289_v33  ;;  %v2327_v25 = vor.u32 %v2326_v20, %v6762_v31  ;;  %v2330_v2 = vshll.u32 %v6769_v36, 16 }
  0x9b   : > { %5607 = vmatprep.mubr.msk.bf16.mxu0 %vm834_vm4, %v5116_v3  ;;  %v8935_v3 = vcombine.low %v8908_v23, %v6258_v62  ;;  %v2350_v62 = vrot.slane %v2348_v8, 4  ;;  %v6774_v23 = vld [vmem:[%s6488_s15 + $0x68] sm:$0x1]  ;;  %v2306_v8 = vshll.u32 %v6760_v51, 16  ;;  %v2270_v48 = vrot.slane %v2269_v14, 4 }
  0x9c   : > { %v6771_v41 = vrot.slane %v2344_v13, 5  ;;  %8939 = vst [vmem:[#allocation18_spill] sm:$0xff] %v6774_v23  ;;  %v2303_v13 = vor.u32 %v2302_v54, %v6750_v15  ;;  %v2341_v40 = vor.u32 %v2340_v57, %v2337_v5  ;;  %v2354_v46 = vshll.u32 %v6774_v23, 16  ;;  %v6797_v54 = vld [vmem:[%s6488_s15 + $0x74] sm:$0x1] }
  0x9d   : > { %8940 = vst [vmem:[#allocation19_spill] sm:$0xff] %v6797_v54  ;;  %v2361_v20 = vrot.slane %v2359_v10, 4  ;;  %v6799_v33 = vrot.slane %v2368_v32, 5  ;;  %v2280_v14 = vrot.slane %v2279_v42, 4  ;;  %v6802_v5 = vld [vmem:[%s6488_s15 + $0x78] sm:$0xf] }
  0x9e   : > { %5534 = vmatmul.mubr.msk.bf16.gmra.mxu1 %vm834_vm4, %v8935_v3  ;;  %v2261_v3 = vsel %vm6004_vm5, %v2256_v7, %v6686_v0  ;;  %v2351_v0 = vor.u32 %v2350_v62, %v6771_v41  ;;  %v2364_v7 = vrot.slane %v2362_v53, 5  ;;  %v2328_v62 = vrot.slane %v2327_v25, 4  ;;  %v6809_v10 = vld [vmem:[%s6488_s15 + $0x7c] sm:$0xf] }
  0x9f   : > { %5573 = vmatprep.mubr.msk.bf16.mxu1 %vm834_vm4, %v8937_v49  ;;  %v2317_v49 = vor.u32 %v2316_v55, %v2313_v17  ;;  %v5120_v47 = vcombine.low %v2251_v35, %v2261_v3  ;;  %v2294_v17 = vrot.slane %v2293_v60, 4  ;;  %v2308_v55 = vrot.slane %v2306_v8, 5 }
  0xa0   : > { %v2332_v23 = vrot.slane %v2330_v2, 5  ;;  %v8942_v35 = vcombine.low %v6528_v45, %v6536_v1  ;;  %v2342_v42 = vrot.slane %v2341_v40, 4  ;;  %v2352_v53 = vrot.slane %v2351_v0, 4 }
  0xa1   : > { %v2318_v57 = vrot.slane %v2317_v49, 4  ;;  %v2378_v32 = vshll.u32 %v6797_v54, 16  ;;  %v2365_v3 = vor.u32 %v2364_v7, %v2361_v20  ;;  %v2383_v2 = vshrl.u32 %v6802_v5, 16 }
  0xa2   : > { %5608 = vmatmul.mubr.msk.bf16.vlgmr.msra.gmra.mxu0 %vm834_vm4, %v6668_v29  ;;  %v2374_v29 = vrot.slane %v2372_v11, 4  ;;  %v2356_v11 = vrot.slane %v2354_v46, 5  ;;  %v2386_v25 = vshll.u32 %v6802_v5, 16  ;;  %v2396_v8 = vshrl.u32 %v6809_v10, 16 }
  0xa3   : > { %5674 = vmatpush3.bf16.msra.mxu0 %v6513_v26  ;;  %5611 = vmatprep.mubr.msk.bf16.mxu0 %vm834_vm4, %v6684_v58  ;;  %v8941_v26 = vcombine.low %v6520_v28, %v6524_v22  ;;  %v2304_v58 = vrot.slane %v2303_v13, 4  ;;  %v2392_v13 = vshll.u32 %v6809_v10, 16  ;;  %v2285_v49 = vsel %vm6004_vm5, %v2280_v14, %v6783_v4 }
  0xa4   : > { %v2375_v60 = vor.u32 %v2374_v29, %v6799_v33  ;;  %v2299_v0 = vsel %vm6004_vm5, %v2294_v17, %v6750_v15  ;;  %v2333_v4 = vsel %vm6004_vm5, %v2328_v62, %v2332_v23  ;;  %v2347_v20 = vsel %vm6004_vm5, %v2342_v42, %v6771_v41  ;;  %v6851_v29 = vld [vmem:[%s6488_s15 + $0x88] sm:$0xf] }
  0xa5   : > { %v2309_v46 = vsel %vm6004_vm5, %v2304_v58, %v2308_v55  ;;  %v2357_v15 = vsel %vm6004_vm5, %v2352_v53, %v2356_v11  ;;  %v2380_v7 = vrot.slane %v2378_v32, 5  ;;  %v2385_v17 = vrot.slane %v2383_v2, 4  ;;  %v6878_v2 = vld [vmem:[%s6488_s15 + $0x90] sm:$0xf] }
  0xa6   : > { %5574 = vmatmul.mubr.msk.bf16.vlgmr.msra.gmra.mxu1 %vm834_vm4, %v8941_v26  ;;  %v2376_v14 = vrot.slane %v2375_v60, 4  ;;  %v2388_v55 = vrot.slane %v2386_v25, 5  ;;  %v6857_v23 = vrot.slane %v2392_v13, 5  ;;  %v2398_v26 = vrot.slane %v2396_v8, 4  ;;  %v6916_v60 = vld [vmem:[%s6488_s15 + $0xa8] sm:$0xf] }
  0xa7   : > { %5640 = vmatpush3.bf16.msra.mxu1 %v6478_v37  ;;  %5577 = vmatprep.mubr.msk.bf16.mxu1 %vm834_vm4, %v8942_v35  ;;  %v2275_v37 = vsel %vm6004_vm5, %v2270_v48, %v6713_v27  ;;  %v2323_v48 = vsel %vm6004_vm5, %v2318_v57, %v6762_v31  ;;  %v6839_v27 = vld [vmem:[%s6488_s15 + $0x84] sm:$0xf]  ;;  %v2366_v31 = vrot.slane %v2365_v3, 4  ;;  %v8944_v57 = vcombine.low %v6542_v38, %v6550_v24 }
  0xa8   : > { %v2407_v41 = vshrl.u32 %v6839_v27, 16  ;;  %v2410_v58 = vshll.u32 %v6839_v27, 16  ;;  %v2420_v35 = vshrl.u32 %v6851_v29, 16  ;;  %v2416_v42 = vshll.u32 %v6851_v29, 16 }
  0xa9   : > { %v8945_v53 = vcombine.low %v6583_v30, %v6608_v50  ;;  %v5122_v11 = vcombine.low %v2299_v0, %v2309_v46  ;;  %v5123_v32 = vcombine.low %v2323_v48, %v2333_v4  ;;  %v6880_v25 = vcombine.low %v2347_v20, %v2357_v15  ;;  %v6890_v0 = vld [vmem:[%s6488_s15 + $0x9c] sm:$0xf]  ;;  %v6896_v4 = vld [vmem:[%s6488_s15 + $0x8c] sm:$0x1] }
  0xaa   : > { %5612 = vmatmul.mubr.msk.bf16.gmra.mxu0 %vm834_vm4, %v6702_v43  ;;  %v6855_v43 = vld [vmem:[%s6488_s15 + $0x80] sm:$0x1]  ;;  %v2389_v8 = vor.u32 %v2388_v55, %v2385_v17  ;;  %v2381_v46 = vsel %vm6004_vm5, %v2376_v14, %v2380_v7  ;;  %v2399_v48 = vor.u32 %v2398_v26, %v6857_v23  ;;  %8946 = vst [vmem:[#allocation21_spill] sm:$0xff] %v6896_v4  ;;  %v2409_v20 = vrot.slane %v2407_v41, 4 }
  0xab   : > { %5615 = vmatprep.mubr.msk.bf16.mxu0 %vm834_vm4, %v5120_v47  ;;  %8943 = vst [vmem:[#allocation20_spill] sm:$0xff] %v6855_v43  ;;  %v5121_v47 = vcombine.low %v2275_v37, %v2285_v49  ;;  %v2371_v37 = vsel %vm6004_vm5, %v2366_v31, %v6799_v33  ;;  %v2402_v13 = vshll.u32 %v6855_v43, 16  ;;  %v6887_v49 = vld [vmem:[%s6488_s15 + $0x94] sm:$0xf]  ;;  %v2412_v15 = vrot.slane %v2410_v58, 5 }
  0xac   : > { %v2422_v33 = vrot.slane %v2420_v35, 4  ;;  %v2431_v31 = vshrl.u32 %v6878_v2, 16  ;;  %v2434_v17 = vshll.u32 %v6878_v2, 16  ;;  %v6903_v55 = vld [vmem:[%s6488_s15 + $0xa0] sm:$0xf]  ;;  %v2444_v7 = vshrl.u32 %v6887_v49, 16 }
  0xad   : > { %v2440_v14 = vshll.u32 %v6887_v49, 16  ;;  %v2455_v26 = vshrl.u32 %v6890_v0, 16  ;;  %v2458_v41 = vshll.u32 %v6890_v0, 16  ;;  %v6911_v58 = vcombine.low %v2371_v37, %v2381_v46  ;;  %v6922_v43 = vld [vmem:[%s6488_s15 + $0xac] sm:$0xf] }
  0xae   : > { %5578 = vmatmul.mubr.msk.bf16.gmra.mxu1 %vm834_vm4, %v8944_v57  ;;  %v6898_v57 = vrot.slane %v2416_v42, 5  ;;  %v2390_v35 = vrot.slane %v2389_v8, 4  ;;  %v2404_v42 = vrot.slane %v2402_v13, 5  ;;  %v2426_v3 = vshll.u32 %v6896_v4, 16 }
  0xaf   : > { %5581 = vmatprep.mubr.msk.bf16.mxu1 %vm834_vm4, %v8945_v53  ;;  %v2468_v62 = vshrl.u32 %v6903_v55, 16  ;;  %v2464_v40 = vshll.u32 %v6903_v55, 16  ;;  %v2413_v37 = vor.u32 %v2412_v15, %v2409_v20  ;;  %v2433_v13 = vrot.slane %v2431_v31, 4  ;;  %v6934_v53 = vld [vmem:[%s6488_s15 + $0x98] sm:$0x1] }
  0xb0   : > { %v2423_v8 = vor.u32 %v2422_v33, %v6898_v57  ;;  %v2436_v46 = vrot.slane %v2434_v17, 5  ;;  %8949 = vst [vmem:[#allocation22_spill] sm:$0xff] %v6934_v53  ;;  %v6936_v4 = vrot.slane %v2440_v14, 5  ;;  %v2446_v54 = vrot.slane %v2444_v7, 4 }
  0xb1   : > { %v2457_v36 = vrot.slane %v2455_v26, 4  ;;  %v2460_v51 = vrot.slane %v2458_v41, 5  ;;  %v2479_v20 = vshrl.u32 %v6916_v60, 16  ;;  %v2482_v15 = vshll.u32 %v6916_v60, 16 }
  0xb2   : > { %5616 = vmatmul.mubr.msk.bf16.gmra.mxu0 %vm834_vm4, %v5121_v47  ;;  %v2400_v47 = vrot.slane %v2399_v48, 4  ;;  %v8948_v48 = vcombine.low %v6678_v12, %v6693_v56  ;;  %v2492_v33 = vshrl.u32 %v6922_v43, 16  ;;  %v2488_v31 = vshll.u32 %v6922_v43, 16  ;;  %v6954_v56 = vld [vmem:[%s6488_s15 + $0xb4] sm:$0xf] }
  0xb3   : > { %5619 = vmatprep.mubr.msk.bf16.mxu0 %vm834_vm4, %v5122_v11  ;;  %v8947_v11 = vcombine.low %v6626_v16, %v6641_v18  ;;  %v6939_v16 = vld [vmem:[%s6488_s15 + $0xa4] sm:$0x1]  ;;  %v2395_v17 = vsel %vm6004_vm5, %v2390_v35, %v6857_v23  ;;  %v6950_v14 = vrot.slane %v2464_v40, 5  ;;  %v2470_v26 = vrot.slane %v2468_v62, 4 }
  0xb4   : > { %8950 = vst [vmem:[#allocation23_spill] sm:$0xff] %v6939_v16  ;;  %v2405_v7 = vsel %vm6004_vm5, %v2400_v47, %v2404_v42  ;;  %v2414_v41 = vrot.slane %v2413_v37, 4  ;;  %v2450_v12 = vshll.u32 %v6934_v53, 16  ;;  %v2437_v30 = vor.u32 %v2436_v46, %v2433_v13  ;;  %v6960_v42 = vld [vmem:[%s6488_s15 + $0xb8] sm:$0xf] }
  0xb5   : > { %v2447_v18 = vor.u32 %v2446_v54, %v6936_v4  ;;  %v2461_v23 = vor.u32 %v2460_v51, %v2457_v36  ;;  %v2474_v35 = vshll.u32 %v6939_v16, 16  ;;  %v2481_v40 = vrot.slane %v2479_v20, 4 }
  0xb6   : > { %5582 = vmatmul.mubr.msk.bf16.gmra.mxu1 %vm834_vm4, %v8947_v11  ;;  %v2424_v11 = vrot.slane %v2423_v8, 4  ;;  %v2484_v62 = vrot.slane %v2482_v15, 5  ;;  %v2494_v47 = vrot.slane %v2492_v33, 4  ;;  %v5126_v37 = vcombine.low %v2395_v17, %v2405_v7  ;;  %v5230_v15 = vld [vmem:[%s8807_s3 + $0xe] sm:$0x3] }
  0xb7   : > { %5585 = vmatprep.mubr.msk.bf16.mxu1 %vm834_vm4, %v8948_v48  ;;  %v2428_v48 = vrot.slane %v2426_v3, 5  ;;  %v6964_v3 = vrot.slane %v2488_v31, 5  ;;  %v2471_v8 = vor.u32 %v2470_v26, %v6950_v14  ;;  %v2503_v54 = vshrl.u32 %v6954_v56, 16 }
  0xb8   : > { %v2506_v51 = vshll.u32 %v6954_v56, 16  ;;  %v8951_v36 = vcombine.low %v6696_v34, %v6708_v63  ;;  %v2452_v13 = vrot.slane %v2450_v12, 5  ;;  %v2516_v46 = vshrl.u32 %v6960_v42, 16 }
  0xb9   : > { %v2512_v20 = vshll.u32 %v6960_v42, 16  ;;  %v8952_v33 = vcombine.low %v6711_v44, %v6721_v59  ;;  %v2429_v31 = vsel %vm6004_vm5, %v2424_v11, %v2428_v48  ;;  %v2438_v17 = vrot.slane %v2437_v30, 4 }
  0xba   : > { %5620 = vmatmul.mubr.msk.bf16.gmra.mxu0 %vm834_vm4, %v5123_v32  ;;  %v6968_v32 = vld [vmem:[%s6488_s15 + $0xb0] sm:$0x1]  ;;  %v2476_v12 = vrot.slane %v2474_v35, 5  ;;  %v2462_v7 = vrot.slane %v2461_v23, 4  ;;  %v2485_v26 = vor.u32 %v2484_v62, %v2481_v40  ;;  %v2472_v53 = vrot.slane %v2471_v8, 4 }
  0xbb   : > { %5623 = vmatprep.mubr.msk.bf16.mxu0 %vm834_vm4, %v6880_v25  ;;  %v2419_v25 = vsel %vm6004_vm5, %v2414_v41, %v6898_v57  ;;  %v2448_v57 = vrot.slane %v2447_v18, 4  ;;  %v2495_v41 = vor.u32 %v2494_v47, %v6964_v3  ;;  %v2505_v16 = vrot.slane %v2503_v54, 4  ;;  %v7000_v18 = vld [vmem:[%s6488_s15 + $0xbc] sm:$0x1] }
  0xbc   : > { %v2508_v34 = vrot.slane %v2506_v51, 5  ;;  %v6993_v44 = vand.u32 %v5230_v15, %v8911_v52  ;;  %v5096_v30 = vcombine.low %v6890_v0, %v6903_v55  ;;  %v7002_v11 = vrot.slane %v2512_v20, 5  ;;  %v7037_v15 = vld [vmem:[%s7015_s26 + $0xc] sm:$0xf] }
  0xbd   : > { %v2518_v48 = vrot.slane %v2516_v46, 4  ;;  %v5127_v23 = vcombine.low %v2419_v25, %v2429_v31  ;;  %v2443_v35 = vsel %vm6004_vm5, %v2438_v17, %v6936_v4  ;;  %v2453_v40 = vsel %vm6004_vm5, %v2448_v57, %v2452_v13  ;;  %8954 = vst [vmem:[#allocation24_spill] sm:$0xff] %v7037_v15 }
  0xbe   : > { %5586 = vmatmul.mubr.msk.bf16.gmra.mxu1 %vm834_vm4, %v8951_v36  ;;  %v2498_v36 = vshll.u32 %v6968_v32, 16  ;;  %5707 = vmatprep.subr.bf16.mxu1 %v6993_v44  ;;  %v2467_v4 = vsel %vm6004_vm5, %v2462_v7, %v6950_v14  ;;  %v2486_v62 = vrot.slane %v2485_v26, 4  ;;  %v2496_v47 = vrot.slane %v2495_v41, 4  ;;  %v7058_v26 = vld [vmem:[%s7015_s26] sm:$0xf] }
  0xbf   : > { %5589 = vmatprep.mubr.msk.bf16.mxu1 %vm834_vm4, %v8952_v33  ;;  %v5095_v33 = vcombine.low %v6878_v2, %v6887_v49  ;;  %v2477_v54 = vsel %vm6004_vm5, %v2472_v53, %v2476_v12  ;;  %v2509_v51 = vor.u32 %v2508_v34, %v2505_v16  ;;  %v2522_v25 = vshll.u32 %v7000_v18, 16  ;;  %v7061_v41 = vld [vmem:[%s7015_s26 + $0x4] sm:$0xf] }
  0xc0   : > { %v2500_v8 = vrot.slane %v2498_v36, 5  ;;  %v2838_v13 = vrot.slane %v6510_v9, 5  ;;  %v8953_v46 = vcombine.low %v6748_v61, %v6753_v6  ;;  %v5097_v14 = vcombine.low %v6916_v60, %v6922_v43 }
  0xc1   : > { %v2519_v20 = vor.u32 %v2518_v48, %v7002_v11  ;;  %v8955_v9 = vcombine.low %v6802_v5, %v6809_v10  ;;  %v2845_v53 = vrot.slane %v6524_v22, 5  ;;  %v3641_v31 = vshrl.u32 %v7037_v15, 16 }
  0xc2   : > { %5624 = vmatmul.mubr.msk.bf16.gmra.mxu0 %vm834_vm4, %v6911_v58  ;;  %v5279_v58 = vld [vmem:[%s8807_s3 + $0x10] sm:$0x3]  ;;  %v3644_v17 = vshll.u32 %v7037_v15, 16  ;;  %v5129_v57 = vcombine.low %v2467_v4, %v2477_v54  ;;  %v2501_v12 = vsel %vm6004_vm5, %v2496_v47, %v2500_v8  ;;  %v5148_v7 = vrot.slane %v6507_v19, 9  ;;  %v8956_v47 = vld [vmem:[#allocation9_spill] sm:$0xff] }
  0xc3   : > { %5627 = vmatprep.mubr.msk.bf16.mxu0 %vm834_vm4, %v5126_v37  ;;  %v5128_v37 = vcombine.low %v2443_v35, %v2453_v40  ;;  %v7040_v16 = vand.u32 %v5279_v58, %v8911_v52  ;;  %v2491_v52 = vsel %vm6004_vm5, %v2486_v62, %v6964_v3  ;;  %v2510_v22 = vrot.slane %v2509_v51, 4  ;;  %v7066_v40 = vld [vmem:[%s7015_s26 + $0x10] sm:$0xf] }
  0xc4   : > { %v2524_v36 = vrot.slane %v2522_v25, 5  ;;  %v2840_v48 = vrot.slane %v2838_v13, 4  ;;  %v2841_v35 = vrot.slane %v6561_v21, 5  ;;  %v2520_v58 = vrot.slane %v2519_v20, 4 }
  0xc5   : > { %5741 = vmatprep.subr.bf16.mxu0 %v7040_v16  ;;  %v5149_v3 = vrot.slane %v6520_v28, 9  ;;  %v3650_v4 = vshll.u32 %v7066_v40, 16  ;;  %v3654_v19 = vshrl.u32 %v7066_v40, 16  ;;  %v2847_v62 = vrot.slane %v2845_v53, 4  ;;  %v8973_v28 = vld [vmem:[#allocation6_spill] sm:$0xff] }
  0xc6   : > { %5590 = vmatmul.mubr.msk.bf16.gmra.mxu1 %vm834_vm4, %v8953_v46  ;;  %v2848_v8 = vrot.slane %v8956_v47, 5  ;;  %v3643_v54 = vrot.slane %v3641_v31, 4  ;;  %v3646_v51 = vrot.slane %v3644_v17, 5  ;;  %v5130_v25 = vcombine.low %v2491_v52, %v2501_v12 }
  0xc7   : > { %5593 = vmatprep.mubr.msk.bf16.mxu1 %vm834_vm4, %v8955_v9  ;;  %v7076_v46 = vsel %vm6277_vm8, %v5148_v7, %v2838_v13  ;;  %v2852_v20 = vrot.slane %v6536_v1, 5  ;;  %v7086_v9 = vsel %vm6277_vm8, %v2840_v48, %v2841_v35  ;;  %v8958_v31 = vcombine.low %v6839_v27, %v6851_v29  ;;  %v7113_v48 = vld [vmem:[%s7015_s26 + $0x18] sm:$0xf]  ;;  %v7116_v35 = vld [vmem:[%s7015_s26 + $0x1c] sm:$0xf]  ;;  %v8965_v13 = vld [vmem:[#allocation14_spill] sm:$0xff] }
  0xc8   : > { %v2525_v1 = vsel %vm6004_vm5, %v2520_v58, %v2524_v36  ;;  %v7096_v17 = vrot.slane %v3650_v4, 5  ;;  %v3656_v52 = vrot.slane %v3654_v19, 4  ;;  %v7105_v12 = vsel %vm6277_vm8, %v5149_v3, %v2845_v53  ;;  %v8960_v19 = vld [vmem:[#allocation8_spill] sm:$0xff] }
  0xc9   : > { %v7109_v7 = vsel %vm6277_vm8, %v2847_v62, %v2848_v8  ;;  %v5150_v36 = vrot.slane %v6528_v45, 9  ;;  %v2854_v4 = vrot.slane %v2852_v20, 4  ;;  %v2859_v53 = vrot.slane %v6550_v24, 5  ;;  %v8968_v24 = vld [vmem:[#allocation11_spill] sm:$0xff]  ;;  %v7191_v45 = vld [vmem:[%s7015_s26 + $0x30] sm:$0xf] }
  0xca   : > { %5628 = vmatmul.mubr.msk.bf16.gmra.mxu0 %vm834_vm4, %v5127_v23  ;;  %v2515_v23 = vsel %vm6004_vm5, %v2510_v22, %v7002_v11  ;;  %8959 = vst [vmem:[#allocation9_spill] sm:$0xff] %v7096_v17  ;;  %v8852_v11 = vrot.slane %v7066_v40, 5  ;;  %v3647_v22 = vor.u32 %v3646_v51, %v3643_v54  ;;  %v3657_v54 = vor.u32 %v3656_v52, %v7096_v17  ;;  %v7145_v52 = vld [vmem:[%s7015_s26 + $0x24] sm:$0xf]  ;;  %v7201_v62 = vld [vmem:[%s7015_s26 + $0x34] sm:$0xf] }
  0xcb   : > { %5631 = vmatprep.mubr.msk.bf16.mxu0 %vm834_vm4, %v5128_v37  ;;  %v5131_v3 = vcombine.low %v2515_v23, %v2525_v1  ;;  %v5151_v1 = vrot.slane %v6542_v38, 9  ;;  %v2861_v58 = vrot.slane %v2859_v53, 4  ;;  %v3692_v38 = vshll.u32 %v7145_v52, 16  ;;  %v8977_v17 = vld [vmem:[#allocation4_spill] sm:$0xff] }
  0xcc   : > { %v7131_v51 = vrot.slane %v8852_v11, 4  ;;  %v7136_v23 = vrot.slane %v3647_v22, 4  ;;  %v3689_v22 = vshrl.u32 %v7145_v52, 16  ;;  %v2869_v37 = vrot.slane %v8968_v24, 5  ;;  %v7207_v24 = vld [vmem:[%s7015_s26 + $0x3c] sm:$0xf] }
  0xce   : > { %5594 = vmatmul.mubr.msk.bf16.gmra.mxu1 %vm834_vm4, %v8958_v31  ;;  %8961 = vst [vmem:[#allocation15_spill] sm:$0xff] %v7131_v51  ;;  %8962 = vst [vmem:[#allocation8_spill] sm:$0xff] %v7136_v23  ;;  %v7140_v31 = vsel %vm6277_vm8, %v5150_v36, %v2852_v20  ;;  %v2866_v20 = vrot.slane %v6608_v50, 5  ;;  %v2873_v36 = vrot.slane %v8965_v13, 5  ;;  %v7187_v8 = vrot.slane %v3689_v22, 4  ;;  %v8990_v51 = vld [vmem:[#allocation18_spill] sm:$0xff] }
  0xcf   : > { %5597 = vmatprep.mubr.msk.bf16.mxu1 %vm834_vm4, %v5095_v33  ;;  %v2855_v33 = vrot.slane %v8960_v19, 5  ;;  %v8963_v19 = vld [vmem:[#allocation12_spill] sm:$0xff]  ;;  %v8978_v23 = vcombine.low %v7076_v46, %v7086_v9  ;;  %v7272_v9 = vld [vmem:[%s7015_s26 + $0x4c] sm:$0xf] }
  0xd0   : > { %v2862_v47 = vrot.slane %v8963_v19, 5  ;;  %8967 = vst [vmem:[#allocation14_spill] sm:$0xff] %v7187_v8  ;;  %v2875_v34 = vrot.slane %v2873_v36, 4 }
  0xd1   : > { %v7150_v11 = vsel %vm6277_vm8, %v2854_v4, %v2855_v33  ;;  %v7165_v4 = vrot.slane %v3657_v54, 4  ;;  %v8966_v33 = vld [vmem:[#allocation10_spill] sm:$0xff] }
  0xd2   : > { %5632 = vmatmul.mubr.msk.bf16.gmra.mxu0 %vm834_vm4, %v5129_v57  ;;  %v7153_v57 = vld [vmem:[%s7015_s26 + $0x28] sm:$0xf]  ;;  %v5152_v50 = vrot.slane %v8966_v33, 9  ;;  %v7185_v13 = vsel %vm6277_vm8, %v2861_v58, %v2862_v47  ;;  %v8972_v47 = vld [vmem:[#allocation13_spill] sm:$0xff]  ;;  %v3737_v33 = vshrl.u32 %v7207_v24, 16  ;;  %v8974_v58 = vld [vmem:[#allocation2_spill] sm:$0xff] }
  0xd3   : > { %5635 = vmatprep.mubr.msk.bf16.mxu0 %vm834_vm4, %v5130_v25  ;;  %v3698_v19 = vshll.u32 %v7153_v57, 16  ;;  %v3702_v25 = vshrl.u32 %v7153_v57, 16  ;;  %8964 = vst [vmem:[#allocation12_spill] sm:$0xff] %v7165_v4  ;;  %v5153_v22 = vrot.slane %v8972_v47, 9  ;;  %v2876_v4 = vrot.slane %v8973_v28, 5 }
  0xd4   : > { %v2880_v47 = vrot.slane %v8974_v58, 5  ;;  %v8975_v28 = vcombine.low %v7058_v26, %v7061_v41  ;;  %v7263_v58 = vrot.slane %v3737_v33, 4 }
  0xd5   : > { %v7197_v54 = vrot.slane %v3702_v25, 4  ;;  %v7217_v25 = vld [vmem:[%s7015_s26 + $0x40] sm:$0xf]  ;;  %v7247_v39 = vsel %vm6277_vm8, %v2875_v34, %v2876_v4  ;;  %v7260_v34 = vld [vmem:[%s7015_s26 + $0x48] sm:$0xf]  ;;  %v2887_v4 = vrot.slane %v6708_v63, 5 }
  0xd6   : > { %5598 = vmatmul.mubr.msk.bf16.gmra.mxu1 %vm834_vm4, %v5096_v30  ;;  %v7178_v30 = vsel %vm6277_vm8, %v5151_v1, %v2859_v53  ;;  %v7193_v53 = vrot.slane %v3692_v38, 5  ;;  %v7195_v1 = vrot.slane %v3698_v19, 5  ;;  %v7214_v19 = vsel %vm6277_vm8, %v5152_v50, %v2866_v20  ;;  %8980 = vst [vmem:[#allocation13_spill] sm:$0xff] %v7263_v58 }
  0xd7   : > { %5601 = vmatprep.mubr.msk.bf16.mxu1 %vm834_vm4, %v5097_v14  ;;  %v2868_v14 = vrot.slane %v2866_v20, 4  ;;  %8971 = vst [vmem:[#allocation25_spill] sm:$0xff] %v7197_v54  ;;  %v3740_v38 = vshll.u32 %v7207_v24, 16  ;;  %v3746_v20 = vshll.u32 %v7217_v25, 16  ;;  %v3750_v50 = vshrl.u32 %v7217_v25, 16 }
  0xd8   : > { %8969 = vst [vmem:[#allocation10_spill] sm:$0xff] %v7193_v53  ;;  %8970 = vst [vmem:[#allocation11_spill] sm:$0xff] %v7195_v1  ;;  %v7279_v53 = vld [vmem:[%s7015_s26 + $0x54] sm:$0xf]  ;;  %v2894_v63 = vrot.slane %v6721_v59, 5 }
  0xd9   : > { %v7265_v1 = vrot.slane %v3740_v38, 5  ;;  %v7269_v46 = vrot.slane %v3750_v50, 4  ;;  %v8985_v38 = vld [vmem:[#allocation5_spill] sm:$0xff] }
  0xda   : > { %5636 = vmatmul.mubr.msk.bf16.gmra.mxu0 %vm834_vm4, %v5131_v3  ;;  %v7227_v3 = vsel %vm6277_vm8, %v2868_v14, %v2869_v37  ;;  %v8976_v37 = vcombine.low %v6954_v56, %v6960_v42  ;;  %v7243_v14 = vsel %vm6277_vm8, %v5153_v22, %v2873_v36  ;;  %v2882_v36 = vrot.slane %v2880_v47, 4  ;;  %v8979_v22 = vld [vmem:[#allocation16_spill] sm:$0xff]  ;;  %v8986_v50 = vld [vmem:[#allocation17_spill] sm:$0xff] }
  0xdb   : > { %5675 = vmatprep.mubr.msk.bf16.mxu0 %vm834_vm4, %v8975_v28  ;;  %v5154_v28 = vrot.slane %v8977_v17, 9  ;;  %v2883_v54 = vrot.slane %v8979_v22, 5  ;;  %8981 = vst [vmem:[#allocation6_spill] sm:$0xff] %v7265_v1  ;;  %v7267_v17 = vrot.slane %v3746_v20, 5  ;;  %8983 = vst [vmem:[#allocation4_spill] sm:$0xff] %v7269_v46  ;;  %v5155_v20 = vrot.slane %v8985_v38, 9 }
  0xdc   : > { %8984 = vst [vmem:[#allocation16_spill] sm:$0xff] %v7279_v53  ;;  %v2890_v46 = vrot.slane %v8986_v50, 5  ;;  %v8987_v22 = vcombine.low %v7037_v15, %v7066_v40  ;;  %v8988_v38 = vcombine.low %v7113_v48, %v7116_v35  ;;  %v2896_v8 = vrot.slane %v2894_v63, 4 }
  0xdd   : > { %8982 = vst [vmem:[#allocation2_spill] sm:$0xff] %v7267_v17  ;;  %v7284_v33 = vsel %vm6277_vm8, %v5154_v28, %v2880_v47  ;;  %v7289_v17 = vld [vmem:[%s7015_s26 + $0x58] sm:$0xf]  ;;  %v7298_v59 = vsel %vm6277_vm8, %v2882_v36, %v2883_v54  ;;  %v3788_v47 = vshll.u32 %v7279_v53, 16  ;;  %v8989_v36 = vld [vmem:[#allocation7_spill] sm:$0xff]  ;;  %v2901_v15 = vrot.slane %v6753_v6, 5 }
  0xde   : > { %5602 = vmatmul.mubr.msk.bf16.gmra.mxu1 %vm834_vm4, %v8976_v37  ;;  %v2889_v37 = vrot.slane %v2887_v4, 4  ;;  %v3794_v28 = vshll.u32 %v7289_v17, 16  ;;  %v5156_v1 = vrot.slane %v8989_v36, 9  ;;  %v7323_v36 = vsel %vm6277_vm8, %v5155_v20, %v2887_v4  ;;  %v7329_v6 = vld [vmem:[%s7015_s26 + $0x60] sm:$0xf] }
  0xdf   : > { %5641 = vmatprep.mubr.msk.bf16.mxu1 %vm834_vm4, %v8978_v23  ;;  %v3785_v23 = vshrl.u32 %v7279_v53, 16  ;;  %8992 = vst [vmem:[#allocation5_spill] sm:$0xff] %v7329_v6  ;;  %v7342_v20 = vrot.slane %v3788_v47, 5  ;;  %v7347_v54 = vld [vmem:[%s7015_s26 + $0x64] sm:$0xf]  ;;  %v9010_v50 = vcombine.low %v7214_v19, %v7227_v3  ;;  %v9018_v19 = vcombine.low %v7207_v24, %v7217_v25 }
  0xe0   : > { %8995 = vst [vmem:[#allocation7_spill] sm:$0xff] %v7347_v54  ;;  %v7364_v47 = vld [vmem:[%s7015_s26 + $0x70] sm:$0xf]  ;;  %v7441_v3 = vld [vmem:[%s7015_s26 + $0x84] sm:$0xf] }
  0xe1   : > { %v7340_v4 = vrot.slane %v3785_v23, 4  ;;  %v2903_v23 = vrot.slane %v2901_v15, 4 }
  0xe2   : > { %5676 = vmatmul.mubr.msk.bf16.vlgmr.msra.gmra.mxu0 %vm834_vm4, %v8987_v22 }
  0xe3   : > { %5742 = vmatpush3.bf16.msra.mxu0 %v7040_v16  ;;  %5679 = vmatprep.mubr.msk.bf16.mxu0 %vm834_vm4, %v8988_v38  ;;  %v2897_v16 = vrot.slane %v8990_v51, 5  ;;  %v8991_v38 = vcombine.low %v7105_v12, %v7109_v7  ;;  %v3798_v51 = vshrl.u32 %v7289_v17, 16  ;;  %v8993_v12 = vcombine.low %v7140_v31, %v7150_v11  ;;  %v8996_v31 = vld [vmem:[#allocation19_spill] sm:$0xff] }
  0xe4   : > { %v7338_v7 = vsel %vm6277_vm8, %v2889_v37, %v2890_v46  ;;  %v5157_v11 = vrot.slane %v6748_v61, 9  ;;  %v7357_v37 = vld [vmem:[%s7015_s26 + $0x6c] sm:$0xf]  ;;  %8998 = vst [vmem:[#allocation19_spill] sm:$0xff] %v7364_v47  ;;  %v3846_v61 = vshrl.u32 %v7364_v47, 16 }
  0xe5   : > { %8997 = vst [vmem:[#allocation18_spill] sm:$0xff] %v7357_v37  ;;  %v7361_v46 = vsel %vm6277_vm8, %v2896_v8, %v2897_v16  ;;  %v3836_v58 = vshll.u32 %v7357_v37, 16  ;;  %v9000_v8 = vcombine.low %v7145_v52, %v7153_v57  ;;  %v9007_v16 = vcombine.low %v7178_v30, %v7185_v13 }
  0xe6   : > { %5642 = vmatmul.mubr.msk.bf16.vlgmr.msra.gmra.mxu1 %vm834_vm4, %v8991_v38  ;;  %v7344_v38 = vrot.slane %v3794_v28, 5  ;;  %v3833_v28 = vshrl.u32 %v7357_v37, 16  ;;  %v7381_v22 = vpop.f32.mrf.mxu0  ;;  %v7428_v30 = vrot.slane %v3846_v61, 4  ;;  %v2915_v61 = vrot.slane %v6851_v29, 5 }
  0xe7   : > { %5708 = vmatpush3.bf16.msra.mxu1 %v6993_v44  ;;  %5645 = vmatprep.mubr.msk.bf16.mxu1 %vm834_vm4, %v8993_v12  ;;  %v7352_v44 = vsel %vm6277_vm8, %v5156_v1, %v2894_v63  ;;  %v2904_v12 = vrot.slane %v8996_v31, 5  ;;  %v7370_v63 = vrot.slane %v3798_v51, 4  ;;  %v2908_v31 = vrot.slane %v6809_v10, 5  ;;  %9001 = vst [vmem:[#allocation27_spill] sm:$0xff] %v7381_v22  ;;  %v7411_v1 = vld [vmem:[%s7015_s26 + $0x7c] sm:$0xf] }
  0xe8   : > { %8994 = vst [vmem:[#allocation17_spill] sm:$0xff] %v7344_v38  ;;  %v3842_v51 = vshll.u32 %v7364_v47, 16  ;;  %v9002_v10 = vcombine.low %v7191_v45, %v7201_v62  ;;  %v7397_v22 = vsel %vm6277_vm8, %v5157_v11, %v2901_v15  ;;  %v7403_v38 = vrot.slane %v3833_v28, 4  ;;  %9006 = vst [vmem:[#allocation31_spill] sm:$0xff] %v7411_v1  ;;  %v7430_v13 = vpop.f32.mrf.mxu0 }
  0xe9   : > { %8999 = vst [vmem:[#allocation26_spill] sm:$0xff] %v7370_v63  ;;  %v7401_v63 = vsel %vm6277_vm8, %v2903_v23, %v2904_v12  ;;  %v5158_v11 = vrot.slane %v6802_v5, 9  ;;  %v2910_v12 = vrot.slane %v2908_v31, 4  ;;  %v9009_v23 = vld [vmem:[#allocation20_spill] sm:$0xff]  ;;  %9012 = vst [vmem:[#allocation33_spill] sm:$0xff] %v7428_v30  ;;  %v9014_v5 = vld [vmem:[#allocation23_spill] sm:$0xff] }
  0xea   : > { %5680 = vmatmul.mubr.msk.bf16.gmra.mxu0 %vm834_vm4, %v9000_v8  ;;  %9003 = vst [vmem:[#allocation28_spill] sm:$0xff] %v7403_v38  ;;  %v7408_v8 = vld [vmem:[%s7015_s26 + $0x78] sm:$0xf]  ;;  %v2911_v28 = vrot.slane %v9009_v23, 5  ;;  %9013 = vst [vmem:[#allocation34_spill] sm:$0xff] %v7430_v13  ;;  %v5159_v29 = vrot.slane %v6839_v27, 9  ;;  %v9020_v27 = vcombine.low %v7260_v34, %v7272_v9 }
  0xeb   : > { %5683 = vmatprep.mubr.msk.bf16.mxu0 %vm834_vm4, %v9002_v10  ;;  %v7405_v10 = vrot.slane %v3836_v58, 5  ;;  %9005 = vst [vmem:[#allocation30_spill] sm:$0xff] %v7408_v8  ;;  %v7417_v15 = vpop.f32.mrf.mxu1  ;;  %v5161_v58 = vrot.slane %v6890_v0, 9  ;;  %9015 = vst [vmem:[#allocation23_spill] sm:$0xff] %v7441_v3  ;;  %v7456_v0 = vsel %vm6277_vm8, %v5158_v11, %v2908_v31  ;;  %v3881_v31 = vshrl.u32 %v7441_v3, 16 }
  0xec   : > { %9008 = vst [vmem:[#allocation32_spill] sm:$0xff] %v7417_v15  ;;  %v2932_v15 = vrot.slane %v9014_v5, 5  ;;  %v7460_v38 = vsel %vm6277_vm8, %v2910_v12, %v2911_v28  ;;  %v2922_v11 = vrot.slane %v6887_v49, 5  ;;  %v9021_v28 = vld [vmem:[#allocation21_spill] sm:$0xff]  ;;  %v5163_v49 = vrot.slane %v6954_v56, 9 }
  0xed   : > { %9004 = vst [vmem:[#allocation29_spill] sm:$0xff] %v7405_v10  ;;  %v7426_v10 = vrot.slane %v3842_v51, 5  ;;  %v7446_v51 = vld [vmem:[%s7015_s26 + $0x88] sm:$0xf]  ;;  %v7452_v23 = vpop.f32.mrf.mxu1  ;;  %v2943_v30 = vrot.slane %v6960_v42, 5 }
  0xee   : > { %5646 = vmatmul.mubr.msk.bf16.gmra.mxu1 %vm834_vm4, %v9007_v16  ;;  %v2929_v16 = vrot.slane %v6903_v55, 5  ;;  %9016 = vst [vmem:[#allocation35_spill] sm:$0xff] %v7446_v51  ;;  %9017 = vst [vmem:[#allocation36_spill] sm:$0xff] %v7452_v23  ;;  %v5160_v23 = vrot.slane %v6878_v2, 9  ;;  %v2946_v2 = vrot.slane %v7000_v18, 5 }
  0xef   : > { %5649 = vmatprep.mubr.msk.bf16.mxu1 %vm834_vm4, %v9010_v50  ;;  %9011 = vst [vmem:[#allocation20_spill] sm:$0xff] %v7426_v10  ;;  %v2918_v50 = vrot.slane %v9021_v28, 5  ;;  %v7495_v28 = vpop.f32.mrf.mxu1  ;;  %v9024_v10 = vcombine.low %v7284_v33, %v7298_v59  ;;  %v7517_v42 = vld [vmem:[%s7015_s26 + $0x90] sm:$0xf]  ;;  %v2936_v33 = vrot.slane %v6922_v43, 5  ;;  %v7522_v59 = vsel %vm6277_vm8, %v5163_v49, %v2943_v30 }
  0xf0   : > { %v7450_v55 = vsel %vm6277_vm8, %v5161_v58, %v2929_v16  ;;  %v2931_v5 = vrot.slane %v2929_v16, 4  ;;  %v7468_v58 = vpop.f32.mrf.mxu0  ;;  %v3884_v16 = vshll.u32 %v7441_v3, 16  ;;  %9023 = vst [vmem:[#allocation21_spill] sm:$0xff] %v7495_v28  ;;  %v7540_v43 = vsel %vm6277_vm8, %v5160_v23, %v2922_v11  ;;  %v7543_v49 = vld [vmem:[%s7015_s26 + $0x94] sm:$0xf] }
  0xf1   : > { %9019 = vst [vmem:[#allocation37_spill] sm:$0xff] %v7468_v58  ;;  %v3894_v58 = vshrl.u32 %v7446_v51, 16 }
  0xf2   : > { %5684 = vmatmul.mubr.msk.bf16.gmra.mxu0 %vm834_vm4, %v9018_v19  ;;  %v7475_v12 = vsel %vm6277_vm8, %v2931_v5, %v2932_v15  ;;  %v2917_v15 = vrot.slane %v2915_v61, 4  ;;  %v3890_v5 = vshll.u32 %v7446_v51, 16  ;;  %v7499_v19 = vsel %vm6277_vm8, %v5159_v29, %v2915_v61  ;;  %v9027_v61 = vld [vmem:[#allocation22_spill] sm:$0xff] }
  0xf3   : > { %5687 = vmatprep.mubr.msk.bf16.mxu0 %vm834_vm4, %v9020_v27  ;;  %v9022_v27 = vcombine.low %v7243_v14, %v7247_v39  ;;  %v7508_v39 = vpop.f32.mrf.mxu0  ;;  %v7510_v14 = vrot.slane %v3881_v31, 4  ;;  %v2925_v29 = vrot.slane %v9027_v61, 5  ;;  %v7514_v56 = vrot.slane %v3884_v16, 5  ;;  %v7534_v16 = vld [vmem:[%s7015_s26 + $0x9c] sm:$0xf] }
  0xf4   : > { %9025 = vst [vmem:[#allocation38_spill] sm:$0xff] %v7508_v39  ;;  %v7526_v31 = vsel %vm6277_vm8, %v2917_v15, %v2918_v50  ;;  %v7528_v28 = vrot.slane %v3890_v5, 5  ;;  %v7530_v61 = vrot.slane %v3894_v58, 4  ;;  %v3929_v50 = vshrl.u32 %v7534_v16, 16  ;;  %v7597_v39 = vld [vmem:[%s7015_s26 + $0xac] sm:$0xf] }
  0xf5   : > { %9026 = vst [vmem:[#allocation39_spill] sm:$0xff] %v7510_v14  ;;  %9028 = vst [vmem:[#allocation22_spill] sm:$0xff] %v7514_v56  ;;  %v7536_v56 = vpop.f32.mrf.mxu1  ;;  %v3932_v15 = vshll.u32 %v7534_v16, 16  ;;  %v9032_v5 = vcombine.low %v7279_v53, %v7289_v17  ;;  %v7614_v14 = vld [vmem:[%s7015_s26 + $0xb4] sm:$0xf] }
  0xf6   : > { %5650 = vmatmul.mubr.msk.bf16.gmra.mxu1 %vm834_vm4, %v9022_v27  ;;  %v2924_v27 = vrot.slane %v2922_v11, 4  ;;  %9029 = vst [vmem:[#allocation40_spill] sm:$0xff] %v7528_v28  ;;  %9030 = vst [vmem:[#allocation41_spill] sm:$0xff] %v7530_v61  ;;  %v7594_v61 = vld [vmem:[%s7015_s26 + $0xa8] sm:$0xf] }
  0xf7   : > { %5653 = vmatprep.mubr.msk.bf16.mxu1 %vm834_vm4, %v9024_v10  ;;  %v2945_v10 = vrot.slane %v2943_v30, 4  ;;  %9031 = vst [vmem:[#allocation42_spill] sm:$0xff] %v7536_v56  ;;  %v7546_v30 = vld [vmem:[%s7015_s26 + $0xa0] sm:$0xf]  ;;  %v7558_v18 = vpop.f32.mrf.mxu0 }
  0xf8   : > { %9033 = vst [vmem:[#allocation43_spill] sm:$0xff] %v7558_v18  ;;  %v7562_v23 = vsel %vm6277_vm8, %v2924_v27, %v2925_v29  ;;  %v3938_v11 = vshll.u32 %v7546_v30, 16  ;;  %v3942_v56 = vshrl.u32 %v7546_v30, 16  ;;  %v2938_v27 = vrot.slane %v2936_v33, 4 }
  0xf9   : > { %v7552_v58 = vsel %vm6277_vm8, %v2945_v10, %v2946_v2  ;;  %v9034_v2 = vcombine.low %v7329_v6, %v7347_v54  ;;  %v2939_v29 = vrot.slane %v6968_v32, 5  ;;  %v3626_v18 = vshll.u32 %v7061_v41, 16  ;;  %v7697_v6 = vld [vmem:[%s7015_s26 + $0x2c] sm:$0x1] }
  0xfa   : > { %5688 = vmatmul.mubr.msk.bf16.gmra.mxu0 %vm834_vm4, %v9032_v5  ;;  %v5162_v5 = vrot.slane %v6916_v60, 9  ;;  %v7607_v10 = vrot.slane %v3932_v15, 5  ;;  %v7609_v28 = vrot.slane %v3938_v11, 5  ;;  %v7611_v32 = vrot.slane %v3942_v56, 4  ;;  %v3244_v11 = vld [vmem:[%s7015_s26 + $0x8] sm:$0x1] }
  0xfb   : > { %5691 = vmatprep.mubr.msk.bf16.mxu0 %vm834_vm4, %v9034_v2  ;;  %v9035_v2 = vcombine.low %v7323_v36, %v7338_v7  ;;  %v7585_v60 = vpop.f32.mrf.mxu1  ;;  %v9037_v36 = vcombine.low %v7352_v44, %v7361_v46  ;;  %v7603_v7 = vpop.f32.mrf.mxu0  ;;  %v7623_v46 = vsel %vm6277_vm8, %v2938_v27, %v2939_v29  ;;  %v3977_v15 = vshrl.u32 %v7614_v14, 16 }
  0xfc   : > { %9036 = vst [vmem:[#allocation44_spill] sm:$0xff] %v7585_v60  ;;  %9038 = vst [vmem:[#allocation45_spill] sm:$0xff] %v7603_v7  ;;  %v7619_v44 = vsel %vm6277_vm8, %v5162_v5, %v2936_v33  ;;  %v9043_v56 = vshrl.u32 %v7058_v26, 16  ;;  %v7634_v60 = vrot.slane %v3626_v18, 5  ;;  %v9045_v33 = vshrl.u32 %v7061_v41, 16 }
  0xfd   : > { %9040 = vst [vmem:[#allocation47_spill] sm:$0xff] %v7607_v10  ;;  %9041 = vst [vmem:[#allocation48_spill] sm:$0xff] %v7609_v28  ;;  %v7638_v10 = vpop.f32.mrf.mxu1  ;;  %v3980_v7 = vshll.u32 %v7614_v14, 16  ;;  %v7650_v18 = vpop.f32.mrf.mxu0  ;;  %v4312_v29 = vrot.slane %v7061_v41, 5  ;;  %v3636_v27 = vshll.u32 %v3244_v11, 16 }
  0xfe   : > { %5654 = vmatmul.mubr.msk.bf16.gmra.mxu1 %vm834_vm4, %v9035_v2  ;;  %v7605_v2 = vrot.slane %v3929_v50, 4  ;;  %9042 = vst [vmem:[#allocation49_spill] sm:$0xff] %v7611_v32  ;;  %v7626_v50 = vld [vmem:[%s7015_s26 + $0xb8] sm:$0xf]  ;;  %v9044_v32 = vshll.u32 %v7058_v26, 16  ;;  %v3632_v5 = vrot.slane %v9045_v33, 4 }
  0xff   : > { %5657 = vmatprep.mubr.msk.bf16.mxu1 %vm834_vm4, %v9037_v36  ;;  %v3619_v36 = vrot.slane %v9043_v56, 4  ;;  %9046 = vst [vmem:[#allocation50_spill] sm:$0xff] %v7638_v10  ;;  %v3247_v56 = vld [vmem:[%s7015_s26 + $0x14] sm:$0x1]  ;;  %9048 = vst [vmem:[#allocation51_spill] sm:$0xff] %v7650_v18  ;;  %v3986_v18 = vshll.u32 %v7626_v50, 16 }
 0x100   : > { %9039 = vst [vmem:[#allocation46_spill] sm:$0xff] %v7605_v2  ;;  %v3622_v28 = vrot.slane %v9044_v32, 5  ;;  %v9047_v32 = vcombine.low %v7357_v37, %v7364_v47  ;;  %v9049_v2 = vcombine.low %v7408_v8, %v7411_v1  ;;  %v3674_v33 = vshll.u32 %v7116_v35, 16 }
 0x101   : > { %v3633_v47 = vor.u32 %v3632_v5, %v7634_v60  ;;  %v3660_v41 = vshll.u32 %v3247_v56, 16  ;;  %v9051_v8 = vcombine.low %v7397_v22, %v7401_v63  ;;  %v7674_v37 = vrot.slane %v3980_v7, 5 }
 0x102   : > { %5692 = vmatmul.mubr.msk.bf16.gmra.mxu0 %vm834_vm4, %v9047_v32  ;;  %v7663_v32 = vrot.slane %v3977_v15, 4  ;;  %v3623_v10 = vor.u32 %v3622_v28, %v3619_v36  ;;  %v3990_v15 = vshrl.u32 %v7626_v50, 16  ;;  %v4315_v1 = vrot.slane %v3244_v11, 5  ;;  %v7682_v36 = vpop.f32.mrf.mxu0  ;;  %v3250_v11 = vld [vmem:[%s7015_s26 + $0x20] sm:$0x1] }
 0x103   : > { %5695 = vmatprep.mubr.msk.bf16.mxu0 %vm834_vm4, %v9049_v2  ;;  %v7672_v2 = vpop.f32.mrf.mxu1  ;;  %9053 = vst [vmem:[#allocation54_spill] sm:$0xff] %v7674_v37  ;;  %v9054_v28 = vcombine.low %v7456_v0, %v7460_v38  ;;  %9055 = vst [vmem:[#allocation55_spill] sm:$0xff] %v7682_v36  ;;  %v4314_v22 = vrot.slane %v4312_v29, 4  ;;  %v4322_v63 = vrot.slane %v3247_v56, 5  ;;  %v9057_v7 = vshll.u32 %v7113_v48, 16 }
 0x104   : > { %9050 = vst [vmem:[#allocation52_spill] sm:$0xff] %v7663_v32  ;;  %9052 = vst [vmem:[#allocation53_spill] sm:$0xff] %v7672_v2  ;;  %v5263_v32 = vrot.slane %v7058_v26, 9  ;;  %v7688_v37 = vrot.slane %v3986_v18, 5  ;;  %v7692_v13 = vrot.slane %v3674_v33, 5  ;;  %v9059_v38 = vshrl.u32 %v7116_v35, 16 }
 0x105   : > { %v3670_v2 = vrot.slane %v9057_v7, 5  ;;  %v3634_v36 = vrot.slane %v3633_v47, 4  ;;  %v3638_v53 = vrot.slane %v3636_v27, 5  ;;  %v3662_v56 = vrot.slane %v3660_v41, 5  ;;  %v9063_v7 = vld [vmem:[#allocation24_spill] sm:$0xff] }
 0x106   : > { %5658 = vmatmul.mubr.msk.bf16.gmra.mxu1 %vm834_vm4, %v9051_v8  ;;  %v9056_v8 = vshrl.u32 %v7113_v48, 16  ;;  %9058 = vst [vmem:[#allocation56_spill] sm:$0xff] %v7688_v37  ;;  %v3680_v0 = vrot.slane %v9059_v38, 4  ;;  %v7701_v54 = vrot.slane %v3990_v15, 4  ;;  %v7705_v18 = vsel %vm6277_vm8, %v5263_v32, %v4312_v29  ;;  %v9074_v37 = vld [vmem:[#allocation8_spill] sm:$0xff] }
 0x107   : > { %5661 = vmatprep.mubr.msk.bf16.mxu1 %vm834_vm4, %v9054_v28  ;;  %v3624_v28 = vrot.slane %v3623_v10, 4  ;;  %v9062_v33 = vrot.slane %v7066_v40, 5  ;;  %v9064_v26 = vrot.slane %v9063_v7, 9  ;;  %v4326_v47 = vrot.slane %v7116_v35, 5  ;;  %v9066_v40 = vld [vmem:[#allocation15_spill] sm:$0xff]  ;;  %v9069_v7 = vld [vmem:[#allocation10_spill] sm:$0xff] }
 0x108   : > { %v3667_v5 = vrot.slane %v9056_v8, 4  ;;  %v7699_v8 = vpop.f32.mrf.mxu1  ;;  %9061 = vst [vmem:[#allocation58_spill] sm:$0xff] %v7701_v54  ;;  %v9065_v27 = vcombine.low %v7441_v3, %v7446_v51  ;;  %v7720_v41 = vpop.f32.mrf.mxu0  ;;  %v7724_v29 = vsel %vm6277_vm8, %v4314_v22, %v4315_v1  ;;  %v7729_v32 = vsel %vm6277_vm8, %v9066_v40, %v4322_v63  ;;  %v9071_v1 = vld [vmem:[#allocation25_spill] sm:$0xff] }
 0x109   : > { %9060 = vst [vmem:[#allocation57_spill] sm:$0xff] %v7699_v8  ;;  %v7713_v10 = vsel %vm6277_vm8, %v9064_v26, %v9062_v33  ;;  %v3684_v26 = vshll.u32 %v3250_v11, 16  ;;  %v9067_v35 = vcombine.low %v7517_v42, %v7543_v49  ;;  %v3681_v38 = vor.u32 %v3680_v0, %v7692_v13  ;;  %v9068_v33 = vld [vmem:[#allocation14_spill] sm:$0xff]  ;;  %v9070_v8 = vld [vmem:[#allocation11_spill] sm:$0xff]  ;;  %v9073_v40 = vld [vmem:[#allocation9_spill] sm:$0xff] }
 0x10a   : > { %5696 = vmatmul.mubr.msk.bf16.gmra.mxu0 %vm834_vm4, %v9065_v27  ;;  %v3671_v15 = vor.u32 %v3670_v2, %v3667_v5  ;;  %v3695_v27 = vor.u32 %v9069_v7, %v9068_v33  ;;  %v3705_v22 = vor.u32 %v9071_v1, %v9070_v8  ;;  %v3708_v54 = vshll.u32 %v7697_v6, 16 }
 0x10b   : > { %5699 = vmatprep.mubr.msk.bf16.mxu0 %vm834_vm4, %v9067_v35  ;;  %v3629_v2 = vsel %vm6004_vm5, %v3624_v28, %v7634_v60  ;;  %v3639_v5 = vsel %vm6004_vm5, %v3634_v36, %v3638_v53  ;;  %v3653_v0 = vsel %vm6004_vm5, %v9074_v37, %v9073_v40  ;;  %v9075_v35 = vld [vmem:[#allocation12_spill] sm:$0xff]  ;;  %v9076_v7 = vcombine.low %v7499_v19, %v7526_v31  ;;  %v7765_v40 = vpop.f32.mrf.mxu0 }
 0x10c   : > { %v3663_v33 = vsel %vm6004_vm5, %v9075_v35, %v3662_v56  ;;  %v5265_v60 = vrot.slane %v7113_v48, 9  ;;  %v4328_v28 = vrot.slane %v4326_v47, 4  ;;  %v4329_v53 = vrot.slane %v3250_v11, 5  ;;  %9079 = vst [vmem:[#allocation15_spill] sm:$0xff] %v7765_v40 }
 0x10d   : > { %v7757_v1 = vpop.f32.mrf.mxu1  ;;  %v3722_v36 = vshll.u32 %v7201_v62, 16  ;;  %v9078_v37 = vcombine.low %v7540_v43, %v7562_v23  ;;  %v3672_v56 = vrot.slane %v3671_v15, 4  ;;  %v3686_v48 = vrot.slane %v3684_v26, 5  ;;  %v7790_v26 = vld [vmem:[%s7015_s26 + $0x38] sm:$0x1] }
 0x10e   : > { %5662 = vmatmul.mubr.msk.bf16.gmra.mxu1 %vm834_vm4, %v9076_v7  ;;  %9077 = vst [vmem:[#allocation24_spill] sm:$0xff] %v7757_v1  ;;  %v3682_v35 = vrot.slane %v3681_v38, 4  ;;  %v3696_v11 = vrot.slane %v3695_v27, 4  ;;  %v3706_v7 = vrot.slane %v3705_v22, 4  ;;  %v3710_v1 = vrot.slane %v3708_v54, 5 }
 0x10f   : > { %5665 = vmatprep.mubr.msk.bf16.mxu1 %vm834_vm4, %v9078_v37  ;;  %v7771_v3 = vcombine.low %v3629_v2, %v3639_v5  ;;  %v7773_v43 = vcombine.low %v3653_v0, %v3663_v33  ;;  %v9080_v23 = vshrl.u32 %v7191_v45, 16  ;;  %v9081_v51 = vshll.u32 %v7191_v45, 16  ;;  %v7779_v40 = vpop.f32.mrf.mxu1  ;;  %v7800_v2 = vpop.f32.mrf.mxu0 }
 0x110   : > { %9082 = vst [vmem:[#allocation14_spill] sm:$0xff] %v7779_v40  ;;  %v7783_v15 = vsel %vm6277_vm8, %v5265_v60, %v4326_v47  ;;  %v7787_v54 = vsel %vm6277_vm8, %v4328_v28, %v4329_v53  ;;  %v7792_v38 = vrot.slane %v3722_v36, 5  ;;  %v9083_v27 = vshrl.u32 %v7201_v62, 16  ;;  %v7817_v36 = vld [vmem:[%s7015_s26 + $0x44] sm:$0x1] }
 0x111   : > { %v3715_v37 = vrot.slane %v9080_v23, 4  ;;  %v3718_v19 = vrot.slane %v9081_v51, 5  ;;  %v9084_v51 = vcombine.low %v7534_v16, %v7546_v30  ;;  %v3677_v47 = vsel %vm6004_vm5, %v3672_v56, %v7692_v13  ;;  %v7875_v40 = vld [vmem:[%s7015_s26 + $0x5c] sm:$0x1] }
 0x112   : > { %v3728_v22 = vrot.slane %v9083_v27, 4  ;;  %v9085_v5 = vrot.slane %v7153_v57, 5  ;;  %v9086_v0 = vrot.slane %v7145_v52, 9  ;;  %v4336_v53 = vrot.slane %v7697_v6, 5 }
 0x113   : > { %5700 = vmatmul.mubr.msk.bf16.gmra.mxu0 %vm834_vm4, %v9084_v51  ;;  %v9088_v23 = vcombine.low %v7594_v61, %v7597_v39  ;;  %v3687_v13 = vsel %vm6004_vm5, %v3682_v35, %v3686_v48  ;;  %v3701_v52 = vsel %vm6004_vm5, %v3696_v11, %v9070_v8  ;;  %v3711_v57 = vsel %vm6004_vm5, %v3706_v7, %v3710_v1  ;;  %v7839_v35 = vpop.f32.mrf.mxu1  ;;  %v9091_v1 = vld [vmem:[#allocation13_spill] sm:$0xff]  ;;  %v9092_v11 = vld [vmem:[#allocation6_spill] sm:$0xff] }
 0x114   : > { %v7811_v33 = vsel %vm6277_vm8, %v9086_v0, %v9085_v5  ;;  %v9087_v60 = vmov %v9085_v5  ;;  %v3770_v56 = vshll.u32 %v7272_v9, 16  ;;  %v3719_v27 = vor.u32 %v3718_v19, %v3715_v37  ;;  %9090 = vst [vmem:[#allocation10_spill] sm:$0xff] %v7839_v35  ;;  %v9093_v0 = vld [vmem:[#allocation2_spill] sm:$0xff]  ;;  %v7847_v37 = vpop.f32.mrf.mxu0 }
 0x115   : > { %v4335_v28 = vrot.slane %v9087_v60, 4  ;;  %5703 = vmatprep.mubr.msk.bf16.mxu0 %vm834_vm4, %v9088_v23  ;;  %v3732_v51 = vshll.u32 %v7790_v26, 16  ;;  %v4340_v5 = vrot.slane %v7201_v62, 5  ;;  %v9089_v48 = vcombine.low %v7450_v55, %v7475_v12  ;;  %v9094_v60 = vld [vmem:[#allocation4_spill] sm:$0xff] }
 0x116   : > { %v3729_v8 = vor.u32 %v3728_v22, %v7792_v38  ;;  %v3743_v7 = vor.u32 %v9092_v11, %v9091_v1  ;;  %v3753_v23 = vor.u32 %v9094_v60, %v9093_v0  ;;  %v3756_v19 = vshll.u32 %v7817_v36, 16 }
 0x117   : > { %5666 = vmatmul.mubr.msk.bf16.gmra.mxu1 %vm834_vm4, %v9089_v48  ;;  %v9095_v62 = vcombine.low %v7619_v44, %v7623_v46  ;;  %v7853_v55 = vcombine.low %v3677_v47, %v3687_v13  ;;  %v7855_v12 = vcombine.low %v3701_v52, %v3711_v57  ;;  %v7859_v22 = vsel %vm6277_vm8, %v4335_v28, %v4336_v53  ;;  %v3262_v53 = vld [vmem:[%s7015_s26 + $0x50] sm:$0x1] }
 0x118   : > { %v5267_v48 = vrot.slane %v7191_v45, 9  ;;  %v9096_v1 = vshrl.u32 %v7260_v34, 16  ;;  %v9097_v60 = vshll.u32 %v7260_v34, 16  ;;  %v7866_v44 = vrot.slane %v3770_v56, 5 }
 0x119   : > { %5669 = vmatprep.mubr.msk.bf16.mxu1 %vm834_vm4, %v9095_v62  ;;  %v9098_v46 = vshrl.u32 %v7272_v9, 16  ;;  %v3720_v13 = vrot.slane %v3719_v27, 4  ;;  %v3734_v52 = vrot.slane %v3732_v51, 5  ;;  %v4342_v57 = vrot.slane %v4340_v5, 4  ;;  %v7872_v62 = vpop.f32.mrf.mxu1 }
 0x11a   : > { %v3763_v11 = vrot.slane %v9096_v1, 4  ;;  %v3766_v6 = vrot.slane %v9097_v60, 5  ;;  %v4343_v28 = vrot.slane %v7790_v26, 5  ;;  %9099 = vst [vmem:[#allocation11_spill] sm:$0xff] %v7872_v62  ;;  %v3730_v45 = vrot.slane %v3729_v8, 4  ;;  %v7877_v60 = vpop.f32.mrf.mxu0 }
 0x11b   : > { %v3776_v47 = vrot.slane %v9098_v46, 4  ;;  %v3744_v31 = vrot.slane %v3743_v7, 4  ;;  %v3754_v35 = vrot.slane %v3753_v23, 4  ;;  %v3758_v1 = vrot.slane %v3756_v19, 5 }
 0x11c   : > { %v9100_v56 = vcombine.low %v7614_v14, %v7626_v50  ;;  %v7885_v27 = vsel %vm6277_vm8, %v5267_v48, %v4340_v5  ;;  %v9101_v26 = vrot.slane %v7217_v25, 5  ;;  %v4350_v8 = vrot.slane %v7817_v36, 5  ;;  %v7898_v48 = vpop.f32.mrf.mxu0 }
 0x11d   : > { %v4354_v7 = vrot.slane %v7272_v9, 5  ;;  %v9102_v23 = vcombine.low %v7705_v18, %v7724_v29  ;;  %v3767_v19 = vor.u32 %v3766_v6, %v3763_v11  ;;  %v3777_v46 = vor.u32 %v3776_v47, %v7866_v44  ;;  %v9105_v29 = vld [vmem:[#allocation17_spill] sm:$0xff]  ;;  %v9106_v6 = vld [vmem:[#allocation26_spill] sm:$0xff] }
 0x11e   : > { %5704 = vmatmul.mubr.msk.bf16.gmra.mxu0 %vm834_vm4, %v9100_v56  ;;  %v4349_v51 = vrot.slane %v9101_v26, 4  ;;  %v3780_v56 = vshll.u32 %v3262_v53, 16  ;;  %v3791_v5 = vor.u32 %v7342_v20, %v7340_v4  ;;  %v3725_v36 = vsel %vm6004_vm5, %v3720_v13, %v7792_v38  ;;  %v7914_v4 = vpop.f32.mrf.mxu1 }
 0x11f   : > { %5743 = vmatprep.mubr.msk.bf16.mxu0 %vm834_vm4, %v9102_v23  ;;  %v9103_v9 = vmov %v9101_v26  ;;  %v9104_v26 = vrot.slane %v7207_v24, 9  ;;  %v3801_v11 = vor.u32 %v9106_v6, %v9105_v29  ;;  %v3804_v47 = vshll.u32 %v7875_v40, 16  ;;  %9107 = vst [vmem:[#allocation25_spill] sm:$0xff] %v7914_v4  ;;  %v7931_v23 = vpop.f32.mrf.mxu0 }
 0x120   : > { %v9108_v20 = vcombine.low %v7522_v59, %v7552_v58  ;;  %v3735_v25 = vsel %vm6004_vm5, %v3730_v45, %v3734_v52  ;;  %v7924_v24 = vsel %vm6277_vm8, %v4342_v57, %v4343_v28  ;;  %v3749_v38 = vsel %vm6004_vm5, %v3744_v31, %v9093_v0  ;;  %v7940_v28 = vpop.f32.mrf.mxu1 }
 0x121   : > { %v7909_v18 = vsel %vm6277_vm8, %v9104_v26, %v9103_v9  ;;  %v3759_v13 = vsel %vm6004_vm5, %v3754_v35, %v3758_v1  ;;  %v7937_v59 = vsel %vm6277_vm8, %v4349_v51, %v4350_v8  ;;  %v5269_v58 = vrot.slane %v7260_v34, 9  ;;  %9109 = vst [vmem:[#allocation3_spill] sm:$0xff] %v7940_v28  ;;  %v7942_v35 = vpop.f32.mrf.mxu0  ;;  %v9192_v63 = vld [vmem:[#allocation11_spill] sm:$0xff] }
 0x122   : > { %5670 = vmatmul.mubr.msk.bf16.gmra.mxu1 %vm834_vm4, %v9108_v20  ;;  %v4356_v52 = vrot.slane %v4354_v7, 4  ;;  %v4357_v57 = vrot.slane %v3262_v53, 5  ;;  %v3768_v45 = vrot.slane %v3767_v19, 4  ;;  %v3778_v31 = vrot.slane %v3777_v46, 4  ;;  %v7947_v8 = vpop.f32.mrf.mxu1  ;;  %v9112_v46 = vld [vmem:[#allocation7_spill] sm:$0xff] }
 0x123   : > { %5709 = vmatprep.mubr.msk.bf16.mxu1 %vm834_vm4, %v7771_v3  ;;  %v3782_v0 = vrot.slane %v3780_v56, 5  ;;  %v3792_v9 = vrot.slane %v3791_v5, 4  ;;  %v3802_v1 = vrot.slane %v3801_v11, 4  ;;  %v3806_v26 = vrot.slane %v3804_v47, 5  ;;  %9111 = vst [vmem:[#allocation9_spill] sm:$0xff] %v7947_v8  ;;  %v5541_v5 = vpop.f32.mrf.mxu0 }
 0x124   : > { %v9110_v3 = vrot.slane %v7289_v17, 5  ;;  %v4364_v51 = vrot.slane %v7875_v40, 5  ;;  %v5283_v34 = vcombine.low %v7811_v33, %v7859_v22  ;;  %v7951_v53 = vcombine.low %v3725_v36, %v3735_v25  ;;  %v9114_v22 = vld [vmem:[#allocation5_spill] sm:$0xff]  ;;  %v7972_v25 = vpop.f32.mrf.mxu1 }
 0x125   : > { %v5284_v19 = vcombine.low %v7885_v27, %v7924_v24  ;;  %v3818_v56 = vshll.u32 %v9112_v46, 16  ;;  %v9113_v11 = vcombine.low %v7713_v10, %v7729_v32  ;;  %v7962_v40 = vsel %vm6277_vm8, %v5269_v58, %v4354_v7  ;;  %9117 = vst [vmem:[#allocation8_spill] sm:$0xff] %v7972_v25 }
 0x126   : > { %v4363_v6 = vrot.slane %v9110_v3, 4  ;;  %v7966_v33 = vsel %vm6277_vm8, %v4356_v52, %v4357_v57  ;;  %v9115_v36 = vshrl.u32 %v9114_v22, 16  ;;  %v9116_v27 = vshll.u32 %v9114_v22, 16  ;;  %v3268_v52 = vld [vmem:[%s7015_s26 + $0x68] sm:$0x1]  ;;  %v1609_v57 = vpop.f32.mrf.mxu0 }
 0x127   : > { %5744 = vmatmul.mubr.msk.bf16.vlgmr.msra.gmra.mxu0 %vm834_vm4, %v9113_v11  ;;  %v9118_v10 = vcombine.low %v7783_v15, %v7787_v54  ;;  %v7978_v32 = vcombine.low %v3749_v38, %v3759_v13  ;;  %v3773_v24 = vsel %vm6004_vm5, %v3768_v45, %v7866_v44  ;;  %v3783_v58 = vsel %vm6004_vm5, %v3778_v31, %v3782_v0  ;;  %v9120_v13 = vld [vmem:[#allocation16_spill] sm:$0xff]  ;;  %v5507_v45 = vpop.f32.mrf.mxu1 }
 0x128   : > { %v3811_v47 = vrot.slane %v9115_v36, 4  ;;  %v3814_v20 = vrot.slane %v9116_v27, 5  ;;  %v3797_v15 = vsel %vm6004_vm5, %v3792_v9, %v9105_v29  ;;  %v3807_v54 = vsel %vm6004_vm5, %v3802_v1, %v3806_v26  ;;  %v8015_v1 = vld [vmem:[%s7015_s26 + $0x74] sm:$0x1]  ;;  %v9123_v26 = vld [vmem:[#allocation27_spill] sm:$0xff] }
 0x129   : > { %5747 = vmatprep.mubr.msk.bf16.mxu0 %vm834_vm4, %v9118_v10  ;;  %v9119_v38 = vmov %v9110_v3  ;;  %v9121_v3 = vrot.slane %v9120_v13, 9  ;;  %v8003_v44 = vsel %vm6277_vm8, %v4363_v6, %v4364_v51  ;;  %v8009_v31 = vrot.slane %v3818_v56, 5  ;;  %v5542_v6 = vpop.f32.mrf.mxu0  ;;  %v1216_v10 = vpop.f32.mrf.mxu1  ;;  %v9124_v13 = vld [vmem:[#allocation28_spill] sm:$0xff] }
 0x12a   : > { %5710 = vmatmul.mubr.msk.bf16.vlgmr.msra.gmra.mxu1 %vm834_vm4, %v7773_v43  ;;  %v9122_v17 = vshrl.u32 %v9112_v46, 16  ;;  %v4368_v9 = vrot.slane %v9112_v46, 5  ;;  %v1225_v36 = vadd.f32 %v5507_v45, %v9123_v26  ;;  %v8020_v51 = vcombine.low %v3773_v24, %v3783_v58  ;;  %v9127_v26 = vld [vmem:[#allocation34_spill] sm:$0xff]  ;;  %v9128_v24 = vld [vmem:[#allocation20_spill] sm:$0xff]  ;;  %v9129_v58 = vld [vmem:[#allocation33_spill] sm:$0xff] }
 0x12b   : > { %v7999_v11 = vsel %vm6277_vm8, %v9121_v3, %v9119_v38  ;;  %5713 = vmatprep.mubr.msk.bf16.mxu1 %vm834_vm4, %v7853_v55  ;;  %v3815_v43 = vor.u32 %v3814_v20, %v3811_v47  ;;  %v3828_v27 = vshll.u32 %v3268_v52, 16  ;;  %v8022_v56 = vcombine.low %v3797_v15, %v3807_v54  ;;  %v9125_v3 = vld [vmem:[#allocation29_spill] sm:$0xff]  ;;  %v1612_v55 = vpop.f32.mrf.mxu0  ;;  %v5508_v15 = vpop.f32.mrf.mxu1 }
 0x12c   : > { %v3824_v0 = vrot.slane %v9122_v17, 4  ;;  %v5271_v46 = vrot.slane %v9114_v22, 9  ;;  %v3839_v17 = vor.u32 %v9125_v3, %v9124_v13  ;;  %v8029_v45 = vadd.f32 %v5541_v5, %v1225_v36  ;;  %v9130_v22 = vld [vmem:[#allocation31_spill] sm:$0xff]  ;;  %v9132_v5 = vld [vmem:[#allocation37_spill] sm:$0xff] }
 0x12d   : > { %v1217_v29 = vadd.f32 %v1216_v10, %v9127_v26  ;;  %v3849_v47 = vor.u32 %v9129_v58, %v9128_v24  ;;  %v3852_v20 = vshll.u32 %v8015_v1, 16  ;;  %v4370_v38 = vrot.slane %v4368_v9, 4  ;;  %v5545_v13 = vpop.f32.mrf.mxu0  ;;  %v1219_v26 = vpop.f32.mrf.mxu1 }
 0x12e   : > { %9126 = vst [vmem:[#allocation12_spill] sm:$0xff] %v8029_v45  ;;  %v3825_v54 = vor.u32 %v3824_v0, %v8009_v31  ;;  %v4371_v7 = vrot.slane %v3268_v52, 5  ;;  %v3866_v25 = vshll.u32 %v9130_v22, 16  ;;  %v1228_v36 = vadd.f32 %v5508_v15, %v9132_v5 }
 0x12f   : > { %v8037_v8 = vadd.f32 %v1609_v57, %v1217_v29  ;;  %5748 = vmatmul.mubr.msk.bf16.gmra.mxu0 %vm834_vm4, %v5283_v34  ;;  %v8041_v10 = vrot.slane %v3815_v43, 4  ;;  %v8043_v3 = vrot.slane %v3828_v27, 5  ;;  %v8048_v0 = vsel %vm6277_vm8, %v5271_v46, %v4368_v9  ;;  %v8053_v57 = vld [vmem:[%s7015_s26 + $0x80] sm:$0x1]  ;;  %v1625_v45 = vpop.f32.mrf.mxu0  ;;  %v5511_v9 = vpop.f32.mrf.mxu1 }
 0x130   : > { %5751 = vmatprep.mubr.msk.bf16.mxu0 %vm834_vm4, %v5284_v19  ;;  %v8050_v52 = vrot.slane %v3839_v17, 4  ;;  %v9133_v29 = vld [vmem:[#allocation30_spill] sm:$0xff]  ;;  %v8059_v5 = vadd.f32 %v5542_v6, %v1228_v36  ;;  %v8062_v19 = vrot.slane %v3849_v47, 4  ;;  %v8064_v28 = vrot.slane %v3852_v20, 5  ;;  %v9140_v47 = vld [vmem:[#allocation43_spill] sm:$0xff] }
 0x131   : > { %9131 = vst [vmem:[#allocation13_spill] sm:$0xff] %v8037_v8  ;;  %v9134_v58 = vshrl.u32 %v9133_v29, 16  ;;  %v9135_v34 = vshll.u32 %v9133_v29, 16  ;;  %v9137_v27 = vld [vmem:[#allocation38_spill] sm:$0xff]  ;;  %v3826_v46 = vrot.slane %v3825_v54, 4  ;;  %v8070_v17 = vsel %vm6277_vm8, %v4370_v38, %v4371_v7  ;;  %v5546_v20 = vpop.f32.mrf.mxu0  ;;  %v9141_v38 = vld [vmem:[#allocation19_spill] sm:$0xff] }
 0x132   : > { %9136 = vst [vmem:[#allocation6_spill] sm:$0xff] %v8059_v5  ;;  %v1220_v8 = vadd.f32 %v1219_v26, %v9137_v27  ;;  %5714 = vmatmul.mubr.msk.bf16.gmra.mxu1 %vm834_vm4, %v7855_v12  ;;  %v9138_v6 = vshrl.u32 %v9130_v22, 16  ;;  %v3821_v12 = vsel %vm6004_vm5, %v8041_v10, %v8009_v31  ;;  %v3876_v7 = vshll.u32 %v8053_v57, 16  ;;  %v9143_v54 = vld [vmem:[#allocation18_spill] sm:$0xff] }
 0x133   : > { %v3859_v15 = vrot.slane %v9134_v58, 4  ;;  %v3862_v43 = vrot.slane %v9135_v34, 5  ;;  %v8072_v58 = vrot.slane %v3866_v25, 5  ;;  %v1241_v34 = vadd.f32 %v5511_v9, %v9140_v47  ;;  %5717 = vmatprep.mubr.msk.bf16.mxu1 %vm834_vm4, %v7951_v53  ;;  %v1232_v25 = vpop.f32.mrf.mxu1 }
 0x134   : > { %v3872_v36 = vrot.slane %v9138_v6, 4  ;;  %v8076_v26 = vadd.f32 %v1612_v55, %v1220_v8  ;;  %v9142_v55 = vrot.slane %v9141_v38, 5  ;;  %v9144_v27 = vrot.slane %v9143_v54, 9  ;;  %v9145_v6 = vld [vmem:[#allocation45_spill] sm:$0xff]  ;;  %v9151_v38 = vld [vmem:[#allocation22_spill] sm:$0xff] }
 0x135   : > { %v3863_v9 = vor.u32 %v3862_v43, %v3859_v15  ;;  %v4382_v31 = vrot.slane %v9130_v22, 5  ;;  %v8099_v10 = vadd.f32 %v5545_v13, %v1241_v34  ;;  %v1233_v47 = vadd.f32 %v1232_v25, %v9145_v6  ;;  %v5512_v62 = vpop.f32.mrf.mxu1  ;;  %v8116_v43 = vld [vmem:[%s7015_s26 + $0x8c] sm:$0x1]  ;;  %v9153_v6 = vld [vmem:[#allocation40_spill] sm:$0xff] }
 0x136   : > { %9139 = vst [vmem:[#allocation2_spill] sm:$0xff] %v8076_v26  ;;  %v8096_v53 = vsel %vm6277_vm8, %v9144_v27, %v9142_v55  ;;  %v1628_v26 = vpop.f32.mrf.mxu0  ;;  %v5288_v5 = vcombine.low %v8048_v0, %v8070_v17  ;;  %v9146_v8 = vmov %v9142_v55  ;;  %v3831_v55 = vsel %vm6004_vm5, %v3826_v46, %v8043_v3  ;;  %v9147_v17 = vld [vmem:[#allocation51_spill] sm:$0xff] }
 0x137   : > { %v4377_v4 = vrot.slane %v9146_v8, 4  ;;  %v3855_v22 = vsel %vm6004_vm5, %v8062_v19, %v8064_v28  ;;  %v4378_v13 = vrot.slane %v8015_v1, 5  ;;  %v3873_v15 = vor.u32 %v3872_v36, %v8072_v58  ;;  %v1235_v28 = vpop.f32.mrf.mxu1 }
 0x138   : > { %v8118_v0 = vadd.f32 %v1625_v45, %v1233_v47  ;;  %v1244_v34 = vadd.f32 %v5512_v62, %v9147_v17  ;;  %v5549_v25 = vpop.f32.mrf.mxu0  ;;  %v9148_v8 = vcombine.low %v7909_v18, %v7937_v59  ;;  %v3878_v3 = vrot.slane %v3876_v7, 5  ;;  %v9150_v62 = vld [vmem:[#allocation39_spill] sm:$0xff] }
 0x139   : > { %v5273_v46 = vrot.slane %v9133_v29, 9  ;;  %v9149_v1 = vcombine.low %v7962_v40, %v7966_v33  ;;  %v3864_v19 = vrot.slane %v3863_v9, 4  ;;  %v4384_v45 = vrot.slane %v4382_v31, 4  ;;  %v9152_v18 = vld [vmem:[#allocation55_spill] sm:$0xff]  ;;  %v9154_v29 = vld [vmem:[#allocation41_spill] sm:$0xff]  ;;  %v5515_v40 = vpop.f32.mrf.mxu1 }
 0x13a   : > { %5752 = vmatmul.mubr.msk.bf16.gmra.mxu0 %vm834_vm4, %v9148_v8  ;;  %v4385_v36 = vrot.slane %v8053_v57, 5  ;;  %v3887_v54 = vor.u32 %v9151_v38, %v9150_v62  ;;  %v8133_v27 = vadd.f32 %v5546_v20, %v1244_v34  ;;  %v1236_v59 = vadd.f32 %v1235_v28, %v9152_v18  ;;  %v1641_v7 = vpop.f32.mrf.mxu0  ;;  %5718 = vmatmul.mubr.msk.bf16.gmra.mxu1 %vm834_vm4, %v7978_v32 }
 0x13b   : > { %5755 = vmatprep.mubr.msk.bf16.mxu0 %vm834_vm4, %v9149_v1  ;;  %v3897_v47 = vor.u32 %v9154_v29, %v9153_v6  ;;  %v3900_v17 = vshll.u32 %v8116_v43, 16  ;;  %v3874_v33 = vrot.slane %v3873_v15, 4  ;;  %v9155_v57 = vshrl.u32 %v7517_v42, 16  ;;  %5721 = vmatprep.mubr.msk.bf16.mxu1 %vm834_vm4, %v8020_v51  ;;  %v1248_v15 = vpop.f32.mrf.mxu1 }
 0x13c   : > { %v9156_v8 = vshll.u32 %v7517_v42, 16  ;;  %v3914_v34 = vshll.u32 %v7543_v49, 16  ;;  %v8146_v28 = vadd.f32 %v1628_v26, %v1236_v59  ;;  %v1257_v1 = vadd.f32 %v5515_v40, %v7720_v41  ;;  %v5550_v62 = vpop.f32.mrf.mxu0 }
 0x13d   : > { %v3907_v9 = vrot.slane %v9155_v57, 4  ;;  %v5239_v38 = vcombine.low %v3821_v12, %v3831_v55  ;;  %v8153_v32 = vsel %vm6277_vm8, %v4377_v4, %v4378_v13  ;;  %v3869_v18 = vsel %vm6004_vm5, %v3864_v19, %v8072_v58  ;;  %v9157_v12 = vld [vmem:[#allocation15_spill] sm:$0xff]  ;;  %v5516_v40 = vpop.f32.mrf.mxu1 }
 0x13e   : > { %v3910_v20 = vrot.slane %v9156_v8, 5  ;;  %v8160_v26 = vsel %vm6277_vm8, %v5273_v46, %v4382_v31  ;;  %v8164_v41 = vsel %vm6277_vm8, %v4384_v45, %v4385_v36  ;;  %v3888_v59 = vrot.slane %v3887_v54, 4  ;;  %v1644_v55 = vpop.f32.mrf.mxu0 }
 0x13f   : > { %v8166_v51 = vadd.f32 %v5549_v25, %v1257_v1  ;;  %v1249_v4 = vadd.f32 %v1248_v15, %v9157_v12  ;;  %v3898_v13 = vrot.slane %v3897_v47, 4  ;;  %v3902_v29 = vrot.slane %v3900_v17, 5  ;;  %v9160_v47 = vld [vmem:[#allocation35_spill] sm:$0xff] }
 0x140   : > { %v3879_v58 = vsel %vm6004_vm5, %v3874_v33, %v3878_v3  ;;  %v3911_v19 = vor.u32 %v3910_v20, %v3907_v9  ;;  %v8171_v31 = vrot.slane %v3914_v34, 5  ;;  %v9158_v46 = vshrl.u32 %v7543_v49, 16  ;;  %v5553_v54 = vpop.f32.mrf.mxu0  ;;  %v3280_v33 = vld [vmem:[%s7015_s26 + $0x98] sm:$0x1]  ;;  %v1251_v9 = vpop.f32.mrf.mxu1 }
 0x141   : > { %v8175_v36 = vadd.f32 %v1641_v7, %v1249_v4  ;;  %v1260_v25 = vadd.f32 %v5516_v40, %v7800_v2  ;;  %v9159_v57 = vcombine.low %v7999_v11, %v8003_v44  ;;  %v9161_v17 = vrot.slane %v9160_v47, 5  ;;  %v9166_v4 = vld [vmem:[#allocation46_spill] sm:$0xff] }
 0x142   : > { %v3920_v45 = vrot.slane %v9158_v46, 4  ;;  %v4392_v3 = vrot.slane %v8116_v43, 5  ;;  %v9162_v2 = vsel %vm6004_vm5, %v8050_v52, %v9128_v24  ;;  %v5289_v11 = vcombine.low %v8096_v53, %v8153_v32  ;;  %v1657_v34 = vpop.f32.mrf.mxu0  ;;  %v5519_v52 = vpop.f32.mrf.mxu1  ;;  %5722 = vmatmul.mubr.msk.bf16.gmra.mxu1 %vm834_vm4, %v8022_v56 }
 0x143   : > { %5756 = vmatmul.mubr.msk.bf16.gmra.mxu0 %vm834_vm4, %v9159_v57  ;;  %v4391_v8 = vrot.slane %v9161_v17, 4  ;;  %v5240_v7 = vcombine.low %v9162_v2, %v3855_v22  ;;  %v5290_v44 = vcombine.low %v8160_v26, %v8164_v41  ;;  %v3893_v43 = vsel %vm6004_vm5, %v3888_v59, %v9153_v6  ;;  %5725 = vmatprep.mubr.msk.bf16.mxu1 %vm834_vm4, %v5239_v38 }
 0x144   : > { %5759 = vmatprep.mubr.msk.bf16.mxu0 %vm834_vm4, %v5288_v5  ;;  %v8199_v20 = vadd.f32 %v5550_v62, %v1260_v25  ;;  %v1252_v5 = vadd.f32 %v1251_v9, %v7847_v37  ;;  %v3903_v1 = vsel %vm6004_vm5, %v3898_v13, %v3902_v29  ;;  %v4396_v24 = vrot.slane %v7543_v49, 5  ;;  %v5554_v15 = vpop.f32.mrf.mxu0  ;;  %v9164_v49 = vld [vmem:[#allocation23_spill] sm:$0xff]  ;;  %v1264_v59 = vpop.f32.mrf.mxu1 }
 0x145   : > { %v5241_v53 = vcombine.low %v3869_v18, %v3879_v58  ;;  %v8207_v22 = vrot.slane %v3911_v19, 4  ;;  %v3921_v32 = vor.u32 %v3920_v45, %v8171_v31  ;;  %v3924_v6 = vshll.u32 %v3280_v33, 16 }
 0x146   : > { %v8210_v62 = vadd.f32 %v1644_v55, %v1252_v5  ;;  %v1273_v37 = vadd.f32 %v5519_v52, %v7877_v60  ;;  %v9163_v26 = vmov %v9161_v17  ;;  %v9165_v41 = vrot.slane %v9164_v49, 9  ;;  %v9167_v55 = vld [vmem:[#allocation47_spill] sm:$0xff]  ;;  %v1660_v58 = vpop.f32.mrf.mxu0  ;;  %v5520_v45 = vpop.f32.mrf.mxu1  ;;  %v9172_v49 = vld [vmem:[#allocation49_spill] sm:$0xff] }
 0x147   : > { %v8224_v18 = vsel %vm6277_vm8, %v4391_v8, %v4392_v3  ;;  %v8226_v12 = vcombine.low %v3893_v43, %v3903_v1  ;;  %v5275_v60 = vrot.slane %v7517_v42, 9  ;;  %v3935_v38 = vor.u32 %v9167_v55, %v9166_v4  ;;  %v3283_v8 = vld [vmem:[%s7015_s26 + $0xa4] sm:$0x1] }
 0x148   : > { %v8220_v56 = vsel %vm6277_vm8, %v9165_v41, %v9163_v26  ;;  %v3962_v13 = vshll.u32 %v7597_v39, 16  ;;  %v8232_v29 = vadd.f32 %v5553_v54, %v1273_v37  ;;  %v1265_v40 = vadd.f32 %v1264_v59, %v7898_v48  ;;  %v5557_v48 = vpop.f32.mrf.mxu0  ;;  %v1267_v43 = vpop.f32.mrf.mxu1  ;;  %v9171_v26 = vld [vmem:[#allocation48_spill] sm:$0xff] }
 0x149   : > { %v4398_v19 = vrot.slane %v4396_v24, 4  ;;  %v4399_v46 = vrot.slane %v3280_v33, 5  ;;  %v5291_v25 = vcombine.low %v8220_v56, %v8224_v18  ;;  %v3917_v42 = vsel %vm6004_vm5, %v8207_v22, %v8171_v31  ;;  %v9174_v59 = vld [vmem:[#allocation32_spill] sm:$0xff] }
 0x14a   : > { %v3922_v57 = vrot.slane %v3921_v32, 4  ;;  %v3926_v47 = vrot.slane %v3924_v6, 5  ;;  %v8241_v17 = vadd.f32 %v1657_v34, %v1265_v40  ;;  %v1276_v54 = vadd.f32 %v5520_v45, %v7931_v23  ;;  %v1673_v22 = vpop.f32.mrf.mxu0  ;;  %v3286_v6 = vld [vmem:[%s7015_s26 + $0xb0] sm:$0x1]  ;;  %v5523_v37 = vpop.f32.mrf.mxu1  ;;  %5726 = vmatmul.mubr.msk.bf16.gmra.mxu1 %vm834_vm4, %v5240_v7 }
 0x14b   : > { %5760 = vmatmul.mubr.msk.bf16.gmra.mxu0 %vm834_vm4, %v5289_v11  ;;  %v9168_v3 = vshrl.u32 %v7594_v61, 16  ;;  %v9169_v9 = vshll.u32 %v7594_v61, 16  ;;  %v4397_v31 = vsel %vm6277_vm8, %v5275_v60, %v4396_v24  ;;  %v8253_v5 = vrot.slane %v3935_v38, 4  ;;  %5729 = vmatprep.mubr.msk.bf16.mxu1 %vm834_vm4, %v5241_v53  ;;  %v9175_v45 = vld [vmem:[#allocation36_spill] sm:$0xff] }
 0x14c   : > { %5763 = vmatprep.mubr.msk.bf16.mxu0 %vm834_vm4, %v5290_v44  ;;  %v8255_v23 = vrot.slane %v3962_v13, 5  ;;  %v9170_v34 = vshrl.u32 %v7597_v39, 16  ;;  %v8259_v1 = vadd.f32 %v5554_v15, %v1276_v54  ;;  %v1268_v52 = vadd.f32 %v1267_v43, %v7942_v35  ;;  %v5558_v4 = vpop.f32.mrf.mxu0  ;;  %v1280_v7 = vpop.f32.mrf.mxu1 }
 0x14d   : > { %v3955_v33 = vrot.slane %v9168_v3, 4  ;;  %v3958_v2 = vrot.slane %v9169_v9, 5  ;;  %v4400_v32 = vsel %vm6277_vm8, %v4398_v19, %v4399_v46  ;;  %v4410_v44 = vrot.slane %v7597_v39, 5 }
 0x14e   : > { %v3968_v11 = vrot.slane %v9170_v34, 4  ;;  %v3927_v24 = vsel %vm6004_vm5, %v3922_v57, %v3926_v47  ;;  %v3945_v41 = vor.u32 %v9172_v49, %v9171_v26  ;;  %v3948_v15 = vshll.u32 %v3283_v8, 16  ;;  %v5524_v3 = vpop.f32.mrf.mxu1 }
 0x14f   : > { %v9173_v56 = vrot.slane %v7546_v30, 5  ;;  %v8273_v18 = vadd.f32 %v1660_v58, %v1268_v52  ;;  %v1289_v60 = vadd.f32 %v5523_v37, %v9174_v59  ;;  %v4406_v39 = vrot.slane %v3283_v8, 5  ;;  %v1676_v58 = vpop.f32.mrf.mxu0 }
 0x150   : > { %v3959_v55 = vor.u32 %v3958_v2, %v3955_v33  ;;  %v5292_v38 = vcombine.low %v4397_v31, %v4400_v32  ;;  %v3969_v13 = vor.u32 %v3968_v11, %v8255_v23  ;;  %v3972_v40 = vshll.u32 %v3286_v6, 16  ;;  %v1283_v32 = vpop.f32.mrf.mxu1 }
 0x151   : > { %v4405_v35 = vrot.slane %v9173_v56, 4  ;;  %v5277_v19 = vrot.slane %v7594_v61, 9  ;;  %v8279_v46 = vadd.f32 %v5557_v48, %v1289_v60  ;;  %v1281_v57 = vadd.f32 %v1280_v7, %v9175_v45  ;;  %v9178_v48 = vld [vmem:[#allocation21_spill] sm:$0xff]  ;;  %v5561_v34 = vpop.f32.mrf.mxu0  ;;  %v9182_v60 = vld [vmem:[#allocation56_spill] sm:$0xff] }
 0x152   : > { %v4412_v47 = vrot.slane %v4410_v44, 4  ;;  %v4413_v54 = vrot.slane %v3286_v6, 5  ;;  %v5243_v9 = vcombine.low %v3917_v42, %v3927_v24  ;;  %v3946_v53 = vrot.slane %v3945_v41, 4  ;;  %v3289_v6 = vld [vmem:[%s7015_s26 + $0xbc] sm:$0x1]  ;;  %5730 = vmatmul.mubr.msk.bf16.gmra.mxu1 %vm834_vm4, %v8226_v12 }
 0x153   : > { %v3950_v8 = vrot.slane %v3948_v15, 5  ;;  %v9176_v33 = vmov %v9173_v56  ;;  %v9177_v2 = vrot.slane %v7534_v16, 9  ;;  %v8288_v61 = vadd.f32 %v1673_v22, %v1281_v57  ;;  %5764 = vmatmul.mubr.msk.bf16.gmra.mxu0 %vm834_vm4, %v5291_v25  ;;  %v9179_v25 = vld [vmem:[#allocation42_spill] sm:$0xff]  ;;  %v1689_v49 = vpop.f32.mrf.mxu0  ;;  %v5527_v15 = vpop.f32.mrf.mxu1  ;;  %v9180_v56 = vld [vmem:[#allocation52_spill] sm:$0xff] }
 0x154   : > { %v1292_v31 = vadd.f32 %v5524_v3, %v9178_v48  ;;  %v4407_v42 = vsel %vm6277_vm8, %v4405_v35, %v4406_v39  ;;  %v3960_v11 = vrot.slane %v3959_v55, 4  ;;  %v4417_v52 = vrot.slane %v7626_v50, 5  ;;  %5767 = vmatprep.mubr.msk.bf16.mxu0 %vm834_vm4, %v5292_v38  ;;  %v9181_v35 = vld [vmem:[#allocation54_spill] sm:$0xff]  ;;  %5733 = vmatprep.mubr.msk.bf16.mxu1 %vm834_vm4, %v5243_v9 }
 0x155   : > { %v4404_v43 = vsel %vm6277_vm8, %v9177_v2, %v9176_v33  ;;  %v3941_v16 = vsel %vm6004_vm5, %v8253_v5, %v9171_v26  ;;  %v3970_v30 = vrot.slane %v3969_v13, 4  ;;  %v3974_v22 = vrot.slane %v3972_v40, 5  ;;  %v5562_v38 = vpop.f32.mrf.mxu0  ;;  %v1296_v40 = vpop.f32.mrf.mxu1 }
 0x156   : > { %v8301_v37 = vadd.f32 %v5558_v4, %v1292_v31  ;;  %v1284_v24 = vadd.f32 %v1283_v32, %v9179_v25  ;;  %v4411_v41 = vsel %vm6277_vm8, %v5277_v19, %v4410_v44  ;;  %v4414_v50 = vsel %vm6277_vm8, %v4412_v47, %v4413_v54  ;;  %v9183_v4 = vld [vmem:[#allocation58_spill] sm:$0xff]  ;;  %v9184_v44 = vld [vmem:[#allocation44_spill] sm:$0xff] }
 0x157   : > { %v3951_v5 = vsel %vm6004_vm5, %v3946_v53, %v3950_v8  ;;  %v5293_v26 = vcombine.low %v4404_v43, %v4407_v42  ;;  %v3983_v59 = vor.u32 %v9181_v35, %v9180_v56  ;;  %v3993_v39 = vor.u32 %v9183_v4, %v9182_v60  ;;  %v1692_v53 = vpop.f32.mrf.mxu0  ;;  %v5528_v8 = vpop.f32.mrf.mxu1  ;;  %v9190_v35 = vld [vmem:[#allocation14_spill] sm:$0xff] }
 0x158   : > { %v8316_v55 = vadd.f32 %v1676_v58, %v1284_v24  ;;  %v1305_v7 = vadd.f32 %v5527_v15, %v9184_v44  ;;  %v3965_v12 = vsel %vm6004_vm5, %v3960_v11, %v8255_v23  ;;  %v3996_v13 = vshll.u32 %v3289_v6, 16  ;;  %v9185_v58 = vld [vmem:[#allocation50_spill] sm:$0xff]  ;;  %v9186_v23 = vld [vmem:[#allocation53_spill] sm:$0xff] }
 0x159   : > { %v3975_v19 = vsel %vm6004_vm5, %v3970_v30, %v3974_v22  ;;  %v5294_v45 = vcombine.low %v4411_v41, %v4414_v50  ;;  %v4419_v57 = vrot.slane %v4417_v52, 4  ;;  %v4420_v47 = vrot.slane %v3289_v6, 5  ;;  %v5565_v31 = vpop.f32.mrf.mxu0  ;;  %v1299_v32 = vpop.f32.mrf.mxu1  ;;  %v9188_v6 = vld [vmem:[#allocation57_spill] sm:$0xff] }
 0x15a   : > { %v8325_v54 = vadd.f32 %v5561_v34, %v1305_v7  ;;  %v1297_v3 = vadd.f32 %v1296_v40, %v9185_v58  ;;  %v5244_v33 = vcombine.low %v3941_v16, %v3951_v5  ;;  %v3984_v9 = vrot.slane %v3983_v59, 4  ;;  %v9191_v7 = vld [vmem:[#allocation10_spill] sm:$0xff]  ;;  %v9193_v58 = vld [vmem:[#allocation25_spill] sm:$0xff] }
 0x15b   : > { %v3994_v2 = vrot.slane %v3993_v39, 4  ;;  %v1308_v48 = vadd.f32 %v5528_v8, %v9186_v23  ;;  %5768 = vmatmul.mubr.msk.bf16.gmra.mxu0 %vm834_vm4, %v5293_v26  ;;  %v5245_v42 = vcombine.low %v3965_v12, %v3975_v19  ;;  %v3998_v11 = vrot.slane %v3996_v13, 5  ;;  %v1705_v24 = vpop.f32.mrf.mxu0 }
 0x15c   : > { %v8328_v43 = vadd.f32 %v1689_v49, %v1297_v3  ;;  %5771 = vmatprep.mubr.msk.bf16.mxu0 %vm834_vm4, %v5294_v45  ;;  %v9187_v34 = vrot.slane %v7614_v14, 9  ;;  %v4421_v16 = vsel %vm6277_vm8, %v4419_v57, %v4420_v47  ;;  %v1300_v25 = vadd.f32 %v1299_v32, %v9188_v6  ;;  %v5531_v49 = vpop.f32.mrf.mxu1  ;;  %5734 = vmatmul.mubr.msk.bf16.gmra.mxu1 %vm834_vm4, %v5244_v33  ;;  %v9189_v14 = vld [vmem:[#allocation24_spill] sm:$0xff] }
 0x15d   : > { %v8339_v22 = vadd.f32 %v5562_v38, %v1308_v48  ;;  %v3989_v41 = vsel %vm6004_vm5, %v3984_v9, %v9182_v60  ;;  %v1321_v15 = vadd.f32 %v5531_v49, %v9189_v14  ;;  %5737 = vmatprep.mubr.msk.bf16.mxu1 %vm834_vm4, %v5245_v42  ;;  %v3999_v21 = vsel %vm6004_vm5, %v3994_v2, %v3998_v11  ;;  %v9194_v9 = vld [vmem:[#allocation3_spill] sm:$0xff]  ;;  %v9195_v42 = vld [vmem:[#allocation9_spill] sm:$0xff] }
 0x15e   : > { %v4418_v30 = vsel %vm6277_vm8, %v9187_v34, %v4417_v52  ;;  %v8346_v50 = vadd.f32 %v1692_v53, %v1300_v25  ;;  %v5566_v52 = vpop.f32.mrf.mxu0  ;;  %v1312_v26 = vpop.f32.mrf.mxu1  ;;  %v5246_v44 = vcombine.low %v3989_v41, %v3999_v21  ;;  %v9197_v41 = vld [vmem:[#allocation12_spill] sm:$0xff] }
 0x15f   : > { %v5295_v5 = vcombine.low %v4418_v30, %v4421_v16  ;;  %v8352_v56 = vadd.f32 %v5565_v31, %v1321_v15  ;;  %v1313_v59 = vadd.f32 %v1312_v26, %v9190_v35  ;;  %v9196_v16 = vld [vmem:[#allocation8_spill] sm:$0xff] }
 0x160   : > { %v1708_v4 = vpop.f32.mrf.mxu0  ;;  %v5532_v39 = vpop.f32.mrf.mxu1 }
 0x161   : > { %v8355_v60 = vadd.f32 %v1705_v24, %v1313_v59  ;;  %v1324_v38 = vadd.f32 %v5532_v39, %v9191_v7  ;;  %v9199_v39 = vld [vmem:[#allocation6_spill] sm:$0xff] }
 0x162   : > { %v5569_v12 = vpop.f32.mrf.mxu0  ;;  %v1315_v13 = vpop.f32.mrf.mxu1 }
 0x163   : > { %5772 = vmatmul.mubr.msk.bf16.gmra.mxu0 %vm834_vm4, %v5295_v5  ;;  %v8359_v40 = vadd.f32 %v5566_v52, %v1324_v38  ;;  %v1316_v19 = vadd.f32 %v1315_v13, %v9192_v63  ;;  %v9198_v5 = vld [vmem:[#allocation13_spill] sm:$0xff]  ;;  %v9200_v13 = vld [vmem:[#allocation2_spill] sm:$0xff] }
 0x164   : > { %v1721_v45 = vpop.f32.mrf.mxu0  ;;  %v5535_v57 = vpop.f32.mrf.mxu1  ;;  %5738 = vmatmul.mubr.msk.bf16.gmra.mxu1 %vm834_vm4, %v5246_v44 }
 0x165   : > { %v8363_v47 = vadd.f32 %v1708_v4, %v1316_v19  ;;  %v1337_v3 = vadd.f32 %v5535_v57, %v9193_v58 }
 0x166   : > { %v5570_v53 = vpop.f32.mrf.mxu0  ;;  %v1328_v8 = vpop.f32.mrf.mxu1 }
 0x167   : > { %v8366_v33 = vadd.f32 %v5569_v12, %v1337_v3  ;;  %v1329_v2 = vadd.f32 %v1328_v8, %v9194_v9 }
 0x168   : > { %v1724_v23 = vpop.f32.mrf.mxu0  ;;  %v5536_v48 = vpop.f32.mrf.mxu1 }
 0x169   : > { %v8369_v31 = vadd.f32 %v1721_v45, %v1329_v2  ;;  %v1340_v11 = vadd.f32 %v5536_v48, %v9195_v42 }
 0x16a   : > { %v5609_v32 = vpop.f32.mrf.mxu0  ;;  %v1331_v34 = vpop.f32.mrf.mxu1 }
 0x16b   : > { %v8372_v30 = vadd.f32 %v5570_v53, %v1340_v11  ;;  %v1332_v6 = vadd.f32 %v1331_v34, %v9196_v16 }
 0x16c   : > { %v2661_v25 = vpop.f32.mrf.mxu0  ;;  %v5575_v24 = vpop.f32.mrf.mxu1 }
 0x16d   : > { %v8375_v49 = vadd.f32 %v1724_v23, %v1332_v6  ;;  %v2112_v14 = vadd.f32 %v5575_v24, %v9197_v41 }
 0x16e   : > { %v5610_v15 = vpop.f32.mrf.mxu0  ;;  %v1983_v52 = vpop.f32.mrf.mxu1 }
 0x16f   : > { %v8378_v21 = vadd.f32 %v5609_v32, %v2112_v14  ;;  %v2110_v26 = vadd.f32 %v1983_v52, %v9198_v5 }
 0x170   : > { %v2664_v35 = vpop.f32.mrf.mxu0  ;;  %v5576_v59 = vpop.f32.mrf.mxu1 }
 0x171   : > { %v8381_v4 = vadd.f32 %v2661_v25, %v2110_v26  ;;  %v2113_v44 = vadd.f32 %v5576_v59, %v9199_v39 }
 0x172   : > { %v5613_v7 = vpop.f32.mrf.mxu0  ;;  %v1986_v38 = vpop.f32.mrf.mxu1 }
 0x173   : > { %v8384_v12 = vadd.f32 %v5610_v15, %v2113_v44  ;;  %v2111_v63 = vadd.f32 %v1986_v38, %v9200_v13 }
 0x174   : > { %v2677_v19 = vpop.f32.mrf.mxu0  ;;  %v5579_v45 = vpop.f32.mrf.mxu1 }
 0x175   : > { %v8387_v57 = vadd.f32 %v2664_v35, %v2111_v63  ;;  %v2116_v58 = vadd.f32 %v5579_v45, %v8099_v10 }
 0x176   : > { %v5614_v3 = vpop.f32.mrf.mxu0  ;;  %v1999_v53 = vpop.f32.mrf.mxu1 }
 0x177   : > { %v8390_v8 = vadd.f32 %v5613_v7, %v2116_v58  ;;  %v2114_v9 = vadd.f32 %v1999_v53, %v8118_v0 }
 0x178   : > { %v2680_v2 = vpop.f32.mrf.mxu0  ;;  %v5580_v23 = vpop.f32.mrf.mxu1 }
 0x179   : > { %v8393_v48 = vadd.f32 %v2677_v19, %v2114_v9  ;;  %v2117_v42 = vadd.f32 %v5580_v23, %v8133_v27 }
 0x17a   : > { %v5617_v11 = vpop.f32.mrf.mxu0  ;;  %v2002_v32 = vpop.f32.mrf.mxu1 }
 0x17b   : > { %v8396_v34 = vadd.f32 %v5614_v3, %v2117_v42  ;;  %v2115_v16 = vadd.f32 %v2002_v32, %v8146_v28 }
 0x17c   : > { %v2693_v6 = vpop.f32.mrf.mxu0  ;;  %v5583_v10 = vpop.f32.mrf.mxu1 }
 0x17d   : > { %v8399_v25 = vadd.f32 %v2680_v2, %v2115_v16  ;;  %v2120_v24 = vadd.f32 %v5583_v10, %v8166_v51 }
 0x17e   : > { %v5618_v41 = vpop.f32.mrf.mxu0  ;;  %v2015_v0 = vpop.f32.mrf.mxu1 }
 0x17f   : > { %v8402_v14 = vadd.f32 %v5617_v11, %v2120_v24  ;;  %v2118_v15 = vadd.f32 %v2015_v0, %v8175_v36 }
 0x180   : > { %v2696_v52 = vpop.f32.mrf.mxu0  ;;  %v5584_v27 = vpop.f32.mrf.mxu1 }
 0x181   : > { %v8405_v5 = vadd.f32 %v2693_v6, %v2118_v15  ;;  %v2121_v26 = vadd.f32 %v5584_v27, %v8199_v20 }
 0x182   : > { %v5621_v35 = vpop.f32.mrf.mxu0  ;;  %v2018_v28 = vpop.f32.mrf.mxu1 }
 0x183   : > { %v8408_v59 = vadd.f32 %v5618_v41, %v2121_v26  ;;  %v2119_v39 = vadd.f32 %v2018_v28, %v8210_v62 }
 0x184   : > { %v2709_v44 = vpop.f32.mrf.mxu0  ;;  %v5587_v51 = vpop.f32.mrf.mxu1 }
 0x185   : > { %v8411_v7 = vadd.f32 %v2696_v52, %v2119_v39  ;;  %v2124_v38 = vadd.f32 %v5587_v51, %v8232_v29 }
 0x186   : > { %v5622_v13 = vpop.f32.mrf.mxu0  ;;  %v2031_v36 = vpop.f32.mrf.mxu1 }
 0x187   : > { %v8414_v63 = vadd.f32 %v5621_v35, %v2124_v38  ;;  %v2122_v19 = vadd.f32 %v2031_v36, %v8241_v17 }
 0x188   : > { %v2712_v45 = vpop.f32.mrf.mxu0  ;;  %v5588_v20 = vpop.f32.mrf.mxu1 }
 0x189   : > { %v8417_v58 = vadd.f32 %v2709_v44, %v2122_v19  ;;  %v2125_v3 = vadd.f32 %v5588_v20, %v8259_v1 }
 0x18a   : > { %v5625_v53 = vpop.f32.mrf.mxu0  ;;  %v2034_v62 = vpop.f32.mrf.mxu1 }
 0x18b   : > { %v8420_v9 = vadd.f32 %v5622_v13, %v2125_v3  ;;  %v2123_v2 = vadd.f32 %v2034_v62, %v8273_v18 }
 0x18c   : > { %v2725_v23 = vpop.f32.mrf.mxu0  ;;  %v5591_v29 = vpop.f32.mrf.mxu1 }
 0x18d   : > { %v8423_v42 = vadd.f32 %v2712_v45, %v2123_v2  ;;  %v2128_v11 = vadd.f32 %v5591_v29, %v8279_v46 }
 0x18e   : > { %v5626_v32 = vpop.f32.mrf.mxu0  ;;  %v2047_v17 = vpop.f32.mrf.mxu1 }
 0x18f   : > { %v8426_v16 = vadd.f32 %v5625_v53, %v2128_v11  ;;  %v2126_v6 = vadd.f32 %v2047_v17, %v8288_v61 }
 0x190   : > { %v2728_v10 = vpop.f32.mrf.mxu0  ;;  %v5592_v1 = vpop.f32.mrf.mxu1 }
 0x191   : > { %v8429_v24 = vadd.f32 %v2725_v23, %v2126_v6  ;;  %v2129_v41 = vadd.f32 %v5592_v1, %v8301_v37 }
 0x192   : > { %v5629_v0 = vpop.f32.mrf.mxu0  ;;  %v2050_v18 = vpop.f32.mrf.mxu1 }
 0x193   : > { %v8432_v15 = vadd.f32 %v5626_v32, %v2129_v41  ;;  %v2127_v52 = vadd.f32 %v2050_v18, %v8316_v55 }
 0x194   : > { %v2741_v27 = vpop.f32.mrf.mxu0  ;;  %v5595_v46 = vpop.f32.mrf.mxu1 }
 0x195   : > { %9201 = vst [vmem:[#allocation4_spill] sm:$0xff] %v8432_v15  ;;  %v8435_v26 = vadd.f32 %v2728_v10, %v2127_v52  ;;  %v2132_v35 = vadd.f32 %v5595_v46, %v8325_v54 }
 0x196   : > { %v5630_v28 = vpop.f32.mrf.mxu0  ;;  %v2063_v61 = vpop.f32.mrf.mxu1 }
 0x197   : > { %9202 = vst [vmem:[#allocation17_spill] sm:$0xff] %v8435_v26  ;;  %v8438_v39 = vadd.f32 %v5629_v0, %v2132_v35  ;;  %v2130_v44 = vadd.f32 %v2063_v61, %v8328_v43 }
 0x198   : > { %v2744_v51 = vpop.f32.mrf.mxu0  ;;  %v5596_v37 = vpop.f32.mrf.mxu1 }
 0x199   : > { %9203 = vst [vmem:[#allocation26_spill] sm:$0xff] %v8438_v39  ;;  %v8441_v38 = vadd.f32 %v2741_v27, %v2130_v44  ;;  %v2133_v13 = vadd.f32 %v5596_v37, %v8339_v22 }
 0x19a   : > { %v5633_v36 = vpop.f32.mrf.mxu0  ;;  %v2066_v55 = vpop.f32.mrf.mxu1 }
 0x19b   : > { %9204 = vst [vmem:[#allocation7_spill] sm:$0xff] %v8441_v38  ;;  %v8444_v19 = vadd.f32 %v5630_v28, %v2133_v13  ;;  %v2131_v45 = vadd.f32 %v2066_v55, %v8346_v50 }
 0x19c   : > { %v2757_v20 = vpop.f32.mrf.mxu0  ;;  %v5599_v54 = vpop.f32.mrf.mxu1 }
 0x19d   : > { %9205 = vst [vmem:[#allocation5_spill] sm:$0xff] %v8444_v19  ;;  %v8447_v3 = vadd.f32 %v2744_v51, %v2131_v45  ;;  %v2136_v53 = vadd.f32 %v5599_v54, %v8352_v56 }
 0x19e   : > { %v5634_v62 = vpop.f32.mrf.mxu0  ;;  %v2079_v43 = vpop.f32.mrf.mxu1 }
 0x19f   : > { %9206 = vst [vmem:[#allocation16_spill] sm:$0xff] %v8447_v3  ;;  %v8450_v2 = vadd.f32 %v5633_v36, %v2136_v53  ;;  %v2134_v23 = vadd.f32 %v2079_v43, %v8355_v60 }
 0x1a0   : > { %v2760_v29 = vpop.f32.mrf.mxu0  ;;  %v5600_v22 = vpop.f32.mrf.mxu1 }
 0x1a1   : > { %9207 = vst [vmem:[#allocation27_spill] sm:$0xff] %v8450_v2  ;;  %v8453_v11 = vadd.f32 %v2757_v20, %v2134_v23  ;;  %v2137_v32 = vadd.f32 %v5600_v22, %v8359_v40 }
 0x1a2   : > { %v5637_v17 = vpop.f32.mrf.mxu0  ;;  %v2082_v50 = vpop.f32.mrf.mxu1 }
 0x1a3   : > { %9208 = vst [vmem:[#allocation28_spill] sm:$0xff] %v8453_v11  ;;  %v8456_v6 = vadd.f32 %v5634_v62, %v2137_v32  ;;  %v2135_v10 = vadd.f32 %v2082_v50, %v8363_v47 }
 0x1a4   : > { %v2773_v1 = vpop.f32.mrf.mxu0  ;;  %v5603_v56 = vpop.f32.mrf.mxu1 }
 0x1a5   : > { %9209 = vst [vmem:[#allocation29_spill] sm:$0xff] %v8456_v6  ;;  %v8459_v41 = vadd.f32 %v2760_v29, %v2135_v10  ;;  %v2140_v0 = vadd.f32 %v5603_v56, %v8366_v33 }
 0x1a6   : > { %v5638_v18 = vpop.f32.mrf.mxu0  ;;  %v2095_v60 = vpop.f32.mrf.mxu1 }
 0x1a7   : > { %9210 = vst [vmem:[#allocation34_spill] sm:$0xff] %v8459_v41  ;;  %v8462_v52 = vadd.f32 %v5637_v17, %v2140_v0  ;;  %v2138_v27 = vadd.f32 %v2095_v60, %v8369_v31 }
 0x1a8   : > { %v2776_v46 = vpop.f32.mrf.mxu0  ;;  %v5604_v40 = vpop.f32.mrf.mxu1 }
 0x1a9   : > { %9211 = vst [vmem:[#allocation20_spill] sm:$0xff] %v8462_v52  ;;  %v8465_v35 = vadd.f32 %v2773_v1, %v2138_v27  ;;  %v2141_v28 = vadd.f32 %v5604_v40, %v8372_v30 }
 0x1aa   : > { %v8468_v61 = vpop.f32.mrf.mxu0  ;;  %v2098_v47 = vpop.f32.mrf.mxu1 }
 0x1ab   : > { %9212 = vst [vmem:[#allocation33_spill] sm:$0xff] %v8465_v35  ;;  %v8470_v44 = vadd.f32 %v5638_v18, %v2141_v28  ;;  %v2139_v51 = vadd.f32 %v2098_v47, %v8375_v49 }
 0x1ac   : > { %v8473_v33 = vpop.f32.mrf.mxu0  ;;  %v5643_v37 = vpop.f32.mrf.mxu1 }
 0x1ad   : > { %9213 = vst [vmem:[#allocation31_spill] sm:$0xff] %v8470_v44  ;;  %v8475_v13 = vadd.f32 %v2776_v46, %v2139_v51 }
 0x1ae   : > { %v8477_v36 = vpop.f32.mrf.mxu0  ;;  %v3083_v31 = vpop.f32.mrf.mxu1 }
 0x1af   : > { %9214 = vst [vmem:[#allocation37_spill] sm:$0xff] %v8475_v13 }
 0x1b0   : > { %v8479_v55 = vpop.f32.mrf.mxu0  ;;  %v5644_v45 = vpop.f32.mrf.mxu1 }
 0x1b2   : > { %v8481_v20 = vpop.f32.mrf.mxu0  ;;  %v8483_v30 = vpop.f32.mrf.mxu1 }
 0x1b4   : > { %v8485_v54 = vpop.f32.mrf.mxu0  ;;  %v8487_v53 = vpop.f32.mrf.mxu1 }
 0x1b6   : > { %v8489_v49 = vpop.f32.mrf.mxu0  ;;  %v8491_v62 = vpop.f32.mrf.mxu1 }
 0x1b8   : > { %v8493_v43 = vpop.f32.mrf.mxu0  ;;  %v8495_v23 = vpop.f32.mrf.mxu1 }
 0x1ba   : > { %v8497_v29 = vpop.f32.mrf.mxu0  ;;  %v8499_v22 = vpop.f32.mrf.mxu1 }
 0x1bc   : > { %v8501_v32 = vpop.f32.mrf.mxu0  ;;  %v8503_v17 = vpop.f32.mrf.mxu1 }
 0x1be   : > { %v8505_v50 = vpop.f32.mrf.mxu0  ;;  %v8507_v10 = vpop.f32.mrf.mxu1 }
 0x1c0   : > { %v8509_v1 = vpop.f32.mrf.mxu0  ;;  %v8511_v56 = vpop.f32.mrf.mxu1 }
 0x1c2   : > { %v8513_v0 = vpop.f32.mrf.mxu0  ;;  %v8515_v18 = vpop.f32.mrf.mxu1 }
 0x1c4   : > { %v8517_v60 = vpop.f32.mrf.mxu0  ;;  %v8519_v27 = vpop.f32.mrf.mxu1 }
 0x1c6   : > { %v8521_v46 = vpop.f32.mrf.mxu0  ;;  %v8523_v40 = vpop.f32.mrf.mxu1 }
 0x1c8   : > { %v8525_v28 = vpop.f32.mrf.mxu0  ;;  %v8527_v47 = vpop.f32.mrf.mxu1 }
 0x1ca   : > { %v8529_v51 = vpop.f32.mrf.mxu0  ;;  %v8531_v13 = vpop.f32.mrf.mxu1 }
 0x1cc   : > { %v8533_v44 = vpop.f32.mrf.mxu0  ;;  %v8535_v35 = vpop.f32.mrf.mxu1 }
 0x1cd   : > { %9215 = vst [vmem:[#allocation30_spill] sm:$0xff] %v8533_v44 }
 0x1ce   : > { %v8537_v52 = vpop.f32.mrf.mxu0  ;;  %v8539_v41 = vpop.f32.mrf.mxu1 }
 0x1cf   : > { %9216 = vst [vmem:[#allocation38_spill] sm:$0xff] %v8537_v52 }
 0x1d0   : > { %v8541_v6 = vpop.f32.mrf.mxu0  ;;  %v8543_v11 = vpop.f32.mrf.mxu1 }
 0x1d1   : > { %9217 = vst [vmem:[#allocation43_spill] sm:$0xff] %v8541_v6  ;;  %9218 = vst [vmem:[#allocation19_spill] sm:$0xff] %v8543_v11 }
 0x1d2   : > { %v8545_v2 = vpop.f32.mrf.mxu0  ;;  %v8547_v3 = vpop.f32.mrf.mxu1 }
 0x1d3   : > { %9219 = vst [vmem:[#allocation18_spill] sm:$0xff] %v8545_v2  ;;  %9220 = vst [vmem:[#allocation45_spill] sm:$0xff] %v8547_v3 }
 0x1d4   : > { %v8549_v19 = vpop.f32.mrf.mxu0  ;;  %v8551_v38 = vpop.f32.mrf.mxu1 }
 0x1d5   : > { %9221 = vst [vmem:[#allocation51_spill] sm:$0xff] %v8549_v19  ;;  %9222 = vst [vmem:[#allocation39_spill] sm:$0xff] %v8551_v38 }
 0x1d6   : > { %v8553_v39 = vpop.f32.mrf.mxu0  ;;  %v8555_v26 = vpop.f32.mrf.mxu1 }
 0x1d7   : > { %9223 = vst [vmem:[#allocation22_spill] sm:$0xff] %v8553_v39  ;;  %9224 = vst [vmem:[#allocation55_spill] sm:$0xff] %v8555_v26 }
 0x1d8   : > { %v8557_v44 = vpop.f32.mrf.mxu0  ;;  %v8559_v52 = vpop.f32.mrf.mxu1 }
 0x1d9   : > { %9225 = vst [vmem:[#allocation40_spill] sm:$0xff] %v8557_v44  ;;  %9226 = vst [vmem:[#allocation41_spill] sm:$0xff] %v8559_v52 }
 0x1da   : > { %v8561_v15 = vpop.f32.mrf.mxu0  ;;  %v8563_v6 = vpop.f32.mrf.mxu1 }
 0x1db   : > { %9227 = vst [vmem:[#allocation15_spill] sm:$0xff] %v8561_v15  ;;  %9228 = vst [vmem:[#allocation35_spill] sm:$0xff] %v8563_v6 }
 0x1dc   : > { %v8565_v11 = vpop.f32.mrf.mxu0  ;;  %v8567_v2 = vpop.f32.mrf.mxu1 }
 0x1dd   : > { %9229 = vst [vmem:[#allocation23_spill] sm:$0xff] %v8565_v11  ;;  %9230 = vst [vmem:[#allocation46_spill] sm:$0xff] %v8567_v2 }
 0x1de   : > { %v8569_v3 = vpop.f32.mrf.mxu0  ;;  %v8571_v19 = vpop.f32.mrf.mxu1 }
 0x1df   : > { %9231 = vst [vmem:[#allocation47_spill] sm:$0xff] %v8569_v3  ;;  %9232 = vst [vmem:[#allocation48_spill] sm:$0xff] %v8571_v19  ;;  %v3212_v3 = vadd.f32 %v5643_v37, %v8378_v21  ;;  %v3211_v21 = vadd.f32 %v8483_v30, %v8387_v57  ;;  %v3214_v57 = vadd.f32 %v8491_v62, %v8393_v48 }
 0x1e0   : > { %v8573_v38 = vpop.f32.mrf.mxu0  ;;  %v8575_v39 = vpop.f32.mrf.mxu1 }
 0x1e1   : > { %9233 = vst [vmem:[#allocation49_spill] sm:$0xff] %v8573_v38  ;;  %9234 = vst [vmem:[#allocation32_spill] sm:$0xff] %v8575_v39  ;;  %v3210_v38 = vadd.f32 %v3083_v31, %v8381_v4  ;;  %v8607_v4 = vld [vmem:[%s8808_s4] ss:$0 sm:$0xff] }
 0x1e2   : > { %v8577_v26 = vpop.f32.mrf.mxu0  ;;  %v8579_v44 = vpop.f32.mrf.mxu1 }
 0x1e3   : > { %9235 = vst [vmem:[#allocation36_spill] sm:$0xff] %v8577_v26  ;;  %9236 = vst [vmem:[#allocation21_spill] sm:$0xff] %v8579_v44 }
 0x1e4   : > { %v8581_v52 = vpop.f32.mrf.mxu0  ;;  %v8583_v15 = vpop.f32.mrf.mxu1 }
 0x1e5   : > { %9237 = vst [vmem:[#allocation42_spill] sm:$0xff] %v8581_v52  ;;  %9238 = vst [vmem:[#allocation52_spill] sm:$0xff] %v8583_v15  ;;  %v3586_v52 = vadd.f32 %v8468_v61, %v3212_v3  ;;  %v3213_v15 = vadd.f32 %v5644_v45, %v8384_v12 }
 0x1e6   : > { %v8585_v6 = vpop.f32.mrf.mxu0  ;;  %v8587_v11 = vpop.f32.mrf.mxu1 }
 0x1e7   : > { %9239 = vst [vmem:[#allocation54_spill] sm:$0xff] %v8585_v6  ;;  %9240 = vst [vmem:[#allocation56_spill] sm:$0xff] %v8587_v11  ;;  %v3584_v11 = vadd.f32 %v8473_v33, %v3210_v38  ;;  %v3587_v12 = vadd.f32 %v8477_v36, %v3213_v15  ;;  %v3217_v15 = vadd.f32 %v8495_v23, %v8396_v34 }
 0x1e8   : > { %v8590_v2 = vpop.f32.mrf.mxu0  ;;  %v8592_v19 = vpop.f32.mrf.mxu1  ;;  %v3215_v34 = vadd.f32 %v8499_v22, %v8399_v25 }
 0x1e9   : > { %9241 = vst [vmem:[#allocation58_spill] sm:$0xff] %v8590_v2  ;;  %9242 = vst [vmem:[#allocation44_spill] sm:$0xff] %v8592_v19  ;;  %v3216_v19 = vadd.f32 %v8487_v53, %v8390_v8 }
 0x1ea   : > { %v5745_v26 = vpop.f32.mrf.mxu0  ;;  %v8595_v39 = vpop.f32.mrf.mxu1 }
 0x1eb   : > { %v3590_v53 = vadd.f32 %v8481_v20, %v3216_v19  ;;  %v3588_v19 = vadd.f32 %v8485_v54, %v3214_v57 }
 0x1ec   : > { %v4557_v44 = vpop.f32.mrf.mxu0  ;;  %v5711_v6 = vpop.f32.mrf.mxu1 }
 0x1ed   : > { %v4264_v37 = vadd.f32 %v5711_v6, %v3586_v52  ;;  %v3585_v52 = vadd.f32 %v8479_v55, %v3211_v21 }
 0x1ee   : > { %v5746_v2 = vpop.f32.mrf.mxu0  ;;  %v4135_v3 = vpop.f32.mrf.mxu1 }
 0x1ef   : > { %v4686_v61 = vadd.f32 %v5745_v26, %v4264_v37  ;;  %v4262_v31 = vadd.f32 %v4135_v3, %v3584_v11 }
 0x1f0   : > { %v4560_v38 = vpop.f32.mrf.mxu0  ;;  %v5712_v6 = vpop.f32.mrf.mxu1 }
 0x1f1   : > { %v4725_v8 = vadd.f32 %v8607_v4, %v4686_v61  ;;  %v4684_v33 = vadd.f32 %v4557_v44, %v4262_v31  ;;  %v4265_v45 = vadd.f32 %v5712_v6, %v3587_v12  ;;  %v3591_v12 = vadd.f32 %v8489_v49, %v3217_v15 }
 0x1f2   : > { %v5749_v30 = vpop.f32.mrf.mxu0  ;;  %v4138_v48 = vpop.f32.mrf.mxu1  ;;  %v3589_v6 = vadd.f32 %v8493_v43, %v3215_v34  ;;  %v3224_v34 = vadd.f32 %v8519_v27, %v8414_v63 }
 0x1f3   : > { %v4757_v26 = vmax.f32 %v4725_v8, 0.0  ;;  %v4723_v11 = vadd.f32 %v8607_v4, %v4684_v33  ;;  %v4687_v44 = vadd.f32 %v5746_v2, %v4265_v45  ;;  %v4263_v36 = vadd.f32 %v4138_v48, %v3585_v52 }
 0x1f4   : > { %v4573_v55 = vpop.f32.mrf.mxu0  ;;  %v5715_v20 = vpop.f32.mrf.mxu1  ;;  %v3220_v2 = vadd.f32 %v8503_v17, %v8402_v14 }
 0x1f5   : > { %4790 = vst.msk [vmem:[%s8621_s8 + $0x10] sm:$0xff] %vm4787_vm9, %v4757_v26  ;;  %v4755_v62 = vmax.f32 %v4723_v11, 0.0  ;;  %v4726_v23 = vadd.f32 %v8607_v4, %v4687_v44  ;;  %v4685_v21 = vadd.f32 %v4560_v38, %v4263_v36  ;;  %v4268_v37 = vadd.f32 %v5715_v20, %v3590_v53 }
 0x1f6   : > { %v5750_v3 = vpop.f32.mrf.mxu0  ;;  %v4151_v61 = vpop.f32.mrf.mxu1  ;;  %v3218_v38 = vadd.f32 %v8507_v10, %v8405_v5  ;;  %v3594_v45 = vadd.f32 %v8497_v29, %v3220_v2  ;;  %v3219_v11 = vadd.f32 %v8515_v18, %v8411_v7 }
 0x1f7   : > { %4788 = vst.msk [vmem:[%s8621_s8] sm:$0xff] %vm4787_vm9, %v4755_v62  ;;  %v4758_v54 = vmax.f32 %v4726_v23, 0.0  ;;  %v4724_v25 = vadd.f32 %v8607_v4, %v4685_v21  ;;  %v4690_v22 = vadd.f32 %v5749_v30, %v4268_v37  ;;  %v4266_v31 = vadd.f32 %v4151_v61, %v3588_v19 }
 0x1f8   : > { %v4576_v57 = vpop.f32.mrf.mxu0  ;;  %v5716_v52 = vpop.f32.mrf.mxu1  ;;  %v3221_v30 = vadd.f32 %v8511_v56, %v8408_v59  ;;  %v3592_v26 = vadd.f32 %v8501_v32, %v3218_v38  ;;  %v3593_v21 = vadd.f32 %v8509_v1, %v3219_v11  ;;  %v3222_v37 = vadd.f32 %v8523_v40, %v8417_v58 }
 0x1f9   : > { %4791 = vst.msk [vmem:[%s8621_s8 + $0x18] sm:$0xff] %vm4787_vm9, %v4758_v54  ;;  %v4756_v49 = vmax.f32 %v4724_v25, 0.0  ;;  %v4729_v14 = vadd.f32 %v8607_v4, %v4690_v22  ;;  %v4688_v17 = vadd.f32 %v4573_v55, %v4266_v31  ;;  %v4269_v8 = vadd.f32 %v5716_v52, %v3591_v12 }
 0x1fa   : > { %v5753_v33 = vpop.f32.mrf.mxu0  ;;  %v4154_v53 = vpop.f32.mrf.mxu1  ;;  %v3595_v19 = vadd.f32 %v8505_v50, %v3221_v30  ;;  %v3598_v61 = vadd.f32 %v8513_v0, %v3224_v34  ;;  %v3225_v54 = vadd.f32 %v8527_v47, %v8420_v9 }
 0x1fb   : > { %4789 = vst.msk [vmem:[%s8621_s8 + $0x8] sm:$0xff] %vm4787_vm9, %v4756_v49  ;;  %v4761_v43 = vmax.f32 %v4729_v14, 0.0  ;;  %v4727_v5 = vadd.f32 %v8607_v4, %v4688_v17  ;;  %v4691_v10 = vadd.f32 %v5750_v3, %v4269_v8  ;;  %v4267_v15 = vadd.f32 %v4154_v53, %v3589_v6 }
 0x1fc   : > { %v4589_v48 = vpop.f32.mrf.mxu0  ;;  %v5719_v44 = vpop.f32.mrf.mxu1  ;;  %v3223_v6 = vadd.f32 %v8531_v13, %v8423_v42  ;;  %v3599_v14 = vadd.f32 %v8521_v46, %v3225_v54  ;;  %v3228_v17 = vadd.f32 %v8535_v35, %v8426_v16  ;;  %v3226_v53 = vadd.f32 %v8539_v41, %v8429_v24 }
 0x1fd   : > { %4794 = vst.msk [vmem:[%s8621_s8 + $0x30] sm:$0xff] %vm4787_vm9, %v4761_v43  ;;  %v4759_v29 = vmax.f32 %v4727_v5, 0.0  ;;  %v4730_v59 = vadd.f32 %v8607_v4, %v4691_v10  ;;  %v4689_v56 = vadd.f32 %v4576_v57, %v4267_v15  ;;  %v4272_v36 = vadd.f32 %v5719_v44, %v3594_v45 }
 0x1fe   : > { %v5754_v55 = vpop.f32.mrf.mxu0  ;;  %v4167_v20 = vpop.f32.mrf.mxu1  ;;  %v3596_v57 = vadd.f32 %v8517_v60, %v3222_v37  ;;  %v3597_v30 = vadd.f32 %v8525_v28, %v3223_v6  ;;  %v3602_v15 = vadd.f32 %v8529_v51, %v3228_v17  ;;  %v9249_v37 = vld [vmem:[#allocation26_spill] sm:$0xff] }
 0x1ff   : > { %4792 = vst.msk [vmem:[%s8621_s8 + $0x20] sm:$0xff] %vm4787_vm9, %v4759_v29  ;;  %v4762_v32 = vmax.f32 %v4730_v59, 0.0  ;;  %v4728_v7 = vadd.f32 %v8607_v4, %v4689_v56  ;;  %v4694_v18 = vadd.f32 %v5753_v33, %v4272_v36  ;;  %v4270_v62 = vadd.f32 %v4167_v20, %v3592_v26  ;;  %v9244_v26 = vld [vmem:[#allocation19_spill] sm:$0xff]  ;;  %v9245_v56 = vld [vmem:[#allocation30_spill] sm:$0xff] }
 0x200   : > { %v4592_v23 = vpop.f32.mrf.mxu0  ;;  %v5720_v3 = vpop.f32.mrf.mxu1  ;;  %v3600_v36 = vadd.f32 %v9245_v56, %v3226_v53 }
 0x201   : > { %4795 = vst.msk [vmem:[%s8621_s8 + $0x38] sm:$0xff] %vm4787_vm9, %v4762_v32  ;;  %v4760_v50 = vmax.f32 %v4728_v7, 0.0  ;;  %v4733_v63 = vadd.f32 %v8607_v4, %v4694_v18  ;;  %v4692_v27 = vadd.f32 %v4589_v48, %v4270_v62  ;;  %v4273_v12 = vadd.f32 %v5720_v3, %v3595_v19  ;;  %v9243_v48 = vld [vmem:[#allocation4_spill] sm:$0xff]  ;;  %v9247_v19 = vld [vmem:[#allocation45_spill] sm:$0xff]  ;;  %v9250_v3 = vld [vmem:[#allocation39_spill] sm:$0xff] }
 0x202   : > { %v4170_v25 = vpop.f32.mrf.mxu1  ;;  %v3229_v11 = vadd.f32 %v9244_v26, %v9243_v48 }
 0x203   : > { %v5757_v2 = vpop.f32.mrf.mxu0  ;;  %4793 = vst.msk [vmem:[%s8621_s8 + $0x28] sm:$0xff] %vm4787_vm9, %v4760_v50  ;;  %v4765_v1 = vmax.f32 %v4733_v63, 0.0  ;;  %v4731_v58 = vadd.f32 %v8607_v4, %v4692_v27  ;;  %v4695_v40 = vadd.f32 %v5754_v55, %v4273_v12  ;;  %v4271_v22 = vadd.f32 %v4170_v25, %v3593_v21  ;;  %v9246_v55 = vld [vmem:[#allocation17_spill] sm:$0xff]  ;;  %v9251_v25 = vld [vmem:[#allocation43_spill] sm:$0xff] }
 0x204   : > { %v5723_v38 = vpop.f32.mrf.mxu1  ;;  %v3227_v34 = vadd.f32 %v9247_v19, %v9246_v55  ;;  %v3232_v50 = vadd.f32 %v9250_v3, %v9249_v37 }
 0x205   : > { %v4605_v31 = vpop.f32.mrf.mxu0  ;;  %4798 = vst.msk [vmem:[%s8621_s8 + $0x50] sm:$0xff] %vm4787_vm9, %v4765_v1  ;;  %v4763_v0 = vmax.f32 %v4731_v58, 0.0  ;;  %v4734_v9 = vadd.f32 %v8607_v4, %v4695_v40  ;;  %v4693_v47 = vadd.f32 %v4592_v23, %v4271_v22  ;;  %v4276_v52 = vadd.f32 %v5723_v38, %v3598_v61  ;;  %v9248_v23 = vld [vmem:[#allocation38_spill] sm:$0xff]  ;;  %v9252_v58 = vld [vmem:[#allocation7_spill] sm:$0xff] }
 0x206   : > { %v4183_v8 = vpop.f32.mrf.mxu1  ;;  %v3603_v21 = vadd.f32 %v9248_v23, %v3229_v11  ;;  %v3601_v1 = vadd.f32 %v9251_v25, %v3227_v34  ;;  %v9253_v40 = vld [vmem:[#allocation55_spill] sm:$0xff]  ;;  %v9260_v11 = vld [vmem:[#allocation22_spill] sm:$0xff]  ;;  %v9263_v34 = vld [vmem:[#allocation40_spill] sm:$0xff] }
 0x207   : > { %v5758_v49 = vpop.f32.mrf.mxu0  ;;  %4796 = vst.msk [vmem:[%s8621_s8 + $0x40] sm:$0xff] %vm4787_vm9, %v4763_v0  ;;  %v4766_v60 = vmax.f32 %v4734_v9, 0.0  ;;  %v4732_v42 = vadd.f32 %v8607_v4, %v4693_v47  ;;  %v4698_v13 = vadd.f32 %v5757_v2, %v4276_v52  ;;  %v4274_v33 = vadd.f32 %v4183_v8, %v3596_v57  ;;  %v9254_v47 = vld [vmem:[#allocation18_spill] sm:$0xff] }
 0x208   : > { %v5724_v43 = vpop.f32.mrf.mxu1  ;;  %v3230_v22 = vadd.f32 %v9253_v40, %v9252_v58  ;;  %v3606_v52 = vadd.f32 %v9254_v47, %v3232_v50  ;;  %v9266_v50 = vld [vmem:[#allocation15_spill] sm:$0xff] }
 0x209   : > { %v4608_v45 = vpop.f32.mrf.mxu0  ;;  %4799 = vst.msk [vmem:[%s8621_s8 + $0x58] sm:$0xff] %vm4787_vm9, %v4766_v60  ;;  %v4764_v46 = vmax.f32 %v4732_v42, 0.0  ;;  %v4737_v16 = vadd.f32 %v8607_v4, %v4698_v13  ;;  %v4696_v35 = vadd.f32 %v4605_v31, %v4274_v33  ;;  %v4277_v5 = vadd.f32 %v5724_v43, %v3599_v14  ;;  %v9256_v14 = vld [vmem:[#allocation41_spill] sm:$0xff]  ;;  %v9258_v43 = vld [vmem:[#allocation16_spill] sm:$0xff] }
 0x20a   : > { %v4186_v44 = vpop.f32.mrf.mxu1 }
 0x20b   : > { %v5761_v10 = vpop.f32.mrf.mxu0  ;;  %4797 = vst.msk [vmem:[%s8621_s8 + $0x48] sm:$0xff] %vm4787_vm9, %v4764_v46  ;;  %v4769_v28 = vmax.f32 %v4737_v16, 0.0  ;;  %v4735_v24 = vadd.f32 %v8607_v4, %v4696_v35  ;;  %v4699_v41 = vadd.f32 %v5758_v49, %v4277_v5  ;;  %v4275_v29 = vadd.f32 %v4186_v44, %v3597_v30  ;;  %v9255_v49 = vld [vmem:[#allocation5_spill] sm:$0xff]  ;;  %v9257_v30 = vld [vmem:[#allocation51_spill] sm:$0xff] }
 0x20c   : > { %v5727_v20 = vpop.f32.mrf.mxu1  ;;  %v3233_v17 = vadd.f32 %v9256_v14, %v9255_v49  ;;  %v3604_v53 = vadd.f32 %v9257_v30, %v3230_v22  ;;  %v9259_v46 = vld [vmem:[#allocation35_spill] sm:$0xff] }
 0x20d   : > { %v4621_v59 = vpop.f32.mrf.mxu0  ;;  %4802 = vst.msk [vmem:[%s8621_s8 + $0x70] sm:$0xff] %vm4787_vm9, %v4769_v28  ;;  %v4767_v51 = vmax.f32 %v4735_v24, 0.0  ;;  %v4738_v32 = vadd.f32 %v8607_v4, %v4699_v41  ;;  %v4697_v7 = vadd.f32 %v4608_v45, %v4275_v29  ;;  %v4280_v18 = vadd.f32 %v5727_v20, %v3602_v15  ;;  %v9261_v28 = vld [vmem:[#allocation27_spill] sm:$0xff]  ;;  %v9262_v24 = vld [vmem:[#allocation46_spill] sm:$0xff] }
 0x20e   : > { %v4199_v63 = vpop.f32.mrf.mxu1  ;;  %v3231_v16 = vadd.f32 %v9259_v46, %v9258_v43  ;;  %v3607_v44 = vadd.f32 %v9260_v11, %v3233_v17  ;;  %v3236_v41 = vadd.f32 %v9262_v24, %v9261_v28  ;;  %v9269_v22 = vld [vmem:[#allocation23_spill] sm:$0xff] }
 0x20f   : > { %v5762_v62 = vpop.f32.mrf.mxu0  ;;  %4800 = vst.msk [vmem:[%s8621_s8 + $0x60] sm:$0xff] %vm4787_vm9, %v4767_v51  ;;  %v4770_v27 = vmax.f32 %v4738_v32, 0.0  ;;  %v4736_v12 = vadd.f32 %v8607_v4, %v4697_v7  ;;  %v4702_v2 = vadd.f32 %v5761_v10, %v4280_v18  ;;  %v4278_v61 = vadd.f32 %v4199_v63, %v3600_v36  ;;  %v9264_v51 = vld [vmem:[#allocation28_spill] sm:$0xff]  ;;  %v9272_v17 = vld [vmem:[#allocation47_spill] sm:$0xff] }
 0x210   : > { %v5728_v31 = vpop.f32.mrf.mxu1  ;;  %v3605_v20 = vadd.f32 %v9263_v34, %v3231_v16  ;;  %v9265_v32 = vld [vmem:[#allocation48_spill] sm:$0xff]  ;;  %v3610_v63 = vadd.f32 %v9266_v50, %v3236_v41  ;;  %v9275_v16 = vld [vmem:[#allocation49_spill] sm:$0xff] }
 0x211   : > { %v4624_v54 = vpop.f32.mrf.mxu0  ;;  %4803 = vst.msk [vmem:[%s8621_s8 + $0x78] sm:$0xff] %vm4787_vm9, %v4770_v27  ;;  %v4768_v57 = vmax.f32 %v4736_v12, 0.0  ;;  %v4741_v6 = vadd.f32 %v8607_v4, %v4702_v2  ;;  %v4700_v38 = vadd.f32 %v4621_v59, %v4278_v61  ;;  %v4281_v0 = vadd.f32 %v5728_v31, %v3603_v21  ;;  %v9267_v27 = vld [vmem:[#allocation29_spill] sm:$0xff]  ;;  %v9268_v12 = vld [vmem:[#allocation32_spill] sm:$0xff] }
 0x212   : > { %v4202_v8 = vpop.f32.mrf.mxu1  ;;  %v3234_v7 = vadd.f32 %v9265_v32, %v9264_v51  ;;  %v3237_v2 = vadd.f32 %v9268_v12, %v9267_v27  ;;  %v9278_v41 = vld [vmem:[#allocation36_spill] sm:$0xff]  ;;  %v9281_v32 = vld [vmem:[#allocation42_spill] sm:$0xff] }
 0x213   : > { %v5765_v9 = vpop.f32.mrf.mxu0  ;;  %4801 = vst.msk [vmem:[%s8621_s8 + $0x68] sm:$0xff] %vm4787_vm9, %v4768_v57  ;;  %v4773_v60 = vmax.f32 %v4741_v6, 0.0  ;;  %v4739_v42 = vadd.f32 %v8607_v4, %v4700_v38  ;;  %v4703_v13 = vadd.f32 %v5762_v62, %v4281_v0  ;;  %v4279_v33 = vadd.f32 %v4202_v8, %v3601_v1  ;;  %v9270_v57 = vld [vmem:[#allocation34_spill] sm:$0xff]  ;;  %v9271_v6 = vld [vmem:[#allocation21_spill] sm:$0xff] }
 0x214   : > { %v5731_v35 = vpop.f32.mrf.mxu1  ;;  %v3608_v31 = vadd.f32 %v9269_v22, %v3234_v7  ;;  %v3235_v38 = vadd.f32 %v9271_v6, %v9270_v57  ;;  %v3611_v8 = vadd.f32 %v9272_v17, %v3237_v2  ;;  %v9283_v27 = vld [vmem:[#allocation54_spill] sm:$0xff] }
 0x215   : > { %v4637_v45 = vpop.f32.mrf.mxu0  ;;  %4806 = vst.msk [vmem:[%s8621_s8 + $0x90] sm:$0xff] %vm4787_vm9, %v4773_v60  ;;  %v4771_v5 = vmax.f32 %v4739_v42, 0.0  ;;  %v4742_v10 = vadd.f32 %v8607_v4, %v4703_v13  ;;  %v4701_v15 = vadd.f32 %v4624_v54, %v4279_v33  ;;  %v4284_v48 = vadd.f32 %v5731_v35, %v3606_v52  ;;  %v9273_v60 = vld [vmem:[#allocation20_spill] sm:$0xff] }
 0x216   : > { %v4215_v29 = vpop.f32.mrf.mxu1  ;;  %v9274_v42 = vld [vmem:[#allocation52_spill] sm:$0xff]  ;;  %v3609_v35 = vadd.f32 %v9275_v16, %v3235_v38 }
 0x217   : > { %v5766_v26 = vpop.f32.mrf.mxu0  ;;  %4804 = vst.msk [vmem:[%s8621_s8 + $0x80] sm:$0xff] %vm4787_vm9, %v4771_v5  ;;  %v4774_v59 = vmax.f32 %v4742_v10, 0.0  ;;  %v4740_v56 = vadd.f32 %v8607_v4, %v4701_v15  ;;  %v4706_v36 = vadd.f32 %v5765_v9, %v4284_v48  ;;  %v4282_v55 = vadd.f32 %v4215_v29, %v3604_v53  ;;  %v9276_v5 = vld [vmem:[#allocation33_spill] sm:$0xff]  ;;  %v9277_v10 = vld [vmem:[#allocation56_spill] sm:$0xff] }
 0x218   : > { %v5732_v18 = vpop.f32.mrf.mxu1  ;;  %v3240_v13 = vadd.f32 %v9274_v42, %v9273_v60  ;;  %v3238_v15 = vadd.f32 %v9277_v10, %v9276_v5 }
 0x219   : > { %v4640_v19 = vpop.f32.mrf.mxu0  ;;  %4807 = vst.msk [vmem:[%s8621_s8 + $0x98] sm:$0xff] %vm4787_vm9, %v4774_v59  ;;  %v4772_v62 = vmax.f32 %v4740_v56, 0.0  ;;  %v4745_v23 = vadd.f32 %v8607_v4, %v4706_v36  ;;  %v4704_v21 = vadd.f32 %v4637_v45, %v4282_v55  ;;  %v4285_v37 = vadd.f32 %v5732_v18, %v3607_v44  ;;  %v9279_v59 = vld [vmem:[#allocation31_spill] sm:$0xff]  ;;  %v9280_v56 = vld [vmem:[#allocation44_spill] sm:$0xff]  ;;  %v9282_v18 = vld [vmem:[#allocation37_spill] sm:$0xff] }
 0x21a   : > { %v4218_v61 = vpop.f32.mrf.mxu1  ;;  %v3614_v29 = vadd.f32 %v9278_v41, %v3240_v13  ;;  %v3241_v36 = vadd.f32 %v9280_v56, %v9279_v59  ;;  %v3612_v7 = vadd.f32 %v9281_v32, %v3238_v15 }
 0x21b   : > { %v5769_v3 = vpop.f32.mrf.mxu0  ;;  %4805 = vst.msk [vmem:[%s8621_s8 + $0x88] sm:$0xff] %vm4787_vm9, %v4772_v62  ;;  %v4777_v54 = vmax.f32 %v4745_v23, 0.0  ;;  %v4743_v25 = vadd.f32 %v8607_v4, %v4704_v21  ;;  %v4707_v1 = vadd.f32 %v5766_v26, %v4285_v37  ;;  %v4283_v58 = vadd.f32 %v4218_v61, %v3605_v20 }
 0x21c   : > { %v5735_v0 = vpop.f32.mrf.mxu1  ;;  %v3239_v62 = vadd.f32 %v8595_v39, %v9282_v18  ;;  %v3615_v12 = vadd.f32 %v9283_v27, %v3241_v36 }
 0x21d   : > { %v4653_v40 = vpop.f32.mrf.mxu0  ;;  %4810 = vst.msk [vmem:[%s8621_s8 + $0xb0] sm:$0xff] %vm4787_vm9, %v4777_v54  ;;  %v4775_v9 = vmax.f32 %v4743_v25, 0.0  ;;  %v4746_v47 = vadd.f32 %v8607_v4, %v4707_v1  ;;  %v4705_v52 = vadd.f32 %v4640_v19, %v4283_v58  ;;  %v4288_v49 = vadd.f32 %v5735_v0, %v3610_v63  ;;  %v9284_v1 = vld [vmem:[#allocation58_spill] sm:$0xff] }
 0x21e   : > { %v4231_v33 = vpop.f32.mrf.mxu1  ;;  %v3613_v58 = vadd.f32 %v9284_v1, %v3239_v62 }
 0x21f   : > { %v5770_v14 = vpop.f32.mrf.mxu0  ;;  %4808 = vst.msk [vmem:[%s8621_s8 + $0xa0] sm:$0xff] %vm4787_vm9, %v4775_v9  ;;  %v4778_v45 = vmax.f32 %v4746_v47, 0.0  ;;  %v4744_v30 = vadd.f32 %v8607_v4, %v4705_v52  ;;  %v4710_v53 = vadd.f32 %v5769_v3, %v4288_v49  ;;  %v4286_v43 = vadd.f32 %v4231_v33, %v3608_v31 }
 0x220   : > { %v5736_v48 = vpop.f32.mrf.mxu1 }
 0x221   : > { %v4656_v46 = vpop.f32.mrf.mxu0  ;;  %4811 = vst.msk [vmem:[%s8621_s8 + $0xb8] sm:$0xff] %vm4787_vm9, %v4778_v45  ;;  %v4776_v26 = vmax.f32 %v4744_v30, 0.0  ;;  %v4749_v11 = vadd.f32 %v8607_v4, %v4710_v53  ;;  %v4708_v44 = vadd.f32 %v4653_v40, %v4286_v43  ;;  %v4289_v28 = vadd.f32 %v5736_v48, %v3611_v8 }
 0x222   : > { %v4234_v55 = vpop.f32.mrf.mxu1 }
 0x223   : > { %v5773_v24 = vpop.f32.mrf.mxu0  ;;  %4809 = vst.msk [vmem:[%s8621_s8 + $0xa8] sm:$0xff] %vm4787_vm9, %v4776_v26  ;;  %v4781_v19 = vmax.f32 %v4749_v11, 0.0  ;;  %v4747_v34 = vadd.f32 %v8607_v4, %v4708_v44  ;;  %v4711_v20 = vadd.f32 %v5770_v14, %v4289_v28  ;;  %v4287_v51 = vadd.f32 %v4234_v55, %v3609_v35 }
 0x224   : > { %v5739_v23 = vpop.f32.mrf.mxu1 }
 0x225   : > { %v4669_v21 = vpop.f32.mrf.mxu0  ;;  %4814 = vst.msk [vmem:[%s8621_s8 + $0xd0] sm:$0xff] %vm4787_vm9, %v4781_v19  ;;  %v4779_v37 = vmax.f32 %v4747_v34, 0.0  ;;  %v4750_v3 = vadd.f32 %v8607_v4, %v4711_v20  ;;  %v4709_v50 = vadd.f32 %v4656_v46, %v4287_v51  ;;  %v4292_v63 = vadd.f32 %v5739_v23, %v3614_v29 }
 0x226   : > { %v4247_v2 = vpop.f32.mrf.mxu1 }
 0x227   : > { %4812 = vst.msk [vmem:[%s8621_s8 + $0xc0] sm:$0xff] %vm4787_vm9, %v4779_v37  ;;  %v4782_v61 = vmax.f32 %v4750_v3, 0.0  ;;  %v4748_v54 = vadd.f32 %v8607_v4, %v4709_v50  ;;  %v4714_v39 = vadd.f32 %v5773_v24, %v4292_v63  ;;  %v4290_v25 = vadd.f32 %v4247_v2, %v3612_v7  ;;  %v5774_v22 = vpop.f32.mrf.mxu0 }
 0x228   : > { %v5740_v40 = vpop.f32.mrf.mxu1 }
 0x229   : > { %4815 = vst.msk [vmem:[%s8621_s8 + $0xd8] sm:$0xff] %vm4787_vm9, %v4782_v61  ;;  %v4780_v31 = vmax.f32 %v4748_v54, 0.0  ;;  %v4753_v57 = vadd.f32 %v8607_v4, %v4714_v39  ;;  %v4712_v6 = vadd.f32 %v4669_v21, %v4290_v25  ;;  %v4293_v38 = vadd.f32 %v5740_v40, %v3615_v12  ;;  %v4672_v14 = vpop.f32.mrf.mxu0 }
 0x22a   : > { %v4250_v0 = vpop.f32.mrf.mxu1 }
 0x22b   : > { %4813 = vst.msk [vmem:[%s8621_s8 + $0xc8] sm:$0xff] %vm4787_vm9, %v4780_v31  ;;  %v4785_v9 = vmax.f32 %v4753_v57, 0.0  ;;  %v4751_v47 = vadd.f32 %v8607_v4, %v4712_v6  ;;  %v4715_v52 = vadd.f32 %v5774_v22, %v4293_v38  ;;  %v4291_v49 = vadd.f32 %v4250_v0, %v3613_v58 }
 0x22d   : > { %4818 = vst.msk [vmem:[%s8621_s8 + $0xf0] sm:$0xff] %vm4787_vm9, %v4785_v9  ;;  %v4783_v17 = vmax.f32 %v4751_v47, 0.0  ;;  %v4754_v8 = vadd.f32 %v8607_v4, %v4715_v52  ;;  %v4713_v60 = vadd.f32 %v4672_v14, %v4291_v49 }
 0x22f   : > { %4816 = vst.msk [vmem:[%s8621_s8 + $0xe0] sm:$0xff] %vm4787_vm9, %v4783_v17  ;;  %v4786_v42 = vmax.f32 %v4754_v8, 0.0  ;;  %v4752_v13 = vadd.f32 %v8607_v4, %v4713_v60 }
 0x231   : > { %4819 = vst.msk [vmem:[%s8621_s8 + $0xf8] sm:$0xff] %vm4787_vm9, %v4786_v42  ;;  %v4784_v33 = vmax.f32 %v4752_v13, 0.0 }
 0x233   : > { %4817 = vst.msk [vmem:[%s8621_s8 + $0xe8] sm:$0xff] %vm4787_vm9, %v4784_v33 }
 0x234 PF: > { %s15_s20 = sadd.s32 1, %s5873_s20   ;;  %s9285_s18 = smov %s5869_s19 }
 0x235   : > { %p12_p5 = scmp.ge.s32.totalorder %s15_s20, 4   ;;  %s9286_s19 = smov %s9288_s21 }
 0x237   :  { %14 = sbr.rel (!%p12_p5) target bundleno = 2 (0x2), region = 84 }

// kernel: first_double_conv.3
= control target key start
LH: loop header
LB: loop body
LE: loop exit
PB: predicated region body
PF: predicated region fallthrough
CT: control target
= control target key end

     0   :  { %10 = vsyncpa [#allocation3], 0  ;;  %s9168_s0 = inlined_call_operand.vmem [shape: bf16[2,16,18,32], index: 0, kind: input, shape index: {}]   ;;  %s9169_s1 = inlined_call_operand.vmem [shape: bf16[2,16,18,32], index: 1, kind: input, shape index: {}]   ;;  %s9170_s2 = inlined_call_operand.vmem [shape: bf16[2,16,18,32], index: 2, kind: input, shape index: {}]   ;;  %s9171_s3 = inlined_call_operand.vmem [shape: bf16[9,32,32], index: 3, kind: input, shape index: {}]   ;;  %s9172_s4 = inlined_call_operand.vmem [shape: f32[1,32], index: 4, kind: input, shape index: {}]   ;;  %s9173_s5 = inlined_call_operand.hbm [shape: f32[2,16,16,32], index: 5, kind: output, shape index: {}]  }
   0x1   :  { %12 = vsyncpa [#allocation3 + $0x1], 0  ;;  %s6181_s18 = smov 0   ;;  %s6183_s19 = smov 0  }
   0x2   :  { %s6185_s20 = smov 0   ;;  %s6187_s21 = smov 0  }
   0x3   :  { %s6189_s22 = smov 0   ;;  %s6191_s23 = smov 0  }
   0x4 LB: > { %s5052_s24 = sadd.s32 4294967295, %s6146_s23   ;;  %s5053_s25 = sadd.s32 4294967294, %s6146_s23   ;;  %s6146_s23 = sphi %s6191_s23, %s18_s23   ;;  %s6142_s22 = sphi %s6189_s22, %s9665_s22   ;;  %s6138_s21 = sphi %s6187_s21, %s9664_s21   ;;  %s6134_s20 = sphi %s6185_s20, %s9663_s20   ;;  %s6130_s19 = sphi %s6183_s19, %s9662_s19   ;;  %s6126_s18 = sphi %s6181_s18, %s9661_s18  }
   0x5   : > { %s30_s26 = sadd.s32 1, %s6142_s22  ;;  %s165_s27 = sadd.s32 1, %s6134_s20 }
   0x6   : > { %p32_p0 = scmp.ge.s32.totalorder %s30_s26, 2  ;;  %p175_p1 = scmp.ne.s32.totalorder %s6134_s20, %s6130_s19 }
   0x7   : > { %p176_p2 = scmp.eq.s32.totalorder %s5052_s24, 1  ;;  %p181_p3 = scmp.ne.s32.totalorder %s6130_s19, %s6126_s18 }
   0x8   : > { %s9667_s26 = smov (%p32_p0, %s30_s26), 0  ;;  %p182_p5 = scmp.eq.s32.totalorder %s5053_s25, 1 }
   0x9   : > { %p6221_p4 = por %p176_p2, %p175_p1  ;;  %s160_s29 = ssub.s32 %s6142_s22, %s9667_s26 }
   0xa   : > { %p5056_p6 = scmp.ge.s32.totalorder %s6146_s23, 1  ;;  %p163_p7 = scmp.eq.s32.totalorder %s160_s29, 0 }
   0xb   : > { %p6228_p8 = por %p182_p5, %p181_p3  ;;  %p248_p9 = scmp.lt.s32.totalorder %s6146_s23, 3 }
   0xc   : > { %s6234_s6 = scalar_select %p163_p7, %s6134_s20, %s165_s27  }
   0xd   : > { %p249_p10 = pnand %p5056_p6, %p248_p9 }
   0xf   : > { %252 = sbr.rel (%p249_p10) target bundleno = 586 (0x24a), region = 40 }
  0x14   : > { %v6002_v0 = vld [vmem:[%s9171_s3 + $0x18] sm:$0xff]   ;;  %p302_p11 = scmp.lt.s32.totalorder %s6138_s21, 1  ;;  %v6003_v1 = vld [vmem:[%s9171_s3 + $0x10] sm:$0xff]   ;;  %v6247_v2 = vld [vmem:[%s9171_s3 + $0x8] sm:$0xff]   ;;  %vm388_vm0 = vsmask.f32 3328 }
  0x15   : > { %5940 = vmatprep.subr.bf16.mxu1 %v6002_v0  ;;  %5616 = vmatprep.subr.bf16.mxu0 %v6002_v0  ;;  %v6254_v3 = vld [vmem:[%s9171_s3 + $0x28] sm:$0xff]   ;;  %vm389_vm1 = vsmask.f32 7440  ;;  %vm840_vm2 = vcmask 261120   ;;  %v9244_v30 = vmov 0  ;;  %vm1367_vm4 = vcmask 1042432  }
  0x16   : > { %s303_s11 = scalar_select %p302_p11, %s6138_s21, 1  ;;  %5942 = vmatpush3.bf16.msra.mxu1 %v6002_v0  ;;  %5617 = vmatpush3.bf16.msra.mxu0 %v6002_v0  ;;  %vm6301_vm3 = vmor %vm388_vm0, %vm389_vm1  ;;  %vm1368_vm5 = vcmask 1046532  }
  0x17   : > { %5941 = vmatprep.subr.bf16.mxu1 %v6003_v1  ;;  %5618 = vmatprep.subr.bf16.mxu0 %v6003_v1  ;;  %v9245_v30 = vsel %vm6301_vm3, 4294967295, %v9244_v30  ;;  %vm6590_vm6 = vmor %vm1367_vm4, %vm1368_vm5  ;;  %s5453_s16 = sshll.u32 %s6138_s21, 12 }
  0x18   : > { %s6249_s14 = smul.u32 192, %s303_s11  ;;  %9246 = vst [vmem:[#allocation5_spill] sm:$0xff] %v9245_v30  ;;  %s9113_s29 = scalar_lea.hbm %s9173_s5, %s5453_s16 }
  0x1a   : > { %s6260_s25 = scalar_lea.vmem %s9168_s0, %s6249_s14  ;;  %5943 = vmatpush3.bf16.msra.mxu1 %v6003_v1  ;;  %5619 = vmatpush3.bf16.msra.mxu0 %v6003_v1  ;;  %s6800_s10 = scalar_lea.vmem %s9169_s1, %s6249_s14 }
  0x1b   : > { %v6263_v4 = vld [vmem:[%s6260_s25] sm:$0xf]  ;;  %v6266_v5 = vld [vmem:[%s6260_s25 + $0x4] sm:$0xf]  ;;  %v6269_v6 = vld [vmem:[%s6260_s25 + $0x8] sm:$0x1]  ;;  %5652 = vmatprep.subr.bf16.mxu1 %v6247_v2  ;;  %5688 = vmatprep.subr.bf16.mxu0 %v6254_v3  ;;  %s7342_s7 = scalar_lea.vmem %s9170_s2, %s6249_s14 }
  0x1c   : > { %v392_v7 = vshrl.u32 %v6263_v4, 16  ;;  %v395_v8 = vshll.u32 %v6263_v4, 16  ;;  %v401_v9 = vshll.u32 %v6266_v5, 16  ;;  %v405_v10 = vshrl.u32 %v6266_v5, 16  ;;  %v6276_v11 = vld [vmem:[%s6260_s25 + $0x60] sm:$0xf] }
  0x1d   : > { %v411_v12 = vshll.u32 %v6269_v6, 16  ;;  %v6283_v14 = vld [vmem:[%s6260_s25 + $0x64] sm:$0xf]  ;;  %v6286_v15 = vld [vmem:[%s6260_s25 + $0x68] sm:$0x1]  ;;  %v584_v21 = vshrl.u32 %v6276_v11, 16 }
  0x1e   : > { %v394_v16 = vrot.slane %v392_v7, 4  ;;  %v397_v17 = vrot.slane %v395_v8, 5  ;;  %v403_v18 = vrot.slane %v401_v9, 5  ;;  %v407_v19 = vrot.slane %v405_v10, 4  ;;  %v6294_v28 = vld [vmem:[%s6260_s25 + $0xc] sm:$0xf] }
  0x1f   : > { %v413_v20 = vrot.slane %v411_v12, 5  ;;  %v587_v22 = vshll.u32 %v6276_v11, 16  ;;  %v593_v23 = vshll.u32 %v6283_v14, 16  ;;  %v597_v26 = vshrl.u32 %v6283_v14, 16  ;;  %v6297_v29 = vld [vmem:[%s6260_s25 + $0x10] sm:$0xf] }
  0x20   : > { %v398_v24 = vor.u32 %v397_v17, %v394_v16  ;;  %v408_v25 = vor.u32 %v407_v19, %v403_v18  ;;  %v603_v27 = vshll.u32 %v6286_v15, 16  ;;  %v586_v31 = vrot.slane %v584_v21, 4  ;;  %v6308_v40 = vld [vmem:[%s6260_s25 + $0x14] sm:$0x1]  ;;  %v6319_v52 = vld [vmem:[%s6260_s25 + $0x6c] sm:$0xf] }
  0x21   : > { %v589_v32 = vrot.slane %v587_v22, 5  ;;  %v595_v33 = vrot.slane %v593_v23, 5  ;;  %v599_v37 = vrot.slane %v597_v26, 4  ;;  %v416_v41 = vshrl.u32 %v6294_v28, 16  ;;  %v6323_v57 = vld [vmem:[%s6260_s25 + $0x70] sm:$0xf] }
  0x22   : > { %v399_v35 = vrot.slane %v398_v24, 4  ;;  %v409_v36 = vrot.slane %v408_v25, 4  ;;  %v605_v38 = vrot.slane %v603_v27, 5  ;;  %v419_v42 = vshll.u32 %v6294_v28, 16  ;;  %v6331_v62 = vld [vmem:[%s6260_s25 + $0x74] sm:$0x1] }
  0x23   : > { %v590_v39 = vor.u32 %v589_v32, %v586_v31  ;;  %v425_v43 = vshll.u32 %v6297_v29, 16  ;;  %v600_v46 = vor.u32 %v599_v37, %v595_v33  ;;  %v429_v47 = vshrl.u32 %v6297_v29, 16  ;;  %9247 = vst [vmem:[#allocation6_spill] sm:$0xff] %v6331_v62  ;;  %v6337_v8 = vld [vmem:[%s6260_s25 + $0x18] sm:$0xf]  ;;  %s6148_s14 = smov [#allocation2]  }
  0x24   : > { %v404_v44 = vsel %vm6301_vm3, %v399_v35, %v403_v18  ;;  %v414_v45 = vsel %vm6301_vm3, %v409_v36, %v413_v20  ;;  %v418_v50 = vrot.slane %v416_v41, 4  ;;  %v421_v51 = vrot.slane %v419_v42, 5  ;;  %v6344_v21 = vld [vmem:[%s6260_s25 + $0x1c] sm:$0xf]  ;;  %v6350_v25 = vld [vmem:[%s6260_s25 + $0x20] sm:$0x1] }
  0x25   : > { %v5065_v48 = vcombine.low %v404_v44, %v414_v45  ;;  %v591_v49 = vrot.slane %v590_v39, 4  ;;  %v601_v53 = vrot.slane %v600_v46, 4  ;;  %v427_v54 = vrot.slane %v425_v43, 5  ;;  %v6357_v35 = vld [vmem:[%s6260_s25 + $0x78] sm:$0xf]  ;;  %v6007_v41 = vld [vmem:[%s9171_s3 + $0x20] sm:$0xff]  }
  0x26   : > { %v431_v55 = vrot.slane %v429_v47, 4  ;;  %v435_v56 = vshll.u32 %v6308_v40, 16  ;;  %v422_v59 = vor.u32 %v421_v51, %v418_v50  ;;  %v608_v7 = vshrl.u32 %v6319_v52, 16  ;;  %9248 = vst [vmem:[#allocation7_spill] sm:$0xff] %v6357_v35  ;;  %v6366_v46 = vld [vmem:[%s6260_s25 + $0x7c] sm:$0xf] }
  0x27   : > { %5620 = vmatprep.mubr.msk.bf16.mxu0 %vm840_vm2, %v5065_v48  ;;  %v596_v58 = vsel %vm6301_vm3, %v591_v49, %v595_v33  ;;  %v606_v63 = vsel %vm6301_vm3, %v601_v53, %v605_v38  ;;  %v611_v12 = vshll.u32 %v6319_v52, 16  ;;  %v617_v16 = vshll.u32 %v6323_v57, 16  ;;  %9249 = vst [vmem:[#allocation8_spill] sm:$0xff] %v6366_v46  ;;  %s6074_s8 = sshll.u32 %s6148_s14, 4  ;;  %s6075_s8 = int_to_ptr.vmem [resolvable:$false] %s6074_s8 }
  0x28   : > { %v432_v0 = vor.u32 %v431_v55, %v427_v54  ;;  %v437_v1 = vrot.slane %v435_v56, 5  ;;  %v5073_v9 = vcombine.low %v596_v58, %v606_v63  ;;  %v423_v10 = vrot.slane %v422_v59, 4  ;;  %v6373_v56 = vld [vmem:[%s6260_s25 + $0x80] sm:$0x1]  ;;  %s6076_s9 = scalar_lea.vmem %s6075_s8, 8192 }
  0x29   : > { %v610_v18 = vrot.slane %v608_v7, 4  ;;  %v621_v19 = vshrl.u32 %v6323_v57, 16  ;;  %v627_v20 = vshll.u32 %v6331_v62, 16  ;;  %v613_v23 = vrot.slane %v611_v12, 5  ;;  %9250 = vst [vmem:[#allocation9_spill] sm:$0xff] %v6373_v56 }
  0x2a   : > { %v433_v17 = vrot.slane %v432_v0, 4  ;;  %5636 = vmatprep.mubr.msk.bf16.mxu1 %vm840_vm2, %v5073_v9  ;;  %v428_v22 = vsel %vm6301_vm3, %v423_v10, %v427_v54  ;;  %v619_v24 = vrot.slane %v617_v16, 5  ;;  %v440_v26 = vshrl.u32 %v6337_v8, 16  ;;  %v6390_v16 = vld [vmem:[%s6260_s25 + $0x28] sm:$0xf] }
  0x2b   : > { %v623_v31 = vrot.slane %v621_v19, 4  ;;  %v629_v32 = vrot.slane %v627_v20, 5  ;;  %v443_v33 = vshll.u32 %v6337_v8, 16  ;;  %v614_v37 = vor.u32 %v613_v23, %v610_v18 }
  0x2c   : > { %v438_v27 = vsel %vm6301_vm3, %v433_v17, %v437_v1  ;;  %v442_v38 = vrot.slane %v440_v26, 4  ;;  %v449_v39 = vshll.u32 %v6344_v21, 16  ;;  %v453_v44 = vshrl.u32 %v6344_v21, 16  ;;  %v6379_v1 = vld [vmem:[%s6260_s25 + $0x24] sm:$0xf] }
  0x2d   : > { %v5066_v36 = vcombine.low %v428_v22, %v438_v27  ;;  %v624_v42 = vor.u32 %v623_v31, %v619_v24  ;;  %v445_v43 = vrot.slane %v443_v33, 5  ;;  %v459_v45 = vshll.u32 %v6350_v25, 16  ;;  %v6006_v22 = vld [vmem:[%s9171_s3] sm:$0xff]   ;;  %v6399_v27 = vld [vmem:[%s6260_s25 + $0x2c] sm:$0x1] }
  0x2e   : > { %v615_v47 = vrot.slane %v614_v37, 4  ;;  %v451_v48 = vrot.slane %v449_v39, 5  ;;  %v632_v49 = vshrl.u32 %v6357_v35, 16  ;;  %v635_v50 = vshll.u32 %v6357_v35, 16 }
  0x2f   : > { %5621 = vmatmul.mubr.msk.bf16.vlgmr.msra.gmra.mxu0 %vm840_vm2, %v5066_v36  ;;  %v625_v51 = vrot.slane %v624_v42, 4  ;;  %v446_v53 = vor.u32 %v445_v43, %v442_v38  ;;  %v455_v54 = vrot.slane %v453_v44, 4  ;;  %v461_v55 = vrot.slane %v459_v45, 5  ;;  %v6406_v38 = vld [vmem:[%s6260_s25 + $0x84] sm:$0xf] }
  0x30   : > { %5689 = vmatpush3.bf16.msra.mxu0 %v6254_v3  ;;  %v620_v58 = vsel %vm6301_vm3, %v615_v47, %v619_v24  ;;  %v634_v59 = vrot.slane %v632_v49, 4  ;;  %v637_v63 = vrot.slane %v635_v50, 5  ;;  %v641_v0 = vshll.u32 %v6366_v46, 16  ;;  %v6384_v3 = vld [vmem:[%s9171_s3 + $0x48] sm:$0xff]  }
  0x31   : > { %5690 = vmatprep.subr.bf16.mxu0 %v6007_v41  ;;  %v630_v7 = vsel %vm6301_vm3, %v625_v51, %v629_v32  ;;  %v447_v9 = vrot.slane %v446_v53, 4  ;;  %v456_v10 = vor.u32 %v455_v54, %v451_v48  ;;  %v645_v12 = vshrl.u32 %v6366_v46, 16  ;;  %v6414_v44 = vld [vmem:[%s6260_s25 + $0x88] sm:$0xf]  ;;  %v6425_v54 = vld [vmem:[%s6260_s25 + $0x8c] sm:$0x1] }
  0x32   : > { %v5074_v17 = vcombine.low %v620_v58, %v630_v7  ;;  %v638_v18 = vor.u32 %v637_v63, %v634_v59  ;;  %v643_v19 = vrot.slane %v641_v0, 5  ;;  %v651_v20 = vshll.u32 %v6373_v56, 16  ;;  %v6433_v7 = vld [vmem:[%s6260_s25 + $0x30] sm:$0xf] }
  0x33   : > { %v452_v23 = vsel %vm6301_vm3, %v447_v9, %v451_v48  ;;  %v457_v24 = vrot.slane %v456_v10, 4  ;;  %v647_v26 = vrot.slane %v645_v12, 4  ;;  %v464_v31 = vshrl.u32 %v6379_v1, 16 }
  0x34   : > { %5691 = vmatpush3.bf16.msra.mxu0 %v6007_v41  ;;  %5637 = vmatmul.mubr.msk.bf16.vlgmr.msra.gmra.mxu1 %vm840_vm2, %v5074_v17  ;;  %v639_v32 = vrot.slane %v638_v18, 4  ;;  %v653_v33 = vrot.slane %v651_v20, 5  ;;  %v467_v36 = vshll.u32 %v6379_v1, 16  ;;  %v473_v37 = vshll.u32 %v6390_v16, 16  ;;  %v6438_v18 = vld [vmem:[%s6260_s25 + $0x34] sm:$0xf] }
  0x35   : > { %5760 = vmatprep.subr.bf16.mxu0 %v6384_v3  ;;  %5653 = vmatpush3.bf16.msra.mxu1 %v6247_v2  ;;  %v462_v39 = vsel %vm6301_vm3, %v457_v24, %v461_v55  ;;  %v648_v42 = vor.u32 %v647_v26, %v643_v19  ;;  %v466_v41 = vrot.slane %v464_v31, 4  ;;  %v477_v43 = vshrl.u32 %v6390_v16, 16  ;;  %v6421_v2 = vld [vmem:[%s9171_s3 + $0x38] sm:$0xff]  }
  0x36   : > { %v5067_v45 = vcombine.low %v452_v23, %v462_v39  ;;  %v644_v47 = vsel %vm6301_vm3, %v639_v32, %v643_v19  ;;  %v469_v48 = vrot.slane %v467_v36, 5  ;;  %v475_v49 = vrot.slane %v473_v37, 5  ;;  %5654 = vmatprep.subr.bf16.mxu1 %v6006_v22  ;;  %v6441_v26 = vld [vmem:[%s6260_s25 + $0x38] sm:$0x1]  ;;  %v6447_v37 = vld [vmem:[%s6260_s25 + $0x90] sm:$0xf] }
  0x37   : > { %v649_v50 = vrot.slane %v648_v42, 4  ;;  %v479_v51 = vrot.slane %v477_v43, 4  ;;  %v483_v53 = vshll.u32 %v6399_v27, 16  ;;  %v656_v55 = vshrl.u32 %v6406_v38, 16  ;;  %v6455_v43 = vld [vmem:[%s6260_s25 + $0x94] sm:$0xf] }
  0x38   : > { %5624 = vmatprep.mubr.msk.bf16.mxu0 %vm840_vm2, %v5067_v45  ;;  %v470_v58 = vor.u32 %v469_v48, %v466_v41  ;;  %v659_v59 = vshll.u32 %v6406_v38, 16  ;;  %v665_v63 = vshll.u32 %v6414_v44, 16  ;;  %v669_v0 = vshrl.u32 %v6414_v44, 16 }
  0x39   : > { %v654_v9 = vsel %vm6301_vm3, %v649_v50, %v653_v33  ;;  %v480_v10 = vor.u32 %v479_v51, %v475_v49  ;;  %v485_v12 = vrot.slane %v483_v53, 5  ;;  %v658_v17 = vrot.slane %v656_v55, 4  ;;  %5655 = vmatpush3.bf16.msra.mxu1 %v6006_v22 }
  0x3a   : > { %v5075_v19 = vcombine.low %v644_v47, %v654_v9  ;;  %v471_v20 = vrot.slane %v470_v58, 4  ;;  %v661_v23 = vrot.slane %v659_v59, 5  ;;  %v667_v24 = vrot.slane %v665_v63, 5  ;;  %5724 = vmatprep.subr.bf16.mxu1 %v6421_v2  ;;  %v6460_v59 = vld [vmem:[%s6260_s25 + $0x98] sm:$0x1] }
  0x3b   : > { %v481_v31 = vrot.slane %v480_v10, 4  ;;  %v671_v32 = vrot.slane %v669_v0, 4  ;;  %v675_v33 = vshll.u32 %v6425_v54, 16  ;;  %v488_v36 = vshrl.u32 %v6433_v7, 16  ;;  %9251 = vst [vmem:[#allocation10_spill] sm:$0xff] %v6460_v59 }
  0x3c   : > { %5640 = vmatprep.mubr.msk.bf16.mxu1 %vm840_vm2, %v5075_v19  ;;  %v476_v22 = vsel %vm6301_vm3, %v471_v20, %v475_v49  ;;  %v662_v39 = vor.u32 %v661_v23, %v658_v17  ;;  %v491_v42 = vshll.u32 %v6433_v7, 16  ;;  %v497_v41 = vshll.u32 %v6438_v18, 16  ;;  %v6463_v49 = vld [vmem:[%s6260_s25 + $0x3c] sm:$0xf]  ;;  %v6469_v17 = vld [vmem:[%s6260_s25 + $0x40] sm:$0xf] }
  0x3d   : > { %v486_v45 = vsel %vm6301_vm3, %v481_v31, %v485_v12  ;;  %v672_v47 = vor.u32 %v671_v32, %v667_v24  ;;  %v677_v48 = vrot.slane %v675_v33, 5  ;;  %v490_v50 = vrot.slane %v488_v36, 4 }
  0x3e   : > { %v5068_v51 = vcombine.low %v476_v22, %v486_v45  ;;  %v663_v53 = vrot.slane %v662_v39, 4  ;;  %v493_v55 = vrot.slane %v491_v42, 5  ;;  %v499_v58 = vrot.slane %v497_v41, 5 }
  0x3f   : > { %v673_v63 = vrot.slane %v672_v47, 4  ;;  %v501_v0 = vshrl.u32 %v6438_v18, 16  ;;  %v507_v9 = vshll.u32 %v6441_v26, 16  ;;  %v680_v10 = vshrl.u32 %v6447_v37, 16 }
  0x40   : > { %5625 = vmatmul.mubr.msk.bf16.gmra.mxu0 %vm840_vm2, %v5068_v51  ;;  %v668_v12 = vsel %vm6301_vm3, %v663_v53, %v667_v24  ;;  %v494_v19 = vor.u32 %v493_v55, %v490_v50  ;;  %v683_v20 = vshll.u32 %v6447_v37, 16  ;;  %v689_v23 = vshll.u32 %v6455_v43, 16  ;;  %v6481_v50 = vld [vmem:[%s6260_s25 + $0x44] sm:$0x1] }
  0x41   : > { %v678_v31 = vsel %vm6301_vm3, %v673_v63, %v677_v48  ;;  %v503_v32 = vrot.slane %v501_v0, 4  ;;  %v509_v33 = vrot.slane %v507_v9, 5  ;;  %v682_v36 = vrot.slane %v680_v10, 4  ;;  %v6490_v0 = vld [vmem:[%s6260_s25 + $0x9c] sm:$0xf] }
  0x42   : > { %v5076_v22 = vcombine.low %v668_v12, %v678_v31  ;;  %v495_v39 = vrot.slane %v494_v19, 4  ;;  %v685_v42 = vrot.slane %v683_v20, 5  ;;  %v691_v41 = vrot.slane %v689_v23, 5  ;;  %9252 = vst [vmem:[#allocation11_spill] sm:$0xff] %v6490_v0 }
  0x43   : > { %v504_v45 = vor.u32 %v503_v32, %v499_v58  ;;  %v693_v47 = vshrl.u32 %v6455_v43, 16  ;;  %v699_v24 = vshll.u32 %v6460_v59, 16  ;;  %v512_v51 = vshrl.u32 %v6463_v49, 16 }
  0x44   : > { %5641 = vmatmul.mubr.msk.bf16.gmra.mxu1 %vm840_vm2, %v5076_v22  ;;  %v500_v48 = vsel %vm6301_vm3, %v495_v39, %v499_v58  ;;  %v686_v53 = vor.u32 %v685_v42, %v682_v36  ;;  %v515_v55 = vshll.u32 %v6463_v49, 16  ;;  %v521_v63 = vshll.u32 %v6469_v17, 16  ;;  %v6494_v22 = vld [vmem:[%s6260_s25 + $0xa0] sm:$0xf]  ;;  %v6500_v42 = vld [vmem:[%s6260_s25 + $0xa4] sm:$0x1] }
  0x45   : > { %v505_v9 = vrot.slane %v504_v45, 4  ;;  %v695_v10 = vrot.slane %v693_v47, 4  ;;  %v701_v12 = vrot.slane %v699_v24, 5  ;;  %v514_v19 = vrot.slane %v512_v51, 4  ;;  %9253 = vst [vmem:[#allocation12_spill] sm:$0xff] %v6494_v22  ;;  %9254 = vst [vmem:[#allocation13_spill] sm:$0xff] %v6500_v42 }
  0x46   : > { %v687_v20 = vrot.slane %v686_v53, 4  ;;  %v517_v23 = vrot.slane %v515_v55, 5  ;;  %v523_v31 = vrot.slane %v521_v63, 5  ;;  %v525_v32 = vshrl.u32 %v6469_v17, 16  ;;  %v6504_v47 = vld [vmem:[%s6260_s25 + $0x48] sm:$0xf] }
  0x47   : > { %v510_v58 = vsel %vm6301_vm3, %v505_v9, %v509_v33  ;;  %v696_v36 = vor.u32 %v695_v10, %v691_v41  ;;  %v531_v39 = vshll.u32 %v6481_v50, 16  ;;  %v704_v45 = vshrl.u32 %v6490_v0, 16 }
  0x48   : > { %v5069_v24 = vcombine.low %v500_v48, %v510_v58  ;;  %v692_v51 = vsel %vm6301_vm3, %v687_v20, %v691_v41  ;;  %v518_v53 = vor.u32 %v517_v23, %v514_v19  ;;  %v527_v55 = vrot.slane %v525_v32, 4  ;;  %v6516_v23 = vld [vmem:[%s6260_s25 + $0x4c] sm:$0xf] }
  0x49   : > { %v697_v63 = vrot.slane %v696_v36, 4  ;;  %v533_v34 = vrot.slane %v531_v39, 5  ;;  %v706_v61 = vrot.slane %v704_v45, 4  ;;  %v707_v33 = vshll.u32 %v6490_v0, 16 }
  0x4a   : > { %5628 = vmatprep.mubr.msk.bf16.mxu0 %vm840_vm2, %v5069_v24  ;;  %v519_v9 = vrot.slane %v518_v53, 4  ;;  %v528_v10 = vor.u32 %v527_v55, %v523_v31  ;;  %v713_v13 = vshll.u32 %v6494_v22, 16  ;;  %v717_v48 = vshrl.u32 %v6494_v22, 16  ;;  %v6522_v24 = vld [vmem:[%s6260_s25 + $0x50] sm:$0x1] }
  0x4b   : > { %v702_v41 = vsel %vm6301_vm3, %v697_v63, %v701_v12  ;;  %v709_v19 = vrot.slane %v707_v33, 5  ;;  %v723_v20 = vshll.u32 %v6500_v42, 16  ;;  %v536_v32 = vshrl.u32 %v6504_v47, 16  ;;  %v6525_v63 = vld [vmem:[%s6260_s25 + $0xa8] sm:$0xf] }
  0x4c   : > { %v5077_v58 = vcombine.low %v692_v51, %v702_v41  ;;  %v524_v36 = vsel %vm6301_vm3, %v519_v9, %v523_v31  ;;  %v529_v39 = vrot.slane %v528_v10, 4  ;;  %v715_v45 = vrot.slane %v713_v13, 5  ;;  %9255 = vst [vmem:[#allocation14_spill] sm:$0xff] %v6525_v63  ;;  %v6535_v41 = vld [vmem:[%s6260_s25 + $0xac] sm:$0xf] }
  0x4d   : > { %v710_v53 = vor.u32 %v709_v19, %v706_v61  ;;  %v719_v55 = vrot.slane %v717_v48, 4  ;;  %v725_v60 = vrot.slane %v723_v20, 5  ;;  %v538_v12 = vrot.slane %v536_v32, 4  ;;  %9256 = vst [vmem:[#allocation15_spill] sm:$0xff] %v6535_v41  ;;  %v6557_v42 = vld [vmem:[%s6260_s25 + $0x5c] sm:$0x1] }
  0x4e   : > { %5644 = vmatprep.mubr.msk.bf16.mxu1 %vm840_vm2, %v5077_v58  ;;  %v534_v51 = vsel %vm6301_vm3, %v529_v39, %v533_v34  ;;  %v539_v33 = vshll.u32 %v6504_v47, 16  ;;  %v545_v31 = vshll.u32 %v6516_v23, 16  ;;  %v549_v13 = vshrl.u32 %v6516_v23, 16  ;;  %v6538_v58 = vld [vmem:[%s6260_s25 + $0xb0] sm:$0x1] }
  0x4f   : > { %v5070_v9 = vcombine.low %v524_v36, %v534_v51  ;;  %v711_v10 = vrot.slane %v710_v53, 4  ;;  %v720_v61 = vor.u32 %v719_v55, %v715_v45  ;;  %v555_v48 = vshll.u32 %v6522_v24, 16  ;;  %9257 = vst [vmem:[#allocation16_spill] sm:$0xff] %v6538_v58 }
  0x50   : > { %v541_v19 = vrot.slane %v539_v33, 5  ;;  %v547_v20 = vrot.slane %v545_v31, 5  ;;  %v551_v32 = vrot.slane %v549_v13, 4  ;;  %v728_v34 = vshrl.u32 %v6525_v63, 16  ;;  %v6547_v31 = vld [vmem:[%s6260_s25 + $0x54] sm:$0xf] }
  0x51   : > { %5629 = vmatmul.mubr.msk.bf16.gmra.mxu0 %vm840_vm2, %v5070_v9  ;;  %v716_v36 = vsel %vm6301_vm3, %v711_v10, %v715_v45  ;;  %v721_v39 = vrot.slane %v720_v61, 4  ;;  %v557_v53 = vrot.slane %v555_v48, 5  ;;  %v731_v55 = vshll.u32 %v6525_v63, 16  ;;  %v6554_v61 = vld [vmem:[%s6260_s25 + $0x58] sm:$0xf] }
  0x52   : > { %v542_v51 = vor.u32 %v541_v19, %v538_v12  ;;  %v552_v56 = vor.u32 %v551_v32, %v547_v20  ;;  %v730_v35 = vrot.slane %v728_v34, 4  ;;  %v737_v33 = vshll.u32 %v6535_v41, 16 }
  0x53   : > { %v726_v13 = vsel %vm6301_vm3, %v721_v39, %v725_v60  ;;  %v733_v9 = vrot.slane %v731_v55, 5  ;;  %v741_v45 = vshrl.u32 %v6535_v41, 16  ;;  %v747_v10 = vshll.u32 %v6538_v58, 16 }
  0x54   : > { %v5078_v12 = vcombine.low %v716_v36, %v726_v13  ;;  %v543_v48 = vrot.slane %v542_v51, 4  ;;  %v553_v19 = vrot.slane %v552_v56, 4  ;;  %v739_v32 = vrot.slane %v737_v33, 5 }
  0x55   : > { %v734_v34 = vor.u32 %v733_v9, %v730_v35  ;;  %v743_v62 = vrot.slane %v741_v45, 4  ;;  %v749_v63 = vrot.slane %v747_v10, 5  ;;  %v560_v60 = vshrl.u32 %v6547_v31, 16  ;;  %v6568_v35 = vld [vmem:[%s6260_s25 + $0xb4] sm:$0xf] }
  0x56   : > { %5645 = vmatmul.mubr.msk.bf16.gmra.mxu1 %vm840_vm2, %v5078_v12  ;;  %v548_v39 = vsel %vm6301_vm3, %v543_v48, %v547_v20  ;;  %v558_v36 = vsel %vm6301_vm3, %v553_v19, %v557_v53  ;;  %v563_v56 = vshll.u32 %v6547_v31, 16  ;;  %v569_v55 = vshll.u32 %v6554_v61, 16  ;;  %9258 = vst [vmem:[#allocation17_spill] sm:$0xff] %v6568_v35  ;;  %v6571_v45 = vld [vmem:[%s6260_s25 + $0xb8] sm:$0xf] }
  0x57   : > { %v5071_v51 = vcombine.low %v548_v39, %v558_v36  ;;  %v735_v33 = vrot.slane %v734_v34, 4  ;;  %v744_v13 = vor.u32 %v743_v62, %v739_v32  ;;  %v562_v9 = vrot.slane %v560_v60, 4  ;;  %v6576_v48 = vld [vmem:[%s6260_s25 + $0xbc] sm:$0x1] }
  0x58   : > { %v565_v10 = vrot.slane %v563_v56, 5  ;;  %v571_v12 = vrot.slane %v569_v55, 5  ;;  %v573_v58 = vshrl.u32 %v6554_v61, 16  ;;  %v579_v20 = vshll.u32 %v6557_v42, 16 }
  0x59   : > { %5632 = vmatprep.mubr.msk.bf16.mxu0 %vm840_vm2, %v5071_v51  ;;  %v740_v53 = vsel %vm6301_vm3, %v735_v33, %v739_v32  ;;  %v745_v19 = vrot.slane %v744_v13, 4  ;;  %v752_v34 = vshrl.u32 %v6568_v35, 16  ;;  %v755_v62 = vshll.u32 %v6568_v35, 16 }
  0x5a   : > { %v566_v60 = vor.u32 %v565_v10, %v562_v9  ;;  %v575_v39 = vrot.slane %v573_v58, 4  ;;  %v581_v36 = vrot.slane %v579_v20, 5  ;;  %v761_v56 = vshll.u32 %v6571_v45, 16 }
  0x5b   : > { %v750_v55 = vsel %vm6301_vm3, %v745_v19, %v749_v63  ;;  %v754_v41 = vrot.slane %v752_v34, 4  ;;  %v757_v46 = vrot.slane %v755_v62, 5  ;;  %v765_v51 = vshrl.u32 %v6571_v45, 16 }
  0x5c   : > { %v5079_v0 = vcombine.low %v740_v53, %v750_v55  ;;  %v567_v22 = vrot.slane %v566_v60, 4  ;;  %v576_v32 = vor.u32 %v575_v39, %v571_v12  ;;  %v763_v33 = vrot.slane %v761_v56, 5 }
  0x5d   : > { %v758_v13 = vor.u32 %v757_v46, %v754_v41  ;;  %v767_v59 = vrot.slane %v765_v51, 4  ;;  %v771_v35 = vshll.u32 %v6576_v48, 16  ;;  %v9259_v58 = vmov 0 }
  0x5e   : > { %v9260_v58 = vsel %vm6590_vm6, 4294967295, %v9259_v58  ;;  %v5133_v63 = vrot.slane %v6263_v4, 9  ;;  %5648 = vmatprep.mubr.msk.bf16.mxu1 %vm840_vm2, %v5079_v0  ;;  %v572_v9 = vsel %vm6301_vm3, %v567_v22, %v571_v12  ;;  %v577_v10 = vrot.slane %v576_v32, 4 }
  0x5f   : > { %9261 = vst [vmem:[#allocation18_spill] sm:$0xff] %v9260_v58  ;;  %v1372_v20 = vrot.slane %v6266_v5, 5  ;;  %v5100_v46 = vcombine.low %v6294_v28, %v6297_v29  ;;  %v759_v41 = vrot.slane %v758_v13, 4  ;;  %v768_v53 = vor.u32 %v767_v59, %v763_v33 }
  0x60   : > { %v773_v19 = vrot.slane %v771_v35, 5  ;;  %v5134_v34 = vrot.slane %v6294_v28, 9  ;;  %v582_v62 = vsel %vm6301_vm3, %v577_v10, %v581_v36  ;;  %v9262_v22 = vrot.slane %v6297_v29, 5 }
  0x61   : > { %v1373_v0 = vsel %vm6590_vm6, %v5133_v63, %v1372_v20  ;;  %v1374_v60 = vrot.slane %v1372_v20, 4  ;;  %v5072_v39 = vcombine.low %v572_v9, %v582_v62  ;;  %v764_v56 = vsel %vm6301_vm3, %v759_v41, %v763_v33 }
  0x62   : > { %v1381_v12 = vrot.slane %v9262_v22, 4  ;;  %v769_v55 = vrot.slane %v768_v53, 4  ;;  %v9263_v59 = vmov %v9262_v22  ;;  %v9264_v35 = vrot.slane %v6269_v6, 5 }
  0x63   : > { %v1380_v28 = vsel %vm6590_vm6, %v5134_v34, %v9263_v59  ;;  %v9265_v51 = vrot.slane %v6308_v40, 5  ;;  %v5101_v13 = vcombine.low %v6337_v8, %v6344_v21  ;;  %v5135_v33 = vrot.slane %v6337_v8, 9  ;;  %5633 = vmatmul.mubr.msk.bf16.gmra.mxu0 %vm840_vm2, %v5072_v39 }
  0x64   : > { %v1376_v36 = vsel %vm6590_vm6, %v1374_v60, %v9264_v35  ;;  %v774_v29 = vsel %vm6301_vm3, %v769_v55, %v773_v19  ;;  %v1386_v9 = vrot.slane %v6344_v21, 5  ;;  %v1389_v40 = vrot.slane %v6350_v25, 5  ;;  %v6019_v35 = vld [vmem:[%s9171_s3 + $0x30] sm:$0xff]  }
  0x65   : > { %v1383_v32 = vsel %vm6590_vm6, %v1381_v12, %v9265_v51  ;;  %v5153_v63 = vcombine.low %v1373_v0, %v1376_v36  ;;  %v5080_v10 = vcombine.low %v764_v56, %v774_v29  ;;  %v1393_v8 = vrot.slane %v6390_v16, 5 }
  0x66   : > { %v5154_v6 = vcombine.low %v1380_v28, %v1383_v32  ;;  %v1387_v20 = vsel %vm6590_vm6, %v5135_v33, %v1386_v9  ;;  %v1388_v41 = vrot.slane %v1386_v9, 4  ;;  %v5136_v53 = vrot.slane %v6379_v1, 9 }
  0x67   : > { %5692 = vmatprep.mubr.msk.bf16.mxu0 %vm840_vm2, %v5153_v63  ;;  %5649 = vmatmul.mubr.msk.bf16.gmra.mxu1 %vm840_vm2, %v5080_v10  ;;  %v1400_v19 = vrot.slane %v6438_v18, 5  ;;  %v9266_v21 = vcombine.low %v6263_v4, %v6266_v5  ;;  %v1395_v34 = vrot.slane %v1393_v8, 4  ;;  %v1396_v62 = vrot.slane %v6399_v27, 5  ;;  %v6021_v4 = vld [vmem:[%s9171_s3 + $0x40] sm:$0xff]  }
  0x68   : > { %v1390_v25 = vsel %vm6590_vm6, %v1388_v41, %v1389_v40  ;;  %v5137_v60 = vrot.slane %v6433_v7, 9  ;;  %v1403_v12 = vrot.slane %v6441_v26, 5  ;;  %v1407_v39 = vrot.slane %v6469_v17, 5 }
  0x69   : > { %5656 = vmatprep.mubr.msk.bf16.mxu1 %vm840_vm2, %v9266_v21  ;;  %v5155_v0 = vcombine.low %v1387_v20, %v1390_v25  ;;  %v1402_v22 = vrot.slane %v1400_v19, 4  ;;  %v1394_v5 = vsel %vm6590_vm6, %v5136_v53, %v1393_v8  ;;  %v5138_v56 = vrot.slane %v6463_v49, 9 }
  0x6a   : > { %v1414_v55 = vrot.slane %v6516_v23, 5  ;;  %v1397_v27 = vsel %vm6590_vm6, %v1395_v34, %v1396_v62  ;;  %v1409_v59 = vrot.slane %v1407_v39, 4  ;;  %v1410_v26 = vrot.slane %v6481_v50, 5  ;;  %v6672_v50 = vld [vmem:[%s9171_s3 + $0x68] sm:$0xff]  }
  0x6b   : > { %5693 = vmatmul.mubr.msk.bf16.vlgmr.msra.gmra.mxu0 %vm840_vm2, %v5154_v6  ;;  %v5139_v28 = vrot.slane %v6504_v47, 9  ;;  %v1417_v51 = vrot.slane %v6522_v24, 5  ;;  %v1401_v32 = vsel %vm6590_vm6, %v5137_v60, %v1400_v19  ;;  %v1404_v33 = vsel %vm6590_vm6, %v1402_v22, %v1403_v12  ;;  %v9268_v22 = vld [vmem:[#allocation10_spill] sm:$0xff] }
  0x6c   : > { %5761 = vmatpush3.bf16.msra.mxu0 %v6384_v3  ;;  %5696 = vmatprep.mubr.msk.bf16.mxu0 %vm840_vm2, %v5155_v0  ;;  %v1416_v36 = vrot.slane %v1414_v55, 4  ;;  %v5156_v3 = vcombine.low %v1394_v5, %v1397_v27  ;;  %v1408_v24 = vsel %vm6590_vm6, %v5138_v56, %v1407_v39  ;;  %v1411_v29 = vsel %vm6590_vm6, %v1409_v59, %v1410_v26  ;;  %v9269_v39 = vld [vmem:[#allocation12_spill] sm:$0xff] }
  0x6d   : > { %5762 = vmatprep.subr.bf16.mxu0 %v6021_v4  ;;  %v5140_v63 = vrot.slane %v6547_v31, 9  ;;  %v1421_v6 = vrot.slane %v6554_v61, 5  ;;  %v5157_v9 = vcombine.low %v1401_v32, %v1404_v33  ;;  %v1415_v10 = vsel %vm6590_vm6, %v5139_v28, %v1414_v55  ;;  %v9271_v55 = vld [vmem:[#allocation8_spill] sm:$0xff]  ;;  %v9273_v33 = vld [vmem:[#allocation15_spill] sm:$0xff] }
  0x6e   : > { %v1431_v40 = vrot.slane %v6286_v15, 5  ;;  %v5102_v20 = vcombine.low %v6379_v1, %v6390_v16  ;;  %v5103_v41 = vcombine.low %v6433_v7, %v6438_v18  ;;  %v1428_v8 = vrot.slane %v6283_v14, 5 }
  0x6f   : > { %5657 = vmatmul.mubr.msk.bf16.vlgmr.msra.gmra.mxu1 %vm840_vm2, %v5100_v46  ;;  %v1418_v46 = vsel %vm6590_vm6, %v1416_v36, %v1417_v51  ;;  %v5158_v53 = vcombine.low %v1408_v24, %v1411_v29  ;;  %v5105_v19 = vcombine.low %v6504_v47, %v6516_v23  ;;  %v1424_v21 = vrot.slane %v6557_v42, 5  ;;  %v9272_v51 = vld [vmem:[#allocation13_spill] sm:$0xff] }
  0x70   : > { %5725 = vmatpush3.bf16.msra.mxu1 %v6421_v2  ;;  %5660 = vmatprep.mubr.msk.bf16.mxu1 %vm840_vm2, %v5101_v13  ;;  %v5141_v2 = vrot.slane %v6276_v11, 9  ;;  %v6691_v13 = vld [vmem:[%s9171_s3 + $0x58] sm:$0xff]   ;;  %v5104_v11 = vcombine.low %v6463_v49, %v6469_v17  ;;  %v5159_v15 = vcombine.low %v1415_v10, %v1418_v46  ;;  %v6708_v1 = vsel %vm6590_vm6, %v5140_v63, %v1421_v6 }
  0x71   : > { %5726 = vmatprep.subr.bf16.mxu1 %v6019_v35  ;;  %5763 = vmatpush3.bf16.msra.mxu0 %v6021_v4  ;;  %9267 = vst [vmem:[#allocation19_spill] sm:$0xff] %v6691_v13  ;;  %v1423_v16 = vrot.slane %v1421_v6, 4  ;;  %v5144_v18 = vrot.slane %v6406_v38, 9  ;;  %v1449_v49 = vrot.slane %v6414_v44, 5  ;;  %v1452_v17 = vrot.slane %v6425_v54, 5  ;;  %v9270_v4 = vld [vmem:[#allocation11_spill] sm:$0xff] }
  0x72   : > { %5832 = vmatprep.subr.bf16.mxu0 %v6672_v50  ;;  %v6715_v7 = vsel %vm6590_vm6, %v5141_v2, %v1428_v8  ;;  %v1430_v42 = vrot.slane %v1428_v8, 4  ;;  %v5142_v47 = vrot.slane %v6319_v52, 9  ;;  %v1435_v23 = vrot.slane %v6323_v57, 5 }
  0x73   : > { %5697 = vmatmul.mubr.msk.bf16.gmra.mxu0 %vm840_vm2, %v5156_v3  ;;  %v6728_v34 = vsel %vm6590_vm6, %v5144_v18, %v1449_v49  ;;  %v1451_v62 = vrot.slane %v1449_v49, 4  ;;  %v5145_v0 = vrot.slane %v6447_v37, 9  ;;  %v1456_v54 = vrot.slane %v6455_v43, 5  ;;  %v9274_v3 = vld [vmem:[#allocation14_spill] sm:$0xff] }
  0x74   : > { %5727 = vmatpush3.bf16.msra.mxu1 %v6019_v35  ;;  %5700 = vmatprep.mubr.msk.bf16.mxu0 %vm840_vm2, %v5157_v9  ;;  %v1425_v60 = vsel %vm6590_vm6, %v1423_v16, %v1424_v21  ;;  %v1459_v12 = vrot.slane %v9268_v22, 5  ;;  %v5146_v56 = vrot.slane %v9270_v4, 9  ;;  %v1442_v27 = vrot.slane %v9271_v55, 5  ;;  %v9275_v9 = vld [vmem:[#allocation16_spill] sm:$0xff] }
  0x75   : > { %5796 = vmatprep.subr.bf16.mxu1 %v6691_v13  ;;  %v6742_v59 = vsel %vm6590_vm6, %v1451_v62, %v1452_v17  ;;  %v6746_v26 = vsel %vm6590_vm6, %v5145_v0, %v1456_v54  ;;  %v1458_v28 = vrot.slane %v1456_v54, 4  ;;  %v1463_v36 = vrot.slane %v9269_v39, 5  ;;  %v9277_v17 = vld [vmem:[#allocation6_spill] sm:$0xff] }
  0x76   : > { %v5164_v35 = vcombine.low %v6728_v34, %v6742_v59  ;;  %v1466_v32 = vrot.slane %v9272_v51, 5  ;;  %v5147_v63 = vrot.slane %v9274_v3, 9  ;;  %v1470_v6 = vrot.slane %v9273_v33, 5 }
  0x77   : > { %5661 = vmatmul.mubr.msk.bf16.gmra.mxu1 %vm840_vm2, %v5102_v20  ;;  %v6756_v29 = vsel %vm6590_vm6, %v1458_v28, %v1459_v12  ;;  %v1473_v10 = vrot.slane %v9275_v9, 5  ;;  %v6766_v2 = vsel %vm6590_vm6, %v5146_v56, %v1463_v36  ;;  %v1465_v20 = vrot.slane %v1463_v36, 4  ;;  %v9278_v12 = vld [vmem:[#allocation7_spill] sm:$0xff]  ;;  %v6069_v9 = vld [vmem:[%s6260_s25 + $0x64] sm:$0xf] }
  0x78   : > { %5664 = vmatprep.mubr.msk.bf16.mxu1 %vm840_vm2, %v5103_v41  ;;  %v9276_v41 = vld [vmem:[#allocation17_spill] sm:$0xff]  ;;  %v6773_v21 = vsel %vm6590_vm6, %v5147_v63, %v1470_v6  ;;  %v1472_v16 = vrot.slane %v1470_v6, 4  ;;  %v1477_v18 = vrot.slane %v6571_v45, 5  ;;  %v1432_v49 = vsel %vm6590_vm6, %v1430_v42, %v1431_v40 }
  0x79   : > { %v1438_v62 = vrot.slane %v9277_v17, 5  ;;  %v6782_v0 = vsel %vm6590_vm6, %v1465_v20, %v1466_v32  ;;  %v5143_v56 = vrot.slane %v9278_v12, 9  ;;  %v5161_v36 = vcombine.low %v6715_v7, %v1432_v49  ;;  %v9279_v32 = vld [vmem:[#allocation9_spill] sm:$0xff] }
  0x7a   : > { %v6790_v22 = vsel %vm6590_vm6, %v1472_v16, %v1473_v10  ;;  %v1479_v42 = vrot.slane %v1477_v18, 4  ;;  %v1444_v51 = vrot.slane %v1442_v27, 4  ;;  %v1445_v63 = vrot.slane %v9279_v32, 5  ;;  %v6068_v7 = vld [vmem:[%s6260_s25 + $0x60] sm:$0xf]  ;;  %s298_s25 = sand.u32 1, %s6130_s19  }
  0x7b   : > { %5701 = vmatmul.mubr.msk.bf16.gmra.mxu0 %vm840_vm2, %v5158_v53  ;;  %v5148_v53 = vrot.slane %v9276_v41, 9  ;;  %v5107_v10 = vcombine.low %v6068_v7, %v6069_v9  ;;  %v1436_v20 = vsel %vm6590_vm6, %v5142_v47, %v1435_v23  ;;  %v6835_v49 = vld [vmem:[%s6800_s10 + $0x4] sm:$0xf]  ;;  %v6839_v47 = vld [vmem:[%s6800_s10 + $0x8] sm:$0x1]  ;;  %v5108_v32 = vcombine.low %v6319_v52, %v6323_v57  ;;  %s5057_s13 = sshll.u32 %s298_s25, 8 }
  0x7c   : > { %5704 = vmatprep.mubr.msk.bf16.mxu0 %vm840_vm2, %v5159_v15  ;;  %v1480_v15 = vrot.slane %v6576_v48, 5  ;;  %v5160_v48 = vcombine.low %v6708_v1, %v1425_v60  ;;  %v6816_v1 = vld [vmem:[%s6800_s10] sm:$0xf]  ;;  %v5106_v60 = vcombine.low %v6547_v31, %v6554_v61  ;;  %v1446_v31 = vsel %vm6590_vm6, %v1444_v51, %v1445_v63  ;;  %9280 = vst [vmem:[#allocation10_spill] sm:$0xff] %v6839_v47  ;;  %s8942_s15 = scalar_lea.vmem [#allocation2], %s5057_s13  ;;  %s9123_s21 = scalar_lea.sflag [#allocation3], %s298_s25 }
  0x7d   : > { %v6794_v40 = vsel %vm6590_vm6, %v5148_v53, %v1477_v18  ;;  %v1443_v53 = vsel %vm6590_vm6, %v5143_v56, %v1442_v27  ;;  %v2175_v61 = vshrl.u32 %v6816_v1, 16  ;;  %v2178_v18 = vshll.u32 %v6816_v1, 16  ;;  %s4928_s17 = sshll.u32 %s8942_s15, 4  ;;  %s9115_s17 = int_to_ptr.vmem [resolvable:$true] %s4928_s17 }
  0x7e   : > { %v6811_v6 = vsel %vm6590_vm6, %v1479_v42, %v1480_v15  ;;  %v5163_v27 = vcombine.low %v1443_v53, %v1446_v31  ;;  %v2188_v15 = vshrl.u32 %v6835_v49, 16  ;;  %v2194_v56 = vshll.u32 %v6839_v47, 16  ;;  %v6873_v53 = vld [vmem:[%s6800_s10 + $0x24] sm:$0xf]  ;;  %v6876_v31 = vld [vmem:[%s6800_s10 + $0x28] sm:$0xf]  ;;  %p6077_p1 = scmp.lt.s32.totalorder %s9115_s17, %s6075_s8 }
  0x7f   : > { %5665 = vmatmul.mubr.msk.bf16.gmra.mxu1 %vm840_vm2, %v5104_v11  ;;  %v1437_v11 = vrot.slane %v1435_v23, 4  ;;  %v6842_v23 = vld [vmem:[%s6800_s10 + $0xc] sm:$0xf]  ;;  %v2177_v42 = vrot.slane %v2175_v61, 4  ;;  %v5109_v9 = vcombine.low %v9278_v12, %v9271_v55  ;;  %9282 = vst [vmem:[#allocation11_spill] sm:$0xff] %v6873_v53  ;;  %v2260_v8 = vshrl.u32 %v6876_v31, 16 }
  0x80   : > { %5668 = vmatprep.mubr.msk.bf16.mxu1 %vm840_vm2, %v5105_v19  ;;  %v2202_v51 = vshll.u32 %v6842_v23, 16  ;;  %v6878_v61 = vrot.slane %v2194_v56, 5  ;;  %v6882_v12 = vld [vmem:[%s6800_s10 + $0x30] sm:$0xf]  ;;  %v2256_v19 = vshll.u32 %v6876_v31, 16  ;;  %v9285_v13 = vcombine.low %v6746_v26, %v6756_v29 }
  0x81   : > { %v1439_v16 = vsel %vm6590_vm6, %v1437_v11, %v1438_v62  ;;  %v6846_v62 = vld [vmem:[%s6800_s10 + $0x10] sm:$0xf]  ;;  %v2184_v11 = vshll.u32 %v6835_v49, 16  ;;  %9283 = vst [vmem:[#allocation8_spill] sm:$0xff] %v6882_v12  ;;  %v2271_v24 = vshrl.u32 %v6882_v12, 16  ;;  %v2262_v59 = vrot.slane %v2260_v8, 4 }
  0x82   : > { %v5162_v17 = vcombine.low %v1436_v20, %v1439_v16  ;;  %v2212_v63 = vshrl.u32 %v6846_v62, 16  ;;  %v2208_v7 = vshll.u32 %v6846_v62, 16  ;;  %v6867_v20 = vld [vmem:[%s6800_s10 + $0x1c] sm:$0xf]  ;;  %v2190_v16 = vrot.slane %v2188_v15, 4 }
  0x83   : > { %5705 = vmatmul.mubr.msk.bf16.gmra.mxu0 %vm840_vm2, %v5160_v48  ;;  %v2180_v48 = vrot.slane %v2178_v18, 5  ;;  %v6870_v57 = vrot.slane %v2184_v11, 5  ;;  %v6890_v11 = vld [vmem:[%s6800_s10 + $0x34] sm:$0xf]  ;;  %v2236_v56 = vshrl.u32 %v6867_v20, 16  ;;  %v6923_v34 = vrot.slane %v2256_v19, 5 }
  0x84   : > { %5708 = vmatprep.mubr.msk.bf16.mxu0 %vm840_vm2, %v5161_v36  ;;  %v2199_v36 = vshrl.u32 %v6842_v23, 16  ;;  %9284 = vst [vmem:[#allocation13_spill] sm:$0xff] %v6890_v11  ;;  %v2284_v5 = vshrl.u32 %v6890_v11, 16  ;;  %v2280_v28 = vshll.u32 %v6890_v11, 16  ;;  %v6933_v19 = vld [vmem:[%s6800_s10 + $0x38] sm:$0x1] }
  0x85   : > { %v2181_v52 = vor.u32 %v2180_v48, %v2177_v42  ;;  %v2214_v42 = vrot.slane %v2212_v63, 4  ;;  %v2191_v63 = vor.u32 %v2190_v16, %v6870_v57  ;;  %v6912_v16 = vld [vmem:[%s6800_s10 + $0x20] sm:$0x1]  ;;  %v2238_v58 = vrot.slane %v2236_v56, 4  ;;  %9288 = vst [vmem:[#allocation14_spill] sm:$0xff] %v6933_v19 }
  0x86   : > { %v2201_v18 = vrot.slane %v2199_v36, 4  ;;  %v2232_v36 = vshll.u32 %v6867_v20, 16  ;;  %v2286_v56 = vrot.slane %v2284_v5, 4  ;;  %v5191_v5 = vcombine.low %v6816_v1, %v6835_v49 }
  0x87   : > { %5669 = vmatmul.mubr.msk.bf16.gmra.mxu1 %vm840_vm2, %v5106_v60  ;;  %v6857_v60 = vld [vmem:[%s6800_s10 + $0x14] sm:$0x1] }
  0x88   : > { %5672 = vmatprep.mubr.msk.bf16.mxu1 %vm840_vm2, %v5107_v10  ;;  %9281 = vst [vmem:[#allocation12_spill] sm:$0xff] %v6857_v60  ;;  %v6864_v10 = vld [vmem:[%s6800_s10 + $0x18] sm:$0xf]  ;;  %v2218_v55 = vshll.u32 %v6857_v60, 16  ;;  %v6914_v46 = vrot.slane %v2232_v36, 5  ;;  %v9287_v36 = vcombine.low %v6406_v38, %v6414_v44 }
  0x89   : > { %v2223_v48 = vshrl.u32 %v6864_v10, 16  ;;  %v2226_v15 = vshll.u32 %v6864_v10, 16 }
  0x8a   : > { %v2239_v38 = vor.u32 %v2238_v58, %v6914_v46 }
  0x8b   : > { %5709 = vmatmul.mubr.msk.bf16.gmra.mxu0 %vm840_vm2, %v5162_v17  ;;  %v2204_v17 = vrot.slane %v2202_v51, 5  ;;  %v2247_v51 = vshrl.u32 %v6873_v53, 16  ;;  %v2228_v14 = vrot.slane %v2226_v15, 5  ;;  %v6925_v15 = vrot.slane %v2280_v28, 5 }
  0x8c   : > { %5712 = vmatprep.mubr.msk.bf16.mxu0 %vm840_vm2, %v5163_v27  ;;  %v6885_v27 = vrot.slane %v2208_v7, 5  ;;  %v6897_v7 = vrot.slane %v2181_v52, 4  ;;  %v2225_v52 = vrot.slane %v2223_v48, 4 }
  0x8d   : > { %v2205_v54 = vor.u32 %v2204_v17, %v2201_v18  ;;  %v2249_v60 = vrot.slane %v2247_v51, 4  ;;  %v2192_v18 = vrot.slane %v2191_v63, 4  ;;  %v2220_v17 = vrot.slane %v2218_v55, 5 }
  0x8e   : > { %v2215_v25 = vor.u32 %v2214_v42, %v6885_v27  ;;  %v6921_v42 = vld [vmem:[%s6800_s10 + $0x2c] sm:$0x1]  ;;  %v2229_v29 = vor.u32 %v2228_v14, %v2225_v52  ;;  %v2242_v55 = vshll.u32 %v6912_v16, 16  ;;  %v2187_v14 = vsel %vm6301_vm3, %v6897_v7, %v6870_v57  ;;  %v6961_v57 = vld [vmem:[%s6800_s10 + $0x40] sm:$0xf] }
  0x8f   : > { %5673 = vmatmul.mubr.msk.bf16.gmra.mxu1 %vm840_vm2, %v5108_v32  ;;  %v2250_v32 = vshll.u32 %v6873_v53, 16  ;;  %9286 = vst [vmem:[#allocation15_spill] sm:$0xff] %v6921_v42  ;;  %v2206_v26 = vrot.slane %v2205_v54, 4  ;;  %v2266_v8 = vshll.u32 %v6921_v42, 16  ;;  %v6953_v54 = vld [vmem:[%s6800_s10 + $0x3c] sm:$0xf]  ;;  %v2197_v58 = vsel %vm6301_vm3, %v2192_v18, %v6878_v61 }
  0x90   : > { %5676 = vmatprep.mubr.msk.bf16.mxu1 %vm840_vm2, %v5109_v9  ;;  %v2274_v9 = vshll.u32 %v6882_v12, 16  ;;  %9290 = vst [vmem:[#allocation16_spill] sm:$0xff] %v6953_v54  ;;  %9291 = vst [vmem:[#allocation17_spill] sm:$0xff] %v6961_v57  ;;  %v2230_v7 = vrot.slane %v2229_v29, 4  ;;  %v2244_v63 = vrot.slane %v2242_v55, 5  ;;  %v9292_v61 = vcombine.low %v6766_v2, %v6782_v0 }
  0x91   : > { %v2252_v47 = vrot.slane %v2250_v32, 5  ;;  %v2211_v51 = vsel %vm6301_vm3, %v2206_v26, %v6885_v27  ;;  %v2268_v18 = vrot.slane %v2266_v8, 5  ;;  %v2304_v2 = vshll.u32 %v6961_v57, 16 }
  0x92   : > { %v2276_v48 = vrot.slane %v2274_v9, 5  ;;  %v2240_v9 = vrot.slane %v2239_v38, 4  ;;  %v5229_v0 = vcombine.low %v2187_v14, %v2197_v58  ;;  %v2235_v29 = vsel %vm6301_vm3, %v2230_v7, %v6914_v46  ;;  %v6997_v38 = vld [vmem:[%s6800_s10 + $0x48] sm:$0xf]  ;;  %v7010_v14 = vld [vmem:[%s6800_s10 + $0x4c] sm:$0xf] }
  0x93   : > { %5713 = vmatmul.mubr.msk.bf16.gmra.mxu0 %vm840_vm2, %v5164_v35  ;;  %v2273_v35 = vrot.slane %v2271_v24, 4  ;;  %v9289_v24 = vcombine.low %v6447_v37, %v6455_v43  ;;  %v2253_v44 = vor.u32 %v2252_v47, %v2249_v60  ;;  %v2263_v43 = vor.u32 %v2262_v59, %v6923_v34  ;;  %9296 = vst [vmem:[#allocation7_spill] sm:$0xff] %v6997_v38 }
  0x94   : > { %5716 = vmatprep.mubr.msk.bf16.mxu0 %vm840_vm2, %v9285_v13  ;;  %v2216_v13 = vrot.slane %v2215_v25, 4  ;;  %v2287_v47 = vor.u32 %v2286_v56, %v6925_v15  ;;  %v2290_v60 = vshll.u32 %v6933_v19, 16  ;;  %v2295_v59 = vshrl.u32 %v6953_v54, 16  ;;  %v6980_v56 = vld [vmem:[%s6800_s10 + $0x44] sm:$0x1]  ;;  %9298 = vst [vmem:[#allocation9_spill] sm:$0xff] %v7010_v14 }
  0x95   : > { %v2277_v28 = vor.u32 %v2276_v48, %v2273_v35  ;;  %v2254_v52 = vrot.slane %v2253_v44, 4  ;;  %v9293_v35 = vcombine.low %v6773_v21, %v6790_v22  ;;  %v2264_v27 = vrot.slane %v2263_v43, 4  ;;  %9294 = vst [vmem:[#allocation6_spill] sm:$0xff] %v6980_v56  ;;  %v7013_v43 = vld [vmem:[%s6800_s10 + $0x54] sm:$0xf] }
  0x96   : > { %v2221_v32 = vsel %vm6301_vm3, %v2216_v13, %v2220_v17  ;;  %v2298_v17 = vshll.u32 %v6953_v54, 16  ;;  %v2308_v48 = vshrl.u32 %v6961_v57, 16  ;;  %v2288_v26 = vrot.slane %v2287_v47, 4  ;;  %9299 = vst [vmem:[#allocation20_spill] sm:$0xff] %v7013_v43 }
  0x97   : > { %5677 = vmatmul.mubr.msk.bf16.gmra.mxu1 %vm840_vm2, %v9287_v36  ;;  %v2278_v36 = vrot.slane %v2277_v28, 4  ;;  %v2292_v13 = vrot.slane %v2290_v60, 5  ;;  %v9295_v21 = vcombine.low %v9270_v4, %v9269_v39  ;;  %v6987_v22 = vcombine.low %v2211_v51, %v2221_v32  ;;  %v7027_v32 = vld [vmem:[%s6800_s10 + $0x58] sm:$0xf] }
  0x98   : > { %5680 = vmatprep.mubr.msk.bf16.mxu1 %vm840_vm2, %v9289_v24  ;;  %v9297_v44 = vcombine.low %v9274_v3, %v9273_v33  ;;  %v2245_v39 = vsel %vm6301_vm3, %v2240_v9, %v2244_v63  ;;  %v2259_v4 = vsel %vm6301_vm3, %v2254_v52, %v6923_v34  ;;  %v2297_v46 = vrot.slane %v2295_v59, 4  ;;  %v7098_v59 = vld [vmem:[%s6800_s10 + $0x78] sm:$0xf] }
  0x99   : > { %v2314_v8 = vshll.u32 %v6980_v56, 16  ;;  %v2269_v33 = vsel %vm6301_vm3, %v2264_v27, %v2268_v18  ;;  %v2300_v3 = vrot.slane %v2298_v17, 5  ;;  %v7017_v58 = vrot.slane %v2304_v2, 5  ;;  %v7052_v2 = vld [vmem:[%s6800_s10 + $0x64] sm:$0xf] }
  0x9a   : > { %v2310_v28 = vrot.slane %v2308_v48, 4  ;;  %v2283_v47 = vsel %vm6301_vm3, %v2278_v36, %v6925_v15  ;;  %v2293_v34 = vsel %vm6301_vm3, %v2288_v26, %v2292_v13  ;;  %v2319_v60 = vshrl.u32 %v6997_v38, 16  ;;  %v7049_v48 = vld [vmem:[%s6800_s10 + $0x60] sm:$0xf]  ;;  %v7058_v13 = vld [vmem:[%s6800_s10 + $0x50] sm:$0x1] }
  0x9b   : > { %5717 = vmatmul.mubr.msk.bf16.gmra.mxu0 %vm840_vm2, %v9292_v61  ;;  %v2322_v51 = vshll.u32 %v6997_v38, 16  ;;  %v2332_v7 = vshrl.u32 %v7010_v14, 16  ;;  %v2328_v63 = vshll.u32 %v7010_v14, 16  ;;  %v2343_v61 = vshrl.u32 %v7013_v43, 16  ;;  %9301 = vst [vmem:[#allocation21_spill] sm:$0xff] %v7058_v13 }
  0x9c   : > { %5720 = vmatprep.mubr.msk.bf16.mxu0 %vm840_vm2, %v9293_v35  ;;  %v2346_v15 = vshll.u32 %v7013_v43, 16  ;;  %v9300_v9 = vcombine.low %v6794_v40, %v6811_v6  ;;  %v5231_v52 = vcombine.low %v2235_v29, %v2245_v39  ;;  %v7037_v18 = vcombine.low %v2259_v4, %v2269_v33  ;;  %v7061_v29 = vld [vmem:[%s6800_s10 + $0x6c] sm:$0xf]  ;;  %v7070_v33 = vld [vmem:[%s6800_s10 + $0x70] sm:$0xf] }
  0x9d   : > { %v7041_v35 = vrot.slane %v2314_v8, 5  ;;  %v2301_v27 = vor.u32 %v2300_v3, %v2297_v46  ;;  %v2356_v40 = vshrl.u32 %v7027_v32, 16  ;;  %v2352_v6 = vshll.u32 %v7027_v32, 16  ;;  %v7077_v3 = vld [vmem:[%s6800_s10 + $0x5c] sm:$0x1] }
  0x9e   : > { %v7054_v36 = vcombine.low %v2283_v47, %v2293_v34  ;;  %v2311_v26 = vor.u32 %v2310_v28, %v7017_v58  ;;  %v7067_v39 = vrot.slane %v2328_v63, 5  ;;  %v2334_v4 = vrot.slane %v2332_v7, 4  ;;  %9303 = vst [vmem:[#allocation22_spill] sm:$0xff] %v7077_v3 }
  0x9f   : > { %5681 = vmatmul.mubr.msk.bf16.gmra.mxu1 %vm840_vm2, %v9295_v21  ;;  %v2324_v21 = vrot.slane %v2322_v51, 5  ;;  %v2345_v46 = vrot.slane %v2343_v61, 4  ;;  %v2348_v8 = vrot.slane %v2346_v15, 5  ;;  %v2367_v28 = vshrl.u32 %v7049_v48, 16 }
  0xa0   : > { %5684 = vmatprep.mubr.msk.bf16.mxu1 %vm840_vm2, %v9297_v44  ;;  %v9302_v44 = vcombine.low %v9276_v41, %v6571_v45  ;;  %v2370_v45 = vshll.u32 %v7049_v48, 16  ;;  %v2380_v41 = vshrl.u32 %v7052_v2, 16  ;;  %v2376_v47 = vshll.u32 %v7052_v2, 16 }
  0xa1   : > { %v7083_v34 = vrot.slane %v2352_v6, 5  ;;  %v2391_v51 = vshrl.u32 %v7061_v29, 16  ;;  %v2394_v7 = vshll.u32 %v7061_v29, 16  ;;  %v2338_v63 = vshll.u32 %v7058_v13, 16 }
  0xa2   : > { %v2404_v61 = vshrl.u32 %v7070_v33, 16  ;;  %v2400_v15 = vshll.u32 %v7070_v33, 16  ;;  %v2335_v6 = vor.u32 %v2334_v4, %v7067_v39  ;;  %v2362_v17 = vshll.u32 %v7077_v3, 16  ;;  %v6039_v4 = vld [vmem:[%s9171_s3 + $0x50] sm:$0xff]  }
  0xa3   : > { %5721 = vmatmul.mubr.msk.bf16.gmra.mxu0 %vm840_vm2, %v9300_v9  ;;  %v6041_v9 = vld [vmem:[%s9171_s3 + $0x60] sm:$0xff]   ;;  %v2369_v24 = vrot.slane %v2367_v28, 4  ;;  %v2372_v55 = vrot.slane %v2370_v45, 5  ;;  %v7105_v37 = vrot.slane %v2376_v47, 5  ;;  %v2382_v25 = vrot.slane %v2380_v41, 4 }
  0xa4   : > { %5764 = vmatprep.mubr.msk.bf16.mxu0 %vm840_vm2, %v5229_v0  ;;  %v2321_v0 = vrot.slane %v2319_v60, 4  ;;  %v2358_v60 = vrot.slane %v2356_v40, 4  ;;  %v2349_v40 = vor.u32 %v2348_v8, %v2345_v46  ;;  %v2396_v46 = vrot.slane %v2394_v7, 5  ;;  %v7114_v8 = vld [vmem:[%s6800_s10 + $0x7c] sm:$0xf] }
  0xa5   : > { %v7116_v28 = vrot.slane %v2400_v15, 5  ;;  %v2406_v45 = vrot.slane %v2404_v61, 4  ;;  %v9306_v41 = vcombine.low %v6842_v23, %v6846_v62  ;;  %v2364_v7 = vrot.slane %v2362_v17, 5  ;;  %v7130_v61 = vld [vmem:[%s6800_s10 + $0x74] sm:$0x1] }
  0xa6   : > { %9307 = vst [vmem:[#allocation25_spill] sm:$0xff] %v7130_v61  ;;  %v9308_v15 = vld [vmem:[#allocation19_spill] sm:$0xff]  ;;  %v9309_v3 = vcombine.low %v6864_v10, %v6867_v20  ;;  %v2350_v13 = vrot.slane %v2349_v40, 4  ;;  %v2373_v56 = vor.u32 %v2372_v55, %v2369_v24  ;;  %v2383_v19 = vor.u32 %v2382_v25, %v7105_v37 }
  0xa7   : > { %5685 = vmatmul.mubr.msk.bf16.gmra.mxu1 %vm840_vm2, %v9302_v44  ;;  %v2325_v44 = vor.u32 %v2324_v21, %v2321_v0  ;;  %v2312_v0 = vrot.slane %v2311_v26, 4  ;;  %v2359_v21 = vor.u32 %v2358_v60, %v7083_v34  ;;  %v7123_v26 = vld [vmem:[%s9171_s3 + $0x88] sm:$0xff]   ;;  %v2336_v60 = vrot.slane %v2335_v6, 4  ;;  %v7144_v6 = vld [vmem:[%s9171_s3 + $0x78] sm:$0xff]  }
  0xa8   : > { %5728 = vmatprep.mubr.msk.bf16.mxu1 %vm840_vm2, %v5191_v5  ;;  %v7087_v5 = vrot.slane %v2301_v27, 4  ;;  %v7103_v27 = vld [vmem:[%s6800_s10 + $0x68] sm:$0x1]  ;;  %9305 = vst [vmem:[#allocation24_spill] sm:$0xff] %v7123_v26  ;;  %v2428_v17 = vshrl.u32 %v7114_v8, 16  ;;  %9310 = vst [vmem:[#allocation19_spill] sm:$0xff] %v7144_v6 }
  0xa9   : > { %9304 = vst [vmem:[#allocation23_spill] sm:$0xff] %v7103_v27  ;;  %v2326_v47 = vrot.slane %v2325_v44, 4  ;;  %v2386_v42 = vshll.u32 %v7103_v27, 16  ;;  %v2410_v55 = vshll.u32 %v7130_v61, 16  ;;  %v2317_v40 = vsel %vm6301_vm3, %v2312_v0, %v7041_v35  ;;  %v7171_v0 = vld [vmem:[%s6800_s10 + $0x80] sm:$0x1] }
  0xaa   : > { %9311 = vst [vmem:[#allocation26_spill] sm:$0xff] %v7171_v0  ;;  %v7283_v61 = vld [vmem:[%s6800_s10 + $0xb4] sm:$0xf] }
  0xab   : > { %5765 = vmatmul.mubr.msk.bf16.vlgmr.msra.gmra.mxu0 %vm840_vm2, %v6987_v22  ;;  %v2393_v22 = vrot.slane %v2391_v51, 4  ;;  %v2340_v51 = vrot.slane %v2338_v63, 5  ;;  %v2424_v63 = vshll.u32 %v7114_v8, 16 }
  0xac   : > { %5833 = vmatpush3.bf16.msra.mxu0 %v6672_v50  ;;  %5768 = vmatprep.mubr.msk.bf16.mxu0 %vm840_vm2, %v5231_v52  ;;  %v2415_v50 = vshrl.u32 %v7098_v59, 16  ;;  %v2418_v52 = vshll.u32 %v7098_v59, 16 }
  0xad   : > { %5834 = vmatprep.subr.bf16.mxu0 %v6041_v9  ;;  %v2397_v44 = vor.u32 %v2396_v46, %v2393_v22  ;;  %v2341_v22 = vsel %vm6301_vm3, %v2336_v60, %v2340_v51  ;;  %v2355_v46 = vsel %vm6301_vm3, %v2350_v13, %v7083_v34  ;;  %v9312_v34 = vcombine.low %v6873_v53, %v6876_v31  ;;  %v7190_v51 = vld [vmem:[%s6800_s10 + $0x88] sm:$0xf] }
  0xae   : > { %v2417_v25 = vrot.slane %v2415_v50, 4  ;;  %v2420_v24 = vrot.slane %v2418_v52, 5  ;;  %v2430_v50 = vrot.slane %v2428_v17, 4  ;;  %v2434_v17 = vshll.u32 %v7171_v0, 16 }
  0xaf   : > { %5729 = vmatmul.mubr.msk.bf16.vlgmr.msra.gmra.mxu1 %vm840_vm2, %v9306_v41  ;;  %v2360_v41 = vrot.slane %v2359_v21, 4  ;;  %v2331_v21 = vsel %vm6301_vm3, %v2326_v47, %v7067_v39  ;;  %v2398_v39 = vrot.slane %v2397_v44, 4  ;;  %v7254_v47 = vld [vmem:[%s6800_s10 + $0xac] sm:$0xf] }
  0xb0   : > { %5797 = vmatpush3.bf16.msra.mxu1 %v9308_v15  ;;  %5732 = vmatprep.mubr.msk.bf16.mxu1 %vm840_vm2, %v9309_v3  ;;  %v2407_v3 = vor.u32 %v2406_v45, %v7116_v28  ;;  %v2388_v45 = vrot.slane %v2386_v42, 5  ;;  %v2421_v13 = vor.u32 %v2420_v24, %v2417_v25  ;;  %v5235_v52 = vcombine.low %v2331_v21, %v2341_v22 }
  0xb1   : > { %5798 = vmatprep.subr.bf16.mxu1 %v6039_v4  ;;  %5835 = vmatpush3.bf16.msra.mxu0 %v6041_v9  ;;  %v2307_v9 = vsel %vm6301_vm3, %v7087_v5, %v7017_v58  ;;  %v2374_v58 = vrot.slane %v2373_v56, 4  ;;  %v2384_v5 = vrot.slane %v2383_v19, 4  ;;  %v2365_v35 = vsel %vm6301_vm3, %v2360_v41, %v2364_v7 }
  0xb2   : > { %5904 = vmatprep.subr.bf16.mxu0 %v7123_v26  ;;  %v2408_v42 = vrot.slane %v2407_v3, 4  ;;  %v2412_v56 = vrot.slane %v2410_v55, 5  ;;  %v9313_v7 = vcombine.low %v6882_v12, %v6890_v11  ;;  %v5236_v15 = vcombine.low %v2355_v46, %v2365_v35  ;;  %v7228_v35 = vld [vmem:[%s6800_s10 + $0x9c] sm:$0xf] }
  0xb3   : > { %5769 = vmatmul.mubr.msk.bf16.gmra.mxu0 %vm840_vm2, %v7037_v18  ;;  %v7173_v18 = vrot.slane %v2424_v63, 5  ;;  %v2379_v41 = vsel %vm6301_vm3, %v2374_v58, %v7105_v37  ;;  %v2389_v44 = vsel %vm6301_vm3, %v2384_v5, %v2388_v45  ;;  %v7203_v63 = vld [vmem:[%s6800_s10 + $0x90] sm:$0xf]  ;;  %v2403_v3 = vsel %vm6301_vm3, %v2398_v39, %v7116_v28  ;;  %v7223_v58 = vld [vmem:[%s6800_s10 + $0x8c] sm:$0x1] }
  0xb4   : > { %5799 = vmatpush3.bf16.msra.mxu1 %v6039_v4  ;;  %5772 = vmatprep.mubr.msk.bf16.mxu0 %vm840_vm2, %v7054_v36  ;;  %v7179_v36 = vld [vmem:[%s6800_s10 + $0x84] sm:$0xf]  ;;  %v5234_v4 = vcombine.low %v2307_v9, %v2317_v40  ;;  %v7212_v9 = vld [vmem:[%s6800_s10 + $0x94] sm:$0xf]  ;;  %v2413_v37 = vsel %vm6301_vm3, %v2408_v42, %v2412_v56  ;;  %v7216_v40 = vrot.slane %v2421_v13, 4  ;;  %v2452_v21 = vshrl.u32 %v7190_v51, 16 }
  0xb5   : > { %5868 = vmatprep.subr.bf16.mxu1 %v7144_v6  ;;  %v2431_v55 = vor.u32 %v2430_v50, %v7173_v18  ;;  %v2439_v25 = vshrl.u32 %v7179_v36, 16  ;;  %v2442_v24 = vshll.u32 %v7179_v36, 16  ;;  %v2448_v22 = vshll.u32 %v7190_v51, 16  ;;  %9314 = vst [vmem:[#allocation27_spill] sm:$0xff] %v7223_v58  ;;  %v7238_v13 = vld [vmem:[%s6800_s10 + $0xa0] sm:$0xf] }
  0xb6   : > { %v5237_v46 = vcombine.low %v2379_v41, %v2389_v44  ;;  %v2463_v5 = vshrl.u32 %v7203_v63, 16  ;;  %v2466_v45 = vshll.u32 %v7203_v63, 16  ;;  %v7231_v39 = vrot.slane %v2434_v17, 5  ;;  %v7244_v44 = vld [vmem:[%s6800_s10 + $0xa8] sm:$0xf] }
  0xb7   : > { %5733 = vmatmul.mubr.msk.bf16.gmra.mxu1 %vm840_vm2, %v9312_v34  ;;  %v2476_v42 = vshrl.u32 %v7212_v9, 16  ;;  %v2472_v56 = vshll.u32 %v7212_v9, 16  ;;  %v7241_v34 = vcombine.low %v2403_v3, %v2413_v37  ;;  %v2441_v41 = vrot.slane %v2439_v25, 4  ;;  %v7267_v37 = vld [vmem:[%s6800_s10 + $0x98] sm:$0x1] }
  0xb8   : > { %5736 = vmatprep.mubr.msk.bf16.mxu1 %vm840_vm2, %v9313_v7  ;;  %v2432_v7 = vrot.slane %v2431_v55, 4  ;;  %v2427_v17 = vsel %vm6301_vm3, %v7216_v40, %v7173_v18  ;;  %v7250_v50 = vrot.slane %v2448_v22, 5  ;;  %v2454_v28 = vrot.slane %v2452_v21, 4  ;;  %9317 = vst [vmem:[#allocation28_spill] sm:$0xff] %v7267_v37 }
  0xb9   : > { %v2458_v60 = vshll.u32 %v7223_v58, 16  ;;  %v2465_v3 = vrot.slane %v2463_v5, 4  ;;  %v2468_v55 = vrot.slane %v2466_v45, 5  ;;  %v2487_v25 = vshrl.u32 %v7228_v35, 16 }
  0xba   : > { %v9316_v18 = vcombine.low %v6997_v38, %v7010_v14  ;;  %v7269_v40 = vrot.slane %v2472_v56, 5  ;;  %v2478_v21 = vrot.slane %v2476_v42, 4  ;;  %v2500_v22 = vshrl.u32 %v7238_v13, 16  ;;  %v7288_v14 = vld [vmem:[%s6800_s10 + $0xb8] sm:$0xf] }
  0xbb   : > { %5773 = vmatmul.mubr.msk.bf16.gmra.mxu0 %vm840_vm2, %v5234_v4  ;;  %v2444_v4 = vrot.slane %v2442_v24, 5  ;;  %v2490_v24 = vshll.u32 %v7228_v35, 16  ;;  %v2496_v5 = vshll.u32 %v7238_v13, 16  ;;  %v2511_v45 = vshrl.u32 %v7244_v44, 16 }
  0xbc   : > { %5776 = vmatprep.mubr.msk.bf16.mxu0 %vm840_vm2, %v5235_v52  ;;  %v9315_v52 = vcombine.low %v6953_v54, %v6961_v57  ;;  %v2524_v19 = vshrl.u32 %v7254_v47, 16  ;;  %v2520_v58 = vshll.u32 %v7254_v47, 16  ;;  %v2460_v42 = vrot.slane %v2458_v60, 5 }
  0xbd   : > { %v2445_v56 = vor.u32 %v2444_v4, %v2441_v41  ;;  %v2455_v6 = vor.u32 %v2454_v28, %v7250_v50  ;;  %v2482_v27 = vshll.u32 %v7267_v37, 16  ;;  %v2489_v26 = vrot.slane %v2487_v25, 4  ;;  %v7296_v4 = vld [vmem:[%s6800_s10 + $0xa4] sm:$0x1] }
  0xbe   : > { %v2492_v38 = vrot.slane %v2490_v24, 5  ;;  %v7292_v60 = vrot.slane %v2496_v5, 5  ;;  %v2502_v41 = vrot.slane %v2500_v22, 4  ;;  %v2513_v28 = vrot.slane %v2511_v45, 4  ;;  %v7301_v24 = vld [vmem:[%s6800_s10 + $0xb0] sm:$0x1] }
  0xbf   : > { %5737 = vmatmul.mubr.msk.bf16.gmra.mxu1 %vm840_vm2, %v9315_v52  ;;  %v2514_v52 = vshll.u32 %v7244_v44, 16  ;;  %v7298_v54 = vrot.slane %v2520_v58, 5  ;;  %v2526_v25 = vrot.slane %v2524_v19, 4  ;;  %v2535_v37 = vshrl.u32 %v7283_v61, 16 }
  0xc0   : > { %5740 = vmatprep.mubr.msk.bf16.mxu1 %vm840_vm2, %v9316_v18  ;;  %v2437_v18 = vsel %vm6301_vm3, %v2432_v7, %v7231_v39  ;;  %v2469_v39 = vor.u32 %v2468_v55, %v2465_v3  ;;  %v2479_v7 = vor.u32 %v2478_v21, %v7269_v40  ;;  %v2548_v3 = vshrl.u32 %v7288_v14, 16 }
  0xc1   : > { %v2516_v0 = vrot.slane %v2514_v52, 5  ;;  %v2544_v55 = vshll.u32 %v7288_v14, 16  ;;  %v2446_v21 = vrot.slane %v2445_v56, 4  ;;  %v2456_v58 = vrot.slane %v2455_v6, 4 }
  0xc2   : > { %v2484_v22 = vrot.slane %v2482_v27, 5  ;;  %v2493_v19 = vor.u32 %v2492_v38, %v2489_v26  ;;  %v9319_v5 = vcombine.low %v7049_v48, %v7052_v2  ;;  %v2470_v45 = vrot.slane %v2469_v39, 4  ;;  %v7320_v27 = vld [vmem:[%s6800_s10 + $0xbc] sm:$0x1] }
  0xc3   : > { %5777 = vmatmul.mubr.msk.bf16.gmra.mxu0 %vm840_vm2, %v5236_v15  ;;  %v2538_v15 = vshll.u32 %v7283_v61, 16  ;;  %v2480_v52 = vrot.slane %v2479_v7, 4  ;;  %v2503_v57 = vor.u32 %v2502_v41, %v7292_v60  ;;  %v2506_v12 = vshll.u32 %v7296_v4, 16 }
  0xc4   : > { %5780 = vmatprep.mubr.msk.bf16.mxu0 %vm840_vm2, %v5237_v46  ;;  %v9318_v46 = vcombine.low %v7013_v43, %v7027_v32  ;;  %v5239_v53 = vcombine.low %v2427_v17, %v2437_v18  ;;  %v2517_v11 = vor.u32 %v2516_v0, %v2513_v28  ;;  %v2527_v43 = vor.u32 %v2526_v25, %v7298_v54 }
  0xc5   : > { %v2530_v6 = vshll.u32 %v7301_v24, 16  ;;  %v2537_v38 = vrot.slane %v2535_v37, 4  ;;  %v2540_v26 = vrot.slane %v2538_v15, 5  ;;  %v7322_v56 = vrot.slane %v2544_v55, 5 }
  0xc6   : > { %v2451_v39 = vsel %vm6301_vm3, %v2446_v21, %v7250_v50  ;;  %v2461_v17 = vsel %vm6301_vm3, %v2456_v58, %v2460_v42  ;;  %v5204_v0 = vcombine.low %v7228_v35, %v7238_v13  ;;  %v2494_v18 = vrot.slane %v2493_v19, 4  ;;  %v7360_v21 = vld [vmem:[%s7342_s7 + $0xc] sm:$0xf] }
  0xc7   : > { %5741 = vmatmul.mubr.msk.bf16.gmra.mxu1 %vm840_vm2, %v9318_v46  ;;  %v2550_v46 = vrot.slane %v2548_v3, 4  ;;  %v2475_v37 = vsel %vm6301_vm3, %v2470_v45, %v7269_v40  ;;  %v2485_v7 = vsel %vm6301_vm3, %v2480_v52, %v2484_v22  ;;  %v2504_v41 = vrot.slane %v2503_v57, 4  ;;  %9321 = vst [vmem:[#allocation29_spill] sm:$0xff] %v7360_v21 }
  0xc8   : > { %5744 = vmatprep.mubr.msk.bf16.mxu1 %vm840_vm2, %v9319_v5  ;;  %v2508_v28 = vrot.slane %v2506_v12, 5  ;;  %v2518_v50 = vrot.slane %v2517_v11, 4  ;;  %v2528_v42 = vrot.slane %v2527_v43, 4  ;;  %v2554_v25 = vshll.u32 %v7320_v27, 16 }
  0xc9   : > { %v5240_v15 = vcombine.low %v2451_v39, %v2461_v17  ;;  %v2541_v40 = vor.u32 %v2540_v26, %v2537_v38  ;;  %v2551_v3 = vor.u32 %v2550_v46, %v7322_v56  ;;  %v2882_v57 = vrot.slane %v6835_v49, 5  ;;  %v7378_v38 = vld [vmem:[%s7342_s7] sm:$0xf]  ;;  %v7381_v26 = vld [vmem:[%s7342_s7 + $0x4] sm:$0xf]  ;;  %v9323_v17 = vld [vmem:[#allocation10_spill] sm:$0xff] }
  0xca   : > { %v9320_v12 = vcombine.low %v7061_v29, %v7070_v33  ;;  %v5241_v55 = vcombine.low %v2475_v37, %v2485_v7  ;;  %v5205_v11 = vcombine.low %v7244_v44, %v7254_v47  ;;  %v9322_v49 = vcombine.low %v7098_v59, %v7114_v8  ;;  %v7385_v37 = vld [vmem:[%s7342_s7 + $0x10] sm:$0xf] }
  0xcb   : > { %5781 = vmatmul.mubr.msk.bf16.gmra.mxu0 %vm840_vm2, %v7241_v34  ;;  %v2532_v34 = vrot.slane %v2530_v6, 5  ;;  %v2509_v58 = vsel %vm6301_vm3, %v2504_v41, %v2508_v28  ;;  %v2889_v22 = vrot.slane %v6846_v62, 5  ;;  %v3712_v19 = vshll.u32 %v7360_v21, 16  ;;  %9324 = vst [vmem:[#allocation10_spill] sm:$0xff] %v7385_v37 }
  0xcc   : > { %5784 = vmatprep.mubr.msk.bf16.mxu0 %vm840_vm2, %v5239_v53  ;;  %v2499_v53 = vsel %vm6301_vm3, %v2494_v18, %v7292_v60  ;;  %v3709_v60 = vshrl.u32 %v7360_v21, 16  ;;  %v2523_v5 = vsel %vm6301_vm3, %v2518_v50, %v7298_v54  ;;  %v2556_v52 = vrot.slane %v2554_v25, 5  ;;  %v9325_v50 = vld [vmem:[#allocation12_spill] sm:$0xff] }
  0xcd   : > { %v2533_v45 = vsel %vm6301_vm3, %v2528_v42, %v2532_v34  ;;  %v5263_v6 = vrot.slane %v6816_v1, 9  ;;  %v2542_v46 = vrot.slane %v2541_v40, 4  ;;  %v2552_v62 = vrot.slane %v2551_v3, 4 }
  0xce   : > { %v2884_v39 = vrot.slane %v2882_v57, 4  ;;  %v2885_v18 = vrot.slane %v9323_v17, 5  ;;  %v5242_v7 = vcombine.low %v2499_v53, %v2509_v58  ;;  %v5264_v54 = vrot.slane %v6842_v23, 9  ;;  %v7511_v53 = vld [vmem:[%s7342_s7 + $0x34] sm:$0xf]  ;;  %v9344_v23 = vld [vmem:[#allocation6_spill] sm:$0xff] }
  0xcf   : > { %5745 = vmatmul.mubr.msk.bf16.gmra.mxu1 %vm840_vm2, %v9320_v12  ;;  %v3718_v41 = vshll.u32 %v7385_v37, 16  ;;  %v3722_v28 = vshrl.u32 %v7385_v37, 16  ;;  %v2891_v1 = vrot.slane %v2889_v22, 4  ;;  %v2892_v42 = vrot.slane %v9325_v50, 5 }
  0xd0   : > { %5748 = vmatprep.mubr.msk.bf16.mxu1 %vm840_vm2, %v9322_v49  ;;  %v3711_v34 = vrot.slane %v3709_v60, 4  ;;  %v3714_v25 = vrot.slane %v3712_v19, 5  ;;  %v5243_v40 = vcombine.low %v2523_v5, %v2533_v45  ;;  %v7395_v12 = vsel %vm6590_vm6, %v5263_v6, %v2882_v57  ;;  %v7470_v60 = vld [vmem:[%s7342_s7 + $0x28] sm:$0xf] }
  0xd1   : > { %v2557_v49 = vsel %vm6301_vm3, %v2552_v62, %v2556_v52  ;;  %v2896_v57 = vrot.slane %v6867_v20, 5  ;;  %v9327_v58 = vcombine.low %v7179_v36, %v7190_v51  ;;  %v7415_v19 = vrot.slane %v3718_v41, 5  ;;  %v7432_v62 = vld [vmem:[%s7342_s7 + $0x18] sm:$0xf] }
  0xd2   : > { %v3724_v5 = vrot.slane %v3722_v28, 4  ;;  %v9329_v45 = vcombine.low %v7203_v63, %v7212_v9  ;;  %v7424_v20 = vsel %vm6590_vm6, %v5264_v54, %v2889_v22  ;;  %v7428_v52 = vsel %vm6590_vm6, %v2891_v1, %v2892_v42 }
  0xd3   : > { %5785 = vmatmul.mubr.msk.bf16.gmra.mxu0 %vm840_vm2, %v5240_v15  ;;  %v2547_v15 = vsel %vm6301_vm3, %v2542_v46, %v7322_v56  ;;  %9328 = vst [vmem:[#allocation12_spill] sm:$0xff] %v7415_v19  ;;  %v9218_v56 = vrot.slane %v7385_v37, 5  ;;  %v3715_v6 = vor.u32 %v3714_v25, %v3711_v34  ;;  %v5265_v46 = vrot.slane %v6864_v10, 9  ;;  %v9337_v25 = vld [vmem:[#allocation14_spill] sm:$0xff] }
  0xd4   : > { %5788 = vmatprep.mubr.msk.bf16.mxu0 %vm840_vm2, %v5241_v55  ;;  %v7407_v55 = vsel %vm6590_vm6, %v2884_v39, %v2885_v18  ;;  %v7435_v39 = vld [vmem:[%s7342_s7 + $0x1c] sm:$0xf]  ;;  %v5244_v17 = vcombine.low %v2547_v15, %v2557_v49  ;;  %v2898_v28 = vrot.slane %v2896_v57, 4  ;;  %v2899_v10 = vrot.slane %v6912_v16, 5  ;;  %v7463_v49 = vld [vmem:[%s7342_s7 + $0x24] sm:$0xf] }
  0xd5   : > { %v2903_v1 = vrot.slane %v6876_v31, 5  ;;  %v3725_v42 = vor.u32 %v3724_v5, %v7415_v19  ;;  %v7450_v34 = vrot.slane %v9218_v56, 4  ;;  %v7455_v15 = vrot.slane %v3715_v6, 4  ;;  %v9334_v56 = vld [vmem:[#allocation15_spill] sm:$0xff] }
  0xd6   : > { %v7459_v16 = vsel %vm6590_vm6, %v5265_v46, %v2896_v57  ;;  %v2906_v41 = vrot.slane %v9334_v56, 5  ;;  %v3760_v6 = vshll.u32 %v7463_v49, 16  ;;  %v7476_v57 = vsel %vm6590_vm6, %v2898_v28, %v2899_v10  ;;  %v9336_v28 = vld [vmem:[#allocation8_spill] sm:$0xff] }
  0xd7   : > { %5749 = vmatmul.mubr.msk.bf16.gmra.mxu1 %vm840_vm2, %v9327_v58  ;;  %9330 = vst [vmem:[#allocation18_spill] sm:$0xff] %v7450_v34  ;;  %9331 = vst [vmem:[#allocation30_spill] sm:$0xff] %v7455_v15  ;;  %v9332_v58 = vld [vmem:[#allocation13_spill] sm:$0xff]  ;;  %v2905_v46 = vrot.slane %v2903_v1, 4  ;;  %v3766_v31 = vshll.u32 %v7470_v60, 16  ;;  %v7484_v56 = vrot.slane %v3725_v42, 4 }
  0xd8   : > { %5752 = vmatprep.mubr.msk.bf16.mxu1 %vm840_vm2, %v9329_v45  ;;  %v2910_v5 = vrot.slane %v9332_v58, 5  ;;  %v9333_v45 = vld [vmem:[#allocation11_spill] sm:$0xff]  ;;  %v5267_v10 = vrot.slane %v9336_v28, 9  ;;  %v9338_v42 = vld [vmem:[#allocation17_spill] sm:$0xff]  ;;  %v7505_v18 = vrot.slane %v3760_v6, 5 }
  0xd9   : > { %v5266_v54 = vrot.slane %v9333_v45, 9  ;;  %9335 = vst [vmem:[#allocation13_spill] sm:$0xff] %v7484_v56  ;;  %v2917_v22 = vrot.slane %v9338_v42, 5  ;;  %v7517_v42 = vrot.slane %v3766_v31, 5  ;;  %v2931_v56 = vrot.slane %v7027_v32, 5  ;;  %v6059_v34 = vld [vmem:[%s9171_s3 + $0x70] sm:$0xff]  }
  0xda   : > { %v2912_v50 = vrot.slane %v2910_v5, 4  ;;  %9340 = vst [vmem:[#allocation15_spill] sm:$0xff] %v7505_v18  ;;  %v2920_v18 = vrot.slane %v9344_v23, 5  ;;  %v7570_v45 = vld [vmem:[%s7342_s7 + $0x48] sm:$0xf]  ;;  %v9348_v32 = vcombine.low %v7395_v12, %v7407_v55  ;;  %v9353_v12 = vld [vmem:[#allocation21_spill] sm:$0xff] }
  0xdb   : > { %5789 = vmatmul.mubr.msk.bf16.gmra.mxu0 %vm840_vm2, %v5242_v7  ;;  %v3757_v7 = vshrl.u32 %v7463_v49, 16  ;;  %v7501_v28 = vsel %vm6590_vm6, %v5266_v54, %v2903_v1  ;;  %9341 = vst [vmem:[#allocation8_spill] sm:$0xff] %v7517_v42  ;;  %v7523_v54 = vld [vmem:[%s7342_s7 + $0x3c] sm:$0xf]  ;;  %v7527_v1 = vsel %vm6590_vm6, %v5267_v10, %v2910_v5  ;;  %v9345_v10 = vcombine.low %v7378_v38, %v7381_v26 }
  0xdc   : > { %5792 = vmatprep.mubr.msk.bf16.mxu0 %vm840_vm2, %v5243_v40  ;;  %v3770_v40 = vshrl.u32 %v7470_v60, 16  ;;  %v2927_v55 = vrot.slane %v9353_v12, 5 }
  0xdd   : > { %v7503_v58 = vrot.slane %v3757_v7, 4  ;;  %v9343_v7 = vld [vmem:[#allocation16_spill] sm:$0xff] }
  0xde   : > { %v7519_v43 = vrot.slane %v3770_v40, 4  ;;  %v5268_v6 = vrot.slane %v9343_v7, 9  ;;  %v3808_v40 = vshll.u32 %v7523_v54, 16 }
  0xdf   : > { %5753 = vmatmul.mubr.msk.bf16.gmra.mxu1 %vm840_vm2, %v5204_v0  ;;  %v2913_v0 = vrot.slane %v9337_v25, 5  ;;  %9339 = vst [vmem:[#allocation11_spill] sm:$0xff] %v7503_v58  ;;  %v7515_v25 = vsel %vm6590_vm6, %v2905_v46, %v2906_v41  ;;  %v7532_v58 = vld [vmem:[%s7342_s7 + $0x40] sm:$0xf]  ;;  %v3805_v41 = vshrl.u32 %v7523_v54, 16  ;;  %v2919_v46 = vrot.slane %v2917_v22, 4 }
  0xe0   : > { %5756 = vmatprep.mubr.msk.bf16.mxu1 %vm840_vm2, %v5205_v11  ;;  %v7508_v11 = vld [vmem:[%s7342_s7 + $0x30] sm:$0xf]  ;;  %9342 = vst [vmem:[#allocation14_spill] sm:$0xff] %v7519_v43  ;;  %v3814_v5 = vshll.u32 %v7532_v58, 16  ;;  %v3818_v42 = vshrl.u32 %v7532_v58, 16  ;;  %v7582_v23 = vrot.slane %v3808_v40, 5 }
  0xe1   : > { %v7538_v31 = vsel %vm6590_vm6, %v2912_v50, %v2913_v0  ;;  %v9346_v0 = vld [vmem:[#allocation9_spill] sm:$0xff]  ;;  %v9352_v43 = vld [vmem:[#allocation7_spill] sm:$0xff]  ;;  %v2938_v40 = vrot.slane %v7052_v2, 5  ;;  %v9357_v2 = vcombine.low %v7360_v21, %v7385_v37 }
  0xe2   : > { %v2924_v7 = vrot.slane %v9346_v0, 5  ;;  %v7565_v0 = vsel %vm6590_vm6, %v5268_v6, %v2917_v22  ;;  %9350 = vst [vmem:[#allocation16_spill] sm:$0xff] %v7582_v23  ;;  %v7584_v22 = vrot.slane %v3814_v5, 5  ;;  %v7587_v6 = vld [vmem:[%s7342_s7 + $0x4c] sm:$0xf]  ;;  %v5269_v50 = vrot.slane %v9352_v43, 9 }
  0xe3   : > { %5793 = vmatmul.mubr.msk.bf16.gmra.mxu0 %vm840_vm2, %v5244_v17  ;;  %v7580_v17 = vrot.slane %v3805_v41, 4  ;;  %v7592_v19 = vrot.slane %v3818_v42, 4  ;;  %v9356_v41 = vld [vmem:[#allocation22_spill] sm:$0xff]  ;;  %v6061_v5 = vld [vmem:[%s9171_s3 + $0x80] sm:$0xff]   ;;  %v9358_v23 = vld [vmem:[#allocation24_spill] sm:$0xff]  ;;  %v9359_v42 = vcombine.low %v7432_v62, %v7435_v39 }
  0xe4   : > { %5836 = vmatprep.mubr.msk.bf16.mxu0 %vm840_vm2, %v9345_v10  ;;  %v9347_v10 = vcombine.low %v7283_v61, %v7288_v14  ;;  %9351 = vst [vmem:[#allocation6_spill] sm:$0xff] %v7584_v22  ;;  %v2926_v30 = vrot.slane %v2924_v7, 4  ;;  %v9362_v37 = vld [vmem:[#allocation19_spill] sm:$0xff] }
  0xe5   : > { %9349 = vst [vmem:[#allocation17_spill] sm:$0xff] %v7580_v17  ;;  %9355 = vst [vmem:[#allocation9_spill] sm:$0xff] %v7592_v19  ;;  %v7609_v19 = vld [vmem:[%s7342_s7 + $0x58] sm:$0xf]  ;;  %v7626_v17 = vsel %vm6590_vm6, %v5269_v50, %v2924_v7  ;;  %v5271_v50 = vrot.slane %v7049_v48, 9  ;;  %v2940_v7 = vrot.slane %v2938_v40, 4 }
  0xe6   : > { %v3862_v12 = vshll.u32 %v7609_v19, 16  ;;  %v2945_v48 = vrot.slane %v7070_v33, 5 }
  0xe7   : > { %5757 = vmatmul.mubr.msk.bf16.gmra.mxu1 %vm840_vm2, %v9347_v10  ;;  %v7578_v10 = vsel %vm6590_vm6, %v2919_v46, %v2920_v18  ;;  %v2933_v18 = vrot.slane %v2931_v56, 4  ;;  %v2934_v46 = vrot.slane %v9356_v41, 5 }
  0xe8   : > { %5800 = vmatprep.mubr.msk.bf16.mxu1 %vm840_vm2, %v9348_v32  ;;  %v9354_v32 = vld [vmem:[#allocation20_spill] sm:$0xff]  ;;  %v7669_v21 = vrot.slane %v3862_v12, 5  ;;  %v5272_v12 = vrot.slane %v7061_v29, 9  ;;  %v2947_v33 = vrot.slane %v2945_v48, 4  ;;  %v9375_v29 = vcombine.low %v7501_v28, %v7515_v25 }
  0xe9   : > { %v5270_v15 = vrot.slane %v9354_v32, 9  ;;  %v7606_v32 = vld [vmem:[%s7342_s7 + $0x54] sm:$0xf] }
  0xea   : > { %v3853_v22 = vshrl.u32 %v7606_v32, 16  ;;  %v3856_v43 = vshll.u32 %v7606_v32, 16  ;;  %9365 = vst [vmem:[#allocation21_spill] sm:$0xff] %v7669_v21  ;;  %v5273_v21 = vrot.slane %v7098_v59, 9  ;;  %v2973_v59 = vrot.slane %v7238_v13, 5 }
  0xeb   : > { %5837 = vmatmul.mubr.msk.bf16.vlgmr.msra.gmra.mxu0 %vm840_vm2, %v9357_v2  ;;  %v7630_v2 = vsel %vm6590_vm6, %v2926_v30, %v2927_v55  ;;  %v7634_v41 = vsel %vm6590_vm6, %v5270_v15, %v2931_v56  ;;  %v9360_v30 = vld [vmem:[#allocation23_spill] sm:$0xff]  ;;  %v9361_v15 = vcombine.low %v7424_v20, %v7428_v52  ;;  %v7672_v56 = vld [vmem:[%s7342_s7 + $0x64] sm:$0xf] }
  0xec   : > { %5905 = vmatpush3.bf16.msra.mxu0 %v9358_v23  ;;  %5840 = vmatprep.mubr.msk.bf16.mxu0 %vm840_vm2, %v9359_v42  ;;  %v3866_v23 = vshrl.u32 %v7609_v19, 16  ;;  %v7642_v42 = vsel %vm6590_vm6, %v2933_v18, %v2934_v46  ;;  %v2941_v55 = vrot.slane %v9360_v30, 5  ;;  %v7655_v46 = vld [vmem:[%s7342_s7 + $0x60] sm:$0xf]  ;;  %v9363_v30 = vcombine.low %v7459_v16, %v7476_v57 }
  0xed   : > { %5906 = vmatprep.subr.bf16.mxu0 %v6061_v5  ;;  %v7665_v52 = vrot.slane %v3853_v22, 4  ;;  %v7685_v22 = vsel %vm6590_vm6, %v5271_v50, %v2938_v40  ;;  %v9369_v18 = vld [vmem:[#allocation25_spill] sm:$0xff]  ;;  %v9370_v40 = vcombine.low %v7463_v49, %v7470_v60 }
  0xef   : > { %5801 = vmatmul.mubr.msk.bf16.vlgmr.msra.gmra.mxu1 %vm840_vm2, %v9361_v15  ;;  %v7667_v15 = vrot.slane %v3856_v43, 5  ;;  %v7689_v43 = vsel %vm6590_vm6, %v2940_v7, %v2941_v55  ;;  %v7706_v7 = vpop.f32.mrf.mxu0 }
  0xf0   : > { %5869 = vmatpush3.bf16.msra.mxu1 %v9362_v37  ;;  %5804 = vmatprep.mubr.msk.bf16.mxu1 %vm840_vm2, %v9363_v30  ;;  %v7676_v37 = vrot.slane %v3866_v23, 4  ;;  %v7681_v30 = vld [vmem:[%s7342_s7 + $0x6c] sm:$0xf]  ;;  %v7693_v23 = vld [vmem:[%s7342_s7 + $0x70] sm:$0xf]  ;;  %9371 = vst [vmem:[#allocation23_spill] sm:$0xff] %v7706_v7 }
  0xf1   : > { %9364 = vst [vmem:[#allocation7_spill] sm:$0xff] %v7667_v15  ;;  %5870 = vmatprep.subr.bf16.mxu1 %v6059_v34  ;;  %9367 = vst [vmem:[#allocation22_spill] sm:$0xff] %v7681_v30  ;;  %5907 = vmatpush3.bf16.msra.mxu0 %v6061_v5  ;;  %v3901_v16 = vshrl.u32 %v7681_v30, 16  ;;  %v2948_v5 = vrot.slane %v9369_v18, 5  ;;  %v3904_v20 = vshll.u32 %v7681_v30, 16  ;;  %v3910_v55 = vshll.u32 %v7693_v23, 16 }
  0xf2   : > { %9366 = vst [vmem:[#allocation20_spill] sm:$0xff] %v7676_v37  ;;  %9368 = vst [vmem:[#allocation24_spill] sm:$0xff] %v7693_v23  ;;  %v3914_v57 = vshrl.u32 %v7693_v23, 16  ;;  %v9372_v18 = vcombine.low %v7508_v11, %v7511_v53  ;;  %v2952_v7 = vrot.slane %v7114_v8, 5  ;;  %v7722_v37 = vsel %vm6590_vm6, %v5272_v12, %v2945_v48  ;;  %v7728_v15 = vld [vmem:[%s7342_s7 + $0x78] sm:$0xf] }
  0xf3   : > { %5841 = vmatmul.mubr.msk.bf16.gmra.mxu0 %vm840_vm2, %v9370_v40  ;;  %9374 = vst [vmem:[#allocation25_spill] sm:$0xff] %v7728_v15  ;;  %v7739_v8 = vsel %vm6590_vm6, %v2947_v33, %v2948_v5  ;;  %v7741_v48 = vrot.slane %v3904_v20, 5  ;;  %v2976_v12 = vrot.slane %v7296_v4, 5  ;;  %v7752_v28 = vrot.slane %v3910_v55, 5  ;;  %v7758_v5 = vpop.f32.mrf.mxu0  ;;  %v9382_v40 = vld [vmem:[#allocation26_spill] sm:$0xff] }
  0xf4   : > { %5871 = vmatpush3.bf16.msra.mxu1 %v6059_v34  ;;  %5844 = vmatprep.mubr.msk.bf16.mxu0 %vm840_vm2, %v9372_v18  ;;  %v7724_v34 = vrot.slane %v3901_v16, 4  ;;  %v5276_v18 = vrot.slane %v7228_v35, 9  ;;  %v7735_v50 = vpop.f32.mrf.mxu1  ;;  %v7744_v16 = vld [vmem:[%s7342_s7 + $0x7c] sm:$0xf]  ;;  %v9378_v35 = vcombine.low %v7527_v1, %v7538_v31  ;;  %v7754_v25 = vrot.slane %v3914_v57, 4  ;;  %9381 = vst [vmem:[#allocation35_spill] sm:$0xff] %v7758_v5 }
  0xf5   : > { %9376 = vst [vmem:[#allocation31_spill] sm:$0xff] %v7735_v50  ;;  %9377 = vst [vmem:[#allocation32_spill] sm:$0xff] %v7741_v48  ;;  %v2955_v13 = vrot.slane %v9382_v40, 5  ;;  %v2975_v1 = vrot.slane %v2973_v59, 4  ;;  %v7769_v57 = vsel %vm6590_vm6, %v5273_v21, %v2952_v7  ;;  %v9384_v21 = vcombine.low %v7523_v54, %v7532_v58  ;;  %v9387_v31 = vld [vmem:[#allocation27_spill] sm:$0xff] }
  0xf6   : > { %9373 = vst [vmem:[#allocation19_spill] sm:$0xff] %v7724_v34  ;;  %9379 = vst [vmem:[#allocation33_spill] sm:$0xff] %v7752_v28  ;;  %v7763_v4 = vsel %vm6590_vm6, %v5276_v18, %v2973_v59  ;;  %v7774_v33 = vpop.f32.mrf.mxu1  ;;  %v2959_v59 = vrot.slane %v7190_v51, 5  ;;  %v5277_v40 = vrot.slane %v7244_v44, 9  ;;  %v2980_v18 = vrot.slane %v7254_v47, 5 }
  0xf7   : > { %5805 = vmatmul.mubr.msk.bf16.gmra.mxu1 %vm840_vm2, %v9375_v29  ;;  %9380 = vst [vmem:[#allocation34_spill] sm:$0xff] %v7754_v25  ;;  %v2954_v29 = vrot.slane %v2952_v7, 4  ;;  %9383 = vst [vmem:[#allocation26_spill] sm:$0xff] %v7774_v33  ;;  %v7781_v20 = vsel %vm6590_vm6, %v2975_v1, %v2976_v12  ;;  %v7787_v7 = vpop.f32.mrf.mxu0  ;;  %v2983_v51 = vrot.slane %v7301_v24, 5  ;;  %v9386_v12 = vcombine.low %v7570_v45, %v7587_v6  ;;  %v7806_v55 = vld [vmem:[%s7342_s7 + $0x84] sm:$0xf] }
  0xf8   : > { %5808 = vmatprep.mubr.msk.bf16.mxu1 %vm840_vm2, %v9378_v35  ;;  %9385 = vst [vmem:[#allocation36_spill] sm:$0xff] %v7787_v7  ;;  %v2962_v35 = vrot.slane %v9387_v31, 5  ;;  %v2966_v44 = vrot.slane %v7212_v9, 5  ;;  %9388 = vst [vmem:[#allocation27_spill] sm:$0xff] %v7806_v55  ;;  %v7810_v47 = vsel %vm6590_vm6, %v5277_v40, %v2980_v18  ;;  %v2982_v24 = vrot.slane %v2980_v18, 4 }
  0xf9   : > { %v7800_v1 = vsel %vm6590_vm6, %v2954_v29, %v2955_v13  ;;  %v5278_v33 = vrot.slane %v7283_v61, 9  ;;  %v9389_v29 = vcombine.low %v7565_v0, %v7578_v10  ;;  %v2961_v13 = vrot.slane %v2959_v59, 4  ;;  %v7821_v9 = vld [vmem:[%s7342_s7 + $0x88] sm:$0xf]  ;;  %v7830_v61 = vpop.f32.mrf.mxu0  ;;  %v7873_v7 = vld [vmem:[%s7342_s7 + $0x9c] sm:$0xf] }
  0xfa   : > { %9391 = vst [vmem:[#allocation38_spill] sm:$0xff] %v7821_v9  ;;  %v3949_v31 = vshrl.u32 %v7806_v55, 16  ;;  %v3952_v40 = vshll.u32 %v7806_v55, 16  ;;  %v2990_v18 = vrot.slane %v7320_v27, 5  ;;  %9393 = vst [vmem:[#allocation39_spill] sm:$0xff] %v7830_v61  ;;  %v3958_v0 = vshll.u32 %v7821_v9, 16 }
  0xfb   : > { %5845 = vmatmul.mubr.msk.bf16.gmra.mxu0 %vm840_vm2, %v9384_v21  ;;  %v5274_v21 = vrot.slane %v7179_v36, 9  ;;  %v7818_v36 = vpop.f32.mrf.mxu1  ;;  %v7835_v10 = vsel %vm6590_vm6, %v2982_v24, %v2983_v51  ;;  %v7851_v24 = vld [vmem:[%s7342_s7 + $0x90] sm:$0xf]  ;;  %v7865_v50 = vsel %vm6590_vm6, %v2961_v13, %v2962_v35  ;;  %v7870_v51 = vld [vmem:[%s7342_s7 + $0x94] sm:$0xf]  ;;  %v9420_v34 = vcombine.low %v7722_v37, %v7739_v8 }
  0xfc   : > { %5848 = vmatprep.mubr.msk.bf16.mxu0 %vm840_vm2, %v9386_v12  ;;  %v2987_v12 = vrot.slane %v7288_v14, 5  ;;  %9390 = vst [vmem:[#allocation37_spill] sm:$0xff] %v7818_v36  ;;  %v9392_v14 = vcombine.low %v7626_v17, %v7630_v2  ;;  %v5275_v36 = vrot.slane %v7203_v63, 9  ;;  %v2968_v17 = vrot.slane %v2966_v44, 4  ;;  %v9394_v2 = vld [vmem:[#allocation28_spill] sm:$0xff] }
  0xfd   : > { %9395 = vst [vmem:[#allocation28_spill] sm:$0xff] %v7851_v24  ;;  %v7867_v61 = vrot.slane %v3949_v31, 4  ;;  %v7885_v35 = vrot.slane %v3958_v0, 5  ;;  %v7888_v13 = vld [vmem:[%s7342_s7 + $0xa0] sm:$0xf]  ;;  %v3997_v31 = vshrl.u32 %v7873_v7, 16 }
  0xfe   : > { %v2989_v27 = vrot.slane %v2987_v12, 4 }
  0xff   : > { %5809 = vmatmul.mubr.msk.bf16.gmra.mxu1 %vm840_vm2, %v9389_v29  ;;  %v7839_v29 = vsel %vm6590_vm6, %v5278_v33, %v2987_v12  ;;  %v3962_v33 = vshrl.u32 %v7821_v9, 16  ;;  %v7857_v12 = vpop.f32.mrf.mxu1  ;;  %9397 = vst [vmem:[#allocation41_spill] sm:$0xff] %v7867_v61  ;;  %9401 = vst [vmem:[#allocation44_spill] sm:$0xff] %v7885_v35  ;;  %v4006_v35 = vshll.u32 %v7888_v13, 16 }
 0x100   : > { %5812 = vmatprep.mubr.msk.bf16.mxu1 %vm840_vm2, %v9392_v14  ;;  %v2969_v14 = vrot.slane %v9394_v2, 5  ;;  %v7855_v63 = vsel %vm6590_vm6, %v2989_v27, %v2990_v18  ;;  %9396 = vst [vmem:[#allocation40_spill] sm:$0xff] %v7857_v12  ;;  %v7861_v2 = vsel %vm6590_vm6, %v5274_v21, %v2959_v59  ;;  %v9398_v27 = vcombine.low %v7606_v32, %v7609_v19  ;;  %v7881_v59 = vpop.f32.mrf.mxu0 }
 0x101   : > { %9399 = vst [vmem:[#allocation42_spill] sm:$0xff] %v7881_v59  ;;  %v7883_v21 = vrot.slane %v3952_v40, 5  ;;  %v4000_v12 = vshll.u32 %v7873_v7, 16  ;;  %v9402_v18 = vcombine.low %v7655_v46, %v7672_v56  ;;  %v7899_v40 = vsel %vm6590_vm6, %v5275_v36, %v2966_v44 }
 0x102   : > { %v7903_v0 = vsel %vm6590_vm6, %v2968_v17, %v2969_v14  ;;  %v7908_v61 = vrot.slane %v3962_v33, 4  ;;  %v9404_v44 = vcombine.low %v7634_v41, %v7642_v42  ;;  %v7930_v41 = vpop.f32.mrf.mxu0  ;;  %v7936_v14 = vrot.slane %v3997_v31, 4  ;;  %v7944_v17 = vld [vmem:[%s7342_s7 + $0xb4] sm:$0xf] }
 0x103   : > { %5849 = vmatmul.mubr.msk.bf16.gmra.mxu0 %vm840_vm2, %v9398_v27  ;;  %9400 = vst [vmem:[#allocation43_spill] sm:$0xff] %v7883_v21  ;;  %v4010_v27 = vshrl.u32 %v7888_v13, 16  ;;  %v7924_v21 = vld [vmem:[%s7342_s7 + $0xa8] sm:$0xf]  ;;  %9407 = vst [vmem:[#allocation47_spill] sm:$0xff] %v7930_v41  ;;  %v7938_v33 = vrot.slane %v4000_v12, 5  ;;  %v9416_v12 = vcombine.low %v7681_v30, %v7693_v23 }
 0x104   : > { %5852 = vmatprep.mubr.msk.bf16.mxu0 %vm840_vm2, %v9402_v18  ;;  %9403 = vst [vmem:[#allocation45_spill] sm:$0xff] %v7908_v61  ;;  %v7916_v36 = vpop.f32.mrf.mxu1  ;;  %v9406_v61 = vcombine.low %v7685_v22, %v7689_v43  ;;  %9408 = vst [vmem:[#allocation48_spill] sm:$0xff] %v7936_v14  ;;  %v7941_v18 = vld [vmem:[%s7342_s7 + $0xac] sm:$0xf]  ;;  %v7946_v22 = vrot.slane %v4006_v35, 5  ;;  %v9413_v42 = vshll.u32 %v7378_v38, 16 }
 0x105   : > { %9405 = vst [vmem:[#allocation46_spill] sm:$0xff] %v7916_v36  ;;  %9409 = vst [vmem:[#allocation49_spill] sm:$0xff] %v7938_v33  ;;  %v7949_v43 = vld [vmem:[%s7342_s7 + $0xb8] sm:$0xf]  ;;  %v3694_v31 = vshll.u32 %v7381_v26, 16  ;;  %v4392_v35 = vrot.slane %v7381_v26, 5  ;;  %v7973_v33 = vpop.f32.mrf.mxu0 }
 0x106   : > { %9410 = vst [vmem:[#allocation50_spill] sm:$0xff] %v7944_v17  ;;  %9411 = vst [vmem:[#allocation51_spill] sm:$0xff] %v7946_v22  ;;  %v3690_v41 = vrot.slane %v9413_v42, 5  ;;  %v7961_v22 = vpop.f32.mrf.mxu1  ;;  %v4045_v59 = vshrl.u32 %v7944_v17, 16  ;;  %v4048_v14 = vshll.u32 %v7944_v17, 16  ;;  %v9418_v42 = vcombine.low %v7728_v15, %v7744_v16 }
 0x107   : > { %5813 = vmatmul.mubr.msk.bf16.gmra.mxu1 %vm840_vm2, %v9404_v44  ;;  %v7956_v44 = vrot.slane %v4010_v27, 4  ;;  %9415 = vst [vmem:[#allocation53_spill] sm:$0xff] %v7961_v22  ;;  %v3303_v27 = vld [vmem:[%s7342_s7 + $0x14] sm:$0x1]  ;;  %9417 = vst [vmem:[#allocation54_spill] sm:$0xff] %v7973_v33  ;;  %v4054_v30 = vshll.u32 %v7949_v43, 16  ;;  %v8007_v37 = vpop.f32.mrf.mxu0 }
 0x108   : > { %5816 = vmatprep.mubr.msk.bf16.mxu1 %vm840_vm2, %v9406_v61  ;;  %v9412_v61 = vshrl.u32 %v7378_v38, 16  ;;  %v3300_v23 = vld [vmem:[%s7342_s7 + $0x8] sm:$0x1]  ;;  %v7986_v5 = vrot.slane %v3694_v31, 5  ;;  %v5393_v22 = vrot.slane %v7378_v38, 9  ;;  %v4394_v25 = vrot.slane %v4392_v35, 4 }
 0x109   : > { %9414 = vst [vmem:[#allocation52_spill] sm:$0xff] %v7956_v44  ;;  %v9419_v44 = vshrl.u32 %v7381_v26, 16  ;;  %v4395_v28 = vrot.slane %v3300_v23, 5  ;;  %v3728_v48 = vshll.u32 %v3303_v27, 16  ;;  %v7997_v15 = vrot.slane %v4045_v59, 4  ;;  %9426 = vst [vmem:[#allocation57_spill] sm:$0xff] %v8007_v37 }
 0x10a   : > { %v3687_v36 = vrot.slane %v9412_v61, 4  ;;  %v3742_v61 = vshll.u32 %v7435_v39, 16  ;;  %v9425_v31 = vcombine.low %v7769_v57, %v7800_v1  ;;  %v4058_v8 = vshrl.u32 %v7949_v43, 16  ;;  %v3306_v1 = vld [vmem:[%s7342_s7 + $0x20] sm:$0x1] }
 0x10b   : > { %5853 = vmatmul.mubr.msk.bf16.gmra.mxu0 %vm840_vm2, %v9416_v12  ;;  %v3700_v33 = vrot.slane %v9419_v44, 4  ;;  %9422 = vst [vmem:[#allocation56_spill] sm:$0xff] %v7997_v15  ;;  %v9424_v44 = vshll.u32 %v7432_v62, 16  ;;  %v3704_v57 = vshll.u32 %v3300_v23, 16 }
 0x10c   : > { %5856 = vmatprep.mubr.msk.bf16.mxu0 %vm840_vm2, %v9418_v42  ;;  %v3691_v12 = vor.u32 %v3690_v41, %v3687_v36  ;;  %v7995_v42 = vpop.f32.mrf.mxu1  ;;  %v4402_v36 = vrot.slane %v3303_v27, 5  ;;  %v9423_v41 = vshrl.u32 %v7432_v62, 16  ;;  %v8012_v59 = vrot.slane %v3742_v61, 5 }
 0x10d   : > { %9421 = vst [vmem:[#allocation55_spill] sm:$0xff] %v7995_v42  ;;  %v3738_v38 = vrot.slane %v9424_v44, 5  ;;  %v9428_v27 = vshrl.u32 %v7435_v39, 16  ;;  %v3701_v44 = vor.u32 %v3700_v33, %v7986_v5  ;;  %v8029_v61 = vsel %vm6590_vm6, %v4394_v25, %v4395_v28  ;;  %v9435_v33 = vld [vmem:[#allocation18_spill] sm:$0xff] }
 0x10e   : > { %v3735_v26 = vrot.slane %v9423_v41, 4  ;;  %v8016_v41 = vrot.slane %v4054_v30, 5  ;;  %v8018_v15 = vrot.slane %v3691_v12, 4  ;;  %v9431_v30 = vld [vmem:[#allocation10_spill] sm:$0xff]  ;;  %v4406_v28 = vrot.slane %v7435_v39, 5 }
 0x10f   : > { %5817 = vmatmul.mubr.msk.bf16.gmra.mxu1 %vm840_vm2, %v9420_v34  ;;  %v8009_v34 = vrot.slane %v4048_v14, 5  ;;  %v3748_v42 = vrot.slane %v9428_v27, 4  ;;  %v8025_v14 = vsel %vm6590_vm6, %v5393_v22, %v4392_v35  ;;  %v8031_v27 = vpop.f32.mrf.mxu1  ;;  %v9432_v12 = vrot.slane %v9431_v30, 5  ;;  %v9438_v30 = vld [vmem:[#allocation12_spill] sm:$0xff] }
 0x110   : > { %5820 = vmatprep.mubr.msk.bf16.mxu1 %vm840_vm2, %v9425_v31  ;;  %9429 = vst [vmem:[#allocation59_spill] sm:$0xff] %v8016_v41  ;;  %9430 = vst [vmem:[#allocation60_spill] sm:$0xff] %v8031_v27  ;;  %v9433_v41 = vld [vmem:[#allocation29_spill] sm:$0xff]  ;;  %v8044_v22 = vsel %vm6590_vm6, %v9435_v33, %v4402_v36  ;;  %v3739_v35 = vor.u32 %v3738_v38, %v3735_v26  ;;  %v3752_v33 = vshll.u32 %v3306_v1, 16  ;;  %v3702_v38 = vrot.slane %v3701_v44, 4 }
 0x111   : > { %9427 = vst [vmem:[#allocation58_spill] sm:$0xff] %v8009_v34  ;;  %v3730_v34 = vrot.slane %v3728_v48, 5  ;;  %v9434_v37 = vrot.slane %v9433_v41, 9  ;;  %v9436_v48 = vcombine.low %v7806_v55, %v7821_v9  ;;  %v8051_v25 = vpop.f32.mrf.mxu0  ;;  %v8053_v41 = vrot.slane %v4058_v8, 4  ;;  %v3309_v27 = vld [vmem:[%s7342_s7 + $0x2c] sm:$0x1] }
 0x112   : > { %v3749_v36 = vor.u32 %v3748_v42, %v8012_v59  ;;  %v9441_v39 = vcombine.low %v7851_v24, %v7870_v51  ;;  %v3697_v26 = vsel %vm6301_vm3, %v8018_v15, %v7986_v5  ;;  %v3706_v8 = vrot.slane %v3704_v57, 5  ;;  %v9445_v55 = vld [vmem:[#allocation11_spill] sm:$0xff] }
 0x113   : > { %v8039_v23 = vsel %vm6590_vm6, %v9434_v37, %v9432_v12  ;;  %5857 = vmatmul.mubr.msk.bf16.gmra.mxu0 %vm840_vm2, %v9436_v48  ;;  %9437 = vst [vmem:[#allocation10_spill] sm:$0xff] %v8053_v41  ;;  %v9439_v37 = vld [vmem:[#allocation30_spill] sm:$0xff]  ;;  %v3790_v41 = vshll.u32 %v7511_v53, 16  ;;  %v9443_v15 = vcombine.low %v7861_v2, %v7865_v50  ;;  %v3740_v44 = vrot.slane %v3739_v35, 4  ;;  %v9449_v2 = vld [vmem:[#allocation8_spill] sm:$0xff] }
 0x114   : > { %v3721_v31 = vsel %vm6301_vm3, %v9439_v37, %v9438_v30  ;;  %5860 = vmatprep.mubr.msk.bf16.mxu0 %vm840_vm2, %v9441_v39  ;;  %v9442_v30 = vld [vmem:[#allocation13_spill] sm:$0xff]  ;;  %v5395_v39 = vrot.slane %v7432_v62, 9  ;;  %v4408_v57 = vrot.slane %v4406_v28, 4  ;;  %v4409_v48 = vrot.slane %v3306_v1, 5  ;;  %v8090_v62 = vpop.f32.mrf.mxu0 }
 0x115   : > { %v3731_v42 = vsel %vm6301_vm3, %v9442_v30, %v3730_v34  ;;  %v9446_v34 = vld [vmem:[#allocation15_spill] sm:$0xff]  ;;  %v9447_v37 = vcombine.low %v7899_v40, %v7903_v0  ;;  %9448 = vst [vmem:[#allocation18_spill] sm:$0xff] %v8090_v62  ;;  %v3750_v9 = vrot.slane %v3749_v36, 4  ;;  %v3754_v50 = vrot.slane %v3752_v33, 5  ;;  %v3312_v36 = vld [vmem:[%s7342_s7 + $0x38] sm:$0x1] }
 0x116   : > { %v8082_v5 = vpop.f32.mrf.mxu1  ;;  %v3763_v30 = vor.u32 %v9446_v34, %v9445_v55  ;;  %v3707_v35 = vsel %vm6301_vm3, %v3702_v38, %v3706_v8  ;;  %v8096_v1 = vcombine.low %v3721_v31, %v3731_v42  ;;  %v9451_v55 = vshrl.u32 %v7508_v11, 16 }
 0x117   : > { %5821 = vmatmul.mubr.msk.bf16.gmra.mxu1 %vm840_vm2, %v9443_v15  ;;  %9444 = vst [vmem:[#allocation29_spill] sm:$0xff] %v8082_v5  ;;  %v9450_v15 = vld [vmem:[#allocation14_spill] sm:$0xff]  ;;  %v3776_v5 = vshll.u32 %v3309_v27, 16  ;;  %v9452_v40 = vshll.u32 %v7508_v11, 16  ;;  %v8107_v33 = vrot.slane %v3790_v41, 5  ;;  %v4420_v38 = vrot.slane %v7511_v53, 5 }
 0x118   : > { %5824 = vmatprep.mubr.msk.bf16.mxu1 %vm840_vm2, %v9447_v37  ;;  %v3773_v24 = vor.u32 %v9450_v15, %v9449_v2  ;;  %v3783_v34 = vrot.slane %v9451_v55, 4  ;;  %v8104_v37 = vsel %vm6590_vm6, %v5395_v39, %v4406_v28  ;;  %v9453_v15 = vshrl.u32 %v7511_v53, 16  ;;  %v8112_v31 = vpop.f32.mrf.mxu1  ;;  %v8127_v53 = vpop.f32.mrf.mxu0 }
 0x119   : > { %v3786_v0 = vrot.slane %v9452_v40, 5  ;;  %9454 = vst [vmem:[#allocation12_spill] sm:$0xff] %v8112_v31  ;;  %v3745_v8 = vsel %vm6301_vm3, %v3740_v44, %v8012_v59  ;;  %v8119_v42 = vsel %vm6590_vm6, %v4408_v57, %v4409_v48  ;;  %v3764_v28 = vrot.slane %v3763_v30, 4 }
 0x11a   : > { %v3796_v62 = vrot.slane %v9453_v15, 4  ;;  %v9455_v39 = vrot.slane %v7470_v60, 5  ;;  %v9456_v55 = vcombine.low %v7873_v7, %v7888_v13  ;;  %v3755_v40 = vsel %vm6301_vm3, %v3750_v9, %v3754_v50  ;;  %v8149_v60 = vpop.f32.mrf.mxu1 }
 0x11b   : > { %v3774_v15 = vrot.slane %v3773_v24, 4  ;;  %v3778_v59 = vrot.slane %v3776_v5, 5  ;;  %v4416_v44 = vrot.slane %v3309_v27, 5  ;;  %v9457_v48 = vcombine.low %v7924_v21, %v7941_v18  ;;  %9461 = vst [vmem:[#allocation30_spill] sm:$0xff] %v8149_v60 }
 0x11c   : > { %v4415_v41 = vrot.slane %v9455_v39, 4  ;;  %5861 = vmatmul.mubr.msk.bf16.gmra.mxu0 %vm840_vm2, %v9456_v55  ;;  %v5359_v57 = vcombine.low %v3697_v26, %v3707_v35  ;;  %v9458_v30 = vmov %v9455_v39  ;;  %v9459_v39 = vrot.slane %v7463_v49, 9  ;;  %v3315_v35 = vld [vmem:[%s7342_s7 + $0x44] sm:$0x1] }
 0x11d   : > { %5864 = vmatprep.mubr.msk.bf16.mxu0 %vm840_vm2, %v9457_v48  ;;  %v3787_v31 = vor.u32 %v3786_v0, %v3783_v34  ;;  %v3800_v9 = vshll.u32 %v3312_v36, 16  ;;  %v3797_v24 = vor.u32 %v3796_v62, %v8107_v33  ;;  %v5397_v27 = vrot.slane %v7508_v11, 9  ;;  %v8160_v34 = vpop.f32.mrf.mxu0 }
 0x11e   : > { %v8141_v55 = vsel %vm6590_vm6, %v9459_v39, %v9458_v30  ;;  %v4422_v5 = vrot.slane %v4420_v38, 4  ;;  %v4423_v50 = vrot.slane %v3312_v36, 5  ;;  %v9460_v48 = vcombine.low %v7763_v4, %v7781_v20  ;;  %v9463_v36 = vld [vmem:[#allocation17_spill] sm:$0xff] }
 0x11f   : > { %v8151_v49 = vcombine.low %v3745_v8, %v3755_v40  ;;  %v3769_v62 = vsel %vm6301_vm3, %v3764_v28, %v9449_v2  ;;  %v3838_v11 = vshll.u32 %v7587_v6, 16  ;;  %v9462_v20 = vcombine.low %v7810_v47, %v7835_v10  ;;  %v9464_v2 = vld [vmem:[#allocation16_spill] sm:$0xff]  ;;  %v9465_v28 = vld [vmem:[#allocation6_spill] sm:$0xff]  ;;  %v9466_v40 = vld [vmem:[#allocation9_spill] sm:$0xff] }
 0x120   : > { %5825 = vmatmul.mubr.msk.bf16.gmra.mxu1 %vm840_vm2, %v9460_v48  ;;  %v3779_v4 = vsel %vm6301_vm3, %v3774_v15, %v3778_v59  ;;  %v8170_v0 = vsel %vm6590_vm6, %v4415_v41, %v4416_v44  ;;  %v3811_v8 = vor.u32 %v9464_v2, %v9463_v36  ;;  %v3821_v30 = vor.u32 %v9466_v40, %v9465_v28  ;;  %v8188_v44 = vpop.f32.mrf.mxu1  ;;  %v3318_v36 = vld [vmem:[%s7342_s7 + $0x50] sm:$0x1] }
 0x121   : > { %5828 = vmatprep.mubr.msk.bf16.mxu1 %vm840_vm2, %v9462_v20  ;;  %v3788_v39 = vrot.slane %v3787_v31, 4  ;;  %v3802_v48 = vrot.slane %v3800_v9, 5  ;;  %v9467_v47 = vshrl.u32 %v7570_v45, 16  ;;  %v9468_v20 = vshll.u32 %v7570_v45, 16  ;;  %9469 = vst [vmem:[#allocation5_spill] sm:$0xff] %v8188_v44 }
 0x122   : > { %v3798_v60 = vrot.slane %v3797_v24, 4  ;;  %v8182_v41 = vsel %vm6590_vm6, %v5397_v27, %v4420_v38  ;;  %v8186_v15 = vsel %vm6590_vm6, %v4422_v5, %v4423_v50  ;;  %v3824_v59 = vshll.u32 %v3315_v35, 16 }
 0x123   : > { %v3831_v10 = vrot.slane %v9467_v47, 4  ;;  %v3834_v26 = vrot.slane %v9468_v20, 5  ;;  %v8190_v31 = vcombine.low %v3769_v62, %v3779_v4  ;;  %v8195_v2 = vrot.slane %v3838_v11, 5  ;;  %v8199_v38 = vpop.f32.mrf.mxu0  ;;  %v8215_v20 = vld [vmem:[%s7342_s7 + $0x5c] sm:$0x1] }
 0x124   : > { %v9470_v24 = vshrl.u32 %v7587_v6, 16  ;;  %v9471_v27 = vcombine.low %v7944_v17, %v7949_v43  ;;  %v3812_v5 = vrot.slane %v3811_v8, 4  ;;  %v3822_v50 = vrot.slane %v3821_v30, 4 }
 0x125   : > { %v9472_v62 = vrot.slane %v7532_v58, 5  ;;  %v9473_v4 = vrot.slane %v7523_v54, 9  ;;  %v4434_v47 = vrot.slane %v7587_v6, 5  ;;  %v3793_v8 = vsel %vm6301_vm3, %v3788_v39, %v8107_v33  ;;  %v9478_v58 = vld [vmem:[#allocation7_spill] sm:$0xff] }
 0x126   : > { %v3844_v40 = vrot.slane %v9470_v24, 4  ;;  %5865 = vmatmul.mubr.msk.bf16.gmra.mxu0 %vm840_vm2, %v9471_v27  ;;  %v9474_v24 = vcombine.low %v8025_v14, %v8029_v61  ;;  %v3803_v6 = vsel %vm6301_vm3, %v3798_v60, %v3802_v48  ;;  %v3826_v9 = vrot.slane %v3824_v59, 5 }
 0x127   : > { %v8211_v11 = vsel %vm6590_vm6, %v9473_v4, %v9472_v62  ;;  %v9475_v30 = vmov %v9472_v62  ;;  %v3835_v62 = vor.u32 %v3834_v26, %v3831_v10  ;;  %v8228_v4 = vpop.f32.mrf.mxu0  ;;  %v4430_v14 = vrot.slane %v3315_v35, 5  ;;  %v9479_v10 = vld [vmem:[#allocation21_spill] sm:$0xff] }
 0x128   : > { %5908 = vmatprep.mubr.msk.bf16.mxu0 %vm840_vm2, %v9474_v24  ;;  %v4429_v27 = vrot.slane %v9475_v30, 4  ;;  %v3848_v61 = vshll.u32 %v3318_v36, 16  ;;  %v8232_v24 = vpop.f32.mrf.mxu1  ;;  %v9477_v33 = vcombine.low %v7839_v29, %v7855_v63  ;;  %v3845_v39 = vor.u32 %v3844_v40, %v8195_v2  ;;  %v9480_v30 = vld [vmem:[#allocation20_spill] sm:$0xff]  ;;  %v9567_v12 = vld [vmem:[#allocation5_spill] sm:$0xff] }
 0x129   : > { %9476 = vst [vmem:[#allocation13_spill] sm:$0xff] %v8232_v24  ;;  %v3859_v26 = vor.u32 %v9478_v58, %v7665_v52  ;;  %v3869_v54 = vor.u32 %v9480_v30, %v9479_v10  ;;  %v3872_v60 = vshll.u32 %v8215_v20, 16  ;;  %v8244_v48 = vpop.f32.mrf.mxu0  ;;  %v3817_v29 = vsel %vm6301_vm3, %v3812_v5, %v9465_v28 }
 0x12a   : > { %5829 = vmatmul.mubr.msk.bf16.gmra.mxu1 %vm840_vm2, %v9477_v33  ;;  %v5399_v63 = vrot.slane %v7570_v45, 9  ;;  %v4436_v35 = vrot.slane %v4434_v47, 4  ;;  %v4437_v59 = vrot.slane %v3318_v36, 5  ;;  %v8251_v40 = vpop.f32.mrf.mxu1  ;;  %v8253_v52 = vcombine.low %v3793_v8, %v3803_v6 }
 0x12b   : > { %5872 = vmatprep.mubr.msk.bf16.mxu1 %vm840_vm2, %v5359_v57  ;;  %9481 = vst [vmem:[#allocation11_spill] sm:$0xff] %v8251_v40  ;;  %v3836_v33 = vrot.slane %v3835_v62, 4  ;;  %v9482_v58 = vshrl.u32 %v7655_v46, 16  ;;  %v9483_v24 = vshll.u32 %v7655_v46, 16  ;;  %v8259_v57 = vpop.f32.mrf.mxu0  ;;  %v3827_v28 = vsel %vm6301_vm3, %v3822_v50, %v3826_v9 }
 0x12c   : > { %v8265_v45 = vsel %vm6590_vm6, %v4429_v27, %v4430_v14  ;;  %v3850_v36 = vrot.slane %v3848_v61, 5  ;;  %v3886_v5 = vshll.u32 %v7672_v56, 16  ;;  %v8268_v8 = vpop.f32.mrf.mxu1  ;;  %v3846_v62 = vrot.slane %v3845_v39, 4  ;;  %v3324_v39 = vld [vmem:[%s7342_s7 + $0x68] sm:$0x1] }
 0x12d   : > { %v3879_v30 = vrot.slane %v9482_v58, 4  ;;  %v3882_v44 = vrot.slane %v9483_v24, 5  ;;  %v3860_v6 = vrot.slane %v3859_v26, 4  ;;  %v3870_v58 = vrot.slane %v3869_v54, 4  ;;  %v5694_v24 = vpop.f32.mrf.mxu0 }
 0x12e   : > { %v3874_v40 = vrot.slane %v3872_v60, 5  ;;  %v9484_v17 = vcombine.low %v8039_v23, %v8044_v22  ;;  %v8276_v9 = vsel %vm6590_vm6, %v5399_v63, %v4434_v47  ;;  %v8280_v50 = vsel %vm6590_vm6, %v4436_v35, %v4437_v59  ;;  %v8285_v61 = vpop.f32.mrf.mxu1 }
 0x12f   : > { %v9485_v27 = vrot.slane %v7609_v19, 5  ;;  %v4444_v54 = vrot.slane %v8215_v20, 5  ;;  %v9486_v23 = vcombine.low %v8104_v37, %v8119_v42  ;;  %v3841_v47 = vsel %vm6301_vm3, %v3836_v33, %v8195_v2  ;;  %v1629_v60 = vpop.f32.mrf.mxu0 }
 0x130   : > { %5909 = vmatmul.mubr.msk.bf16.vlgmr.msra.gmra.mxu0 %vm840_vm2, %v9484_v17  ;;  %v8291_v17 = vcombine.low %v3817_v29, %v3827_v28  ;;  %v3883_v26 = vor.u32 %v3882_v44, %v3879_v30  ;;  %v9488_v63 = vrot.slane %v7606_v32, 9  ;;  %v8307_v42 = vrot.slane %v3886_v5, 5  ;;  %v5658_v2 = vpop.f32.mrf.mxu1  ;;  %v9490_v30 = vld [vmem:[#allocation23_spill] sm:$0xff] }
 0x131   : > { %v4443_v14 = vrot.slane %v9485_v27, 4  ;;  %5912 = vmatprep.mubr.msk.bf16.mxu0 %vm840_vm2, %v9486_v23  ;;  %v9487_v20 = vmov %v9485_v27  ;;  %v9489_v29 = vshrl.u32 %v7672_v56, 16  ;;  %v4448_v59 = vrot.slane %v7672_v56, 5  ;;  %v5695_v56 = vpop.f32.mrf.mxu0 }
 0x132   : > { %v8305_v37 = vsel %vm6590_vm6, %v9488_v63, %v9487_v20  ;;  %5873 = vmatmul.mubr.msk.bf16.vlgmr.msra.gmra.mxu1 %vm840_vm2, %v8096_v1  ;;  %v3851_v19 = vsel %vm6301_vm3, %v3846_v62, %v3850_v36  ;;  %v3865_v44 = vsel %vm6301_vm3, %v3860_v6, %v9479_v10  ;;  %v3875_v33 = vsel %vm6301_vm3, %v3870_v58, %v3874_v40  ;;  %v8332_v62 = vld [vmem:[%s7342_s7 + $0x74] sm:$0x1]  ;;  %v1224_v27 = vpop.f32.mrf.mxu1  ;;  %v9492_v58 = vld [vmem:[#allocation32_spill] sm:$0xff]  ;;  %v9493_v20 = vld [vmem:[#allocation33_spill] sm:$0xff] }
 0x133   : > { %v3892_v35 = vrot.slane %v9489_v29, 4  ;;  %v1233_v28 = vadd.f32 %v5658_v2, %v9490_v30  ;;  %5876 = vmatprep.mubr.msk.bf16.mxu1 %vm840_vm2, %v8151_v49  ;;  %v8328_v1 = vsel %vm6590_vm6, %v4443_v14, %v4444_v54  ;;  %v3896_v36 = vshll.u32 %v3324_v39, 16  ;;  %v9491_v40 = vld [vmem:[#allocation19_spill] sm:$0xff]  ;;  %v9494_v63 = vld [vmem:[#allocation34_spill] sm:$0xff]  ;;  %v1632_v54 = vpop.f32.mrf.mxu0 }
 0x134   : > { %v5401_v5 = vrot.slane %v7655_v46, 9  ;;  %v8334_v10 = vrot.slane %v3883_v26, 4  ;;  %v4451_v6 = vrot.slane %v3324_v39, 5  ;;  %v3907_v23 = vor.u32 %v9492_v58, %v9491_v40  ;;  %v9495_v2 = vld [vmem:[#allocation35_spill] sm:$0xff]  ;;  %v5659_v32 = vpop.f32.mrf.mxu1 }
 0x135   : > { %v3917_v29 = vor.u32 %v9494_v63, %v9493_v20  ;;  %v8340_v49 = vadd.f32 %v5694_v24, %v1233_v28  ;;  %v1225_v14 = vadd.f32 %v1224_v27, %v9495_v2  ;;  %v3893_v30 = vor.u32 %v3892_v35, %v8307_v42  ;;  %v9497_v24 = vld [vmem:[#allocation36_spill] sm:$0xff]  ;;  %v5698_v63 = vpop.f32.mrf.mxu0 }
 0x136   : > { %v4450_v46 = vrot.slane %v4448_v59, 4  ;;  %v8344_v22 = vcombine.low %v3841_v47, %v3851_v19  ;;  %v8346_v26 = vcombine.low %v3865_v44, %v3875_v33  ;;  %v3920_v40 = vshll.u32 %v8332_v62, 16  ;;  %v1227_v19 = vpop.f32.mrf.mxu1 }
 0x137   : > { %v8351_v58 = vadd.f32 %v1629_v60, %v1225_v14  ;;  %v1236_v28 = vadd.f32 %v5659_v32, %v9497_v24  ;;  %v9498_v27 = vcombine.low %v8141_v55, %v8170_v0  ;;  %v3898_v35 = vrot.slane %v3896_v36, 5  ;;  %v9501_v36 = vld [vmem:[#allocation39_spill] sm:$0xff] }
 0x138   : > { %v3934_v47 = vshll.u32 %v7744_v16, 16  ;;  %v9499_v44 = vcombine.low %v8182_v41, %v8186_v15  ;;  %v3889_v60 = vsel %vm6301_vm3, %v8334_v10, %v8307_v42  ;;  %v8369_v55 = vsel %vm6590_vm6, %v5401_v5, %v4448_v59  ;;  %v1645_v41 = vpop.f32.mrf.mxu0  ;;  %v5662_v24 = vpop.f32.mrf.mxu1  ;;  %v9502_v59 = vld [vmem:[#allocation24_spill] sm:$0xff]  ;;  %v9504_v10 = vld [vmem:[#allocation22_spill] sm:$0xff] }
 0x139   : > { %9496 = vst [vmem:[#allocation15_spill] sm:$0xff] %v8351_v58  ;;  %5913 = vmatmul.mubr.msk.bf16.gmra.mxu0 %vm840_vm2, %v9498_v27  ;;  %v8371_v0 = vrot.slane %v3907_v23, 4  ;;  %v8373_v32 = vrot.slane %v3917_v29, 4  ;;  %v8375_v33 = vadd.f32 %v5695_v56, %v1236_v28  ;;  %v1228_v2 = vadd.f32 %v1227_v19, %v9501_v36  ;;  %v8395_v29 = vld [vmem:[%s7342_s7 + $0x80] sm:$0x1]  ;;  %v9519_v58 = vld [vmem:[#allocation43_spill] sm:$0xff] }
 0x13a   : > { %5916 = vmatprep.mubr.msk.bf16.mxu0 %vm840_vm2, %v9499_v44  ;;  %v3894_v15 = vrot.slane %v3893_v30, 4  ;;  %v8380_v14 = vsel %vm6590_vm6, %v4450_v46, %v4451_v6  ;;  %5877 = vmatmul.mubr.msk.bf16.gmra.mxu1 %vm840_vm2, %v8190_v31  ;;  %v8384_v42 = vrot.slane %v3920_v40, 5  ;;  %v9503_v5 = vrot.slane %v9502_v59, 5  ;;  %v9506_v30 = vld [vmem:[#allocation25_spill] sm:$0xff]  ;;  %v9510_v31 = vld [vmem:[#allocation42_spill] sm:$0xff]  ;;  %v5699_v44 = vpop.f32.mrf.mxu0 }
 0x13b   : > { %9500 = vst [vmem:[#allocation8_spill] sm:$0xff] %v8375_v33  ;;  %v9505_v23 = vrot.slane %v9504_v10, 9  ;;  %v9507_v28 = vshrl.u32 %v9506_v30, 16  ;;  %v9508_v46 = vshll.u32 %v9506_v30, 16  ;;  %v8401_v19 = vadd.f32 %v1632_v54, %v1228_v2  ;;  %5880 = vmatprep.mubr.msk.bf16.mxu1 %vm840_vm2, %v8253_v52 }
 0x13c   : > { %v1249_v40 = vadd.f32 %v5662_v24, %v9510_v31  ;;  %v8406_v36 = vrot.slane %v3934_v47, 5  ;;  %v9512_v2 = vrot.slane %v9502_v59, 5  ;;  %v9514_v47 = vld [vmem:[#allocation47_spill] sm:$0xff]  ;;  %v1648_v39 = vpop.f32.mrf.mxu0 }
 0x13d   : > { %v8392_v56 = vsel %vm6590_vm6, %v9505_v23, %v9503_v5  ;;  %v3927_v6 = vrot.slane %v9507_v28, 4  ;;  %v3930_v27 = vrot.slane %v9508_v46, 5  ;;  %9509 = vst [vmem:[#allocation14_spill] sm:$0xff] %v8401_v19  ;;  %v9511_v5 = vshrl.u32 %v7744_v16, 16  ;;  %v1240_v23 = vpop.f32.mrf.mxu1  ;;  %v8426_v19 = vld [vmem:[%s7342_s7 + $0x8c] sm:$0x1] }
 0x13e   : > { %v4457_v24 = vrot.slane %v9512_v2, 4  ;;  %v4458_v46 = vrot.slane %v8332_v62, 5  ;;  %v8419_v52 = vadd.f32 %v5698_v63, %v1249_v40  ;;  %v1241_v31 = vadd.f32 %v1240_v23, %v9514_v47  ;;  %v9516_v23 = vld [vmem:[#allocation54_spill] sm:$0xff] }
 0x13f   : > { %v3940_v10 = vrot.slane %v9511_v5, 4  ;;  %v3899_v5 = vsel %vm6301_vm3, %v3894_v15, %v3898_v35  ;;  %v3944_v28 = vshll.u32 %v8395_v29, 16  ;;  %v5663_v33 = vpop.f32.mrf.mxu1  ;;  %v3931_v2 = vor.u32 %v3930_v27, %v3927_v6  ;;  %v5702_v35 = vpop.f32.mrf.mxu0 }
 0x140   : > { %9513 = vst [vmem:[#allocation17_spill] sm:$0xff] %v8419_v52  ;;  %v5403_v62 = vrot.slane %v9506_v30, 9  ;;  %v4462_v63 = vrot.slane %v7744_v16, 5  ;;  %v8434_v40 = vadd.f32 %v1645_v41, %v1241_v31  ;;  %v1252_v47 = vadd.f32 %v5663_v33, %v9516_v23  ;;  %v9518_v52 = vld [vmem:[#allocation41_spill] sm:$0xff] }
 0x141   : > { %v9517_v15 = vcombine.low %v8211_v11, %v8265_v45  ;;  %v3941_v54 = vor.u32 %v3940_v10, %v8406_v36  ;;  %v3955_v59 = vor.u32 %v9519_v58, %v9518_v52  ;;  %v1243_v6 = vpop.f32.mrf.mxu1  ;;  %v9520_v30 = vcombine.low %v8276_v9, %v8280_v50  ;;  %v9521_v11 = vld [vmem:[#allocation44_spill] sm:$0xff]  ;;  %v9522_v45 = vld [vmem:[#allocation45_spill] sm:$0xff]  ;;  %v1661_v31 = vpop.f32.mrf.mxu0 }
 0x142   : > { %9515 = vst [vmem:[#allocation16_spill] sm:$0xff] %v8434_v40  ;;  %v8448_v16 = vcombine.low %v3889_v60, %v3899_v5  ;;  %v8452_v33 = vsel %vm6590_vm6, %v4457_v24, %v4458_v46  ;;  %v3965_v41 = vor.u32 %v9522_v45, %v9521_v11  ;;  %v3968_v27 = vshll.u32 %v8426_v19, 16  ;;  %v9524_v58 = vld [vmem:[#allocation57_spill] sm:$0xff]  ;;  %5881 = vmatmul.mubr.msk.bf16.gmra.mxu1 %vm840_vm2, %v8291_v17 }
 0x143   : > { %5917 = vmatmul.mubr.msk.bf16.gmra.mxu0 %vm840_vm2, %v9517_v15  ;;  %v8457_v10 = vadd.f32 %v5699_v44, %v1252_v47  ;;  %v1244_v52 = vadd.f32 %v1243_v6, %v9524_v58  ;;  %v3946_v23 = vrot.slane %v3944_v28, 5  ;;  %v4465_v9 = vrot.slane %v8395_v29, 5  ;;  %v5666_v50 = vpop.f32.mrf.mxu1  ;;  %v5703_v15 = vpop.f32.mrf.mxu0  ;;  %5884 = vmatprep.mubr.msk.bf16.mxu1 %vm840_vm2, %v8344_v22 }
 0x144   : > { %5920 = vmatprep.mubr.msk.bf16.mxu0 %vm840_vm2, %v9520_v30  ;;  %v3932_v60 = vrot.slane %v3931_v2, 4  ;;  %v8465_v24 = vsel %vm6590_vm6, %v5403_v62, %v4462_v63  ;;  %v4464_v46 = vrot.slane %v4462_v63, 4  ;;  %v3982_v5 = vshll.u32 %v7870_v51, 16  ;;  %v9526_v30 = vld [vmem:[#allocation28_spill] sm:$0xff] }
 0x145   : > { %9523 = vst [vmem:[#allocation6_spill] sm:$0xff] %v8457_v10  ;;  %v8468_v44 = vadd.f32 %v1648_v39, %v1244_v52  ;;  %v1265_v47 = vadd.f32 %v5666_v50, %v8051_v25  ;;  %v3942_v29 = vrot.slane %v3941_v54, 4  ;;  %v3956_v28 = vrot.slane %v3955_v59, 4  ;;  %v1256_v17 = vpop.f32.mrf.mxu1  ;;  %v9529_v52 = vld [vmem:[#allocation18_spill] sm:$0xff]  ;;  %v1664_v50 = vpop.f32.mrf.mxu0 }
 0x146   : > { %v3966_v2 = vrot.slane %v3965_v41, 4  ;;  %v3970_v6 = vrot.slane %v3968_v27, 5  ;;  %v9527_v62 = vshrl.u32 %v9526_v30, 16  ;;  %v9528_v63 = vshll.u32 %v9526_v30, 16  ;;  %v3336_v41 = vld [vmem:[%s7342_s7 + $0x98] sm:$0x1] }
 0x147   : > { %9525 = vst [vmem:[#allocation9_spill] sm:$0xff] %v8468_v44  ;;  %v8477_v39 = vadd.f32 %v5702_v35, %v1265_v47  ;;  %v1257_v25 = vadd.f32 %v1256_v17, %v9529_v52  ;;  %v9530_v44 = vld [vmem:[#allocation38_spill] sm:$0xff]  ;;  %v4472_v22 = vrot.slane %v8426_v19, 5  ;;  %v5667_v54 = vpop.f32.mrf.mxu1  ;;  %v3937_v59 = vsel %vm6301_vm3, %v3932_v60, %v8406_v36 }
 0x148   : > { %v3975_v45 = vrot.slane %v9527_v62, 4  ;;  %v3978_v58 = vrot.slane %v9528_v63, 5  ;;  %v9531_v10 = vrot.slane %v9530_v44, 5  ;;  %v8487_v27 = vrot.slane %v3982_v5, 5 }
 0x149   : > { %v9532_v62 = vshrl.u32 %v7870_v51, 16  ;;  %v4476_v47 = vrot.slane %v7870_v51, 5  ;;  %v8492_v17 = vadd.f32 %v1661_v31, %v1257_v25  ;;  %v1268_v63 = vadd.f32 %v5667_v54, %v8127_v53  ;;  %v1259_v5 = vpop.f32.mrf.mxu1  ;;  %v9536_v31 = vld [vmem:[#allocation27_spill] sm:$0xff] }
 0x14a   : > { %v4471_v40 = vrot.slane %v9531_v10, 4  ;;  %v5706_v10 = vpop.f32.mrf.mxu0  ;;  %v9533_v19 = vcombine.low %v8305_v37, %v8328_v1  ;;  %v3947_v36 = vsel %vm6301_vm3, %v3942_v29, %v3946_v23  ;;  %v4466_v60 = vsel %vm6590_vm6, %v4464_v46, %v4465_v9  ;;  %5885 = vmatmul.mubr.msk.bf16.gmra.mxu1 %vm840_vm2, %v8346_v26 }
 0x14b   : > { %v3988_v35 = vrot.slane %v9532_v62, 4  ;;  %v9534_v51 = vcombine.low %v8369_v55, %v8380_v14  ;;  %v3961_v53 = vsel %vm6301_vm3, %v3956_v28, %v9521_v11  ;;  %v3971_v37 = vsel %vm6301_vm3, %v3966_v2, %v3970_v6  ;;  %v5670_v2 = vpop.f32.mrf.mxu1  ;;  %5888 = vmatprep.mubr.msk.bf16.mxu1 %vm840_vm2, %v8448_v16 }
 0x14c   : > { %5921 = vmatmul.mubr.msk.bf16.gmra.mxu0 %vm840_vm2, %v9533_v19  ;;  %v9535_v1 = vrot.slane %v9530_v44, 5  ;;  %v9537_v23 = vrot.slane %v9536_v31, 9  ;;  %v3979_v46 = vor.u32 %v3978_v58, %v3975_v45  ;;  %v8520_v29 = vadd.f32 %v5703_v15, %v1268_v63  ;;  %v1677_v14 = vpop.f32.mrf.mxu0 }
 0x14d   : > { %5924 = vmatprep.mubr.msk.bf16.mxu0 %vm840_vm2, %v9534_v51  ;;  %v1260_v55 = vadd.f32 %v1259_v5, %v8160_v34  ;;  %v8525_v11 = vsel %vm6590_vm6, %v4471_v40, %v4472_v22  ;;  %v3992_v28 = vshll.u32 %v3336_v41, 16  ;;  %v3989_v44 = vor.u32 %v3988_v35, %v8487_v27 }
 0x14e   : > { %v8518_v9 = vsel %vm6590_vm6, %v9537_v23, %v9535_v1  ;;  %v5405_v6 = vrot.slane %v9526_v30, 9  ;;  %v4478_v52 = vrot.slane %v4476_v47, 4  ;;  %v4479_v45 = vrot.slane %v3336_v41, 5  ;;  %v5707_v58 = vpop.f32.mrf.mxu0 }
 0x14f   : > { %v8531_v15 = vadd.f32 %v1664_v50, %v1260_v55  ;;  %v1281_v34 = vadd.f32 %v5670_v2, %v8199_v38  ;;  %v9538_v40 = vsel %vm6301_vm3, %v8373_v32, %v8384_v42  ;;  %v9539_v26 = vsel %vm6301_vm3, %v8371_v0, %v9493_v20  ;;  %v1272_v50 = vpop.f32.mrf.mxu1  ;;  %v3342_v2 = vld [vmem:[%s7342_s7 + $0xb0] sm:$0x1] }
 0x150   : > { %v5368_v30 = vcombine.low %v9539_v26, %v9538_v40  ;;  %v5422_v25 = vcombine.low %v8392_v56, %v8452_v33  ;;  %v5369_v38 = vcombine.low %v3937_v59, %v3947_v36  ;;  %v5423_v22 = vcombine.low %v8465_v24, %v4466_v60  ;;  %v1680_v42 = vpop.f32.mrf.mxu0 }
 0x151   : > { %v3980_v54 = vrot.slane %v3979_v46, 4  ;;  %v4030_v16 = vshll.u32 %v7941_v18, 16  ;;  %v8550_v41 = vadd.f32 %v5706_v10, %v1281_v34  ;;  %v1273_v32 = vadd.f32 %v1272_v50, %v8228_v4  ;;  %v5671_v0 = vpop.f32.mrf.mxu1  ;;  %v3339_v10 = vld [vmem:[%s7342_s7 + $0xa4] sm:$0x1] }
 0x152   : > { %v8553_v62 = vcombine.low %v3961_v53, %v3971_v37  ;;  %v5424_v20 = vcombine.low %v8518_v9, %v8525_v11  ;;  %v3990_v56 = vrot.slane %v3989_v44, 4  ;;  %v3994_v33 = vrot.slane %v3992_v28, 5  ;;  %v5710_v4 = vpop.f32.mrf.mxu0  ;;  %v9542_v53 = vld [vmem:[#allocation48_spill] sm:$0xff]  ;;  %5889 = vmatmul.mubr.msk.bf16.gmra.mxu1 %vm840_vm2, %v5368_v30 }
 0x153   : > { %v4477_v24 = vsel %vm6590_vm6, %v5405_v6, %v4476_v47  ;;  %v4480_v59 = vsel %vm6590_vm6, %v4478_v52, %v4479_v45  ;;  %v8561_v35 = vadd.f32 %v1677_v14, %v1273_v32  ;;  %v1284_v63 = vadd.f32 %v5671_v0, %v8244_v48  ;;  %v1275_v51 = vpop.f32.mrf.mxu1  ;;  %v9543_v48 = vld [vmem:[#allocation49_spill] sm:$0xff]  ;;  %v9545_v14 = vld [vmem:[#allocation51_spill] sm:$0xff]  ;;  %v9546_v11 = vld [vmem:[#allocation52_spill] sm:$0xff]  ;;  %5892 = vmatprep.mubr.msk.bf16.mxu1 %vm840_vm2, %v5369_v38 }
 0x154   : > { %5925 = vmatmul.mubr.msk.bf16.gmra.mxu0 %vm840_vm2, %v5422_v25  ;;  %v9540_v19 = vshrl.u32 %v7924_v21, 16  ;;  %v9541_v60 = vshll.u32 %v7924_v21, 16  ;;  %v3985_v47 = vsel %vm6301_vm3, %v3980_v54, %v8487_v27  ;;  %v4003_v37 = vor.u32 %v9543_v48, %v9542_v53  ;;  %v1693_v55 = vpop.f32.mrf.mxu0 }
 0x155   : > { %5928 = vmatprep.mubr.msk.bf16.mxu0 %vm840_vm2, %v5423_v22  ;;  %v8576_v1 = vrot.slane %v4030_v16, 5  ;;  %v9544_v31 = vshrl.u32 %v7941_v18, 16  ;;  %v8580_v9 = vadd.f32 %v5707_v58, %v1284_v63  ;;  %v1276_v46 = vadd.f32 %v1275_v51, %v8259_v57  ;;  %v5674_v27 = vpop.f32.mrf.mxu1  ;;  %v9548_v57 = vld [vmem:[#allocation31_spill] sm:$0xff] }
 0x156   : > { %v4023_v36 = vrot.slane %v9540_v19, 4  ;;  %v4026_v5 = vrot.slane %v9541_v60, 5  ;;  %v4013_v28 = vor.u32 %v9546_v11, %v9545_v14  ;;  %v4490_v44 = vrot.slane %v7941_v18, 5  ;;  %v5711_v25 = vpop.f32.mrf.mxu0  ;;  %v9553_v11 = vld [vmem:[#allocation40_spill] sm:$0xff] }
 0x157   : > { %v4036_v23 = vrot.slane %v9544_v31, 4  ;;  %v3995_v6 = vsel %vm6301_vm3, %v3990_v56, %v3994_v33  ;;  %v5425_v52 = vcombine.low %v4477_v24, %v4480_v59  ;;  %v4016_v45 = vshll.u32 %v3339_v10, 16  ;;  %v1288_v22 = vpop.f32.mrf.mxu1  ;;  %v9549_v56 = vld [vmem:[#allocation26_spill] sm:$0xff] }
 0x158   : > { %v9547_v34 = vrot.slane %v7888_v13, 5  ;;  %v8592_v40 = vadd.f32 %v1680_v42, %v1276_v46  ;;  %v1297_v26 = vadd.f32 %v5674_v27, %v9548_v57  ;;  %v4486_v50 = vrot.slane %v3339_v10, 5  ;;  %v1696_v42 = vpop.f32.mrf.mxu0  ;;  %v3345_v46 = vld [vmem:[%s7342_s7 + $0xbc] sm:$0x1]  ;;  %v9557_v57 = vld [vmem:[#allocation10_spill] sm:$0xff]  ;;  %s6070_s7 = scalar_lea.vmem %s9115_s17, 4096 }
 0x159   : > { %v4027_v18 = vor.u32 %v4026_v5, %v4023_v36  ;;  %v4004_v54 = vrot.slane %v4003_v37, 4  ;;  %v4037_v30 = vor.u32 %v4036_v23, %v8576_v1  ;;  %v4040_v16 = vshll.u32 %v3342_v2, 16  ;;  %v5675_v63 = vpop.f32.mrf.mxu1  ;;  %p6071_p12 = scmp.ne.s32.totalorder %s9115_s17, %s6070_s7  ;;  %p6078_p2 = scmp.lt.s32.totalorder %s6076_s9, %s6070_s7 }
 0x15a   : > { %v4485_v58 = vrot.slane %v9547_v34, 4  ;;  %v5407_v32 = vrot.slane %v7924_v21, 9  ;;  %v8598_v0 = vadd.f32 %v5710_v4, %v1297_v26  ;;  %v1289_v33 = vadd.f32 %v1288_v22, %v9549_v56  ;;  %v9552_v4 = vld [vmem:[#allocation37_spill] sm:$0xff]  ;;  %v5714_v53 = vpop.f32.mrf.mxu0  ;;  %5893 = vmatmul.mubr.msk.bf16.gmra.mxu1 %vm840_vm2, %v8553_v62 }
 0x15b   : > { %v4492_v24 = vrot.slane %v4490_v44, 4  ;;  %v4493_v59 = vrot.slane %v3342_v2, 5  ;;  %v5371_v19 = vcombine.low %v3985_v47, %v3995_v6  ;;  %v4014_v38 = vrot.slane %v4013_v28, 4  ;;  %v1291_v31 = vpop.f32.mrf.mxu1  ;;  %p6072_p13 = pnand %p6071_p12, %p6221_p4  ;;  %p6079_p3 = por %p6078_p2, %p6077_p1 }
 0x15c   : > { %v4018_v10 = vrot.slane %v4016_v45, 5  ;;  %v9550_v36 = vmov %v9547_v34  ;;  %v9551_v60 = vrot.slane %v7873_v7, 9  ;;  %v8607_v21 = vadd.f32 %v1693_v55, %v1289_v33  ;;  %5929 = vmatmul.mubr.msk.bf16.gmra.mxu0 %vm840_vm2, %v5424_v20  ;;  %v1709_v28 = vpop.f32.mrf.mxu0  ;;  %v9555_v45 = vld [vmem:[#allocation58_spill] sm:$0xff] }
 0x15d   : > { %v1300_v51 = vadd.f32 %v5675_v63, %v9552_v4  ;;  %v4487_v47 = vsel %vm6590_vm6, %v4485_v58, %v4486_v50  ;;  %v4028_v48 = vrot.slane %v4027_v18, 4  ;;  %v4497_v37 = vrot.slane %v7949_v43, 5  ;;  %5932 = vmatprep.mubr.msk.bf16.mxu0 %vm840_vm2, %v5425_v52  ;;  %v5678_v27 = vpop.f32.mrf.mxu1  ;;  %v9554_v52 = vld [vmem:[#allocation56_spill] sm:$0xff]  ;;  %v9556_v58 = vld [vmem:[#allocation59_spill] sm:$0xff]  ;;  %5896 = vmatprep.mubr.msk.bf16.mxu1 %vm840_vm2, %v5371_v19  ;;  %p6073_p0 = pneg %p6072_p13 }
 0x15e   : > { %v4484_v5 = vsel %vm6590_vm6, %v9551_v60, %v9550_v36  ;;  %v4009_v7 = vsel %vm6301_vm3, %v4004_v54, %v9545_v14  ;;  %v4038_v13 = vrot.slane %v4037_v30, 4  ;;  %v4042_v23 = vrot.slane %v4040_v16, 5  ;;  %v5715_v18 = vpop.f32.mrf.mxu0 }
 0x15f   : > { %v8619_v55 = vadd.f32 %v5711_v25, %v1300_v51  ;;  %v1292_v20 = vadd.f32 %v1291_v31, %v9553_v11  ;;  %v4491_v2 = vsel %vm6590_vm6, %v5407_v32, %v4490_v44  ;;  %v4494_v43 = vsel %vm6590_vm6, %v4492_v24, %v4493_v59  ;;  %v9558_v44 = vld [vmem:[#allocation46_spill] sm:$0xff]  ;;  %v1304_v54 = vpop.f32.mrf.mxu1  ;;  %p6080_p5 = pnand %p6079_p3, %p6073_p0 }
 0x160   : > { %v4019_v14 = vsel %vm6301_vm3, %v4014_v38, %v4018_v10  ;;  %v5426_v6 = vcombine.low %v4484_v5, %v4487_v47  ;;  %v4051_v34 = vor.u32 %v9555_v45, %v9554_v52  ;;  %v4061_v26 = vor.u32 %v9557_v57, %v9556_v58  ;;  %v1712_v59 = vpop.f32.mrf.mxu0  ;;  %v9565_v45 = vld [vmem:[#allocation12_spill] sm:$0xff] }
 0x161   : > { %v8634_v25 = vadd.f32 %v1696_v42, %v1292_v20  ;;  %v1313_v50 = vadd.f32 %v5678_v27, %v9558_v44  ;;  %v4033_v62 = vsel %vm6301_vm3, %v4028_v48, %v8576_v1  ;;  %v4064_v22 = vshll.u32 %v3345_v46, 16  ;;  %v9559_v42 = vld [vmem:[#allocation53_spill] sm:$0xff]  ;;  %v5679_v63 = vpop.f32.mrf.mxu1  ;;  %v9560_v1 = vld [vmem:[#allocation55_spill] sm:$0xff] }
 0x162   : > { %v4043_v30 = vsel %vm6301_vm3, %v4038_v13, %v4042_v23  ;;  %v5427_v16 = vcombine.low %v4491_v2, %v4494_v43  ;;  %v4499_v32 = vrot.slane %v4497_v37, 4  ;;  %v4500_v56 = vrot.slane %v3345_v46, 5  ;;  %v5718_v5 = vpop.f32.mrf.mxu0  ;;  %v9563_v23 = vld [vmem:[#allocation60_spill] sm:$0xff]  ;;  %v9564_v43 = vld [vmem:[#allocation29_spill] sm:$0xff] }
 0x163   : > { %v8643_v33 = vadd.f32 %v5714_v53, %v1313_v50  ;;  %v1305_v24 = vadd.f32 %v1304_v54, %v9559_v42  ;;  %v5372_v38 = vcombine.low %v4009_v7, %v4019_v14  ;;  %v4052_v19 = vrot.slane %v4051_v34, 4  ;;  %v1307_v47 = vpop.f32.mrf.mxu1  ;;  %v9561_v53 = vld [vmem:[#allocation50_spill] sm:$0xff]  ;;  %v9568_v42 = vld [vmem:[#allocation13_spill] sm:$0xff] }
 0x164   : > { %v4062_v10 = vrot.slane %v4061_v26, 4  ;;  %v1316_v60 = vadd.f32 %v5679_v63, %v9560_v1  ;;  %5933 = vmatmul.mubr.msk.bf16.gmra.mxu0 %vm840_vm2, %v5426_v6  ;;  %v5373_v4 = vcombine.low %v4033_v62, %v4043_v30  ;;  %v4066_v51 = vrot.slane %v4064_v22, 5  ;;  %v1725_v11 = vpop.f32.mrf.mxu0  ;;  %v9566_v50 = vld [vmem:[#allocation30_spill] sm:$0xff] }
 0x165   : > { %v8646_v36 = vadd.f32 %v1709_v28, %v1305_v24  ;;  %5936 = vmatprep.mubr.msk.bf16.mxu0 %vm840_vm2, %v5427_v16  ;;  %v9562_v48 = vrot.slane %v9561_v53, 9  ;;  %v4501_v7 = vsel %vm6590_vm6, %v4499_v32, %v4500_v56  ;;  %v1308_v46 = vadd.f32 %v1307_v47, %v9563_v23  ;;  %v5682_v20 = vpop.f32.mrf.mxu1  ;;  %5897 = vmatmul.mubr.msk.bf16.gmra.mxu1 %vm840_vm2, %v5372_v38 }
 0x166   : > { %v8657_v13 = vadd.f32 %v5715_v18, %v1316_v60  ;;  %v4057_v28 = vsel %vm6301_vm3, %v4052_v19, %v9556_v58  ;;  %v1329_v27 = vadd.f32 %v5682_v20, %v9564_v43  ;;  %5900 = vmatprep.mubr.msk.bf16.mxu1 %vm840_vm2, %v5373_v4  ;;  %v4067_v3 = vsel %vm6301_vm3, %v4062_v10, %v4066_v51  ;;  %v9569_v19 = vld [vmem:[#allocation11_spill] sm:$0xff] }
 0x167   : > { %v4498_v31 = vsel %vm6590_vm6, %v9562_v48, %v4497_v37  ;;  %v8664_v2 = vadd.f32 %v1712_v59, %v1308_v46  ;;  %v5719_v37 = vpop.f32.mrf.mxu0  ;;  %v1320_v6 = vpop.f32.mrf.mxu1  ;;  %v5374_v44 = vcombine.low %v4057_v28, %v4067_v3  ;;  %v9570_v43 = vld [vmem:[#allocation15_spill] sm:$0xff] }
 0x168   : > { %v5428_v14 = vcombine.low %v4498_v31, %v4501_v7  ;;  %v8670_v52 = vadd.f32 %v5718_v5, %v1329_v27  ;;  %v1321_v34 = vadd.f32 %v1320_v6, %v9565_v45 }
 0x169   : > { %v1728_v57 = vpop.f32.mrf.mxu0  ;;  %v5683_v26 = vpop.f32.mrf.mxu1 }
 0x16a   : > { %v8673_v58 = vadd.f32 %v1725_v11, %v1321_v34  ;;  %v1332_v18 = vadd.f32 %v5683_v26, %v9566_v50 }
 0x16b   : > { %v5722_v62 = vpop.f32.mrf.mxu0  ;;  %v1323_v22 = vpop.f32.mrf.mxu1 }
 0x16c   : > { %5937 = vmatmul.mubr.msk.bf16.gmra.mxu0 %vm840_vm2, %v5428_v14  ;;  %v8677_v54 = vadd.f32 %v5719_v37, %v1332_v18  ;;  %v1324_v30 = vadd.f32 %v1323_v22, %v9567_v12  ;;  %v9571_v14 = vld [vmem:[#allocation8_spill] sm:$0xff]  ;;  %v9573_v18 = vld [vmem:[#allocation17_spill] sm:$0xff] }
 0x16d   : > { %v1741_v16 = vpop.f32.mrf.mxu0  ;;  %v5686_v32 = vpop.f32.mrf.mxu1  ;;  %5901 = vmatmul.mubr.msk.bf16.gmra.mxu1 %vm840_vm2, %v5374_v44 }
 0x16e   : > { %v8681_v56 = vadd.f32 %v1728_v57, %v1324_v30  ;;  %v1345_v24 = vadd.f32 %v5686_v32, %v9568_v42  ;;  %v9572_v57 = vld [vmem:[#allocation14_spill] sm:$0xff] }
 0x16f   : > { %v5723_v59 = vpop.f32.mrf.mxu0  ;;  %v1336_v63 = vpop.f32.mrf.mxu1 }
 0x170   : > { %v8684_v38 = vadd.f32 %v5722_v62, %v1345_v24  ;;  %v1337_v10 = vadd.f32 %v1336_v63, %v9569_v19  ;;  %v9575_v63 = vld [vmem:[#allocation6_spill] sm:$0xff] }
 0x171   : > { %v1744_v1 = vpop.f32.mrf.mxu0  ;;  %v5687_v60 = vpop.f32.mrf.mxu1 }
 0x172   : > { %v8687_v5 = vadd.f32 %v1741_v16, %v1337_v10  ;;  %v1348_v4 = vadd.f32 %v5687_v60, %v8268_v8  ;;  %v9574_v16 = vld [vmem:[#allocation16_spill] sm:$0xff] }
 0x173   : > { %v5766_v51 = vpop.f32.mrf.mxu0  ;;  %v1339_v47 = vpop.f32.mrf.mxu1 }
 0x174   : > { %v8690_v53 = vadd.f32 %v5723_v59, %v1348_v4  ;;  %v1340_v48 = vadd.f32 %v1339_v47, %v8285_v61  ;;  %v9576_v4 = vld [vmem:[#allocation9_spill] sm:$0xff] }
 0x175   : > { %v2705_v31 = vpop.f32.mrf.mxu0  ;;  %v5730_v7 = vpop.f32.mrf.mxu1 }
 0x176   : > { %v8693_v23 = vadd.f32 %v1744_v1, %v1340_v48  ;;  %v2144_v46 = vadd.f32 %v5730_v7, %v8340_v49 }
 0x177   : > { %v5767_v11 = vpop.f32.mrf.mxu0  ;;  %v2015_v20 = vpop.f32.mrf.mxu1 }
 0x178   : > { %v8696_v28 = vadd.f32 %v5766_v51, %v2144_v46  ;;  %v2142_v27 = vadd.f32 %v2015_v20, %v9570_v43 }
 0x179   : > { %v2708_v37 = vpop.f32.mrf.mxu0  ;;  %v5731_v8 = vpop.f32.mrf.mxu1 }
 0x17a   : > { %v8699_v3 = vadd.f32 %v2705_v31, %v2142_v27  ;;  %v2145_v6 = vadd.f32 %v5731_v8, %v9571_v14 }
 0x17b   : > { %v5770_v45 = vpop.f32.mrf.mxu0  ;;  %v2018_v61 = vpop.f32.mrf.mxu1 }
 0x17c   : > { %v8702_v34 = vadd.f32 %v5767_v11, %v2145_v6  ;;  %v2143_v26 = vadd.f32 %v2018_v61, %v9572_v57 }
 0x17d   : > { %v2721_v44 = vpop.f32.mrf.mxu0  ;;  %v5734_v49 = vpop.f32.mrf.mxu1 }
 0x17e   : > { %v8705_v50 = vadd.f32 %v2708_v37, %v2143_v26  ;;  %v2148_v62 = vadd.f32 %v5734_v49, %v9573_v18 }
 0x17f   : > { %v5771_v22 = vpop.f32.mrf.mxu0  ;;  %v2031_v12 = vpop.f32.mrf.mxu1 }
 0x180   : > { %v8708_v30 = vadd.f32 %v5770_v45, %v2148_v62  ;;  %v2146_v32 = vadd.f32 %v2031_v12, %v9574_v16 }
 0x181   : > { %v2724_v42 = vpop.f32.mrf.mxu0  ;;  %v5735_v24 = vpop.f32.mrf.mxu1 }
 0x182   : > { %v8711_v59 = vadd.f32 %v2721_v44, %v2146_v32  ;;  %v2149_v19 = vadd.f32 %v5735_v24, %v9575_v63 }
 0x183   : > { %v5774_v10 = vpop.f32.mrf.mxu0  ;;  %v2034_v1 = vpop.f32.mrf.mxu1 }
 0x184   : > { %v8714_v60 = vadd.f32 %v5771_v22, %v2149_v19  ;;  %v2147_v51 = vadd.f32 %v2034_v1, %v9576_v4 }
 0x185   : > { %v2737_v47 = vpop.f32.mrf.mxu0  ;;  %v5738_v48 = vpop.f32.mrf.mxu1 }
 0x186   : > { %v8717_v31 = vadd.f32 %v2724_v42, %v2147_v51  ;;  %v2152_v7 = vadd.f32 %v5738_v48, %v8477_v39 }
 0x187   : > { %v5775_v46 = vpop.f32.mrf.mxu0  ;;  %v2047_v11 = vpop.f32.mrf.mxu1 }
 0x188   : > { %v8720_v20 = vadd.f32 %v5774_v10, %v2152_v7  ;;  %v2150_v43 = vadd.f32 %v2047_v11, %v8492_v17 }
 0x189   : > { %v2740_v27 = vpop.f32.mrf.mxu0  ;;  %v5739_v37 = vpop.f32.mrf.mxu1 }
 0x18a   : > { %v8723_v8 = vadd.f32 %v2737_v47, %v2150_v43  ;;  %v2153_v14 = vadd.f32 %v5739_v37, %v8520_v29 }
 0x18b   : > { %v5778_v6 = vpop.f32.mrf.mxu0  ;;  %v2050_v45 = vpop.f32.mrf.mxu1 }
 0x18c   : > { %v8726_v61 = vadd.f32 %v5775_v46, %v2153_v14  ;;  %v2151_v57 = vadd.f32 %v2050_v45, %v8531_v15 }
 0x18d   : > { %v2753_v26 = vpop.f32.mrf.mxu0  ;;  %v5742_v39 = vpop.f32.mrf.mxu1 }
 0x18e   : > { %v8729_v44 = vadd.f32 %v2740_v27, %v2151_v57  ;;  %v2156_v49 = vadd.f32 %v5742_v39, %v8550_v41 }
 0x18f   : > { %v5779_v18 = vpop.f32.mrf.mxu0  ;;  %v2063_v17 = vpop.f32.mrf.mxu1 }
 0x190   : > { %v8732_v62 = vadd.f32 %v5778_v6, %v2156_v49  ;;  %v2154_v22 = vadd.f32 %v2063_v17, %v8561_v35 }
 0x191   : > { %v2756_v12 = vpop.f32.mrf.mxu0  ;;  %v5743_v29 = vpop.f32.mrf.mxu1 }
 0x192   : > { %v8735_v16 = vadd.f32 %v2753_v26, %v2154_v22  ;;  %v2157_v32 = vadd.f32 %v5743_v29, %v8580_v9 }
 0x193   : > { %v5782_v42 = vpop.f32.mrf.mxu0  ;;  %v2066_v15 = vpop.f32.mrf.mxu1 }
 0x194   : > { %v8738_v24 = vadd.f32 %v5779_v18, %v2157_v32  ;;  %v2155_v63 = vadd.f32 %v2066_v15, %v8592_v40 }
 0x195   : > { %v2769_v19 = vpop.f32.mrf.mxu0  ;;  %v5746_v41 = vpop.f32.mrf.mxu1 }
 0x196   : > { %v8741_v10 = vadd.f32 %v2756_v12, %v2155_v63  ;;  %v2160_v1 = vadd.f32 %v5746_v41, %v8598_v0 }
 0x197   : > { %v5783_v4 = vpop.f32.mrf.mxu0  ;;  %v2079_v35 = vpop.f32.mrf.mxu1 }
 0x198   : > { %v8744_v51 = vadd.f32 %v5782_v42, %v2160_v1  ;;  %v2158_v47 = vadd.f32 %v2079_v35, %v8607_v21 }
 0x199   : > { %v2772_v48 = vpop.f32.mrf.mxu0  ;;  %v5747_v9 = vpop.f32.mrf.mxu1 }
 0x19a   : > { %v8747_v7 = vadd.f32 %v2769_v19, %v2158_v47  ;;  %v2161_v46 = vadd.f32 %v5747_v9, %v8619_v55 }
 0x19b   : > { %v5786_v11 = vpop.f32.mrf.mxu0  ;;  %v2082_v40 = vpop.f32.mrf.mxu1 }
 0x19c   : > { %v8750_v43 = vadd.f32 %v5783_v4, %v2161_v46  ;;  %v2159_v27 = vadd.f32 %v2082_v40, %v8634_v25 }
 0x19d   : > { %v2785_v37 = vpop.f32.mrf.mxu0  ;;  %v5750_v0 = vpop.f32.mrf.mxu1 }
 0x19e   : > { %9577 = vst [vmem:[#allocation7_spill] sm:$0xff] %v8750_v43  ;;  %v8753_v14 = vadd.f32 %v2772_v48, %v2159_v27  ;;  %v2164_v6 = vadd.f32 %v5750_v0, %v8643_v33 }
 0x19f   : > { %v5787_v45 = vpop.f32.mrf.mxu0  ;;  %v2095_v21 = vpop.f32.mrf.mxu1 }
 0x1a0   : > { %9578 = vst [vmem:[#allocation21_spill] sm:$0xff] %v8753_v14  ;;  %v8756_v57 = vadd.f32 %v5786_v11, %v2164_v6  ;;  %v2162_v26 = vadd.f32 %v2095_v21, %v8646_v36 }
 0x1a1   : > { %v2788_v39 = vpop.f32.mrf.mxu0  ;;  %v5751_v55 = vpop.f32.mrf.mxu1 }
 0x1a2   : > { %9579 = vst [vmem:[#allocation20_spill] sm:$0xff] %v8756_v57  ;;  %v8759_v49 = vadd.f32 %v2785_v37, %v2162_v26  ;;  %v2165_v18 = vadd.f32 %v5751_v55, %v8657_v13 }
 0x1a3   : > { %v5790_v17 = vpop.f32.mrf.mxu0  ;;  %v2098_v25 = vpop.f32.mrf.mxu1 }
 0x1a4   : > { %9580 = vst [vmem:[#allocation23_spill] sm:$0xff] %v8759_v49  ;;  %v8762_v22 = vadd.f32 %v5787_v45, %v2165_v18  ;;  %v2163_v12 = vadd.f32 %v2098_v25, %v8664_v2 }
 0x1a5   : > { %v2801_v29 = vpop.f32.mrf.mxu0  ;;  %v5754_v33 = vpop.f32.mrf.mxu1 }
 0x1a6   : > { %9581 = vst [vmem:[#allocation19_spill] sm:$0xff] %v8762_v22  ;;  %v8765_v32 = vadd.f32 %v2788_v39, %v2163_v12  ;;  %v2168_v42 = vadd.f32 %v5754_v33, %v8670_v52 }
 0x1a7   : > { %v5791_v15 = vpop.f32.mrf.mxu0  ;;  %v2111_v36 = vpop.f32.mrf.mxu1 }
 0x1a8   : > { %9582 = vst [vmem:[#allocation32_spill] sm:$0xff] %v8765_v32  ;;  %v8768_v63 = vadd.f32 %v5790_v17, %v2168_v42  ;;  %v2166_v19 = vadd.f32 %v2111_v36, %v8673_v58 }
 0x1a9   : > { %v2804_v41 = vpop.f32.mrf.mxu0  ;;  %v5755_v13 = vpop.f32.mrf.mxu1 }
 0x1aa   : > { %9583 = vst [vmem:[#allocation33_spill] sm:$0xff] %v8768_v63  ;;  %v8771_v1 = vadd.f32 %v2801_v29, %v2166_v19  ;;  %v2169_v4 = vadd.f32 %v5755_v13, %v8677_v54 }
 0x1ab   : > { %v5794_v35 = vpop.f32.mrf.mxu0  ;;  %v2114_v2 = vpop.f32.mrf.mxu1 }
 0x1ac   : > { %9584 = vst [vmem:[#allocation34_spill] sm:$0xff] %v8771_v1  ;;  %v8774_v47 = vadd.f32 %v5791_v15, %v2169_v4  ;;  %v2167_v48 = vadd.f32 %v2114_v2, %v8681_v56 }
 0x1ad   : > { %v2817_v9 = vpop.f32.mrf.mxu0  ;;  %v5758_v52 = vpop.f32.mrf.mxu1 }
 0x1ae   : > { %9585 = vst [vmem:[#allocation35_spill] sm:$0xff] %v8774_v47  ;;  %v8777_v46 = vadd.f32 %v2804_v41, %v2167_v48  ;;  %v2172_v11 = vadd.f32 %v5758_v52, %v8684_v38 }
 0x1af   : > { %v5795_v40 = vpop.f32.mrf.mxu0  ;;  %v2127_v58 = vpop.f32.mrf.mxu1 }
 0x1b0   : > { %9586 = vst [vmem:[#allocation36_spill] sm:$0xff] %v8777_v46  ;;  %v8780_v27 = vadd.f32 %v5794_v35, %v2172_v11  ;;  %v2170_v37 = vadd.f32 %v2127_v58, %v8687_v5 }
 0x1b1   : > { %v2820_v0 = vpop.f32.mrf.mxu0  ;;  %v5759_v54 = vpop.f32.mrf.mxu1 }
 0x1b2   : > { %9587 = vst [vmem:[#allocation39_spill] sm:$0xff] %v8780_v27  ;;  %v8783_v6 = vadd.f32 %v2817_v9, %v2170_v37  ;;  %v2173_v45 = vadd.f32 %v5759_v54, %v8690_v53 }
 0x1b3   : > { %v8786_v21 = vpop.f32.mrf.mxu0  ;;  %v2130_v56 = vpop.f32.mrf.mxu1 }
 0x1b4   : > { %9588 = vst [vmem:[#allocation24_spill] sm:$0xff] %v8783_v6  ;;  %v8788_v26 = vadd.f32 %v5795_v40, %v2173_v45  ;;  %v2171_v39 = vadd.f32 %v2130_v56, %v8693_v23 }
 0x1b5   : > { %v8791_v38 = vpop.f32.mrf.mxu0  ;;  %v5802_v55 = vpop.f32.mrf.mxu1 }
 0x1b6   : > { %9589 = vst [vmem:[#allocation22_spill] sm:$0xff] %v8788_v26  ;;  %v8793_v18 = vadd.f32 %v2820_v0, %v2171_v39 }
 0x1b7   : > { %v8795_v17 = vpop.f32.mrf.mxu0  ;;  %v3139_v5 = vpop.f32.mrf.mxu1 }
 0x1b8   : > { %9590 = vst [vmem:[#allocation25_spill] sm:$0xff] %v8793_v18 }
 0x1b9   : > { %v8797_v25 = vpop.f32.mrf.mxu0  ;;  %v5803_v12 = vpop.f32.mrf.mxu1 }
 0x1bb   : > { %v8799_v29 = vpop.f32.mrf.mxu0  ;;  %v8801_v53 = vpop.f32.mrf.mxu1 }
 0x1bd   : > { %v8803_v33 = vpop.f32.mrf.mxu0  ;;  %v8805_v42 = vpop.f32.mrf.mxu1 }
 0x1bf   : > { %v8807_v23 = vpop.f32.mrf.mxu0  ;;  %v8809_v15 = vpop.f32.mrf.mxu1 }
 0x1c1   : > { %v8811_v36 = vpop.f32.mrf.mxu0  ;;  %v8813_v19 = vpop.f32.mrf.mxu1 }
 0x1c3   : > { %v8815_v41 = vpop.f32.mrf.mxu0  ;;  %v8817_v13 = vpop.f32.mrf.mxu1 }
 0x1c5   : > { %v8819_v4 = vpop.f32.mrf.mxu0  ;;  %v8821_v35 = vpop.f32.mrf.mxu1 }
 0x1c7   : > { %v8823_v2 = vpop.f32.mrf.mxu0  ;;  %v8825_v48 = vpop.f32.mrf.mxu1 }
 0x1c9   : > { %v8827_v9 = vpop.f32.mrf.mxu0  ;;  %v8829_v52 = vpop.f32.mrf.mxu1 }
 0x1cb   : > { %v8831_v11 = vpop.f32.mrf.mxu0  ;;  %v8833_v40 = vpop.f32.mrf.mxu1 }
 0x1cd   : > { %v8835_v58 = vpop.f32.mrf.mxu0  ;;  %v8837_v37 = vpop.f32.mrf.mxu1 }
 0x1cf   : > { %v8839_v0 = vpop.f32.mrf.mxu0  ;;  %v8841_v54 = vpop.f32.mrf.mxu1 }
 0x1d1   : > { %v8843_v45 = vpop.f32.mrf.mxu0  ;;  %v8845_v56 = vpop.f32.mrf.mxu1 }
 0x1d3   : > { %v8847_v39 = vpop.f32.mrf.mxu0  ;;  %v8849_v18 = vpop.f32.mrf.mxu1 }
 0x1d5   : > { %v8851_v26 = vpop.f32.mrf.mxu0  ;;  %v8853_v6 = vpop.f32.mrf.mxu1 }
 0x1d6   : > { %9591 = vst [vmem:[#allocation42_spill] sm:$0xff] %v8851_v26 }
 0x1d7   : > { %v8855_v27 = vpop.f32.mrf.mxu0  ;;  %v8857_v46 = vpop.f32.mrf.mxu1 }
 0x1d8   : > { %9592 = vst [vmem:[#allocation47_spill] sm:$0xff] %v8855_v27 }
 0x1d9   : > { %v8859_v47 = vpop.f32.mrf.mxu0  ;;  %v8861_v1 = vpop.f32.mrf.mxu1 }
 0x1da   : > { %9593 = vst [vmem:[#allocation54_spill] sm:$0xff] %v8859_v47  ;;  %9594 = vst [vmem:[#allocation41_spill] sm:$0xff] %v8861_v1 }
 0x1db   : > { %v8863_v63 = vpop.f32.mrf.mxu0  ;;  %v8865_v32 = vpop.f32.mrf.mxu1 }
 0x1dc   : > { %9595 = vst [vmem:[#allocation43_spill] sm:$0xff] %v8863_v63  ;;  %9596 = vst [vmem:[#allocation44_spill] sm:$0xff] %v8865_v32 }
 0x1dd   : > { %v8867_v22 = vpop.f32.mrf.mxu0  ;;  %v8869_v49 = vpop.f32.mrf.mxu1 }
 0x1de   : > { %9597 = vst [vmem:[#allocation45_spill] sm:$0xff] %v8867_v22  ;;  %9598 = vst [vmem:[#allocation57_spill] sm:$0xff] %v8869_v49 }
 0x1df   : > { %v8871_v57 = vpop.f32.mrf.mxu0  ;;  %v8873_v14 = vpop.f32.mrf.mxu1 }
 0x1e0   : > { %9599 = vst [vmem:[#allocation28_spill] sm:$0xff] %v8871_v57  ;;  %9600 = vst [vmem:[#allocation18_spill] sm:$0xff] %v8873_v14 }
 0x1e1   : > { %v8875_v26 = vpop.f32.mrf.mxu0  ;;  %v8877_v27 = vpop.f32.mrf.mxu1 }
 0x1e2   : > { %9601 = vst [vmem:[#allocation38_spill] sm:$0xff] %v8875_v26  ;;  %9602 = vst [vmem:[#allocation27_spill] sm:$0xff] %v8877_v27 }
 0x1e3   : > { %v8879_v43 = vpop.f32.mrf.mxu0  ;;  %v8881_v47 = vpop.f32.mrf.mxu1 }
 0x1e4   : > { %9603 = vst [vmem:[#allocation48_spill] sm:$0xff] %v8879_v43  ;;  %9604 = vst [vmem:[#allocation49_spill] sm:$0xff] %v8881_v47 }
 0x1e5   : > { %v8883_v1 = vpop.f32.mrf.mxu0  ;;  %v8885_v63 = vpop.f32.mrf.mxu1 }
 0x1e6   : > { %9605 = vst [vmem:[#allocation51_spill] sm:$0xff] %v8883_v1  ;;  %9606 = vst [vmem:[#allocation52_spill] sm:$0xff] %v8885_v63 }
 0x1e7   : > { %v8887_v32 = vpop.f32.mrf.mxu0  ;;  %v8889_v22 = vpop.f32.mrf.mxu1 }
 0x1e8   : > { %9607 = vst [vmem:[#allocation31_spill] sm:$0xff] %v8887_v32  ;;  %9608 = vst [vmem:[#allocation26_spill] sm:$0xff] %v8889_v22  ;;  %v3268_v32 = vadd.f32 %v5802_v55, %v8696_v28  ;;  %v3267_v28 = vadd.f32 %v8801_v53, %v8705_v50  ;;  %v3270_v50 = vadd.f32 %v8809_v15, %v8711_v59 }
 0x1e9   : > { %v8891_v49 = vpop.f32.mrf.mxu0  ;;  %v8893_v57 = vpop.f32.mrf.mxu1 }
 0x1ea   : > { %9609 = vst [vmem:[#allocation37_spill] sm:$0xff] %v8891_v49  ;;  %9610 = vst [vmem:[#allocation40_spill] sm:$0xff] %v8893_v57  ;;  %v3266_v57 = vadd.f32 %v3139_v5, %v8699_v3  ;;  %v3272_v3 = vadd.f32 %v8805_v42, %v8708_v30  ;;  %v8926_v5 = vld [vmem:[%s9172_s4] ss:$0 sm:$0xff]  ;;  %v3656_v15 = vadd.f32 %v8803_v33, %v3270_v50 }
 0x1eb   : > { %v8895_v14 = vpop.f32.mrf.mxu0  ;;  %v8897_v26 = vpop.f32.mrf.mxu1  ;;  %v3276_v33 = vadd.f32 %v8821_v35, %v8720_v20 }
 0x1ec   : > { %9611 = vst [vmem:[#allocation56_spill] sm:$0xff] %v8895_v14  ;;  %9612 = vst [vmem:[#allocation58_spill] sm:$0xff] %v8897_v26 }
 0x1ed   : > { %v8899_v43 = vpop.f32.mrf.mxu0  ;;  %v8901_v47 = vpop.f32.mrf.mxu1 }
 0x1ee   : > { %9613 = vst [vmem:[#allocation59_spill] sm:$0xff] %v8899_v43  ;;  %9614 = vst [vmem:[#allocation10_spill] sm:$0xff] %v8901_v47  ;;  %v3654_v43 = vadd.f32 %v8786_v21, %v3268_v32  ;;  %v3269_v47 = vadd.f32 %v5803_v12, %v8702_v34 }
 0x1ef   : > { %v8903_v1 = vpop.f32.mrf.mxu0  ;;  %v8905_v63 = vpop.f32.mrf.mxu1 }
 0x1f0   : > { %9615 = vst [vmem:[#allocation46_spill] sm:$0xff] %v8903_v1  ;;  %9616 = vst [vmem:[#allocation53_spill] sm:$0xff] %v8905_v63  ;;  %v3652_v63 = vadd.f32 %v8791_v38, %v3266_v57  ;;  %v3655_v34 = vadd.f32 %v8795_v17, %v3269_v47  ;;  %v3273_v47 = vadd.f32 %v8813_v19, %v8714_v60 }
 0x1f1   : > { %v8908_v22 = vpop.f32.mrf.mxu0  ;;  %v8910_v49 = vpop.f32.mrf.mxu1 }
 0x1f2   : > { %9617 = vst [vmem:[#allocation55_spill] sm:$0xff] %v8908_v22 }
 0x1f3   : > { %v5910_v14 = vpop.f32.mrf.mxu0  ;;  %v8913_v27 = vpop.f32.mrf.mxu1 }
 0x1f4   : > { %9618 = vst [vmem:[#allocation50_spill] sm:$0xff] %v8913_v27  ;;  %v3658_v27 = vadd.f32 %v8799_v29, %v3272_v3  ;;  %v3659_v3 = vadd.f32 %v8807_v23, %v3273_v47 }
 0x1f5   : > { %v4649_v26 = vpop.f32.mrf.mxu0  ;;  %v5874_v1 = vpop.f32.mrf.mxu1 }
 0x1f6   : > { %v4344_v55 = vadd.f32 %v5874_v1, %v3654_v43  ;;  %v3653_v1 = vadd.f32 %v8797_v25, %v3267_v28  ;;  %v3271_v25 = vadd.f32 %v8817_v13, %v8717_v31 }
 0x1f7   : > { %v5911_v22 = vpop.f32.mrf.mxu0  ;;  %v4215_v32 = vpop.f32.mrf.mxu1 }
 0x1f8   : > { %v4778_v21 = vadd.f32 %v5910_v14, %v4344_v55  ;;  %v4342_v57 = vadd.f32 %v4215_v32, %v3652_v63 }
 0x1f9   : > { %v4652_v38 = vpop.f32.mrf.mxu0  ;;  %v5875_v43 = vpop.f32.mrf.mxu1 }
 0x1fa   : > { %v4817_v30 = vadd.f32 %v8926_v5, %v4778_v21  ;;  %v4776_v12 = vadd.f32 %v4649_v26, %v4342_v57  ;;  %v4345_v53 = vadd.f32 %v5875_v43, %v3655_v34  ;;  %v3657_v43 = vadd.f32 %v8811_v36, %v3271_v25 }
 0x1fb   : > { %v5914_v42 = vpop.f32.mrf.mxu0  ;;  %v4218_v17 = vpop.f32.mrf.mxu1  ;;  %v3280_v25 = vadd.f32 %v8837_v37, %v8732_v62 }
 0x1fc   : > { %v4849_v14 = vmax.f32 %v4817_v30, 0.0  ;;  %v4815_v63 = vadd.f32 %v8926_v5, %v4776_v12  ;;  %v4779_v55 = vadd.f32 %v5911_v22, %v4345_v53  ;;  %v4343_v32 = vadd.f32 %v4218_v17, %v3653_v1 }
 0x1fd   : > { %v4665_v59 = vpop.f32.mrf.mxu0  ;;  %v5878_v26 = vpop.f32.mrf.mxu1  ;;  %v3662_v12 = vadd.f32 %v8815_v41, %v3276_v33  ;;  %v3277_v53 = vadd.f32 %v8829_v52, %v8726_v61 }
 0x1fe   : > { %4881 = vst.msk [vmem:[%s8942_s15 + $0x10] sm:$0xff] %vm840_vm2, %v4849_v14  ;;  %v4847_v60 = vmax.f32 %v4815_v63, 0.0  ;;  %v4818_v29 = vadd.f32 %v8926_v5, %v4779_v55  ;;  %v4777_v19 = vadd.f32 %v4652_v38, %v4343_v32  ;;  %v4348_v22 = vadd.f32 %v5878_v26, %v3658_v27 }
 0x1ff   : > { %v5915_v28 = vpop.f32.mrf.mxu0  ;;  %v4231_v31 = vpop.f32.mrf.mxu1  ;;  %v3274_v27 = vadd.f32 %v8825_v48, %v8723_v8  ;;  %v3275_v63 = vadd.f32 %v8833_v40, %v8729_v44 }
 0x200   : > { %4879 = vst.msk [vmem:[%s8942_s15] sm:$0xff] %vm840_vm2, %v4847_v60  ;;  %v4850_v13 = vmax.f32 %v4818_v29, 0.0  ;;  %v4816_v34 = vadd.f32 %v8926_v5, %v4777_v19  ;;  %v4782_v21 = vadd.f32 %v5914_v42, %v4348_v22  ;;  %v4346_v57 = vadd.f32 %v4231_v31, %v3656_v15 }
 0x201   : > { %v4668_v50 = vpop.f32.mrf.mxu0  ;;  %v5879_v38 = vpop.f32.mrf.mxu1  ;;  %v3660_v14 = vadd.f32 %v8819_v4, %v3274_v27  ;;  %v3663_v15 = vadd.f32 %v8823_v2, %v3277_v53  ;;  %v3661_v19 = vadd.f32 %v8827_v9, %v3275_v63  ;;  %v3278_v22 = vadd.f32 %v8841_v54, %v8735_v16 }
 0x202   : > { %4882 = vst.msk [vmem:[%s8942_s15 + $0x18] sm:$0xff] %vm840_vm2, %v4850_v13  ;;  %v4848_v23 = vmax.f32 %v4816_v34, 0.0  ;;  %v4821_v20 = vadd.f32 %v8926_v5, %v4782_v21  ;;  %v4780_v35 = vadd.f32 %v4665_v59, %v4346_v57  ;;  %v4349_v1 = vadd.f32 %v5879_v38, %v3659_v3 }
 0x203   : > { %v5918_v30 = vpop.f32.mrf.mxu0  ;;  %v4234_v42 = vpop.f32.mrf.mxu1  ;;  %v3666_v31 = vadd.f32 %v8831_v11, %v3280_v25  ;;  %v3281_v13 = vadd.f32 %v8845_v56, %v8738_v24 }
 0x204   : > { %4880 = vst.msk [vmem:[%s8942_s15 + $0x8] sm:$0xff] %vm840_vm2, %v4848_v23  ;;  %v4853_v36 = vmax.f32 %v4821_v20, 0.0  ;;  %v4819_v8 = vadd.f32 %v8926_v5, %v4780_v35  ;;  %v4783_v48 = vadd.f32 %v5915_v28, %v4349_v1  ;;  %v4347_v47 = vadd.f32 %v4234_v42, %v3657_v43 }
 0x205   : > { %v4681_v17 = vpop.f32.mrf.mxu0  ;;  %v5882_v55 = vpop.f32.mrf.mxu1  ;;  %v3279_v43 = vadd.f32 %v8849_v18, %v8741_v10  ;;  %v3667_v20 = vadd.f32 %v8839_v0, %v3281_v13  ;;  %v3284_v35 = vadd.f32 %v8853_v6, %v8744_v51  ;;  %v3282_v42 = vadd.f32 %v8857_v46, %v8747_v7 }
 0x206   : > { %4885 = vst.msk [vmem:[%s8942_s15 + $0x30] sm:$0xff] %vm840_vm2, %v4853_v36  ;;  %v4851_v41 = vmax.f32 %v4819_v8, 0.0  ;;  %v4822_v61 = vadd.f32 %v8926_v5, %v4783_v48  ;;  %v4781_v52 = vadd.f32 %v4668_v50, %v4347_v47  ;;  %v4352_v32 = vadd.f32 %v5882_v55, %v3662_v12 }
 0x207   : > { %v5919_v59 = vpop.f32.mrf.mxu0  ;;  %v4247_v26 = vpop.f32.mrf.mxu1  ;;  %v3664_v50 = vadd.f32 %v8835_v58, %v3278_v22  ;;  %v3665_v53 = vadd.f32 %v8843_v45, %v3279_v43  ;;  %v3670_v47 = vadd.f32 %v8847_v39, %v3284_v35  ;;  %v9625_v22 = vld [vmem:[#allocation20_spill] sm:$0xff] }
 0x208   : > { %4883 = vst.msk [vmem:[%s8942_s15 + $0x20] sm:$0xff] %vm840_vm2, %v4851_v41  ;;  %v4854_v4 = vmax.f32 %v4822_v61, 0.0  ;;  %v4820_v44 = vadd.f32 %v8926_v5, %v4781_v52  ;;  %v4786_v40 = vadd.f32 %v5918_v30, %v4352_v32  ;;  %v4350_v60 = vadd.f32 %v4247_v26, %v3660_v14  ;;  %v9620_v14 = vld [vmem:[#allocation41_spill] sm:$0xff]  ;;  %v9621_v52 = vld [vmem:[#allocation42_spill] sm:$0xff] }
 0x209   : > { %v4684_v29 = vpop.f32.mrf.mxu0  ;;  %v5883_v28 = vpop.f32.mrf.mxu1  ;;  %v3668_v32 = vadd.f32 %v9621_v52, %v3282_v42 }
 0x20a   : > { %4886 = vst.msk [vmem:[%s8942_s15 + $0x38] sm:$0xff] %vm840_vm2, %v4854_v4  ;;  %v4852_v2 = vmax.f32 %v4820_v44, 0.0  ;;  %v4825_v62 = vadd.f32 %v8926_v5, %v4786_v40  ;;  %v4784_v37 = vadd.f32 %v4681_v17, %v4350_v60  ;;  %v4353_v3 = vadd.f32 %v5883_v28, %v3663_v15  ;;  %v9619_v17 = vld [vmem:[#allocation7_spill] sm:$0xff]  ;;  %v9623_v15 = vld [vmem:[#allocation44_spill] sm:$0xff]  ;;  %v9626_v28 = vld [vmem:[#allocation57_spill] sm:$0xff] }
 0x20b   : > { %v4250_v34 = vpop.f32.mrf.mxu1  ;;  %v3285_v63 = vadd.f32 %v9620_v14, %v9619_v17 }
 0x20c   : > { %v5922_v33 = vpop.f32.mrf.mxu0  ;;  %4884 = vst.msk [vmem:[%s8942_s15 + $0x28] sm:$0xff] %vm840_vm2, %v4852_v2  ;;  %v4857_v9 = vmax.f32 %v4825_v62, 0.0  ;;  %v4823_v16 = vadd.f32 %v8926_v5, %v4784_v37  ;;  %v4787_v54 = vadd.f32 %v5919_v59, %v4353_v3  ;;  %v4351_v21 = vadd.f32 %v4250_v34, %v3661_v19  ;;  %v9622_v59 = vld [vmem:[#allocation21_spill] sm:$0xff]  ;;  %v9627_v34 = vld [vmem:[#allocation54_spill] sm:$0xff] }
 0x20d   : > { %v5886_v27 = vpop.f32.mrf.mxu1  ;;  %v3283_v25 = vadd.f32 %v9623_v15, %v9622_v59  ;;  %v3288_v2 = vadd.f32 %v9626_v28, %v9625_v22 }
 0x20e   : > { %v4697_v57 = vpop.f32.mrf.mxu0  ;;  %4889 = vst.msk [vmem:[%s8942_s15 + $0x50] sm:$0xff] %vm840_vm2, %v4857_v9  ;;  %v4855_v11 = vmax.f32 %v4823_v16, 0.0  ;;  %v4826_v24 = vadd.f32 %v8926_v5, %v4787_v54  ;;  %v4785_v56 = vadd.f32 %v4684_v29, %v4351_v21  ;;  %v4356_v38 = vadd.f32 %v5886_v27, %v3666_v31  ;;  %v9624_v29 = vld [vmem:[#allocation47_spill] sm:$0xff]  ;;  %v9629_v54 = vld [vmem:[#allocation18_spill] sm:$0xff] }
 0x20f   : > { %v4263_v1 = vpop.f32.mrf.mxu1  ;;  %v3671_v19 = vadd.f32 %v9624_v29, %v3285_v63  ;;  %v3669_v9 = vadd.f32 %v9627_v34, %v3283_v25  ;;  %v9628_v16 = vld [vmem:[#allocation23_spill] sm:$0xff]  ;;  %v9636_v63 = vld [vmem:[#allocation28_spill] sm:$0xff]  ;;  %v9639_v25 = vld [vmem:[#allocation38_spill] sm:$0xff] }
 0x210   : > { %v5923_v23 = vpop.f32.mrf.mxu0  ;;  %4887 = vst.msk [vmem:[%s8942_s15 + $0x40] sm:$0xff] %vm840_vm2, %v4855_v11  ;;  %v4858_v58 = vmax.f32 %v4826_v24, 0.0  ;;  %v4824_v10 = vadd.f32 %v8926_v5, %v4785_v56  ;;  %v4790_v18 = vadd.f32 %v5922_v33, %v4356_v38  ;;  %v4354_v30 = vadd.f32 %v4263_v1, %v3664_v50  ;;  %v9630_v56 = vld [vmem:[#allocation43_spill] sm:$0xff] }
 0x211   : > { %v5887_v36 = vpop.f32.mrf.mxu1  ;;  %v3286_v21 = vadd.f32 %v9629_v54, %v9628_v16  ;;  %v3674_v38 = vadd.f32 %v9630_v56, %v3288_v2  ;;  %v9642_v2 = vld [vmem:[#allocation48_spill] sm:$0xff] }
 0x212   : > { %v4700_v12 = vpop.f32.mrf.mxu0  ;;  %4890 = vst.msk [vmem:[%s8942_s15 + $0x58] sm:$0xff] %vm840_vm2, %v4858_v58  ;;  %v4856_v0 = vmax.f32 %v4824_v10, 0.0  ;;  %v4829_v51 = vadd.f32 %v8926_v5, %v4790_v18  ;;  %v4788_v6 = vadd.f32 %v4697_v57, %v4354_v30  ;;  %v4357_v8 = vadd.f32 %v5887_v36, %v3667_v20  ;;  %v9632_v20 = vld [vmem:[#allocation27_spill] sm:$0xff]  ;;  %v9634_v36 = vld [vmem:[#allocation32_spill] sm:$0xff] }
 0x213   : > { %v4266_v55 = vpop.f32.mrf.mxu1 }
 0x214   : > { %v5926_v48 = vpop.f32.mrf.mxu0  ;;  %4888 = vst.msk [vmem:[%s8942_s15 + $0x48] sm:$0xff] %vm840_vm2, %v4856_v0  ;;  %v4861_v45 = vmax.f32 %v4829_v51, 0.0  ;;  %v4827_v7 = vadd.f32 %v8926_v5, %v4788_v6  ;;  %v4791_v46 = vadd.f32 %v5923_v23, %v4357_v8  ;;  %v4355_v41 = vadd.f32 %v4266_v55, %v3665_v53  ;;  %v9631_v23 = vld [vmem:[#allocation19_spill] sm:$0xff]  ;;  %v9633_v53 = vld [vmem:[#allocation45_spill] sm:$0xff] }
 0x215   : > { %v5890_v26 = vpop.f32.mrf.mxu1  ;;  %v3289_v35 = vadd.f32 %v9632_v20, %v9631_v23  ;;  %v3672_v42 = vadd.f32 %v9633_v53, %v3286_v21  ;;  %v9635_v0 = vld [vmem:[#allocation49_spill] sm:$0xff]  ;;  %v9645_v21 = vld [vmem:[#allocation51_spill] sm:$0xff] }
 0x216   : > { %v4713_v61 = vpop.f32.mrf.mxu0  ;;  %4893 = vst.msk [vmem:[%s8942_s15 + $0x70] sm:$0xff] %vm840_vm2, %v4861_v45  ;;  %v4859_v39 = vmax.f32 %v4827_v7, 0.0  ;;  %v4830_v4 = vadd.f32 %v8926_v5, %v4791_v46  ;;  %v4789_v44 = vadd.f32 %v4700_v12, %v4355_v41  ;;  %v4360_v40 = vadd.f32 %v5890_v26, %v3670_v47  ;;  %v9637_v45 = vld [vmem:[#allocation33_spill] sm:$0xff]  ;;  %v9638_v7 = vld [vmem:[#allocation52_spill] sm:$0xff] }
 0x217   : > { %v4279_v62 = vpop.f32.mrf.mxu1  ;;  %v3287_v51 = vadd.f32 %v9635_v0, %v9634_v36  ;;  %v3675_v55 = vadd.f32 %v9636_v63, %v3289_v35  ;;  %v3292_v46 = vadd.f32 %v9638_v7, %v9637_v45  ;;  %v9648_v35 = vld [vmem:[#allocation31_spill] sm:$0xff] }
 0x218   : > { %v5927_v60 = vpop.f32.mrf.mxu0  ;;  %4891 = vst.msk [vmem:[%s8942_s15 + $0x60] sm:$0xff] %vm840_vm2, %v4859_v39  ;;  %v4862_v37 = vmax.f32 %v4830_v4, 0.0  ;;  %v4828_v3 = vadd.f32 %v8926_v5, %v4789_v44  ;;  %v4794_v33 = vadd.f32 %v5926_v48, %v4360_v40  ;;  %v4358_v31 = vadd.f32 %v4279_v62, %v3668_v32  ;;  %v9640_v39 = vld [vmem:[#allocation34_spill] sm:$0xff] }
 0x219   : > { %v5891_v57 = vpop.f32.mrf.mxu1  ;;  %v3673_v26 = vadd.f32 %v9639_v25, %v3287_v51  ;;  %v9641_v4 = vld [vmem:[#allocation26_spill] sm:$0xff]  ;;  %v3678_v62 = vadd.f32 %v9642_v2, %v3292_v46  ;;  %v9651_v51 = vld [vmem:[#allocation37_spill] sm:$0xff]  ;;  %v9654_v46 = vld [vmem:[#allocation56_spill] sm:$0xff] }
 0x21a   : > { %v4716_v13 = vpop.f32.mrf.mxu0  ;;  %4894 = vst.msk [vmem:[%s8942_s15 + $0x78] sm:$0xff] %vm840_vm2, %v4862_v37  ;;  %v4860_v50 = vmax.f32 %v4828_v3, 0.0  ;;  %v4833_v43 = vadd.f32 %v8926_v5, %v4794_v33  ;;  %v4792_v27 = vadd.f32 %v4713_v61, %v4358_v31  ;;  %v4361_v11 = vadd.f32 %v5891_v57, %v3671_v19  ;;  %v9643_v37 = vld [vmem:[#allocation35_spill] sm:$0xff]  ;;  %v9644_v3 = vld [vmem:[#allocation40_spill] sm:$0xff] }
 0x21b   : > { %v4282_v1 = vpop.f32.mrf.mxu1  ;;  %v3290_v44 = vadd.f32 %v9641_v4, %v9640_v39  ;;  %v3293_v33 = vadd.f32 %v9644_v3, %v9643_v37  ;;  %v9656_v39 = vld [vmem:[#allocation59_spill] sm:$0xff] }
 0x21c   : > { %v5930_v24 = vpop.f32.mrf.mxu0  ;;  %4892 = vst.msk [vmem:[%s8942_s15 + $0x68] sm:$0xff] %vm840_vm2, %v4860_v50  ;;  %v4865_v58 = vmax.f32 %v4833_v43, 0.0  ;;  %v4831_v10 = vadd.f32 %v8926_v5, %v4792_v27  ;;  %v4795_v18 = vadd.f32 %v5927_v60, %v4361_v11  ;;  %v4359_v30 = vadd.f32 %v4282_v1, %v3669_v9  ;;  %v9646_v50 = vld [vmem:[#allocation36_spill] sm:$0xff]  ;;  %v9647_v43 = vld [vmem:[#allocation58_spill] sm:$0xff] }
 0x21d   : > { %v5894_v6 = vpop.f32.mrf.mxu1  ;;  %v3676_v57 = vadd.f32 %v9645_v21, %v3290_v44  ;;  %v3291_v27 = vadd.f32 %v9647_v43, %v9646_v50  ;;  %v3679_v1 = vadd.f32 %v9648_v35, %v3293_v33  ;;  %v9657_v44 = vld [vmem:[#allocation25_spill] sm:$0xff] }
 0x21e   : > { %v4729_v12 = vpop.f32.mrf.mxu0  ;;  %4897 = vst.msk [vmem:[%s8942_s15 + $0x90] sm:$0xff] %vm840_vm2, %v4865_v58  ;;  %v4863_v8 = vmax.f32 %v4831_v10, 0.0  ;;  %v4834_v48 = vadd.f32 %v8926_v5, %v4795_v18  ;;  %v4793_v47 = vadd.f32 %v4716_v13, %v4359_v30  ;;  %v4364_v17 = vadd.f32 %v5894_v6, %v3674_v38  ;;  %v9649_v58 = vld [vmem:[#allocation39_spill] sm:$0xff]  ;;  %v9650_v10 = vld [vmem:[#allocation10_spill] sm:$0xff] }
 0x21f   : > { %v4295_v41 = vpop.f32.mrf.mxu1  ;;  %v3296_v18 = vadd.f32 %v9650_v10, %v9649_v58  ;;  %v3677_v6 = vadd.f32 %v9651_v51, %v3291_v27 }
 0x220   : > { %v5931_v14 = vpop.f32.mrf.mxu0  ;;  %4895 = vst.msk [vmem:[%s8942_s15 + $0x80] sm:$0xff] %vm840_vm2, %v4863_v8  ;;  %v4866_v61 = vmax.f32 %v4834_v48, 0.0  ;;  %v4832_v52 = vadd.f32 %v8926_v5, %v4793_v47  ;;  %v4798_v32 = vadd.f32 %v5930_v24, %v4364_v17  ;;  %v4362_v59 = vadd.f32 %v4295_v41, %v3672_v42  ;;  %v9652_v8 = vld [vmem:[#allocation24_spill] sm:$0xff]  ;;  %v9653_v48 = vld [vmem:[#allocation53_spill] sm:$0xff] }
 0x221   : > { %v5895_v40 = vpop.f32.mrf.mxu1  ;;  %v3294_v47 = vadd.f32 %v9653_v48, %v9652_v8  ;;  %v3682_v41 = vadd.f32 %v9654_v46, %v3296_v18 }
 0x222   : > { %v4732_v15 = vpop.f32.mrf.mxu0  ;;  %4898 = vst.msk [vmem:[%s8942_s15 + $0x98] sm:$0xff] %vm840_vm2, %v4866_v61  ;;  %v4864_v60 = vmax.f32 %v4832_v52, 0.0  ;;  %v4837_v29 = vadd.f32 %v8926_v5, %v4798_v32  ;;  %v4796_v19 = vadd.f32 %v4729_v12, %v4362_v59  ;;  %v4365_v22 = vadd.f32 %v5895_v40, %v3675_v55  ;;  %v9655_v61 = vld [vmem:[#allocation22_spill] sm:$0xff] }
 0x223   : > { %v4298_v31 = vpop.f32.mrf.mxu1  ;;  %v3297_v52 = vadd.f32 %v8910_v49, %v9655_v61  ;;  %v3680_v4 = vadd.f32 %v9656_v39, %v3294_v47  ;;  %v9658_v40 = vld [vmem:[#allocation50_spill] sm:$0xff] }
 0x224   : > { %v5934_v28 = vpop.f32.mrf.mxu0  ;;  %4896 = vst.msk [vmem:[%s8942_s15 + $0x88] sm:$0xff] %vm840_vm2, %v4864_v60  ;;  %v4869_v13 = vmax.f32 %v4837_v29, 0.0  ;;  %v4835_v34 = vadd.f32 %v8926_v5, %v4796_v19  ;;  %v4799_v9 = vadd.f32 %v5931_v14, %v4365_v22  ;;  %v4363_v16 = vadd.f32 %v4298_v31, %v3673_v26 }
 0x225   : > { %v5898_v11 = vpop.f32.mrf.mxu1  ;;  %v3295_v60 = vadd.f32 %v9658_v40, %v9657_v44 }
 0x226   : > { %v4745_v54 = vpop.f32.mrf.mxu0  ;;  %4901 = vst.msk [vmem:[%s8942_s15 + $0xb0] sm:$0xff] %vm840_vm2, %v4869_v13  ;;  %v4867_v24 = vmax.f32 %v4835_v34, 0.0  ;;  %v4838_v56 = vadd.f32 %v8926_v5, %v4799_v9  ;;  %v4797_v38 = vadd.f32 %v4732_v15, %v4363_v16  ;;  %v4368_v23 = vadd.f32 %v5898_v11, %v3678_v62  ;;  %v9659_v62 = vld [vmem:[#allocation46_spill] sm:$0xff]  ;;  %v9660_v9 = vld [vmem:[#allocation55_spill] sm:$0xff] }
 0x227   : > { %v4311_v30 = vpop.f32.mrf.mxu1  ;;  %v3683_v37 = vadd.f32 %v9659_v62, %v3297_v52  ;;  %v3681_v16 = vadd.f32 %v9660_v9, %v3295_v60 }
 0x228   : > { %v5935_v20 = vpop.f32.mrf.mxu0  ;;  %4899 = vst.msk [vmem:[%s8942_s15 + $0xa0] sm:$0xff] %vm840_vm2, %v4867_v24  ;;  %v4870_v12 = vmax.f32 %v4838_v56, 0.0  ;;  %v4836_v53 = vadd.f32 %v8926_v5, %v4797_v38  ;;  %v4802_v42 = vadd.f32 %v5934_v28, %v4368_v23  ;;  %v4366_v36 = vadd.f32 %v4311_v30, %v3676_v57 }
 0x229   : > { %v5899_v17 = vpop.f32.mrf.mxu1 }
 0x22a   : > { %v4748_v0 = vpop.f32.mrf.mxu0  ;;  %4902 = vst.msk [vmem:[%s8942_s15 + $0xb8] sm:$0xff] %vm840_vm2, %v4870_v12  ;;  %v4868_v14 = vmax.f32 %v4836_v53, 0.0  ;;  %v4841_v63 = vadd.f32 %v8926_v5, %v4802_v42  ;;  %v4800_v55 = vadd.f32 %v4745_v54, %v4366_v36  ;;  %v4369_v45 = vadd.f32 %v5899_v17, %v3679_v1 }
 0x22b   : > { %v4314_v32 = vpop.f32.mrf.mxu1 }
 0x22c   : > { %v5938_v7 = vpop.f32.mrf.mxu0  ;;  %4900 = vst.msk [vmem:[%s8942_s15 + $0xa8] sm:$0xff] %vm840_vm2, %v4868_v14  ;;  %v4873_v59 = vmax.f32 %v4841_v63, 0.0  ;;  %v4839_v15 = vadd.f32 %v8926_v5, %v4800_v55  ;;  %v4803_v25 = vadd.f32 %v5935_v20, %v4369_v45  ;;  %v4367_v26 = vadd.f32 %v4314_v32, %v3677_v6 }
 0x22d   : > { %v5902_v29 = vpop.f32.mrf.mxu1 }
 0x22e   : > { %v4761_v19 = vpop.f32.mrf.mxu0  ;;  %4905 = vst.msk [vmem:[%s8942_s15 + $0xd0] sm:$0xff] %vm840_vm2, %v4873_v59  ;;  %v4871_v49 = vmax.f32 %v4839_v15, 0.0  ;;  %v4842_v22 = vadd.f32 %v8926_v5, %v4803_v25  ;;  %v4801_v28 = vadd.f32 %v4748_v0, %v4367_v26  ;;  %v4372_v2 = vadd.f32 %v5902_v29, %v3682_v41 }
 0x22f   : > { %v4327_v3 = vpop.f32.mrf.mxu1 }
 0x230   : > { %4903 = vst.msk [vmem:[%s8942_s15 + $0xc0] sm:$0xff] %vm840_vm2, %v4871_v49  ;;  %v4874_v33 = vmax.f32 %v4842_v22, 0.0  ;;  %v4840_v31 = vadd.f32 %v8926_v5, %v4801_v28  ;;  %v4806_v13 = vadd.f32 %v5938_v7, %v4372_v2  ;;  %v4370_v34 = vadd.f32 %v4327_v3, %v3680_v4  ;;  %v5939_v21 = vpop.f32.mrf.mxu0 }
 0x231   : > { %v5903_v54 = vpop.f32.mrf.mxu1 }
 0x232   : > { %4906 = vst.msk [vmem:[%s8942_s15 + $0xd8] sm:$0xff] %vm840_vm2, %v4874_v33  ;;  %v4872_v57 = vmax.f32 %v4840_v31, 0.0  ;;  %v4845_v50 = vadd.f32 %v8926_v5, %v4806_v13  ;;  %v4804_v43 = vadd.f32 %v4761_v19, %v4370_v34  ;;  %v4373_v27 = vadd.f32 %v5903_v54, %v3683_v37  ;;  %v4764_v20 = vpop.f32.mrf.mxu0 }
 0x233   : > { %v4330_v11 = vpop.f32.mrf.mxu1 }
 0x234   : > { %4904 = vst.msk [vmem:[%s8942_s15 + $0xc8] sm:$0xff] %vm840_vm2, %v4872_v57  ;;  %v4877_v24 = vmax.f32 %v4845_v50, 0.0  ;;  %v4843_v56 = vadd.f32 %v8926_v5, %v4804_v43  ;;  %v4807_v38 = vadd.f32 %v5939_v21, %v4373_v27  ;;  %v4371_v23 = vadd.f32 %v4330_v11, %v3681_v16 }
 0x236   : > { %4909 = vst.msk [vmem:[%s8942_s15 + $0xf0] sm:$0xff] %vm840_vm2, %v4877_v24  ;;  %v4875_v35 = vmax.f32 %v4843_v56, 0.0  ;;  %v4846_v1 = vadd.f32 %v8926_v5, %v4807_v38  ;;  %v4805_v58 = vadd.f32 %v4764_v20, %v4371_v23 }
 0x238   : > { %4907 = vst.msk [vmem:[%s8942_s15 + $0xe0] sm:$0xff] %vm840_vm2, %v4875_v35  ;;  %v4878_v10 = vmax.f32 %v4846_v1, 0.0  ;;  %v4844_v18 = vadd.f32 %v8926_v5, %v4805_v58 }
 0x23a   : > { %4910 = vst.msk [vmem:[%s8942_s15 + $0xf8] sm:$0xff] %vm840_vm2, %v4878_v10  ;;  %v4876_v30 = vmax.f32 %v4844_v18, 0.0 }
 0x23c   : > { %4908 = vst.msk [vmem:[%s8942_s15 + $0xe8] sm:$0xff] %vm840_vm2, %v4876_v30 }
 0x23d   : > { %6083 = shalt.err (!%p6080_p5)
}
 0x23e   : > { %s6084_s10 = scalar_lea.hbm %s9113_s29, 4096  ;;  %s6088_s12 = scalar_lea.hbm %s9173_s5, 8192 }
 0x23f   : > { %p6085_p6 = scmp.ne.s32.totalorder %s9113_s29, %s6084_s10  ;;  %p6089_p10 = scmp.lt.s32.totalorder %s9113_s29, %s9173_s5 }
 0x240   : > { %p6090_p11 = scmp.lt.s32.totalorder %s6088_s12, %s6084_s10 }
 0x241   : > { %p6086_p7 = pnand %p6085_p6, %p6221_p4 }
 0x242   : > { %p6091_p12 = por %p6090_p11, %p6089_p10 }
 0x243   : > { %p6087_p9 = pneg %p6086_p7 }
 0x245   : > { %p6092_p13 = pnand %p6091_p12, %p6087_p9 }
 0x247   : > { %6095 = shalt.err (!%p6092_p13)
}
 0x248   : > { %s6149_s16 = smov 128   ;;  %s6150_s24 = smov 8  }
 0x249   : > { %5945 = dma.vmem_to_hbm [thread:$0]  (%p6221_p4), %s9115_s17, 4096, %s9113_s29, %s9123_s21, %s6149_s16, %s6149_s16, %s6150_s24  }
 0x24a PF: > { %p5951_p0 = scmp.ge.s32.totalorder %s6146_s23, 2  ;;  %s4943_s27 = sand.u32 1, %s6126_s18  }
 0x24b   : > { %s4944_s7 = scalar_lea.sflag [#allocation3], %s4943_s27 }
 0x24c   : > { %p5948_p1 = pnand %p5951_p0, %p6228_p8 }
 0x24e   : > { %p5949_p2 = pneg %p5948_p1 }
 0x250   : > { %6121 = dma.done.wait (%p5949_p2), %s4944_s7, 4096  }
 0x251   : > { %6123 = vsyncadd (%p5949_p2), %s4944_s7, 4294963200  ;;  %s18_s23 = sadd.s32 1, %s6146_s23   ;;  %s9661_s18 = smov %s6130_s19 }
 0x252   : > { %p15_p3 = scmp.ge.s32.totalorder %s18_s23, 4   ;;  %s9662_s19 = smov %s6134_s20 }
 0x253   : > { %s9663_s20 = smov %s6234_s6  ;;  %s9664_s21 = smov %s6142_s22 }
 0x254   : > { %s9665_s22 = smov %s9667_s26  ;;  %17 = sbr.rel (!%p15_p3) target bundleno = 4 (0x4), region = 89 }
 0x259   :  { %4949 = vsyncpa [#allocation3], 1 }
 0x25a   :  { %4951 = vsyncpa [#allocation3 + $0x1], 1 }

</bundles_post_ra>
